<compile_context>
chip_gen: v5e
topology: v5e:2x2
jax: 0.10.0
libtpu: 0.0.40
codegen_flags: <defaults>
</compile_context>

<pallas_src>
import functools
import math

import numpy as np
import jax
import jax.numpy as jnp
from jax import lax
from jax.experimental import pallas as pl
from jax.experimental.pallas import tpu as pltpu


# ------------------------------- fused kernel ------------------------------- #

def _k2k_kernel(x_ref, mats_ref, aux_ref, out_ref, *,
                B, J, S, E, H, Dh, Hid, lat, enc_depth, dec_depth,
                enc_din, out_w, off):
    f32 = jnp.float32
    bf16 = jnp.bfloat16
    N = B * S
    HN = H * N
    scale = 1.0 / math.sqrt(Dh)

    # --- slab accessors (static offsets baked in at trace time) ---
    def vrow(key, width):                       # (1, width) f32 vector row
        r = off[key]
        return aux_ref[r:r + 1, 0:width]

    def vblk(key, rows, width):                 # (rows, width) f32 block
        r = off[key]
        return aux_ref[r:r + rows, 0:width]

    def wmat(key, rows, width):                 # (rows, width) bf16 weight
        r = off[key]
        return mats_ref[r:r + rows, 0:width]

    def dot_bf(a, w):                           # bf16 MXU matmul, f32 accumulate
        return jnp.dot(a.astype(bf16), w.astype(bf16), preferred_element_type=f32)

    def layernorm(h, gkey, bkey):
        mu = jnp.mean(h, axis=-1, keepdims=True)
        var = jnp.mean(jnp.square(h - mu), axis=-1, keepdims=True)
        return (h - mu) * lax.rsqrt(var + 1e-5) * vrow(gkey, E) + vrow(bkey, E)

    def gelu(h):                                # exact erf GELU (torch nn.GELU default)
        return 0.5 * h * (1.0 + lax.erf(h * (1.0 / math.sqrt(2.0))))

    # Attention layout constants (shared by all 6 attention layers), loaded once.
    rowmask = vblk("rowmask", HN, E)            # (HN, E): lane e belongs to row's head
    gsum = vblk("gsum", HN, HN)                 # (HN, HN): same-(head,batch) column groups
    am_plain = vblk("am_plain", N, HN)          # cross-batch -1e30 additive mask

    def attention(h, p, addmask):
        # Head-batched block attention: the per-head / per-batch structure is
        # encoded in column blocks of a single (N, H*N) score matrix, so there
        # are no per-head lane slices and only 5 MXU pushes per attention.
        qkv = dot_bf(h, wmat(p + "_wqkv", E, 3 * E)) + vrow(p + "_bqkv", 3 * E)
        q = qkv[:, 0:E] * scale
        k = qkv[:, E:2 * E]
        v = qkv[:, 2 * E:3 * E]
        k_bd = jnp.concatenate([k] * H, axis=0) * rowmask          # (HN, E)
        v_bd = jnp.concatenate([v] * H, axis=0) * rowmask          # (HN, E)
        s = lax.dot_general(q.astype(bf16), k_bd.astype(bf16),
                            (((1,), (1,)), ((), ())),
                            preferred_element_type=f32)            # (N, HN)
        s = s + addmask                                            # bias + batch mask
        m = jnp.max(s, axis=-1, keepdims=True)                     # shared max (valid)
        pexp = jnp.exp(s - m)
        # Per-(head,batch) softmax denominators broadcast back in one matmul.
        denom = jnp.dot(pexp, gsum, preferred_element_type=f32)    # (N, HN)
        pnorm = pexp * jnp.where(denom > 0.0, 1.0 / denom, 0.0)    # exact reciprocal
        ctx = dot_bf(pnorm, v_bd)                                  # (N, E), heads packed
        return dot_bf(ctx, wmat(p + "_wo", E, E)) + vrow(p + "_bo", E)

    def run_vit(h, tag, depth, addmask_jr):
        # JointRelationAttention: MHA + learnable (S,S) bias, residual, LN.
        a = attention(h, tag + "/jr", addmask_jr)
        h = layernorm(h + a, tag + "/jr_lng", tag + "/jr_lnb")
        for d in range(depth):                  # static unroll (depth is small)
            p = "%s/blk%d" % (tag, d)
            a = attention(h, p, am_plain)
            h = layernorm(h + a, p + "_ln1g", p + "_ln1b")
            m1 = gelu(dot_bf(h, wmat(p + "_w1", E, Hid)) + vrow(p + "_b1", Hid))
            m2 = dot_bf(m1, wmat(p + "_w2", Hid, E)) + vrow(p + "_b2", E)
            h = layernorm(h + m2, p + "_ln2g", p + "_ln2b")
        return layernorm(h, tag + "/norm_g", tag + "/norm_b")

    # ------------------ encoder: patch embed + CLS + PE -------------------- #
    enc_pe = vblk("enc/pe", S, E)
    enc_cls = vrow("enc/cls", E) + enc_pe[0:1, :]
    enc_pw = wmat("enc/proj_w", enc_din, E)
    enc_pb = vrow("enc/proj_b", E)
    pieces = []
    for b in range(B):                          # build (B*S, E) slab in-kernel
        hb = dot_bf(x_ref[b], enc_pw) + enc_pb + enc_pe[1:S, :]
        pieces.append(enc_cls)
        pieces.append(hb)
    h = jnp.concatenate(pieces, axis=0)                            # (N, E)
    h = run_vit(h, "enc", enc_depth, vblk("am_jr_enc", N, HN))

    # Encoder head applied ONLY to the CLS rows (use_cls_token=True).
    h_cls = jnp.concatenate([h[b * S:b * S + 1, :] for b in range(B)], axis=0)
    latent = dot_bf(h_cls, wmat("enc/head_w", E, J * lat)) + vrow("enc/head_b", J * lat)
    # latent_projection is nn.Identity() (latent_dim == embed_dim)

    # -------- decoder: re-embed the latent kept in VMEM (never hits HBM) ---- #
    dec_pe = vblk("dec/pe", S, E)
    dec_cls = vrow("dec/cls", E) + dec_pe[0:1, :]
    dec_pb = vrow("dec/proj_b", E)
    # (B, J*lat) latent -> (B*J, E) joint embeddings via a single masked matmul
    # against the row-expanded decoder projection (no tiny width-`lat` slices).
    lat_mask = vblk("lat_mask", B * J, J * lat)
    lat_rep = jnp.concatenate(
        [jnp.broadcast_to(latent[b:b + 1, :], (J, J * lat)) for b in range(B)], axis=0)
    pe_j = jnp.concatenate([dec_pe[1:S, :]] * B, axis=0)
    emb = dot_bf(lat_rep * lat_mask, wmat("dec/proj_w", J * lat, E)) + dec_pb + pe_j
    pieces = []
    for b in range(B):
        pieces.append(dec_cls)
        pieces.append(emb[b * J:(b + 1) * J, :])
    h = jnp.concatenate(pieces, axis=0)                            # (N, E)
    h = run_vit(h, "dec", dec_depth, vblk("am_jr_dec", N, HN))

    # Decoder head on the joint rows (use_cls_token=False).
    # Lane-dense output: head weight/bias zero-padded to 128 lanes.
    h_j = jnp.concatenate([h[b * S + 1:(b + 1) * S, :] for b in range(B)], axis=0)
    out = dot_bf(h_j, wmat("dec/head_w", E, out_w)) + vrow("dec/head_b", out_w)
    out_ref[...] = out.astype(out_ref.dtype)


# ------------------------------ weight packing ------------------------------ #

class _SlabPacker:
    """Packs many small parameter arrays into one (rows, width) slab so the
    kernel needs a single input DMA per slab."""

    def __init__(self, width, align):
        self.width = width
        self.align = align
        self._items = []
        self.offsets = {}
        self._cur = 0

    def add(self, key, arr):
        a = np.asarray(arr, np.float32)
        if a.ndim == 1:
            a = a[None, :]
        assert a.ndim == 2 and a.shape[1] <= self.width, (key, a.shape)
        offv = -(-self._cur // self.align) * self.align
        self.offsets[key] = int(offv)
        self._items.append((int(offv), a))
        self._cur = offv + a.shape[0]

    def finalize(self, dtype, row_align):
        rows = max(row_align, -(-self._cur // row_align) * row_align)
        slab = np.zeros((int(rows), self.width), np.float32)
        for offv, a in self._items:
            slab[offv:offv + a.shape[0], :a.shape[1]] = a
        return jnp.asarray(slab).astype(dtype)


def pack_keypoint2keypoint(enc, dec, *, batch, num_joints, input_dim,
                           latent_per_joint, output_dim, embed_dim, num_heads,
                           enc_depth, dec_depth, mlp_ratio):
    B, J, E, H = batch, num_joints, embed_dim, num_heads
    S = J + 1
    N = B * S
    HN = H * N
    Dh = E // H
    lat = latent_per_joint
    assert HN <= 128, ("fused kernel keeps all heads/batch in one 128-lane score "
                       "block; add a batch grid axis for larger batches")
    # TODO(synk): for larger batches, add a grid axis over small batch blocks.

    mats = _SlabPacker(width=128, align=16)     # bf16 matmul weights
    aux = _SlabPacker(width=128, align=1)       # f32 vectors / PE / masks

    def pack_vit(tag, p):
        pw = np.asarray(p["proj_w"], np.float32)
        if tag == "dec":
            # Expand (lat, E) -> (J*lat, E): row f holds proj_w[f % lat]; combined
            # with `lat_mask` the latent re-embedding becomes one matmul.
            pw = pw[np.arange(J * lat) % lat, :]
        mats.add(tag + "/proj_w", pw)
        mats.add(tag + "/jr_wqkv", p["jr_wqkv"])
        mats.add(tag + "/jr_wo", p["jr_wo"])
        for d, blk in enumerate(p["blocks"]):
            pre = "%s/blk%d" % (tag, d)
            mats.add(pre + "_wqkv", blk["wqkv"])
            mats.add(pre + "_wo", blk["wo"])
            mats.add(pre + "_w1", blk["w1"])
            mats.add(pre + "_w2", blk["w2"])
        mats.add(tag + "/head_w", p["head_w"])

        aux.add(tag + "/pe", p["pe"])
        aux.add(tag + "/cls", p["cls"])
        aux.add(tag + "/proj_b", p["proj_b"])
        aux.add(tag + "/jr_bqkv", p["jr_bqkv"])
        aux.add(tag + "/jr_bo", p["jr_bo"])
        aux.add(tag + "/jr_lng", p["jr_lng"])
        aux.add(tag + "/jr_lnb", p["jr_lnb"])
        for d, blk in enumerate(p["blocks"]):
            pre = "%s/blk%d" % (tag, d)
            aux.add(pre + "_bqkv", blk["bqkv"])
            aux.add(pre + "_bo", blk["bo"])
            aux.add(pre + "_ln1g", blk["ln1g"])
            aux.add(pre + "_ln1b", blk["ln1b"])
            aux.add(pre + "_b1", blk["b1"])
            aux.add(pre + "_b2", blk["b2"])
            aux.add(pre + "_ln2g", blk["ln2g"])
            aux.add(pre + "_ln2b", blk["ln2b"])
        aux.add(tag + "/norm_g", p["norm_g"])
        aux.add(tag + "/norm_b", p["norm_b"])
        aux.add(tag + "/head_b", p["head_b"])

    pack_vit("enc", enc)
    pack_vit("dec", dec)

    # ---- attention layout constants (head-batched block attention) ---------
    col = np.arange(HN)
    row = np.arange(N)
    col_head = col // N
    col_batch = (col % N) // S
    row_batch = row // S
    rowmask = (col_head[:, None] == (np.arange(E) // Dh)[None, :]).astype(np.float32)
    gsum = ((col_head[:, None] == col_head[None, :])
            & (col_batch[:, None] == col_batch[None, :])).astype(np.float32)
    am_base = np.where(row_batch[:, None] == col_batch[None, :],
                       0.0, -1e30).astype(np.float32)
    enc_bias = np.asarray(enc["jr_bias"], np.float32)
    dec_bias = np.asarray(dec["jr_bias"], np.float32)
    aux.add("rowmask", rowmask)                                    # (HN, E)
    aux.add("gsum", gsum)                                          # (HN, HN)
    aux.add("am_plain", am_base)                                   # (N, HN)
    aux.add("am_jr_enc", am_base + np.tile(enc_bias, (B, H * B)))
    aux.add("am_jr_dec", am_base + np.tile(dec_bias, (B, H * B)))
    # latent re-embedding selector: row (b,j) keeps lanes [j*lat, (j+1)*lat)
    jrow = np.tile(np.arange(J), B)
    lat_mask = (jrow[:, None] == (np.arange(J * lat) // lat)[None, :]).astype(np.float32)
    aux.add("lat_mask", lat_mask)

    mats_slab = mats.finalize(jnp.bfloat16, row_align=16)
    aux_slab = aux.finalize(jnp.float32, row_align=8)
    offsets = dict(mats.offsets)
    offsets.update(aux.offsets)
    return mats_slab, aux_slab, offsets


# --------------------------------- wrapper ---------------------------------- #

def make_k2k_forward(off, mats_shape, aux_shape, *, batch, num_joints, input_dim,
                     output_dim, embed_dim, num_heads, mlp_ratio,
                     enc_depth, dec_depth, latent_per_joint):
    B, J, E, H = batch, num_joints, embed_dim, num_heads
    S = J + 1
    N = B * S
    HN = H * N
    Dh = E // H
    Hid = mlp_ratio * E
    out_w = 128                                  # lane-dense padded head width

    kernel = functools.partial(
        _k2k_kernel, B=B, J=J, S=S, E=E, H=H, Dh=Dh, Hid=Hid,
        lat=latent_per_joint, enc_depth=enc_depth, dec_depth=dec_depth,
        enc_din=input_dim, out_w=out_w, off=off)

    # Advisory cost estimate for the XLA scheduler.
    attn_flops = (2 * N * E * 3 * E + 2 * N * E * HN + 2 * N * HN * HN
                  + 2 * N * HN * E + 2 * N * E * E)
    mlp_flops = 4 * N * E * Hid
    flops = ((enc_depth + dec_depth + 2) * attn_flops
             + (enc_depth + dec_depth) * mlp_flops
             + 2 * B * J * input_dim * E + 2 * B * E * (J * latent_per_joint)
             + 2 * B * J * (J * latent_per_joint) * E + 2 * B * J * E * out_w)
    transcend = ((enc_depth + dec_depth + 2) * N * HN
                 + (enc_depth + dec_depth) * N * Hid)
    x_bytes = B * J * input_dim * 4
    mats_bytes = int(np.prod(mats_shape)) * 2
    aux_bytes = int(np.prod(aux_shape)) * 4
    out_bytes = B * J * out_w * 4
    cost = pl.CostEstimate(flops=int(flops), transcendentals=int(transcend),
                           bytes_accessed=int(x_bytes + mats_bytes + aux_bytes
                                              + out_bytes))
    # VMEM limit from actual buffer sizes (double-buffered blocks) + headroom.
    vmem_limit = int(2 * (x_bytes + mats_bytes + aux_bytes + out_bytes) + (8 << 20))

    call = pl.pallas_call(
        kernel,
        grid=(1,),               # whole (tiny) batch in one step; see packer TODO
        in_specs=[pl.BlockSpec((B, J, input_dim), lambda i: (0, 0, 0)),
                  pl.BlockSpec(mats_shape, lambda i: (0, 0)),
                  pl.BlockSpec(aux_shape, lambda i: (0, 0))],
        out_specs=pl.BlockSpec((B * J, out_w), lambda i: (0, 0)),
        out_shape=jax.ShapeDtypeStruct((B * J, out_w), jnp.float32),
        compiler_params=pltpu.CompilerParams(
            dimension_semantics=("arbitrary",),
            vmem_limit_bytes=vmem_limit),
        cost_estimate=cost,
    )

    def forward(x, mats_slab, aux_slab):
        out = call(x, mats_slab, aux_slab)           # (B*J, 128) lane-dense store
        return out[:, :output_dim].reshape(B, J, output_dim)

    return forward


# -------------------------------- param init -------------------------------- #

def _sinusoidal_pe(max_len, d):
    pos = np.arange(max_len, dtype=np.float32)[:, None]
    div = np.exp(np.arange(0, d, 2, dtype=np.float32) * (-math.log(10000.0) / d))
    pe = np.zeros((max_len, d), np.float32)
    pe[:, 0::2] = np.sin(pos * div)
    pe[:, 1::2] = np.cos(pos * div)
    return pe


def init_vit_params(key, num_joints, input_dim, embed_dim, depth, mlp_ratio,
                    head_out):
    S = num_joints + 1
    E = embed_dim
    Hid = mlp_ratio * embed_dim
    ks = jax.random.split(key, 6 + depth)

    def nrm(k, shape):
        return jax.random.normal(k, shape, jnp.float32) * 0.02

    p = {
        "proj_w": nrm(ks[0], (input_dim, E)),
        "proj_b": jnp.zeros((E,), jnp.float32),
        "cls": jax.random.normal(ks[1], (E,), jnp.float32),
        "pe": _sinusoidal_pe(S, E),
        "jr_wqkv": nrm(ks[2], (E, 3 * E)),
        "jr_bqkv": jnp.zeros((3 * E,), jnp.float32),
        "jr_wo": nrm(ks[3], (E, E)),
        "jr_bo": jnp.zeros((E,), jnp.float32),
        "jr_bias": nrm(ks[4], (S, S)),
        "jr_lng": jnp.ones((E,), jnp.float32),
        "jr_lnb": jnp.zeros((E,), jnp.float32),
        "norm_g": jnp.ones((E,), jnp.float32),
        "norm_b": jnp.zeros((E,), jnp.float32),
        "head_w": nrm(ks[5], (E, head_out)),
        "head_b": jnp.zeros((head_out,), jnp.float32),
        "blocks": [],
    }
    for d in range(depth):
        kk = jax.random.split(ks[6 + d], 4)
        p["blocks"].append({
            "wqkv": nrm(kk[0], (E, 3 * E)), "bqkv": jnp.zeros((3 * E,), jnp.float32),
            "wo": nrm(kk[1], (E, E)), "bo": jnp.zeros((E,), jnp.float32),
            "ln1g": jnp.ones((E,), jnp.float32), "ln1b": jnp.zeros((E,), jnp.float32),
            "w1": nrm(kk[2], (E, Hid)), "b1": jnp.zeros((Hid,), jnp.float32),
            "w2": nrm(kk[3], (Hid, E)), "b2": jnp.zeros((E,), jnp.float32),
            "ln2g": jnp.ones((E,), jnp.float32), "ln2b": jnp.zeros((E,), jnp.float32),
        })
    return p


# ----------------------------------- main ------------------------------------ #

if __name__ == "__main__":
    NUM_JOINTS = 8
    INPUT_DIM = 2
    OUTPUT_DIM = 3
    EMBED_DIM = 32
    ENC_DEPTH = 2
    DEC_DEPTH = 2
    NUM_HEADS = 4
    MLP_RATIO = 4
    BATCH = 2

    LATENT_DIM = EMBED_DIM                        # latent_dim=None -> embed_dim
    LAT_PER_JOINT = LATENT_DIM // NUM_JOINTS

    key = jax.random.PRNGKey(0)
    kx, ke, kd = jax.random.split(key, 3)
    x = jax.random.normal(kx, (BATCH, NUM_JOINTS, INPUT_DIM), jnp.float32)

    enc = init_vit_params(ke, NUM_JOINTS, INPUT_DIM, EMBED_DIM, ENC_DEPTH,
                          MLP_RATIO, head_out=NUM_JOINTS * LAT_PER_JOINT)
    dec = init_vit_params(kd, NUM_JOINTS, LAT_PER_JOINT, EMBED_DIM, DEC_DEPTH,
                          MLP_RATIO, head_out=OUTPUT_DIM)

    mats_slab, aux_slab, off = pack_keypoint2keypoint(
        enc, dec, batch=BATCH, num_joints=NUM_JOINTS, input_dim=INPUT_DIM,
        latent_per_joint=LAT_PER_JOINT, output_dim=OUTPUT_DIM,
        embed_dim=EMBED_DIM, num_heads=NUM_HEADS, enc_depth=ENC_DEPTH,
        dec_depth=DEC_DEPTH, mlp_ratio=MLP_RATIO)

    fwd = jax.jit(make_k2k_forward(
        off, tuple(mats_slab.shape), tuple(aux_slab.shape),
        batch=BATCH, num_joints=NUM_JOINTS, input_dim=INPUT_DIM,
        output_dim=OUTPUT_DIM, embed_dim=EMBED_DIM, num_heads=NUM_HEADS,
        mlp_ratio=MLP_RATIO, enc_depth=ENC_DEPTH, dec_depth=DEC_DEPTH,
        latent_per_joint=LAT_PER_JOINT))

    out = fwd(x, mats_slab, aux_slab)
    out = jax.block_until_ready(out)
    assert out.shape == (BATCH, NUM_JOINTS, OUTPUT_DIM), out.shape
    assert bool(jnp.all(jnp.isfinite(out)))
    print("KERNEL_OK")
</pallas_src>

<mosaic_0001>
module attributes {stable_mosaic.version = 11 : i64} {
  func.func @_k2k_kernel(%arg0: i32, %arg1: memref<2x8x2xf32, #tpu.memory_space<vmem>>, %arg2: memref<1136x128xbf16, #tpu.memory_space<vmem>>, %arg3: memref<288x128xf32, #tpu.memory_space<vmem>>, %arg4: memref<16x128xf32, #tpu.memory_space<vmem>>) attributes {dimension_semantics = [#tpu.dimension_semantics<arbitrary>], iteration_bounds = array<i64: 1>, scalar_prefetch = 0 : i64, scratch_operands = 0 : i64, tpu.core_type = #tpu.core_type<tc>, window_params = [{pipeline_mode = #tpu.pipeline_mode<synchronous>, transform_indices = @transform_0, window_bounds = array<i64: 2, 8, 2>}, {pipeline_mode = #tpu.pipeline_mode<synchronous>, transform_indices = @transform_1, window_bounds = array<i64: 1136, 128>}, {pipeline_mode = #tpu.pipeline_mode<synchronous>, transform_indices = @transform_2, window_bounds = array<i64: 288, 128>}, {pipeline_mode = #tpu.pipeline_mode<synchronous>, transform_indices = @transform_3, window_bounds = array<i64: 16, 128>}]} {
    %c68 = arith.constant 68 : index
    %c0 = arith.constant 0 : index
    %0 = vector.load %arg3[%c68, %c0] : memref<288x128xf32, #tpu.memory_space<vmem>>, vector<72x32xf32>
    %c140 = arith.constant 140 : index
    %c0_0 = arith.constant 0 : index
    %1 = vector.load %arg3[%c140, %c0_0] : memref<288x128xf32, #tpu.memory_space<vmem>>, vector<72x72xf32>
    %c212 = arith.constant 212 : index
    %c0_1 = arith.constant 0 : index
    %2 = vector.load %arg3[%c212, %c0_1] : memref<288x128xf32, #tpu.memory_space<vmem>>, vector<18x72xf32>
    %c0_2 = arith.constant 0 : index
    %c0_3 = arith.constant 0 : index
    %3 = vector.load %arg3[%c0_2, %c0_3] : memref<288x128xf32, #tpu.memory_space<vmem>>, vector<9x32xf32>
    %c9 = arith.constant 9 : index
    %c0_4 = arith.constant 0 : index
    %4 = vector.load %arg3[%c9, %c0_4] : memref<288x128xf32, #tpu.memory_space<vmem>>, vector<1x32xf32>
    %5 = vector.extract_strided_slice %3 {offsets = [0, 0], sizes = [1, 32], strides = [1, 1]} : vector<9x32xf32> to vector<1x32xf32>
    %6 = arith.addf %4, %5 : vector<1x32xf32>
    %c0_5 = arith.constant 0 : index
    %c0_6 = arith.constant 0 : index
    %7 = vector.load %arg2[%c0_5, %c0_6] : memref<1136x128xbf16, #tpu.memory_space<vmem>>, vector<2x32xbf16>
    %c10 = arith.constant 10 : index
    %c0_7 = arith.constant 0 : index
    %8 = vector.load %arg3[%c10, %c0_7] : memref<288x128xf32, #tpu.memory_space<vmem>>, vector<1x32xf32>
    %c0_8 = arith.constant 0 : index
    %c0_9 = arith.constant 0 : index
    %c0_10 = arith.constant 0 : index
    %9 = vector.load %arg1[%c0_8, %c0_9, %c0_10] : memref<2x8x2xf32, #tpu.memory_space<vmem>>, vector<1x8x2xf32>
    %10 = vector.shape_cast %9 : vector<1x8x2xf32> to vector<8x2xf32>
    %11 = arith.truncf %10 : vector<8x2xf32> to vector<8x2xbf16>
    %cst = arith.constant dense<0.000000e+00> : vector<8x32xf32>
    %12 = tpu.matmul %11, %7, %cst {dimension_numbers = #tpu.dot_dimension_numbers<[1], [0], [0], [1], [0, 0, 1, 1], [], []>} : vector<8x2xbf16>, vector<2x32xbf16>, vector<8x32xf32> -> vector<8x32xf32>
    %13 = vector.broadcast %8 : vector<1x32xf32> to vector<8x32xf32>
    %14 = arith.addf %12, %13 : vector<8x32xf32>
    %15 = vector.extract_strided_slice %3 {offsets = [1, 0], sizes = [8, 32], strides = [1, 1]} : vector<9x32xf32> to vector<8x32xf32>
    %16 = arith.addf %14, %15 : vector<8x32xf32>
    %c1 = arith.constant 1 : index
    %c0_11 = arith.constant 0 : index
    %c0_12 = arith.constant 0 : index
    %17 = vector.load %arg1[%c1, %c0_11, %c0_12] : memref<2x8x2xf32, #tpu.memory_space<vmem>>, vector<1x8x2xf32>
    %18 = vector.shape_cast %17 : vector<1x8x2xf32> to vector<8x2xf32>
    %19 = arith.truncf %18 : vector<8x2xf32> to vector<8x2xbf16>
    %cst_13 = arith.constant dense<0.000000e+00> : vector<8x32xf32>
    %20 = tpu.matmul %19, %7, %cst_13 {dimension_numbers = #tpu.dot_dimension_numbers<[1], [0], [0], [1], [0, 0, 1, 1], [], []>} : vector<8x2xbf16>, vector<2x32xbf16>, vector<8x32xf32> -> vector<8x32xf32>
    %21 = vector.broadcast %8 : vector<1x32xf32> to vector<8x32xf32>
    %22 = arith.addf %20, %21 : vector<8x32xf32>
    %23 = vector.extract_strided_slice %3 {offsets = [1, 0], sizes = [8, 32], strides = [1, 1]} : vector<9x32xf32> to vector<8x32xf32>
    %24 = arith.addf %22, %23 : vector<8x32xf32>
    %25 = tpu.concatenate %6, %16, %6, %24 in 0 : vector<1x32xf32>, vector<8x32xf32>, vector<1x32xf32>, vector<8x32xf32> -> vector<18x32xf32>
    %c230 = arith.constant 230 : index
    %c0_14 = arith.constant 0 : index
    %26 = vector.load %arg3[%c230, %c0_14] : memref<288x128xf32, #tpu.memory_space<vmem>>, vector<18x72xf32>
    %c16 = arith.constant 16 : index
    %c0_15 = arith.constant 0 : index
    %27 = vector.load %arg2[%c16, %c0_15] : memref<1136x128xbf16, #tpu.memory_space<vmem>>, vector<32x96xbf16>
    %28 = arith.truncf %25 : vector<18x32xf32> to vector<18x32xbf16>
    %cst_16 = arith.constant dense<0.000000e+00> : vector<18x96xf32>
    %29 = tpu.matmul %28, %27, %cst_16 {dimension_numbers = #tpu.dot_dimension_numbers<[1], [0], [0], [1], [0, 0, 1, 1], [], []>} : vector<18x32xbf16>, vector<32x96xbf16>, vector<18x96xf32> -> vector<18x96xf32>
    %c11 = arith.constant 11 : index
    %c0_17 = arith.constant 0 : index
    %30 = vector.load %arg3[%c11, %c0_17] : memref<288x128xf32, #tpu.memory_space<vmem>>, vector<1x96xf32>
    %31 = vector.broadcast %30 : vector<1x96xf32> to vector<18x96xf32>
    %32 = arith.addf %29, %31 : vector<18x96xf32>
    %33 = vector.extract_strided_slice %32 {offsets = [0, 0], sizes = [18, 32], strides = [1, 1]} : vector<18x96xf32> to vector<18x32xf32>
    %cst_18 = arith.constant 0.353553385 : f32
    %34 = vector.broadcast %cst_18 : f32 to vector<18x32xf32>
    %35 = arith.mulf %33, %34 : vector<18x32xf32>
    %36 = vector.extract_strided_slice %32 {offsets = [0, 32], sizes = [18, 32], strides = [1, 1]} : vector<18x96xf32> to vector<18x32xf32>
    %37 = vector.extract_strided_slice %32 {offsets = [0, 64], sizes = [18, 32], strides = [1, 1]} : vector<18x96xf32> to vector<18x32xf32>
    %38 = tpu.concatenate %36, %36, %36, %36 in 0 : vector<18x32xf32>, vector<18x32xf32>, vector<18x32xf32>, vector<18x32xf32> -> vector<72x32xf32>
    %39 = arith.mulf %38, %0 : vector<72x32xf32>
    %40 = tpu.concatenate %37, %37, %37, %37 in 0 : vector<18x32xf32>, vector<18x32xf32>, vector<18x32xf32>, vector<18x32xf32> -> vector<72x32xf32>
    %41 = arith.mulf %40, %0 : vector<72x32xf32>
    %42 = arith.truncf %35 : vector<18x32xf32> to vector<18x32xbf16>
    %43 = arith.truncf %39 : vector<72x32xf32> to vector<72x32xbf16>
    %cst_19 = arith.constant dense<0.000000e+00> : vector<18x72xf32>
    %44 = tpu.matmul %42, %43, %cst_19 {dimension_numbers = #tpu.dot_dimension_numbers<[1], [1], [0], [0], [0, 0, 1, 0], [], []>} : vector<18x32xbf16>, vector<72x32xbf16>, vector<18x72xf32> -> vector<18x72xf32>
    %45 = arith.addf %44, %26 : vector<18x72xf32>
    %cst_20 = arith.constant dense<0xFF800000> : vector<18xf32>
    %46 = vector.multi_reduction <maximumf>, %45, %cst_20 [1] : vector<18x72xf32> to vector<18xf32>
    %47 = vector.shape_cast %46 : vector<18xf32> to vector<18x1xf32>
    %48 = vector.broadcast %47 : vector<18x1xf32> to vector<18x72xf32>
    %49 = arith.subf %45, %48 : vector<18x72xf32>
    %50 = math.exp %49 : vector<18x72xf32>
    %cst_21 = arith.constant dense<0.000000e+00> : vector<18x72xf32>
    %51 = tpu.matmul %50, %1, %cst_21 {dimension_numbers = #tpu.dot_dimension_numbers<[1], [0], [0], [1], [0, 0, 1, 1], [], []>} : vector<18x72xf32>, vector<72x72xf32>, vector<18x72xf32> -> vector<18x72xf32>
    %cst_22 = arith.constant 0.000000e+00 : f32
    %52 = vector.broadcast %cst_22 : f32 to vector<18x72xf32>
    %53 = arith.cmpf ogt, %51, %52 : vector<18x72xf32>
    %cst_23 = arith.constant 1.000000e+00 : f32
    %54 = vector.broadcast %cst_23 : f32 to vector<18x72xf32>
    %55 = arith.divf %54, %51 : vector<18x72xf32>
    %cst_24 = arith.constant 0.000000e+00 : f32
    %56 = vector.broadcast %cst_24 : f32 to vector<18x72xf32>
    %57 = arith.select %53, %55, %56 : vector<18x72xi1>, vector<18x72xf32>
    %58 = arith.mulf %50, %57 : vector<18x72xf32>
    %59 = arith.truncf %58 : vector<18x72xf32> to vector<18x72xbf16>
    %60 = arith.truncf %41 : vector<72x32xf32> to vector<72x32xbf16>
    %cst_25 = arith.constant dense<0.000000e+00> : vector<18x32xf32>
    %61 = tpu.matmul %59, %60, %cst_25 {dimension_numbers = #tpu.dot_dimension_numbers<[1], [0], [0], [1], [0, 0, 1, 1], [], []>} : vector<18x72xbf16>, vector<72x32xbf16>, vector<18x32xf32> -> vector<18x32xf32>
    %c48 = arith.constant 48 : index
    %c0_26 = arith.constant 0 : index
    %62 = vector.load %arg2[%c48, %c0_26] : memref<1136x128xbf16, #tpu.memory_space<vmem>>, vector<32x32xbf16>
    %63 = arith.truncf %61 : vector<18x32xf32> to vector<18x32xbf16>
    %cst_27 = arith.constant dense<0.000000e+00> : vector<18x32xf32>
    %64 = tpu.matmul %63, %62, %cst_27 {dimension_numbers = #tpu.dot_dimension_numbers<[1], [0], [0], [1], [0, 0, 1, 1], [], []>} : vector<18x32xbf16>, vector<32x32xbf16>, vector<18x32xf32> -> vector<18x32xf32>
    %c12 = arith.constant 12 : index
    %c0_28 = arith.constant 0 : index
    %65 = vector.load %arg3[%c12, %c0_28] : memref<288x128xf32, #tpu.memory_space<vmem>>, vector<1x32xf32>
    %66 = vector.broadcast %65 : vector<1x32xf32> to vector<18x32xf32>
    %67 = arith.addf %64, %66 : vector<18x32xf32>
    %68 = arith.addf %25, %67 : vector<18x32xf32>
    %cst_29 = arith.constant dense<0.000000e+00> : vector<18xf32>
    %69 = vector.multi_reduction <add>, %68, %cst_29 [1] : vector<18x32xf32> to vector<18xf32>
    %70 = vector.shape_cast %69 : vector<18xf32> to vector<18x1xf32>
    %cst_30 = arith.constant 3.200000e+01 : f32
    %71 = vector.broadcast %cst_30 : f32 to vector<18x1xf32>
    %72 = arith.divf %70, %71 : vector<18x1xf32>
    %73 = vector.broadcast %72 : vector<18x1xf32> to vector<18x32xf32>
    %74 = arith.subf %68, %73 : vector<18x32xf32>
    %75 = arith.mulf %74, %74 : vector<18x32xf32>
    %cst_31 = arith.constant dense<0.000000e+00> : vector<18xf32>
    %76 = vector.multi_reduction <add>, %75, %cst_31 [1] : vector<18x32xf32> to vector<18xf32>
    %77 = vector.shape_cast %76 : vector<18xf32> to vector<18x1xf32>
    %cst_32 = arith.constant 3.200000e+01 : f32
    %78 = vector.broadcast %cst_32 : f32 to vector<18x1xf32>
    %79 = arith.divf %77, %78 : vector<18x1xf32>
    %80 = vector.broadcast %72 : vector<18x1xf32> to vector<18x32xf32>
    %81 = arith.subf %68, %80 : vector<18x32xf32>
    %cst_33 = arith.constant 9.99999974E-6 : f32
    %82 = vector.broadcast %cst_33 : f32 to vector<18x1xf32>
    %83 = arith.addf %79, %82 : vector<18x1xf32>
    %84 = math.rsqrt %83 : vector<18x1xf32>
    %85 = vector.broadcast %84 : vector<18x1xf32> to vector<18x32xf32>
    %86 = arith.mulf %81, %85 : vector<18x32xf32>
    %c13 = arith.constant 13 : index
    %c0_34 = arith.constant 0 : index
    %87 = vector.load %arg3[%c13, %c0_34] : memref<288x128xf32, #tpu.memory_space<vmem>>, vector<1x32xf32>
    %88 = vector.broadcast %87 : vector<1x32xf32> to vector<18x32xf32>
    %89 = arith.mulf %86, %88 : vector<18x32xf32>
    %c14 = arith.constant 14 : index
    %c0_35 = arith.constant 0 : index
    %90 = vector.load %arg3[%c14, %c0_35] : memref<288x128xf32, #tpu.memory_space<vmem>>, vector<1x32xf32>
    %91 = vector.broadcast %90 : vector<1x32xf32> to vector<18x32xf32>
    %92 = arith.addf %89, %91 : vector<18x32xf32>
    %c80 = arith.constant 80 : index
    %c0_36 = arith.constant 0 : index
    %93 = vector.load %arg2[%c80, %c0_36] : memref<1136x128xbf16, #tpu.memory_space<vmem>>, vector<32x96xbf16>
    %94 = arith.truncf %92 : vector<18x32xf32> to vector<18x32xbf16>
    %cst_37 = arith.constant dense<0.000000e+00> : vector<18x96xf32>
    %95 = tpu.matmul %94, %93, %cst_37 {dimension_numbers = #tpu.dot_dimension_numbers<[1], [0], [0], [1], [0, 0, 1, 1], [], []>} : vector<18x32xbf16>, vector<32x96xbf16>, vector<18x96xf32> -> vector<18x96xf32>
    %c15 = arith.constant 15 : index
    %c0_38 = arith.constant 0 : index
    %96 = vector.load %arg3[%c15, %c0_38] : memref<288x128xf32, #tpu.memory_space<vmem>>, vector<1x96xf32>
    %97 = vector.broadcast %96 : vector<1x96xf32> to vector<18x96xf32>
    %98 = arith.addf %95, %97 : vector<18x96xf32>
    %99 = vector.extract_strided_slice %98 {offsets = [0, 0], sizes = [18, 32], strides = [1, 1]} : vector<18x96xf32> to vector<18x32xf32>
    %cst_39 = arith.constant 0.353553385 : f32
    %100 = vector.broadcast %cst_39 : f32 to vector<18x32xf32>
    %101 = arith.mulf %99, %100 : vector<18x32xf32>
    %102 = vector.extract_strided_slice %98 {offsets = [0, 32], sizes = [18, 32], strides = [1, 1]} : vector<18x96xf32> to vector<18x32xf32>
    %103 = vector.extract_strided_slice %98 {offsets = [0, 64], sizes = [18, 32], strides = [1, 1]} : vector<18x96xf32> to vector<18x32xf32>
    %104 = tpu.concatenate %102, %102, %102, %102 in 0 : vector<18x32xf32>, vector<18x32xf32>, vector<18x32xf32>, vector<18x32xf32> -> vector<72x32xf32>
    %105 = arith.mulf %104, %0 : vector<72x32xf32>
    %106 = tpu.concatenate %103, %103, %103, %103 in 0 : vector<18x32xf32>, vector<18x32xf32>, vector<18x32xf32>, vector<18x32xf32> -> vector<72x32xf32>
    %107 = arith.mulf %106, %0 : vector<72x32xf32>
    %108 = arith.truncf %101 : vector<18x32xf32> to vector<18x32xbf16>
    %109 = arith.truncf %105 : vector<72x32xf32> to vector<72x32xbf16>
    %cst_40 = arith.constant dense<0.000000e+00> : vector<18x72xf32>
    %110 = tpu.matmul %108, %109, %cst_40 {dimension_numbers = #tpu.dot_dimension_numbers<[1], [1], [0], [0], [0, 0, 1, 0], [], []>} : vector<18x32xbf16>, vector<72x32xbf16>, vector<18x72xf32> -> vector<18x72xf32>
    %111 = arith.addf %110, %2 : vector<18x72xf32>
    %cst_41 = arith.constant dense<0xFF800000> : vector<18xf32>
    %112 = vector.multi_reduction <maximumf>, %111, %cst_41 [1] : vector<18x72xf32> to vector<18xf32>
    %113 = vector.shape_cast %112 : vector<18xf32> to vector<18x1xf32>
    %114 = vector.broadcast %113 : vector<18x1xf32> to vector<18x72xf32>
    %115 = arith.subf %111, %114 : vector<18x72xf32>
    %116 = math.exp %115 : vector<18x72xf32>
    %cst_42 = arith.constant dense<0.000000e+00> : vector<18x72xf32>
    %117 = tpu.matmul %116, %1, %cst_42 {dimension_numbers = #tpu.dot_dimension_numbers<[1], [0], [0], [1], [0, 0, 1, 1], [], []>} : vector<18x72xf32>, vector<72x72xf32>, vector<18x72xf32> -> vector<18x72xf32>
    %cst_43 = arith.constant 0.000000e+00 : f32
    %118 = vector.broadcast %cst_43 : f32 to vector<18x72xf32>
    %119 = arith.cmpf ogt, %117, %118 : vector<18x72xf32>
    %cst_44 = arith.constant 1.000000e+00 : f32
    %120 = vector.broadcast %cst_44 : f32 to vector<18x72xf32>
    %121 = arith.divf %120, %117 : vector<18x72xf32>
    %cst_45 = arith.constant 0.000000e+00 : f32
    %122 = vector.broadcast %cst_45 : f32 to vector<18x72xf32>
    %123 = arith.select %119, %121, %122 : vector<18x72xi1>, vector<18x72xf32>
    %124 = arith.mulf %116, %123 : vector<18x72xf32>
    %125 = arith.truncf %124 : vector<18x72xf32> to vector<18x72xbf16>
    %126 = arith.truncf %107 : vector<72x32xf32> to vector<72x32xbf16>
    %cst_46 = arith.constant dense<0.000000e+00> : vector<18x32xf32>
    %127 = tpu.matmul %125, %126, %cst_46 {dimension_numbers = #tpu.dot_dimension_numbers<[1], [0], [0], [1], [0, 0, 1, 1], [], []>} : vector<18x72xbf16>, vector<72x32xbf16>, vector<18x32xf32> -> vector<18x32xf32>
    %c112 = arith.constant 112 : index
    %c0_47 = arith.constant 0 : index
    %128 = vector.load %arg2[%c112, %c0_47] : memref<1136x128xbf16, #tpu.memory_space<vmem>>, vector<32x32xbf16>
    %129 = arith.truncf %127 : vector<18x32xf32> to vector<18x32xbf16>
    %cst_48 = arith.constant dense<0.000000e+00> : vector<18x32xf32>
    %130 = tpu.matmul %129, %128, %cst_48 {dimension_numbers = #tpu.dot_dimension_numbers<[1], [0], [0], [1], [0, 0, 1, 1], [], []>} : vector<18x32xbf16>, vector<32x32xbf16>, vector<18x32xf32> -> vector<18x32xf32>
    %c16_49 = arith.constant 16 : index
    %c0_50 = arith.constant 0 : index
    %131 = vector.load %arg3[%c16_49, %c0_50] : memref<288x128xf32, #tpu.memory_space<vmem>>, vector<1x32xf32>
    %132 = vector.broadcast %131 : vector<1x32xf32> to vector<18x32xf32>
    %133 = arith.addf %130, %132 : vector<18x32xf32>
    %134 = arith.addf %92, %133 : vector<18x32xf32>
    %cst_51 = arith.constant dense<0.000000e+00> : vector<18xf32>
    %135 = vector.multi_reduction <add>, %134, %cst_51 [1] : vector<18x32xf32> to vector<18xf32>
    %136 = vector.shape_cast %135 : vector<18xf32> to vector<18x1xf32>
    %cst_52 = arith.constant 3.200000e+01 : f32
    %137 = vector.broadcast %cst_52 : f32 to vector<18x1xf32>
    %138 = arith.divf %136, %137 : vector<18x1xf32>
    %139 = vector.broadcast %138 : vector<18x1xf32> to vector<18x32xf32>
    %140 = arith.subf %134, %139 : vector<18x32xf32>
    %141 = arith.mulf %140, %140 : vector<18x32xf32>
    %cst_53 = arith.constant dense<0.000000e+00> : vector<18xf32>
    %142 = vector.multi_reduction <add>, %141, %cst_53 [1] : vector<18x32xf32> to vector<18xf32>
    %143 = vector.shape_cast %142 : vector<18xf32> to vector<18x1xf32>
    %cst_54 = arith.constant 3.200000e+01 : f32
    %144 = vector.broadcast %cst_54 : f32 to vector<18x1xf32>
    %145 = arith.divf %143, %144 : vector<18x1xf32>
    %146 = vector.broadcast %138 : vector<18x1xf32> to vector<18x32xf32>
    %147 = arith.subf %134, %146 : vector<18x32xf32>
    %cst_55 = arith.constant 9.99999974E-6 : f32
    %148 = vector.broadcast %cst_55 : f32 to vector<18x1xf32>
    %149 = arith.addf %145, %148 : vector<18x1xf32>
    %150 = math.rsqrt %149 : vector<18x1xf32>
    %151 = vector.broadcast %150 : vector<18x1xf32> to vector<18x32xf32>
    %152 = arith.mulf %147, %151 : vector<18x32xf32>
    %c17 = arith.constant 17 : index
    %c0_56 = arith.constant 0 : index
    %153 = vector.load %arg3[%c17, %c0_56] : memref<288x128xf32, #tpu.memory_space<vmem>>, vector<1x32xf32>
    %154 = vector.broadcast %153 : vector<1x32xf32> to vector<18x32xf32>
    %155 = arith.mulf %152, %154 : vector<18x32xf32>
    %c18 = arith.constant 18 : index
    %c0_57 = arith.constant 0 : index
    %156 = vector.load %arg3[%c18, %c0_57] : memref<288x128xf32, #tpu.memory_space<vmem>>, vector<1x32xf32>
    %157 = vector.broadcast %156 : vector<1x32xf32> to vector<18x32xf32>
    %158 = arith.addf %155, %157 : vector<18x32xf32>
    %c144 = arith.constant 144 : index
    %c0_58 = arith.constant 0 : index
    %159 = vector.load %arg2[%c144, %c0_58] : memref<1136x128xbf16, #tpu.memory_space<vmem>>, vector<32x128xbf16>
    %160 = arith.truncf %158 : vector<18x32xf32> to vector<18x32xbf16>
    %cst_59 = arith.constant dense<0.000000e+00> : vector<18x128xf32>
    %161 = tpu.matmul %160, %159, %cst_59 {dimension_numbers = #tpu.dot_dimension_numbers<[1], [0], [0], [1], [0, 0, 1, 1], [], []>} : vector<18x32xbf16>, vector<32x128xbf16>, vector<18x128xf32> -> vector<18x128xf32>
    %c19 = arith.constant 19 : index
    %c0_60 = arith.constant 0 : index
    %162 = vector.load %arg3[%c19, %c0_60] : memref<288x128xf32, #tpu.memory_space<vmem>>, vector<1x128xf32>
    %163 = vector.broadcast %162 : vector<1x128xf32> to vector<18x128xf32>
    %164 = arith.addf %161, %163 : vector<18x128xf32>
    %cst_61 = arith.constant 5.000000e-01 : f32
    %165 = vector.broadcast %cst_61 : f32 to vector<18x128xf32>
    %166 = arith.mulf %165, %164 : vector<18x128xf32>
    %cst_62 = arith.constant 0.707106769 : f32
    %167 = vector.broadcast %cst_62 : f32 to vector<18x128xf32>
    %168 = arith.mulf %164, %167 : vector<18x128xf32>
    %169 = math.erf %168 : vector<18x128xf32>
    %cst_63 = arith.constant 1.000000e+00 : f32
    %170 = vector.broadcast %cst_63 : f32 to vector<18x128xf32>
    %171 = arith.addf %170, %169 : vector<18x128xf32>
    %172 = arith.mulf %166, %171 : vector<18x128xf32>
    %c176 = arith.constant 176 : index
    %c0_64 = arith.constant 0 : index
    %173 = vector.load %arg2[%c176, %c0_64] : memref<1136x128xbf16, #tpu.memory_space<vmem>>, vector<128x32xbf16>
    %174 = arith.truncf %172 : vector<18x128xf32> to vector<18x128xbf16>
    %cst_65 = arith.constant dense<0.000000e+00> : vector<18x32xf32>
    %175 = tpu.matmul %174, %173, %cst_65 {dimension_numbers = #tpu.dot_dimension_numbers<[1], [0], [0], [1], [0, 0, 1, 1], [], []>} : vector<18x128xbf16>, vector<128x32xbf16>, vector<18x32xf32> -> vector<18x32xf32>
    %c20 = arith.constant 20 : index
    %c0_66 = arith.constant 0 : index
    %176 = vector.load %arg3[%c20, %c0_66] : memref<288x128xf32, #tpu.memory_space<vmem>>, vector<1x32xf32>
    %177 = vector.broadcast %176 : vector<1x32xf32> to vector<18x32xf32>
    %178 = arith.addf %175, %177 : vector<18x32xf32>
    %179 = arith.addf %158, %178 : vector<18x32xf32>
    %cst_67 = arith.constant dense<0.000000e+00> : vector<18xf32>
    %180 = vector.multi_reduction <add>, %179, %cst_67 [1] : vector<18x32xf32> to vector<18xf32>
    %181 = vector.shape_cast %180 : vector<18xf32> to vector<18x1xf32>
    %cst_68 = arith.constant 3.200000e+01 : f32
    %182 = vector.broadcast %cst_68 : f32 to vector<18x1xf32>
    %183 = arith.divf %181, %182 : vector<18x1xf32>
    %184 = vector.broadcast %183 : vector<18x1xf32> to vector<18x32xf32>
    %185 = arith.subf %179, %184 : vector<18x32xf32>
    %186 = arith.mulf %185, %185 : vector<18x32xf32>
    %cst_69 = arith.constant dense<0.000000e+00> : vector<18xf32>
    %187 = vector.multi_reduction <add>, %186, %cst_69 [1] : vector<18x32xf32> to vector<18xf32>
    %188 = vector.shape_cast %187 : vector<18xf32> to vector<18x1xf32>
    %cst_70 = arith.constant 3.200000e+01 : f32
    %189 = vector.broadcast %cst_70 : f32 to vector<18x1xf32>
    %190 = arith.divf %188, %189 : vector<18x1xf32>
    %191 = vector.broadcast %183 : vector<18x1xf32> to vector<18x32xf32>
    %192 = arith.subf %179, %191 : vector<18x32xf32>
    %cst_71 = arith.constant 9.99999974E-6 : f32
    %193 = vector.broadcast %cst_71 : f32 to vector<18x1xf32>
    %194 = arith.addf %190, %193 : vector<18x1xf32>
    %195 = math.rsqrt %194 : vector<18x1xf32>
    %196 = vector.broadcast %195 : vector<18x1xf32> to vector<18x32xf32>
    %197 = arith.mulf %192, %196 : vector<18x32xf32>
    %c21 = arith.constant 21 : index
    %c0_72 = arith.constant 0 : index
    %198 = vector.load %arg3[%c21, %c0_72] : memref<288x128xf32, #tpu.memory_space<vmem>>, vector<1x32xf32>
    %199 = vector.broadcast %198 : vector<1x32xf32> to vector<18x32xf32>
    %200 = arith.mulf %197, %199 : vector<18x32xf32>
    %c22 = arith.constant 22 : index
    %c0_73 = arith.constant 0 : index
    %201 = vector.load %arg3[%c22, %c0_73] : memref<288x128xf32, #tpu.memory_space<vmem>>, vector<1x32xf32>
    %202 = vector.broadcast %201 : vector<1x32xf32> to vector<18x32xf32>
    %203 = arith.addf %200, %202 : vector<18x32xf32>
    %c304 = arith.constant 304 : index
    %c0_74 = arith.constant 0 : index
    %204 = vector.load %arg2[%c304, %c0_74] : memref<1136x128xbf16, #tpu.memory_space<vmem>>, vector<32x96xbf16>
    %205 = arith.truncf %203 : vector<18x32xf32> to vector<18x32xbf16>
    %cst_75 = arith.constant dense<0.000000e+00> : vector<18x96xf32>
    %206 = tpu.matmul %205, %204, %cst_75 {dimension_numbers = #tpu.dot_dimension_numbers<[1], [0], [0], [1], [0, 0, 1, 1], [], []>} : vector<18x32xbf16>, vector<32x96xbf16>, vector<18x96xf32> -> vector<18x96xf32>
    %c23 = arith.constant 23 : index
    %c0_76 = arith.constant 0 : index
    %207 = vector.load %arg3[%c23, %c0_76] : memref<288x128xf32, #tpu.memory_space<vmem>>, vector<1x96xf32>
    %208 = vector.broadcast %207 : vector<1x96xf32> to vector<18x96xf32>
    %209 = arith.addf %206, %208 : vector<18x96xf32>
    %210 = vector.extract_strided_slice %209 {offsets = [0, 0], sizes = [18, 32], strides = [1, 1]} : vector<18x96xf32> to vector<18x32xf32>
    %cst_77 = arith.constant 0.353553385 : f32
    %211 = vector.broadcast %cst_77 : f32 to vector<18x32xf32>
    %212 = arith.mulf %210, %211 : vector<18x32xf32>
    %213 = vector.extract_strided_slice %209 {offsets = [0, 32], sizes = [18, 32], strides = [1, 1]} : vector<18x96xf32> to vector<18x32xf32>
    %214 = vector.extract_strided_slice %209 {offsets = [0, 64], sizes = [18, 32], strides = [1, 1]} : vector<18x96xf32> to vector<18x32xf32>
    %215 = tpu.concatenate %213, %213, %213, %213 in 0 : vector<18x32xf32>, vector<18x32xf32>, vector<18x32xf32>, vector<18x32xf32> -> vector<72x32xf32>
    %216 = arith.mulf %215, %0 : vector<72x32xf32>
    %217 = tpu.concatenate %214, %214, %214, %214 in 0 : vector<18x32xf32>, vector<18x32xf32>, vector<18x32xf32>, vector<18x32xf32> -> vector<72x32xf32>
    %218 = arith.mulf %217, %0 : vector<72x32xf32>
    %219 = arith.truncf %212 : vector<18x32xf32> to vector<18x32xbf16>
    %220 = arith.truncf %216 : vector<72x32xf32> to vector<72x32xbf16>
    %cst_78 = arith.constant dense<0.000000e+00> : vector<18x72xf32>
    %221 = tpu.matmul %219, %220, %cst_78 {dimension_numbers = #tpu.dot_dimension_numbers<[1], [1], [0], [0], [0, 0, 1, 0], [], []>} : vector<18x32xbf16>, vector<72x32xbf16>, vector<18x72xf32> -> vector<18x72xf32>
    %222 = arith.addf %221, %2 : vector<18x72xf32>
    %cst_79 = arith.constant dense<0xFF800000> : vector<18xf32>
    %223 = vector.multi_reduction <maximumf>, %222, %cst_79 [1] : vector<18x72xf32> to vector<18xf32>
    %224 = vector.shape_cast %223 : vector<18xf32> to vector<18x1xf32>
    %225 = vector.broadcast %224 : vector<18x1xf32> to vector<18x72xf32>
    %226 = arith.subf %222, %225 : vector<18x72xf32>
    %227 = math.exp %226 : vector<18x72xf32>
    %cst_80 = arith.constant dense<0.000000e+00> : vector<18x72xf32>
    %228 = tpu.matmul %227, %1, %cst_80 {dimension_numbers = #tpu.dot_dimension_numbers<[1], [0], [0], [1], [0, 0, 1, 1], [], []>} : vector<18x72xf32>, vector<72x72xf32>, vector<18x72xf32> -> vector<18x72xf32>
    %cst_81 = arith.constant 0.000000e+00 : f32
    %229 = vector.broadcast %cst_81 : f32 to vector<18x72xf32>
    %230 = arith.cmpf ogt, %228, %229 : vector<18x72xf32>
    %cst_82 = arith.constant 1.000000e+00 : f32
    %231 = vector.broadcast %cst_82 : f32 to vector<18x72xf32>
    %232 = arith.divf %231, %228 : vector<18x72xf32>
    %cst_83 = arith.constant 0.000000e+00 : f32
    %233 = vector.broadcast %cst_83 : f32 to vector<18x72xf32>
    %234 = arith.select %230, %232, %233 : vector<18x72xi1>, vector<18x72xf32>
    %235 = arith.mulf %227, %234 : vector<18x72xf32>
    %236 = arith.truncf %235 : vector<18x72xf32> to vector<18x72xbf16>
    %237 = arith.truncf %218 : vector<72x32xf32> to vector<72x32xbf16>
    %cst_84 = arith.constant dense<0.000000e+00> : vector<18x32xf32>
    %238 = tpu.matmul %236, %237, %cst_84 {dimension_numbers = #tpu.dot_dimension_numbers<[1], [0], [0], [1], [0, 0, 1, 1], [], []>} : vector<18x72xbf16>, vector<72x32xbf16>, vector<18x32xf32> -> vector<18x32xf32>
    %c336 = arith.constant 336 : index
    %c0_85 = arith.constant 0 : index
    %239 = vector.load %arg2[%c336, %c0_85] : memref<1136x128xbf16, #tpu.memory_space<vmem>>, vector<32x32xbf16>
    %240 = arith.truncf %238 : vector<18x32xf32> to vector<18x32xbf16>
    %cst_86 = arith.constant dense<0.000000e+00> : vector<18x32xf32>
    %241 = tpu.matmul %240, %239, %cst_86 {dimension_numbers = #tpu.dot_dimension_numbers<[1], [0], [0], [1], [0, 0, 1, 1], [], []>} : vector<18x32xbf16>, vector<32x32xbf16>, vector<18x32xf32> -> vector<18x32xf32>
    %c24 = arith.constant 24 : index
    %c0_87 = arith.constant 0 : index
    %242 = vector.load %arg3[%c24, %c0_87] : memref<288x128xf32, #tpu.memory_space<vmem>>, vector<1x32xf32>
    %243 = vector.broadcast %242 : vector<1x32xf32> to vector<18x32xf32>
    %244 = arith.addf %241, %243 : vector<18x32xf32>
    %245 = arith.addf %203, %244 : vector<18x32xf32>
    %cst_88 = arith.constant dense<0.000000e+00> : vector<18xf32>
    %246 = vector.multi_reduction <add>, %245, %cst_88 [1] : vector<18x32xf32> to vector<18xf32>
    %247 = vector.shape_cast %246 : vector<18xf32> to vector<18x1xf32>
    %cst_89 = arith.constant 3.200000e+01 : f32
    %248 = vector.broadcast %cst_89 : f32 to vector<18x1xf32>
    %249 = arith.divf %247, %248 : vector<18x1xf32>
    %250 = vector.broadcast %249 : vector<18x1xf32> to vector<18x32xf32>
    %251 = arith.subf %245, %250 : vector<18x32xf32>
    %252 = arith.mulf %251, %251 : vector<18x32xf32>
    %cst_90 = arith.constant dense<0.000000e+00> : vector<18xf32>
    %253 = vector.multi_reduction <add>, %252, %cst_90 [1] : vector<18x32xf32> to vector<18xf32>
    %254 = vector.shape_cast %253 : vector<18xf32> to vector<18x1xf32>
    %cst_91 = arith.constant 3.200000e+01 : f32
    %255 = vector.broadcast %cst_91 : f32 to vector<18x1xf32>
    %256 = arith.divf %254, %255 : vector<18x1xf32>
    %257 = vector.broadcast %249 : vector<18x1xf32> to vector<18x32xf32>
    %258 = arith.subf %245, %257 : vector<18x32xf32>
    %cst_92 = arith.constant 9.99999974E-6 : f32
    %259 = vector.broadcast %cst_92 : f32 to vector<18x1xf32>
    %260 = arith.addf %256, %259 : vector<18x1xf32>
    %261 = math.rsqrt %260 : vector<18x1xf32>
    %262 = vector.broadcast %261 : vector<18x1xf32> to vector<18x32xf32>
    %263 = arith.mulf %258, %262 : vector<18x32xf32>
    %c25 = arith.constant 25 : index
    %c0_93 = arith.constant 0 : index
    %264 = vector.load %arg3[%c25, %c0_93] : memref<288x128xf32, #tpu.memory_space<vmem>>, vector<1x32xf32>
    %265 = vector.broadcast %264 : vector<1x32xf32> to vector<18x32xf32>
    %266 = arith.mulf %263, %265 : vector<18x32xf32>
    %c26 = arith.constant 26 : index
    %c0_94 = arith.constant 0 : index
    %267 = vector.load %arg3[%c26, %c0_94] : memref<288x128xf32, #tpu.memory_space<vmem>>, vector<1x32xf32>
    %268 = vector.broadcast %267 : vector<1x32xf32> to vector<18x32xf32>
    %269 = arith.addf %266, %268 : vector<18x32xf32>
    %c368 = arith.constant 368 : index
    %c0_95 = arith.constant 0 : index
    %270 = vector.load %arg2[%c368, %c0_95] : memref<1136x128xbf16, #tpu.memory_space<vmem>>, vector<32x128xbf16>
    %271 = arith.truncf %269 : vector<18x32xf32> to vector<18x32xbf16>
    %cst_96 = arith.constant dense<0.000000e+00> : vector<18x128xf32>
    %272 = tpu.matmul %271, %270, %cst_96 {dimension_numbers = #tpu.dot_dimension_numbers<[1], [0], [0], [1], [0, 0, 1, 1], [], []>} : vector<18x32xbf16>, vector<32x128xbf16>, vector<18x128xf32> -> vector<18x128xf32>
    %c27 = arith.constant 27 : index
    %c0_97 = arith.constant 0 : index
    %273 = vector.load %arg3[%c27, %c0_97] : memref<288x128xf32, #tpu.memory_space<vmem>>, vector<1x128xf32>
    %274 = vector.broadcast %273 : vector<1x128xf32> to vector<18x128xf32>
    %275 = arith.addf %272, %274 : vector<18x128xf32>
    %cst_98 = arith.constant 5.000000e-01 : f32
    %276 = vector.broadcast %cst_98 : f32 to vector<18x128xf32>
    %277 = arith.mulf %276, %275 : vector<18x128xf32>
    %cst_99 = arith.constant 0.707106769 : f32
    %278 = vector.broadcast %cst_99 : f32 to vector<18x128xf32>
    %279 = arith.mulf %275, %278 : vector<18x128xf32>
    %280 = math.erf %279 : vector<18x128xf32>
    %cst_100 = arith.constant 1.000000e+00 : f32
    %281 = vector.broadcast %cst_100 : f32 to vector<18x128xf32>
    %282 = arith.addf %281, %280 : vector<18x128xf32>
    %283 = arith.mulf %277, %282 : vector<18x128xf32>
    %c400 = arith.constant 400 : index
    %c0_101 = arith.constant 0 : index
    %284 = vector.load %arg2[%c400, %c0_101] : memref<1136x128xbf16, #tpu.memory_space<vmem>>, vector<128x32xbf16>
    %285 = arith.truncf %283 : vector<18x128xf32> to vector<18x128xbf16>
    %cst_102 = arith.constant dense<0.000000e+00> : vector<18x32xf32>
    %286 = tpu.matmul %285, %284, %cst_102 {dimension_numbers = #tpu.dot_dimension_numbers<[1], [0], [0], [1], [0, 0, 1, 1], [], []>} : vector<18x128xbf16>, vector<128x32xbf16>, vector<18x32xf32> -> vector<18x32xf32>
    %c28 = arith.constant 28 : index
    %c0_103 = arith.constant 0 : index
    %287 = vector.load %arg3[%c28, %c0_103] : memref<288x128xf32, #tpu.memory_space<vmem>>, vector<1x32xf32>
    %288 = vector.broadcast %287 : vector<1x32xf32> to vector<18x32xf32>
    %289 = arith.addf %286, %288 : vector<18x32xf32>
    %290 = arith.addf %269, %289 : vector<18x32xf32>
    %cst_104 = arith.constant dense<0.000000e+00> : vector<18xf32>
    %291 = vector.multi_reduction <add>, %290, %cst_104 [1] : vector<18x32xf32> to vector<18xf32>
    %292 = vector.shape_cast %291 : vector<18xf32> to vector<18x1xf32>
    %cst_105 = arith.constant 3.200000e+01 : f32
    %293 = vector.broadcast %cst_105 : f32 to vector<18x1xf32>
    %294 = arith.divf %292, %293 : vector<18x1xf32>
    %295 = vector.broadcast %294 : vector<18x1xf32> to vector<18x32xf32>
    %296 = arith.subf %290, %295 : vector<18x32xf32>
    %297 = arith.mulf %296, %296 : vector<18x32xf32>
    %cst_106 = arith.constant dense<0.000000e+00> : vector<18xf32>
    %298 = vector.multi_reduction <add>, %297, %cst_106 [1] : vector<18x32xf32> to vector<18xf32>
    %299 = vector.shape_cast %298 : vector<18xf32> to vector<18x1xf32>
    %cst_107 = arith.constant 3.200000e+01 : f32
    %300 = vector.broadcast %cst_107 : f32 to vector<18x1xf32>
    %301 = arith.divf %299, %300 : vector<18x1xf32>
    %302 = vector.broadcast %294 : vector<18x1xf32> to vector<18x32xf32>
    %303 = arith.subf %290, %302 : vector<18x32xf32>
    %cst_108 = arith.constant 9.99999974E-6 : f32
    %304 = vector.broadcast %cst_108 : f32 to vector<18x1xf32>
    %305 = arith.addf %301, %304 : vector<18x1xf32>
    %306 = math.rsqrt %305 : vector<18x1xf32>
    %307 = vector.broadcast %306 : vector<18x1xf32> to vector<18x32xf32>
    %308 = arith.mulf %303, %307 : vector<18x32xf32>
    %c29 = arith.constant 29 : index
    %c0_109 = arith.constant 0 : index
    %309 = vector.load %arg3[%c29, %c0_109] : memref<288x128xf32, #tpu.memory_space<vmem>>, vector<1x32xf32>
    %310 = vector.broadcast %309 : vector<1x32xf32> to vector<18x32xf32>
    %311 = arith.mulf %308, %310 : vector<18x32xf32>
    %c30 = arith.constant 30 : index
    %c0_110 = arith.constant 0 : index
    %312 = vector.load %arg3[%c30, %c0_110] : memref<288x128xf32, #tpu.memory_space<vmem>>, vector<1x32xf32>
    %313 = vector.broadcast %312 : vector<1x32xf32> to vector<18x32xf32>
    %314 = arith.addf %311, %313 : vector<18x32xf32>
    %cst_111 = arith.constant dense<0.000000e+00> : vector<18xf32>
    %315 = vector.multi_reduction <add>, %314, %cst_111 [1] : vector<18x32xf32> to vector<18xf32>
    %316 = vector.shape_cast %315 : vector<18xf32> to vector<18x1xf32>
    %cst_112 = arith.constant 3.200000e+01 : f32
    %317 = vector.broadcast %cst_112 : f32 to vector<18x1xf32>
    %318 = arith.divf %316, %317 : vector<18x1xf32>
    %319 = vector.broadcast %318 : vector<18x1xf32> to vector<18x32xf32>
    %320 = arith.subf %314, %319 : vector<18x32xf32>
    %321 = arith.mulf %320, %320 : vector<18x32xf32>
    %cst_113 = arith.constant dense<0.000000e+00> : vector<18xf32>
    %322 = vector.multi_reduction <add>, %321, %cst_113 [1] : vector<18x32xf32> to vector<18xf32>
    %323 = vector.shape_cast %322 : vector<18xf32> to vector<18x1xf32>
    %cst_114 = arith.constant 3.200000e+01 : f32
    %324 = vector.broadcast %cst_114 : f32 to vector<18x1xf32>
    %325 = arith.divf %323, %324 : vector<18x1xf32>
    %326 = vector.broadcast %318 : vector<18x1xf32> to vector<18x32xf32>
    %327 = arith.subf %314, %326 : vector<18x32xf32>
    %cst_115 = arith.constant 9.99999974E-6 : f32
    %328 = vector.broadcast %cst_115 : f32 to vector<18x1xf32>
    %329 = arith.addf %325, %328 : vector<18x1xf32>
    %330 = math.rsqrt %329 : vector<18x1xf32>
    %331 = vector.broadcast %330 : vector<18x1xf32> to vector<18x32xf32>
    %332 = arith.mulf %327, %331 : vector<18x32xf32>
    %c31 = arith.constant 31 : index
    %c0_116 = arith.constant 0 : index
    %333 = vector.load %arg3[%c31, %c0_116] : memref<288x128xf32, #tpu.memory_space<vmem>>, vector<1x32xf32>
    %334 = vector.broadcast %333 : vector<1x32xf32> to vector<18x32xf32>
    %335 = arith.mulf %332, %334 : vector<18x32xf32>
    %c32 = arith.constant 32 : index
    %c0_117 = arith.constant 0 : index
    %336 = vector.load %arg3[%c32, %c0_117] : memref<288x128xf32, #tpu.memory_space<vmem>>, vector<1x32xf32>
    %337 = vector.broadcast %336 : vector<1x32xf32> to vector<18x32xf32>
    %338 = arith.addf %335, %337 : vector<18x32xf32>
    %339 = vector.extract_strided_slice %338 {offsets = [0, 0], sizes = [1, 32], strides = [1, 1]} : vector<18x32xf32> to vector<1x32xf32>
    %340 = vector.extract_strided_slice %338 {offsets = [9, 0], sizes = [1, 32], strides = [1, 1]} : vector<18x32xf32> to vector<1x32xf32>
    %341 = tpu.concatenate %339, %340 in 0 : vector<1x32xf32>, vector<1x32xf32> -> vector<2x32xf32>
    %c528 = arith.constant 528 : index
    %c0_118 = arith.constant 0 : index
    %342 = vector.load %arg2[%c528, %c0_118] : memref<1136x128xbf16, #tpu.memory_space<vmem>>, vector<32x32xbf16>
    %343 = arith.truncf %341 : vector<2x32xf32> to vector<2x32xbf16>
    %cst_119 = arith.constant dense<0.000000e+00> : vector<2x32xf32>
    %344 = tpu.matmul %343, %342, %cst_119 {dimension_numbers = #tpu.dot_dimension_numbers<[1], [0], [0], [1], [0, 0, 1, 1], [], []>} : vector<2x32xbf16>, vector<32x32xbf16>, vector<2x32xf32> -> vector<2x32xf32>
    %c33 = arith.constant 33 : index
    %c0_120 = arith.constant 0 : index
    %345 = vector.load %arg3[%c33, %c0_120] : memref<288x128xf32, #tpu.memory_space<vmem>>, vector<1x32xf32>
    %346 = vector.broadcast %345 : vector<1x32xf32> to vector<2x32xf32>
    %347 = arith.addf %344, %346 : vector<2x32xf32>
    %c34 = arith.constant 34 : index
    %c0_121 = arith.constant 0 : index
    %348 = vector.load %arg3[%c34, %c0_121] : memref<288x128xf32, #tpu.memory_space<vmem>>, vector<9x32xf32>
    %c43 = arith.constant 43 : index
    %c0_122 = arith.constant 0 : index
    %349 = vector.load %arg3[%c43, %c0_122] : memref<288x128xf32, #tpu.memory_space<vmem>>, vector<1x32xf32>
    %350 = vector.extract_strided_slice %348 {offsets = [0, 0], sizes = [1, 32], strides = [1, 1]} : vector<9x32xf32> to vector<1x32xf32>
    %351 = arith.addf %349, %350 : vector<1x32xf32>
    %c44 = arith.constant 44 : index
    %c0_123 = arith.constant 0 : index
    %352 = vector.load %arg3[%c44, %c0_123] : memref<288x128xf32, #tpu.memory_space<vmem>>, vector<1x32xf32>
    %c266 = arith.constant 266 : index
    %c0_124 = arith.constant 0 : index
    %353 = vector.load %arg3[%c266, %c0_124] : memref<288x128xf32, #tpu.memory_space<vmem>>, vector<16x32xf32>
    %354 = vector.extract_strided_slice %347 {offsets = [0, 0], sizes = [1, 32], strides = [1, 1]} : vector<2x32xf32> to vector<1x32xf32>
    %355 = vector.shape_cast %354 : vector<1x32xf32> to vector<1x32xf32>
    %356 = vector.broadcast %355 : vector<1x32xf32> to vector<8x32xf32>
    %357 = vector.extract_strided_slice %347 {offsets = [1, 0], sizes = [1, 32], strides = [1, 1]} : vector<2x32xf32> to vector<1x32xf32>
    %358 = vector.shape_cast %357 : vector<1x32xf32> to vector<1x32xf32>
    %359 = vector.broadcast %358 : vector<1x32xf32> to vector<8x32xf32>
    %360 = tpu.concatenate %356, %359 in 0 : vector<8x32xf32>, vector<8x32xf32> -> vector<16x32xf32>
    %361 = vector.extract_strided_slice %348 {offsets = [1, 0], sizes = [8, 32], strides = [1, 1]} : vector<9x32xf32> to vector<8x32xf32>
    %362 = tpu.concatenate %361, %361 in 0 : vector<8x32xf32>, vector<8x32xf32> -> vector<16x32xf32>
    %363 = arith.mulf %360, %353 : vector<16x32xf32>
    %c560 = arith.constant 560 : index
    %c0_125 = arith.constant 0 : index
    %364 = vector.load %arg2[%c560, %c0_125] : memref<1136x128xbf16, #tpu.memory_space<vmem>>, vector<32x32xbf16>
    %365 = arith.truncf %363 : vector<16x32xf32> to vector<16x32xbf16>
    %cst_126 = arith.constant dense<0.000000e+00> : vector<16x32xf32>
    %366 = tpu.matmul %365, %364, %cst_126 {dimension_numbers = #tpu.dot_dimension_numbers<[1], [0], [0], [1], [0, 0, 1, 1], [], []>} : vector<16x32xbf16>, vector<32x32xbf16>, vector<16x32xf32> -> vector<16x32xf32>
    %367 = vector.broadcast %352 : vector<1x32xf32> to vector<16x32xf32>
    %368 = arith.addf %366, %367 : vector<16x32xf32>
    %369 = arith.addf %368, %362 : vector<16x32xf32>
    %370 = vector.extract_strided_slice %369 {offsets = [0, 0], sizes = [8, 32], strides = [1, 1]} : vector<16x32xf32> to vector<8x32xf32>
    %371 = vector.extract_strided_slice %369 {offsets = [8, 0], sizes = [8, 32], strides = [1, 1]} : vector<16x32xf32> to vector<8x32xf32>
    %372 = tpu.concatenate %351, %370, %351, %371 in 0 : vector<1x32xf32>, vector<8x32xf32>, vector<1x32xf32>, vector<8x32xf32> -> vector<18x32xf32>
    %c248 = arith.constant 248 : index
    %c0_127 = arith.constant 0 : index
    %373 = vector.load %arg3[%c248, %c0_127] : memref<288x128xf32, #tpu.memory_space<vmem>>, vector<18x72xf32>
    %c592 = arith.constant 592 : index
    %c0_128 = arith.constant 0 : index
    %374 = vector.load %arg2[%c592, %c0_128] : memref<1136x128xbf16, #tpu.memory_space<vmem>>, vector<32x96xbf16>
    %375 = arith.truncf %372 : vector<18x32xf32> to vector<18x32xbf16>
    %cst_129 = arith.constant dense<0.000000e+00> : vector<18x96xf32>
    %376 = tpu.matmul %375, %374, %cst_129 {dimension_numbers = #tpu.dot_dimension_numbers<[1], [0], [0], [1], [0, 0, 1, 1], [], []>} : vector<18x32xbf16>, vector<32x96xbf16>, vector<18x96xf32> -> vector<18x96xf32>
    %c45 = arith.constant 45 : index
    %c0_130 = arith.constant 0 : index
    %377 = vector.load %arg3[%c45, %c0_130] : memref<288x128xf32, #tpu.memory_space<vmem>>, vector<1x96xf32>
    %378 = vector.broadcast %377 : vector<1x96xf32> to vector<18x96xf32>
    %379 = arith.addf %376, %378 : vector<18x96xf32>
    %380 = vector.extract_strided_slice %379 {offsets = [0, 0], sizes = [18, 32], strides = [1, 1]} : vector<18x96xf32> to vector<18x32xf32>
    %cst_131 = arith.constant 0.353553385 : f32
    %381 = vector.broadcast %cst_131 : f32 to vector<18x32xf32>
    %382 = arith.mulf %380, %381 : vector<18x32xf32>
    %383 = vector.extract_strided_slice %379 {offsets = [0, 32], sizes = [18, 32], strides = [1, 1]} : vector<18x96xf32> to vector<18x32xf32>
    %384 = vector.extract_strided_slice %379 {offsets = [0, 64], sizes = [18, 32], strides = [1, 1]} : vector<18x96xf32> to vector<18x32xf32>
    %385 = tpu.concatenate %383, %383, %383, %383 in 0 : vector<18x32xf32>, vector<18x32xf32>, vector<18x32xf32>, vector<18x32xf32> -> vector<72x32xf32>
    %386 = arith.mulf %385, %0 : vector<72x32xf32>
    %387 = tpu.concatenate %384, %384, %384, %384 in 0 : vector<18x32xf32>, vector<18x32xf32>, vector<18x32xf32>, vector<18x32xf32> -> vector<72x32xf32>
    %388 = arith.mulf %387, %0 : vector<72x32xf32>
    %389 = arith.truncf %382 : vector<18x32xf32> to vector<18x32xbf16>
    %390 = arith.truncf %386 : vector<72x32xf32> to vector<72x32xbf16>
    %cst_132 = arith.constant dense<0.000000e+00> : vector<18x72xf32>
    %391 = tpu.matmul %389, %390, %cst_132 {dimension_numbers = #tpu.dot_dimension_numbers<[1], [1], [0], [0], [0, 0, 1, 0], [], []>} : vector<18x32xbf16>, vector<72x32xbf16>, vector<18x72xf32> -> vector<18x72xf32>
    %392 = arith.addf %391, %373 : vector<18x72xf32>
    %cst_133 = arith.constant dense<0xFF800000> : vector<18xf32>
    %393 = vector.multi_reduction <maximumf>, %392, %cst_133 [1] : vector<18x72xf32> to vector<18xf32>
    %394 = vector.shape_cast %393 : vector<18xf32> to vector<18x1xf32>
    %395 = vector.broadcast %394 : vector<18x1xf32> to vector<18x72xf32>
    %396 = arith.subf %392, %395 : vector<18x72xf32>
    %397 = math.exp %396 : vector<18x72xf32>
    %cst_134 = arith.constant dense<0.000000e+00> : vector<18x72xf32>
    %398 = tpu.matmul %397, %1, %cst_134 {dimension_numbers = #tpu.dot_dimension_numbers<[1], [0], [0], [1], [0, 0, 1, 1], [], []>} : vector<18x72xf32>, vector<72x72xf32>, vector<18x72xf32> -> vector<18x72xf32>
    %cst_135 = arith.constant 0.000000e+00 : f32
    %399 = vector.broadcast %cst_135 : f32 to vector<18x72xf32>
    %400 = arith.cmpf ogt, %398, %399 : vector<18x72xf32>
    %cst_136 = arith.constant 1.000000e+00 : f32
    %401 = vector.broadcast %cst_136 : f32 to vector<18x72xf32>
    %402 = arith.divf %401, %398 : vector<18x72xf32>
    %cst_137 = arith.constant 0.000000e+00 : f32
    %403 = vector.broadcast %cst_137 : f32 to vector<18x72xf32>
    %404 = arith.select %400, %402, %403 : vector<18x72xi1>, vector<18x72xf32>
    %405 = arith.mulf %397, %404 : vector<18x72xf32>
    %406 = arith.truncf %405 : vector<18x72xf32> to vector<18x72xbf16>
    %407 = arith.truncf %388 : vector<72x32xf32> to vector<72x32xbf16>
    %cst_138 = arith.constant dense<0.000000e+00> : vector<18x32xf32>
    %408 = tpu.matmul %406, %407, %cst_138 {dimension_numbers = #tpu.dot_dimension_numbers<[1], [0], [0], [1], [0, 0, 1, 1], [], []>} : vector<18x72xbf16>, vector<72x32xbf16>, vector<18x32xf32> -> vector<18x32xf32>
    %c624 = arith.constant 624 : index
    %c0_139 = arith.constant 0 : index
    %409 = vector.load %arg2[%c624, %c0_139] : memref<1136x128xbf16, #tpu.memory_space<vmem>>, vector<32x32xbf16>
    %410 = arith.truncf %408 : vector<18x32xf32> to vector<18x32xbf16>
    %cst_140 = arith.constant dense<0.000000e+00> : vector<18x32xf32>
    %411 = tpu.matmul %410, %409, %cst_140 {dimension_numbers = #tpu.dot_dimension_numbers<[1], [0], [0], [1], [0, 0, 1, 1], [], []>} : vector<18x32xbf16>, vector<32x32xbf16>, vector<18x32xf32> -> vector<18x32xf32>
    %c46 = arith.constant 46 : index
    %c0_141 = arith.constant 0 : index
    %412 = vector.load %arg3[%c46, %c0_141] : memref<288x128xf32, #tpu.memory_space<vmem>>, vector<1x32xf32>
    %413 = vector.broadcast %412 : vector<1x32xf32> to vector<18x32xf32>
    %414 = arith.addf %411, %413 : vector<18x32xf32>
    %415 = arith.addf %372, %414 : vector<18x32xf32>
    %cst_142 = arith.constant dense<0.000000e+00> : vector<18xf32>
    %416 = vector.multi_reduction <add>, %415, %cst_142 [1] : vector<18x32xf32> to vector<18xf32>
    %417 = vector.shape_cast %416 : vector<18xf32> to vector<18x1xf32>
    %cst_143 = arith.constant 3.200000e+01 : f32
    %418 = vector.broadcast %cst_143 : f32 to vector<18x1xf32>
    %419 = arith.divf %417, %418 : vector<18x1xf32>
    %420 = vector.broadcast %419 : vector<18x1xf32> to vector<18x32xf32>
    %421 = arith.subf %415, %420 : vector<18x32xf32>
    %422 = arith.mulf %421, %421 : vector<18x32xf32>
    %cst_144 = arith.constant dense<0.000000e+00> : vector<18xf32>
    %423 = vector.multi_reduction <add>, %422, %cst_144 [1] : vector<18x32xf32> to vector<18xf32>
    %424 = vector.shape_cast %423 : vector<18xf32> to vector<18x1xf32>
    %cst_145 = arith.constant 3.200000e+01 : f32
    %425 = vector.broadcast %cst_145 : f32 to vector<18x1xf32>
    %426 = arith.divf %424, %425 : vector<18x1xf32>
    %427 = vector.broadcast %419 : vector<18x1xf32> to vector<18x32xf32>
    %428 = arith.subf %415, %427 : vector<18x32xf32>
    %cst_146 = arith.constant 9.99999974E-6 : f32
    %429 = vector.broadcast %cst_146 : f32 to vector<18x1xf32>
    %430 = arith.addf %426, %429 : vector<18x1xf32>
    %431 = math.rsqrt %430 : vector<18x1xf32>
    %432 = vector.broadcast %431 : vector<18x1xf32> to vector<18x32xf32>
    %433 = arith.mulf %428, %432 : vector<18x32xf32>
    %c47 = arith.constant 47 : index
    %c0_147 = arith.constant 0 : index
    %434 = vector.load %arg3[%c47, %c0_147] : memref<288x128xf32, #tpu.memory_space<vmem>>, vector<1x32xf32>
    %435 = vector.broadcast %434 : vector<1x32xf32> to vector<18x32xf32>
    %436 = arith.mulf %433, %435 : vector<18x32xf32>
    %c48_148 = arith.constant 48 : index
    %c0_149 = arith.constant 0 : index
    %437 = vector.load %arg3[%c48_148, %c0_149] : memref<288x128xf32, #tpu.memory_space<vmem>>, vector<1x32xf32>
    %438 = vector.broadcast %437 : vector<1x32xf32> to vector<18x32xf32>
    %439 = arith.addf %436, %438 : vector<18x32xf32>
    %c656 = arith.constant 656 : index
    %c0_150 = arith.constant 0 : index
    %440 = vector.load %arg2[%c656, %c0_150] : memref<1136x128xbf16, #tpu.memory_space<vmem>>, vector<32x96xbf16>
    %441 = arith.truncf %439 : vector<18x32xf32> to vector<18x32xbf16>
    %cst_151 = arith.constant dense<0.000000e+00> : vector<18x96xf32>
    %442 = tpu.matmul %441, %440, %cst_151 {dimension_numbers = #tpu.dot_dimension_numbers<[1], [0], [0], [1], [0, 0, 1, 1], [], []>} : vector<18x32xbf16>, vector<32x96xbf16>, vector<18x96xf32> -> vector<18x96xf32>
    %c49 = arith.constant 49 : index
    %c0_152 = arith.constant 0 : index
    %443 = vector.load %arg3[%c49, %c0_152] : memref<288x128xf32, #tpu.memory_space<vmem>>, vector<1x96xf32>
    %444 = vector.broadcast %443 : vector<1x96xf32> to vector<18x96xf32>
    %445 = arith.addf %442, %444 : vector<18x96xf32>
    %446 = vector.extract_strided_slice %445 {offsets = [0, 0], sizes = [18, 32], strides = [1, 1]} : vector<18x96xf32> to vector<18x32xf32>
    %cst_153 = arith.constant 0.353553385 : f32
    %447 = vector.broadcast %cst_153 : f32 to vector<18x32xf32>
    %448 = arith.mulf %446, %447 : vector<18x32xf32>
    %449 = vector.extract_strided_slice %445 {offsets = [0, 32], sizes = [18, 32], strides = [1, 1]} : vector<18x96xf32> to vector<18x32xf32>
    %450 = vector.extract_strided_slice %445 {offsets = [0, 64], sizes = [18, 32], strides = [1, 1]} : vector<18x96xf32> to vector<18x32xf32>
    %451 = tpu.concatenate %449, %449, %449, %449 in 0 : vector<18x32xf32>, vector<18x32xf32>, vector<18x32xf32>, vector<18x32xf32> -> vector<72x32xf32>
    %452 = arith.mulf %451, %0 : vector<72x32xf32>
    %453 = tpu.concatenate %450, %450, %450, %450 in 0 : vector<18x32xf32>, vector<18x32xf32>, vector<18x32xf32>, vector<18x32xf32> -> vector<72x32xf32>
    %454 = arith.mulf %453, %0 : vector<72x32xf32>
    %455 = arith.truncf %448 : vector<18x32xf32> to vector<18x32xbf16>
    %456 = arith.truncf %452 : vector<72x32xf32> to vector<72x32xbf16>
    %cst_154 = arith.constant dense<0.000000e+00> : vector<18x72xf32>
    %457 = tpu.matmul %455, %456, %cst_154 {dimension_numbers = #tpu.dot_dimension_numbers<[1], [1], [0], [0], [0, 0, 1, 0], [], []>} : vector<18x32xbf16>, vector<72x32xbf16>, vector<18x72xf32> -> vector<18x72xf32>
    %458 = arith.addf %457, %2 : vector<18x72xf32>
    %cst_155 = arith.constant dense<0xFF800000> : vector<18xf32>
    %459 = vector.multi_reduction <maximumf>, %458, %cst_155 [1] : vector<18x72xf32> to vector<18xf32>
    %460 = vector.shape_cast %459 : vector<18xf32> to vector<18x1xf32>
    %461 = vector.broadcast %460 : vector<18x1xf32> to vector<18x72xf32>
    %462 = arith.subf %458, %461 : vector<18x72xf32>
    %463 = math.exp %462 : vector<18x72xf32>
    %cst_156 = arith.constant dense<0.000000e+00> : vector<18x72xf32>
    %464 = tpu.matmul %463, %1, %cst_156 {dimension_numbers = #tpu.dot_dimension_numbers<[1], [0], [0], [1], [0, 0, 1, 1], [], []>} : vector<18x72xf32>, vector<72x72xf32>, vector<18x72xf32> -> vector<18x72xf32>
    %cst_157 = arith.constant 0.000000e+00 : f32
    %465 = vector.broadcast %cst_157 : f32 to vector<18x72xf32>
    %466 = arith.cmpf ogt, %464, %465 : vector<18x72xf32>
    %cst_158 = arith.constant 1.000000e+00 : f32
    %467 = vector.broadcast %cst_158 : f32 to vector<18x72xf32>
    %468 = arith.divf %467, %464 : vector<18x72xf32>
    %cst_159 = arith.constant 0.000000e+00 : f32
    %469 = vector.broadcast %cst_159 : f32 to vector<18x72xf32>
    %470 = arith.select %466, %468, %469 : vector<18x72xi1>, vector<18x72xf32>
    %471 = arith.mulf %463, %470 : vector<18x72xf32>
    %472 = arith.truncf %471 : vector<18x72xf32> to vector<18x72xbf16>
    %473 = arith.truncf %454 : vector<72x32xf32> to vector<72x32xbf16>
    %cst_160 = arith.constant dense<0.000000e+00> : vector<18x32xf32>
    %474 = tpu.matmul %472, %473, %cst_160 {dimension_numbers = #tpu.dot_dimension_numbers<[1], [0], [0], [1], [0, 0, 1, 1], [], []>} : vector<18x72xbf16>, vector<72x32xbf16>, vector<18x32xf32> -> vector<18x32xf32>
    %c688 = arith.constant 688 : index
    %c0_161 = arith.constant 0 : index
    %475 = vector.load %arg2[%c688, %c0_161] : memref<1136x128xbf16, #tpu.memory_space<vmem>>, vector<32x32xbf16>
    %476 = arith.truncf %474 : vector<18x32xf32> to vector<18x32xbf16>
    %cst_162 = arith.constant dense<0.000000e+00> : vector<18x32xf32>
    %477 = tpu.matmul %476, %475, %cst_162 {dimension_numbers = #tpu.dot_dimension_numbers<[1], [0], [0], [1], [0, 0, 1, 1], [], []>} : vector<18x32xbf16>, vector<32x32xbf16>, vector<18x32xf32> -> vector<18x32xf32>
    %c50 = arith.constant 50 : index
    %c0_163 = arith.constant 0 : index
    %478 = vector.load %arg3[%c50, %c0_163] : memref<288x128xf32, #tpu.memory_space<vmem>>, vector<1x32xf32>
    %479 = vector.broadcast %478 : vector<1x32xf32> to vector<18x32xf32>
    %480 = arith.addf %477, %479 : vector<18x32xf32>
    %481 = arith.addf %439, %480 : vector<18x32xf32>
    %cst_164 = arith.constant dense<0.000000e+00> : vector<18xf32>
    %482 = vector.multi_reduction <add>, %481, %cst_164 [1] : vector<18x32xf32> to vector<18xf32>
    %483 = vector.shape_cast %482 : vector<18xf32> to vector<18x1xf32>
    %cst_165 = arith.constant 3.200000e+01 : f32
    %484 = vector.broadcast %cst_165 : f32 to vector<18x1xf32>
    %485 = arith.divf %483, %484 : vector<18x1xf32>
    %486 = vector.broadcast %485 : vector<18x1xf32> to vector<18x32xf32>
    %487 = arith.subf %481, %486 : vector<18x32xf32>
    %488 = arith.mulf %487, %487 : vector<18x32xf32>
    %cst_166 = arith.constant dense<0.000000e+00> : vector<18xf32>
    %489 = vector.multi_reduction <add>, %488, %cst_166 [1] : vector<18x32xf32> to vector<18xf32>
    %490 = vector.shape_cast %489 : vector<18xf32> to vector<18x1xf32>
    %cst_167 = arith.constant 3.200000e+01 : f32
    %491 = vector.broadcast %cst_167 : f32 to vector<18x1xf32>
    %492 = arith.divf %490, %491 : vector<18x1xf32>
    %493 = vector.broadcast %485 : vector<18x1xf32> to vector<18x32xf32>
    %494 = arith.subf %481, %493 : vector<18x32xf32>
    %cst_168 = arith.constant 9.99999974E-6 : f32
    %495 = vector.broadcast %cst_168 : f32 to vector<18x1xf32>
    %496 = arith.addf %492, %495 : vector<18x1xf32>
    %497 = math.rsqrt %496 : vector<18x1xf32>
    %498 = vector.broadcast %497 : vector<18x1xf32> to vector<18x32xf32>
    %499 = arith.mulf %494, %498 : vector<18x32xf32>
    %c51 = arith.constant 51 : index
    %c0_169 = arith.constant 0 : index
    %500 = vector.load %arg3[%c51, %c0_169] : memref<288x128xf32, #tpu.memory_space<vmem>>, vector<1x32xf32>
    %501 = vector.broadcast %500 : vector<1x32xf32> to vector<18x32xf32>
    %502 = arith.mulf %499, %501 : vector<18x32xf32>
    %c52 = arith.constant 52 : index
    %c0_170 = arith.constant 0 : index
    %503 = vector.load %arg3[%c52, %c0_170] : memref<288x128xf32, #tpu.memory_space<vmem>>, vector<1x32xf32>
    %504 = vector.broadcast %503 : vector<1x32xf32> to vector<18x32xf32>
    %505 = arith.addf %502, %504 : vector<18x32xf32>
    %c720 = arith.constant 720 : index
    %c0_171 = arith.constant 0 : index
    %506 = vector.load %arg2[%c720, %c0_171] : memref<1136x128xbf16, #tpu.memory_space<vmem>>, vector<32x128xbf16>
    %507 = arith.truncf %505 : vector<18x32xf32> to vector<18x32xbf16>
    %cst_172 = arith.constant dense<0.000000e+00> : vector<18x128xf32>
    %508 = tpu.matmul %507, %506, %cst_172 {dimension_numbers = #tpu.dot_dimension_numbers<[1], [0], [0], [1], [0, 0, 1, 1], [], []>} : vector<18x32xbf16>, vector<32x128xbf16>, vector<18x128xf32> -> vector<18x128xf32>
    %c53 = arith.constant 53 : index
    %c0_173 = arith.constant 0 : index
    %509 = vector.load %arg3[%c53, %c0_173] : memref<288x128xf32, #tpu.memory_space<vmem>>, vector<1x128xf32>
    %510 = vector.broadcast %509 : vector<1x128xf32> to vector<18x128xf32>
    %511 = arith.addf %508, %510 : vector<18x128xf32>
    %cst_174 = arith.constant 5.000000e-01 : f32
    %512 = vector.broadcast %cst_174 : f32 to vector<18x128xf32>
    %513 = arith.mulf %512, %511 : vector<18x128xf32>
    %cst_175 = arith.constant 0.707106769 : f32
    %514 = vector.broadcast %cst_175 : f32 to vector<18x128xf32>
    %515 = arith.mulf %511, %514 : vector<18x128xf32>
    %516 = math.erf %515 : vector<18x128xf32>
    %cst_176 = arith.constant 1.000000e+00 : f32
    %517 = vector.broadcast %cst_176 : f32 to vector<18x128xf32>
    %518 = arith.addf %517, %516 : vector<18x128xf32>
    %519 = arith.mulf %513, %518 : vector<18x128xf32>
    %c752 = arith.constant 752 : index
    %c0_177 = arith.constant 0 : index
    %520 = vector.load %arg2[%c752, %c0_177] : memref<1136x128xbf16, #tpu.memory_space<vmem>>, vector<128x32xbf16>
    %521 = arith.truncf %519 : vector<18x128xf32> to vector<18x128xbf16>
    %cst_178 = arith.constant dense<0.000000e+00> : vector<18x32xf32>
    %522 = tpu.matmul %521, %520, %cst_178 {dimension_numbers = #tpu.dot_dimension_numbers<[1], [0], [0], [1], [0, 0, 1, 1], [], []>} : vector<18x128xbf16>, vector<128x32xbf16>, vector<18x32xf32> -> vector<18x32xf32>
    %c54 = arith.constant 54 : index
    %c0_179 = arith.constant 0 : index
    %523 = vector.load %arg3[%c54, %c0_179] : memref<288x128xf32, #tpu.memory_space<vmem>>, vector<1x32xf32>
    %524 = vector.broadcast %523 : vector<1x32xf32> to vector<18x32xf32>
    %525 = arith.addf %522, %524 : vector<18x32xf32>
    %526 = arith.addf %505, %525 : vector<18x32xf32>
    %cst_180 = arith.constant dense<0.000000e+00> : vector<18xf32>
    %527 = vector.multi_reduction <add>, %526, %cst_180 [1] : vector<18x32xf32> to vector<18xf32>
    %528 = vector.shape_cast %527 : vector<18xf32> to vector<18x1xf32>
    %cst_181 = arith.constant 3.200000e+01 : f32
    %529 = vector.broadcast %cst_181 : f32 to vector<18x1xf32>
    %530 = arith.divf %528, %529 : vector<18x1xf32>
    %531 = vector.broadcast %530 : vector<18x1xf32> to vector<18x32xf32>
    %532 = arith.subf %526, %531 : vector<18x32xf32>
    %533 = arith.mulf %532, %532 : vector<18x32xf32>
    %cst_182 = arith.constant dense<0.000000e+00> : vector<18xf32>
    %534 = vector.multi_reduction <add>, %533, %cst_182 [1] : vector<18x32xf32> to vector<18xf32>
    %535 = vector.shape_cast %534 : vector<18xf32> to vector<18x1xf32>
    %cst_183 = arith.constant 3.200000e+01 : f32
    %536 = vector.broadcast %cst_183 : f32 to vector<18x1xf32>
    %537 = arith.divf %535, %536 : vector<18x1xf32>
    %538 = vector.broadcast %530 : vector<18x1xf32> to vector<18x32xf32>
    %539 = arith.subf %526, %538 : vector<18x32xf32>
    %cst_184 = arith.constant 9.99999974E-6 : f32
    %540 = vector.broadcast %cst_184 : f32 to vector<18x1xf32>
    %541 = arith.addf %537, %540 : vector<18x1xf32>
    %542 = math.rsqrt %541 : vector<18x1xf32>
    %543 = vector.broadcast %542 : vector<18x1xf32> to vector<18x32xf32>
    %544 = arith.mulf %539, %543 : vector<18x32xf32>
    %c55 = arith.constant 55 : index
    %c0_185 = arith.constant 0 : index
    %545 = vector.load %arg3[%c55, %c0_185] : memref<288x128xf32, #tpu.memory_space<vmem>>, vector<1x32xf32>
    %546 = vector.broadcast %545 : vector<1x32xf32> to vector<18x32xf32>
    %547 = arith.mulf %544, %546 : vector<18x32xf32>
    %c56 = arith.constant 56 : index
    %c0_186 = arith.constant 0 : index
    %548 = vector.load %arg3[%c56, %c0_186] : memref<288x128xf32, #tpu.memory_space<vmem>>, vector<1x32xf32>
    %549 = vector.broadcast %548 : vector<1x32xf32> to vector<18x32xf32>
    %550 = arith.addf %547, %549 : vector<18x32xf32>
    %c880 = arith.constant 880 : index
    %c0_187 = arith.constant 0 : index
    %551 = vector.load %arg2[%c880, %c0_187] : memref<1136x128xbf16, #tpu.memory_space<vmem>>, vector<32x96xbf16>
    %552 = arith.truncf %550 : vector<18x32xf32> to vector<18x32xbf16>
    %cst_188 = arith.constant dense<0.000000e+00> : vector<18x96xf32>
    %553 = tpu.matmul %552, %551, %cst_188 {dimension_numbers = #tpu.dot_dimension_numbers<[1], [0], [0], [1], [0, 0, 1, 1], [], []>} : vector<18x32xbf16>, vector<32x96xbf16>, vector<18x96xf32> -> vector<18x96xf32>
    %c57 = arith.constant 57 : index
    %c0_189 = arith.constant 0 : index
    %554 = vector.load %arg3[%c57, %c0_189] : memref<288x128xf32, #tpu.memory_space<vmem>>, vector<1x96xf32>
    %555 = vector.broadcast %554 : vector<1x96xf32> to vector<18x96xf32>
    %556 = arith.addf %553, %555 : vector<18x96xf32>
    %557 = vector.extract_strided_slice %556 {offsets = [0, 0], sizes = [18, 32], strides = [1, 1]} : vector<18x96xf32> to vector<18x32xf32>
    %cst_190 = arith.constant 0.353553385 : f32
    %558 = vector.broadcast %cst_190 : f32 to vector<18x32xf32>
    %559 = arith.mulf %557, %558 : vector<18x32xf32>
    %560 = vector.extract_strided_slice %556 {offsets = [0, 32], sizes = [18, 32], strides = [1, 1]} : vector<18x96xf32> to vector<18x32xf32>
    %561 = vector.extract_strided_slice %556 {offsets = [0, 64], sizes = [18, 32], strides = [1, 1]} : vector<18x96xf32> to vector<18x32xf32>
    %562 = tpu.concatenate %560, %560, %560, %560 in 0 : vector<18x32xf32>, vector<18x32xf32>, vector<18x32xf32>, vector<18x32xf32> -> vector<72x32xf32>
    %563 = arith.mulf %562, %0 : vector<72x32xf32>
    %564 = tpu.concatenate %561, %561, %561, %561 in 0 : vector<18x32xf32>, vector<18x32xf32>, vector<18x32xf32>, vector<18x32xf32> -> vector<72x32xf32>
    %565 = arith.mulf %564, %0 : vector<72x32xf32>
    %566 = arith.truncf %559 : vector<18x32xf32> to vector<18x32xbf16>
    %567 = arith.truncf %563 : vector<72x32xf32> to vector<72x32xbf16>
    %cst_191 = arith.constant dense<0.000000e+00> : vector<18x72xf32>
    %568 = tpu.matmul %566, %567, %cst_191 {dimension_numbers = #tpu.dot_dimension_numbers<[1], [1], [0], [0], [0, 0, 1, 0], [], []>} : vector<18x32xbf16>, vector<72x32xbf16>, vector<18x72xf32> -> vector<18x72xf32>
    %569 = arith.addf %568, %2 : vector<18x72xf32>
    %cst_192 = arith.constant dense<0xFF800000> : vector<18xf32>
    %570 = vector.multi_reduction <maximumf>, %569, %cst_192 [1] : vector<18x72xf32> to vector<18xf32>
    %571 = vector.shape_cast %570 : vector<18xf32> to vector<18x1xf32>
    %572 = vector.broadcast %571 : vector<18x1xf32> to vector<18x72xf32>
    %573 = arith.subf %569, %572 : vector<18x72xf32>
    %574 = math.exp %573 : vector<18x72xf32>
    %cst_193 = arith.constant dense<0.000000e+00> : vector<18x72xf32>
    %575 = tpu.matmul %574, %1, %cst_193 {dimension_numbers = #tpu.dot_dimension_numbers<[1], [0], [0], [1], [0, 0, 1, 1], [], []>} : vector<18x72xf32>, vector<72x72xf32>, vector<18x72xf32> -> vector<18x72xf32>
    %cst_194 = arith.constant 0.000000e+00 : f32
    %576 = vector.broadcast %cst_194 : f32 to vector<18x72xf32>
    %577 = arith.cmpf ogt, %575, %576 : vector<18x72xf32>
    %cst_195 = arith.constant 1.000000e+00 : f32
    %578 = vector.broadcast %cst_195 : f32 to vector<18x72xf32>
    %579 = arith.divf %578, %575 : vector<18x72xf32>
    %cst_196 = arith.constant 0.000000e+00 : f32
    %580 = vector.broadcast %cst_196 : f32 to vector<18x72xf32>
    %581 = arith.select %577, %579, %580 : vector<18x72xi1>, vector<18x72xf32>
    %582 = arith.mulf %574, %581 : vector<18x72xf32>
    %583 = arith.truncf %582 : vector<18x72xf32> to vector<18x72xbf16>
    %584 = arith.truncf %565 : vector<72x32xf32> to vector<72x32xbf16>
    %cst_197 = arith.constant dense<0.000000e+00> : vector<18x32xf32>
    %585 = tpu.matmul %583, %584, %cst_197 {dimension_numbers = #tpu.dot_dimension_numbers<[1], [0], [0], [1], [0, 0, 1, 1], [], []>} : vector<18x72xbf16>, vector<72x32xbf16>, vector<18x32xf32> -> vector<18x32xf32>
    %c912 = arith.constant 912 : index
    %c0_198 = arith.constant 0 : index
    %586 = vector.load %arg2[%c912, %c0_198] : memref<1136x128xbf16, #tpu.memory_space<vmem>>, vector<32x32xbf16>
    %587 = arith.truncf %585 : vector<18x32xf32> to vector<18x32xbf16>
    %cst_199 = arith.constant dense<0.000000e+00> : vector<18x32xf32>
    %588 = tpu.matmul %587, %586, %cst_199 {dimension_numbers = #tpu.dot_dimension_numbers<[1], [0], [0], [1], [0, 0, 1, 1], [], []>} : vector<18x32xbf16>, vector<32x32xbf16>, vector<18x32xf32> -> vector<18x32xf32>
    %c58 = arith.constant 58 : index
    %c0_200 = arith.constant 0 : index
    %589 = vector.load %arg3[%c58, %c0_200] : memref<288x128xf32, #tpu.memory_space<vmem>>, vector<1x32xf32>
    %590 = vector.broadcast %589 : vector<1x32xf32> to vector<18x32xf32>
    %591 = arith.addf %588, %590 : vector<18x32xf32>
    %592 = arith.addf %550, %591 : vector<18x32xf32>
    %cst_201 = arith.constant dense<0.000000e+00> : vector<18xf32>
    %593 = vector.multi_reduction <add>, %592, %cst_201 [1] : vector<18x32xf32> to vector<18xf32>
    %594 = vector.shape_cast %593 : vector<18xf32> to vector<18x1xf32>
    %cst_202 = arith.constant 3.200000e+01 : f32
    %595 = vector.broadcast %cst_202 : f32 to vector<18x1xf32>
    %596 = arith.divf %594, %595 : vector<18x1xf32>
    %597 = vector.broadcast %596 : vector<18x1xf32> to vector<18x32xf32>
    %598 = arith.subf %592, %597 : vector<18x32xf32>
    %599 = arith.mulf %598, %598 : vector<18x32xf32>
    %cst_203 = arith.constant dense<0.000000e+00> : vector<18xf32>
    %600 = vector.multi_reduction <add>, %599, %cst_203 [1] : vector<18x32xf32> to vector<18xf32>
    %601 = vector.shape_cast %600 : vector<18xf32> to vector<18x1xf32>
    %cst_204 = arith.constant 3.200000e+01 : f32
    %602 = vector.broadcast %cst_204 : f32 to vector<18x1xf32>
    %603 = arith.divf %601, %602 : vector<18x1xf32>
    %604 = vector.broadcast %596 : vector<18x1xf32> to vector<18x32xf32>
    %605 = arith.subf %592, %604 : vector<18x32xf32>
    %cst_205 = arith.constant 9.99999974E-6 : f32
    %606 = vector.broadcast %cst_205 : f32 to vector<18x1xf32>
    %607 = arith.addf %603, %606 : vector<18x1xf32>
    %608 = math.rsqrt %607 : vector<18x1xf32>
    %609 = vector.broadcast %608 : vector<18x1xf32> to vector<18x32xf32>
    %610 = arith.mulf %605, %609 : vector<18x32xf32>
    %c59 = arith.constant 59 : index
    %c0_206 = arith.constant 0 : index
    %611 = vector.load %arg3[%c59, %c0_206] : memref<288x128xf32, #tpu.memory_space<vmem>>, vector<1x32xf32>
    %612 = vector.broadcast %611 : vector<1x32xf32> to vector<18x32xf32>
    %613 = arith.mulf %610, %612 : vector<18x32xf32>
    %c60 = arith.constant 60 : index
    %c0_207 = arith.constant 0 : index
    %614 = vector.load %arg3[%c60, %c0_207] : memref<288x128xf32, #tpu.memory_space<vmem>>, vector<1x32xf32>
    %615 = vector.broadcast %614 : vector<1x32xf32> to vector<18x32xf32>
    %616 = arith.addf %613, %615 : vector<18x32xf32>
    %c944 = arith.constant 944 : index
    %c0_208 = arith.constant 0 : index
    %617 = vector.load %arg2[%c944, %c0_208] : memref<1136x128xbf16, #tpu.memory_space<vmem>>, vector<32x128xbf16>
    %618 = arith.truncf %616 : vector<18x32xf32> to vector<18x32xbf16>
    %cst_209 = arith.constant dense<0.000000e+00> : vector<18x128xf32>
    %619 = tpu.matmul %618, %617, %cst_209 {dimension_numbers = #tpu.dot_dimension_numbers<[1], [0], [0], [1], [0, 0, 1, 1], [], []>} : vector<18x32xbf16>, vector<32x128xbf16>, vector<18x128xf32> -> vector<18x128xf32>
    %c61 = arith.constant 61 : index
    %c0_210 = arith.constant 0 : index
    %620 = vector.load %arg3[%c61, %c0_210] : memref<288x128xf32, #tpu.memory_space<vmem>>, vector<1x128xf32>
    %621 = vector.broadcast %620 : vector<1x128xf32> to vector<18x128xf32>
    %622 = arith.addf %619, %621 : vector<18x128xf32>
    %cst_211 = arith.constant 5.000000e-01 : f32
    %623 = vector.broadcast %cst_211 : f32 to vector<18x128xf32>
    %624 = arith.mulf %623, %622 : vector<18x128xf32>
    %cst_212 = arith.constant 0.707106769 : f32
    %625 = vector.broadcast %cst_212 : f32 to vector<18x128xf32>
    %626 = arith.mulf %622, %625 : vector<18x128xf32>
    %627 = math.erf %626 : vector<18x128xf32>
    %cst_213 = arith.constant 1.000000e+00 : f32
    %628 = vector.broadcast %cst_213 : f32 to vector<18x128xf32>
    %629 = arith.addf %628, %627 : vector<18x128xf32>
    %630 = arith.mulf %624, %629 : vector<18x128xf32>
    %c976 = arith.constant 976 : index
    %c0_214 = arith.constant 0 : index
    %631 = vector.load %arg2[%c976, %c0_214] : memref<1136x128xbf16, #tpu.memory_space<vmem>>, vector<128x32xbf16>
    %632 = arith.truncf %630 : vector<18x128xf32> to vector<18x128xbf16>
    %cst_215 = arith.constant dense<0.000000e+00> : vector<18x32xf32>
    %633 = tpu.matmul %632, %631, %cst_215 {dimension_numbers = #tpu.dot_dimension_numbers<[1], [0], [0], [1], [0, 0, 1, 1], [], []>} : vector<18x128xbf16>, vector<128x32xbf16>, vector<18x32xf32> -> vector<18x32xf32>
    %c62 = arith.constant 62 : index
    %c0_216 = arith.constant 0 : index
    %634 = vector.load %arg3[%c62, %c0_216] : memref<288x128xf32, #tpu.memory_space<vmem>>, vector<1x32xf32>
    %635 = vector.broadcast %634 : vector<1x32xf32> to vector<18x32xf32>
    %636 = arith.addf %633, %635 : vector<18x32xf32>
    %637 = arith.addf %616, %636 : vector<18x32xf32>
    %cst_217 = arith.constant dense<0.000000e+00> : vector<18xf32>
    %638 = vector.multi_reduction <add>, %637, %cst_217 [1] : vector<18x32xf32> to vector<18xf32>
    %639 = vector.shape_cast %638 : vector<18xf32> to vector<18x1xf32>
    %cst_218 = arith.constant 3.200000e+01 : f32
    %640 = vector.broadcast %cst_218 : f32 to vector<18x1xf32>
    %641 = arith.divf %639, %640 : vector<18x1xf32>
    %642 = vector.broadcast %641 : vector<18x1xf32> to vector<18x32xf32>
    %643 = arith.subf %637, %642 : vector<18x32xf32>
    %644 = arith.mulf %643, %643 : vector<18x32xf32>
    %cst_219 = arith.constant dense<0.000000e+00> : vector<18xf32>
    %645 = vector.multi_reduction <add>, %644, %cst_219 [1] : vector<18x32xf32> to vector<18xf32>
    %646 = vector.shape_cast %645 : vector<18xf32> to vector<18x1xf32>
    %cst_220 = arith.constant 3.200000e+01 : f32
    %647 = vector.broadcast %cst_220 : f32 to vector<18x1xf32>
    %648 = arith.divf %646, %647 : vector<18x1xf32>
    %649 = vector.broadcast %641 : vector<18x1xf32> to vector<18x32xf32>
    %650 = arith.subf %637, %649 : vector<18x32xf32>
    %cst_221 = arith.constant 9.99999974E-6 : f32
    %651 = vector.broadcast %cst_221 : f32 to vector<18x1xf32>
    %652 = arith.addf %648, %651 : vector<18x1xf32>
    %653 = math.rsqrt %652 : vector<18x1xf32>
    %654 = vector.broadcast %653 : vector<18x1xf32> to vector<18x32xf32>
    %655 = arith.mulf %650, %654 : vector<18x32xf32>
    %c63 = arith.constant 63 : index
    %c0_222 = arith.constant 0 : index
    %656 = vector.load %arg3[%c63, %c0_222] : memref<288x128xf32, #tpu.memory_space<vmem>>, vector<1x32xf32>
    %657 = vector.broadcast %656 : vector<1x32xf32> to vector<18x32xf32>
    %658 = arith.mulf %655, %657 : vector<18x32xf32>
    %c64 = arith.constant 64 : index
    %c0_223 = arith.constant 0 : index
    %659 = vector.load %arg3[%c64, %c0_223] : memref<288x128xf32, #tpu.memory_space<vmem>>, vector<1x32xf32>
    %660 = vector.broadcast %659 : vector<1x32xf32> to vector<18x32xf32>
    %661 = arith.addf %658, %660 : vector<18x32xf32>
    %cst_224 = arith.constant dense<0.000000e+00> : vector<18xf32>
    %662 = vector.multi_reduction <add>, %661, %cst_224 [1] : vector<18x32xf32> to vector<18xf32>
    %663 = vector.shape_cast %662 : vector<18xf32> to vector<18x1xf32>
    %cst_225 = arith.constant 3.200000e+01 : f32
    %664 = vector.broadcast %cst_225 : f32 to vector<18x1xf32>
    %665 = arith.divf %663, %664 : vector<18x1xf32>
    %666 = vector.broadcast %665 : vector<18x1xf32> to vector<18x32xf32>
    %667 = arith.subf %661, %666 : vector<18x32xf32>
    %668 = arith.mulf %667, %667 : vector<18x32xf32>
    %cst_226 = arith.constant dense<0.000000e+00> : vector<18xf32>
    %669 = vector.multi_reduction <add>, %668, %cst_226 [1] : vector<18x32xf32> to vector<18xf32>
    %670 = vector.shape_cast %669 : vector<18xf32> to vector<18x1xf32>
    %cst_227 = arith.constant 3.200000e+01 : f32
    %671 = vector.broadcast %cst_227 : f32 to vector<18x1xf32>
    %672 = arith.divf %670, %671 : vector<18x1xf32>
    %673 = vector.broadcast %665 : vector<18x1xf32> to vector<18x32xf32>
    %674 = arith.subf %661, %673 : vector<18x32xf32>
    %cst_228 = arith.constant 9.99999974E-6 : f32
    %675 = vector.broadcast %cst_228 : f32 to vector<18x1xf32>
    %676 = arith.addf %672, %675 : vector<18x1xf32>
    %677 = math.rsqrt %676 : vector<18x1xf32>
    %678 = vector.broadcast %677 : vector<18x1xf32> to vector<18x32xf32>
    %679 = arith.mulf %674, %678 : vector<18x32xf32>
    %c65 = arith.constant 65 : index
    %c0_229 = arith.constant 0 : index
    %680 = vector.load %arg3[%c65, %c0_229] : memref<288x128xf32, #tpu.memory_space<vmem>>, vector<1x32xf32>
    %681 = vector.broadcast %680 : vector<1x32xf32> to vector<18x32xf32>
    %682 = arith.mulf %679, %681 : vector<18x32xf32>
    %c66 = arith.constant 66 : index
    %c0_230 = arith.constant 0 : index
    %683 = vector.load %arg3[%c66, %c0_230] : memref<288x128xf32, #tpu.memory_space<vmem>>, vector<1x32xf32>
    %684 = vector.broadcast %683 : vector<1x32xf32> to vector<18x32xf32>
    %685 = arith.addf %682, %684 : vector<18x32xf32>
    %686 = vector.extract_strided_slice %685 {offsets = [1, 0], sizes = [8, 32], strides = [1, 1]} : vector<18x32xf32> to vector<8x32xf32>
    %687 = vector.extract_strided_slice %685 {offsets = [10, 0], sizes = [8, 32], strides = [1, 1]} : vector<18x32xf32> to vector<8x32xf32>
    %688 = tpu.concatenate %686, %687 in 0 : vector<8x32xf32>, vector<8x32xf32> -> vector<16x32xf32>
    %c1104 = arith.constant 1104 : index
    %c0_231 = arith.constant 0 : index
    %689 = vector.load %arg2[%c1104, %c0_231] : memref<1136x128xbf16, #tpu.memory_space<vmem>>, vector<32x128xbf16>
    %690 = arith.truncf %688 : vector<16x32xf32> to vector<16x32xbf16>
    %cst_232 = arith.constant dense<0.000000e+00> : vector<16x128xf32>
    %691 = tpu.matmul %690, %689, %cst_232 {dimension_numbers = #tpu.dot_dimension_numbers<[1], [0], [0], [1], [0, 0, 1, 1], [], []>} : vector<16x32xbf16>, vector<32x128xbf16>, vector<16x128xf32> -> vector<16x128xf32>
    %c67 = arith.constant 67 : index
    %c0_233 = arith.constant 0 : index
    %692 = vector.load %arg3[%c67, %c0_233] : memref<288x128xf32, #tpu.memory_space<vmem>>, vector<1x128xf32>
    %693 = vector.broadcast %692 : vector<1x128xf32> to vector<16x128xf32>
    %694 = arith.addf %691, %693 : vector<16x128xf32>
    %c0_234 = arith.constant 0 : index
    %c0_235 = arith.constant 0 : index
    %695 = vector.load %arg4[%c0_234, %c0_235] : memref<16x128xf32, #tpu.memory_space<vmem>>, vector<16x128xf32>
    tpu.vector_store %arg4[%c0_234, %c0_235], %694 {strides = array<i32>} : memref<16x128xf32, #tpu.memory_space<vmem>>, vector<16x128xf32>,
    return
  }
  func.func @transform_0(%arg0: i32) -> (i32, i32, i32) {
    %c0_i32 = arith.constant 0 : i32
    %c0_i32_0 = arith.constant 0 : i32
    %c0_i32_1 = arith.constant 0 : i32
    %c0_i32_2 = arith.constant 0 : i32
    return %c0_i32, %c0_i32_0, %c0_i32_1 : i32, i32, i32
  }
  func.func @transform_1(%arg0: i32) -> (i32, i32) {
    %c0_i32 = arith.constant 0 : i32
    %c0_i32_0 = arith.constant 0 : i32
    %c0_i32_1 = arith.constant 0 : i32
    return %c0_i32, %c0_i32_0 : i32, i32
  }
  func.func @transform_2(%arg0: i32) -> (i32, i32) {
    %c0_i32 = arith.constant 0 : i32
    %c0_i32_0 = arith.constant 0 : i32
    %c0_i32_1 = arith.constant 0 : i32
    return %c0_i32, %c0_i32_0 : i32, i32
  }
  func.func @transform_3(%arg0: i32) -> (i32, i32) {
    %c0_i32 = arith.constant 0 : i32
    %c0_i32_0 = arith.constant 0 : i32
    %c0_i32_1 = arith.constant 0 : i32
    return %c0_i32, %c0_i32_0 : i32, i32
  }
}

</mosaic_0001>

<bundles_post_ra>
// kernel: forward.1
= control target key start
LH: loop header
LB: loop body
LE: loop exit
PB: predicated region body
PF: predicated region fallthrough
CT: control target
= control target key end

     0   :  { %8 = vsyncpa [#allocation3], 0  ;;  %s6624_s0 = inlined_call_operand.vmem [shape: f32[2,8,2], index: 0, kind: input, shape index: {}]   ;;  %s6625_s1 = inlined_call_operand.hbm [shape: bf16[1136,128], index: 1, kind: input, shape index: {}]   ;;  %s6626_s2 = inlined_call_operand.hbm [shape: f32[288,128], index: 2, kind: input, shape index: {}]   ;;  %s6627_s3 = inlined_call_operand.vmem [shape: f32[16,128], index: 3, kind: output, shape index: {}]  }
   0x1   :  { %s16_s14 = sshll.u32 %s6625_s1, 4  ;;  %s17_s14 = int_to_ptr.hbm [resolvable:$true] %s16_s14 }
   0x2   :  { %9 = vsyncpa [#allocation5], 0  ;;  %s5231_s15 = smov [#allocation2]   ;;  %s29_s19 = sshll.u32 %s6626_s2, 4  ;;  %s30_s19 = int_to_ptr.hbm [resolvable:$true] %s29_s19 }
   0x3   :  { %s18_s16 = sshll.u32 %s5231_s15, 4  ;;  %s5232_s20 = smov 64   ;;  %s19_s16 = int_to_ptr.vmem [resolvable:$true] %s18_s16 }
   0x4   :  { %s5233_s21 = smov 4   ;;  %s5234_s22 = smov [#allocation4]  }
   0x5   :  { %24 = dma.hbm_to_vmem [thread:$0]  %s17_s14, 9088, %s19_s16, [#allocation3], %s5232_s20, %s5232_s20, %s5233_s21  }
   0x6   :  { %s31_s23 = sshll.u32 %s5234_s22, 4  ;;  %s5235_s24 = smov 128   ;;  %s32_s23 = int_to_ptr.vmem [resolvable:$true] %s31_s23 }
   0x7   :  { %s5236_s1 = smov 8  }
   0x8   :  { %37 = dma.hbm_to_vmem [thread:$0]  %s30_s19, 4608, %s32_s23, [#allocation5], %s5235_s24, %s5235_s24, %s5236_s1  }
   0x9   :  { %5227 = dma.done.wait [#allocation3], 9088  }
   0xa   :  { %5228 = vsyncadd [#allocation3], 4294958208 }
   0xb   :  { %5229 = dma.done.wait [#allocation5], 4608  }
   0xc   :  { %5230 = vsyncadd [#allocation5], 4294962688  ;;  %vm81_vm0 = vcmask 1040384   ;;  %v72_v0 = vld [vmem:[#allocation2] sm:$0x1]  ;;  %v4479_v2 = vld [vmem:[%s6624_s0 + $0x8] sm:$0xff] }
   0xd   :  { %v74_v1 = vld [vmem:[%s6624_s0] sm:$0xff]  ;;  %v83_v3 = vsel %vm81_vm0, %v72_v0, 0  ;;  %v108_v5 = vpack.c.bf16 %v4479_v2, %v4479_v2  ;;  %vm77_vm1 = vcmask 15360   ;;  %v4851_v6 = vld [vmem:[#allocation2 + $0x10] sm:$0xff]  ;;  %v4850_v7 = vld [vmem:[#allocation2 + $0x8] sm:$0xff]  ;;  %s5237_s28 = smov 32  }
   0xe   :  { %v75_v4 = vpack.c.bf16 %v74_v1, %v74_v1  ;;  %92 = vmatpush.bf16.msra.mxu0 %v83_v3  ;;  %119 = vmatpush.bf16.msra.mxu1 %v83_v3  ;;  %v5275_v8 = vld [vmem:[#allocation4 + $0x7c] sm:$0xff]  ;;  %v5277_v9 = vld [vmem:[#allocation4 + $0x84] sm:$0xff]  ;;  %v5289_v14 = vld [vmem:[#allocation4 + $0x74] sm:$0xff]  ;;  %vm6628_vm2 = vcmask 1046528   ;;  %vm137_vm3 = vcmask 1041408   ;;  %vm162_vm4 = vcmask 261120  }
   0xf   :  { %175 = vmatpush.bf16.msra.mxu2 %v4851_v6  ;;  %245 = vrot.lane.b32.xlu1 %v5275_v8, %s5237_s28  ;;  %v5283_v10 = vld [vmem:[#allocation4 + $0x64] sm:$0xff]  ;;  %v5295_v18 = vld [vmem:[#allocation4 + $0x6c] sm:$0xff]  ;;  %v5300_v26 = vld [vmem:[#allocation4 + $0x5c] sm:$0xff]  ;;  %vm6630_vm5 = vcmask 1045504   ;;  %vm6629_vm6 = vcmask 1043456   ;;  %s5238_s0 = smov 96  }
  0x10   :  { %247 = vrot.lane.b32.xlu0 %v5277_v9, %s5237_s28  ;;  %v68_v11 = vld [vmem:[#allocation4] sm:$0xff]  ;;  %v69_v12 = vld [vmem:[#allocation4 + $0x8] sm:$0x1]  ;;  %v70_v17 = vld [vmem:[#allocation4 + $0x9] sm:$0x1]  ;;  %241 = vrot.lane.b32.xlu2 %v5295_v18, %s5237_s28  ;;  %vm364_vm7 = vcmask 588800  }
  0x11   :  { %4478 = vmatmul.msk.bf16.vlgmr.msra.gmra.mxu0 %vm77_vm1, %v75_v4  ;;  %4480 = vmatmul.msk.bf16.vlgmr.msra.gmra.mxu1 %vm77_vm1, %v108_v5  ;;  %v5287_v13 = vld [vmem:[#allocation4 + $0x44] sm:$0xff]  ;;  %v101_v15 = vrot.slane %v68_v11, 1  ;;  %v102_v16 = vrot.slane %v69_v12, 1  ;;  %v71_v20 = vadd.f32 %v70_v17, %v68_v11  ;;  %v5302_v27 = vld [vmem:[#allocation4 + $0x54] sm:$0xff]  ;;  %v5320_v39 = vld [vmem:[#allocation4 + $0x4c] sm:$0xff]  ;;  %vm371_vm8 = vcmask 582656  }
  0x12   :  { %v4929_v19 = vld [vmem:[#allocation4 + $0xa] ss:$0 sm:$0xff]  ;;  %v4930_v46 = vld [vmem:[#allocation4 + $0xb] ss:$0 sm:$0xff] }
  0x13   :  { %176 = vmatpush.bf16.msra.mxu2 %v4850_v7  ;;  %v103_v22 = vsel %vm6628_vm2, %v101_v15, %v102_v16  ;;  %v130_v30 = vrot.slane %v71_v20, 7 }
  0x17   :  { %239 = vrot.lane.b32.xlu1 %v5283_v10, %s5237_s28 }
  0x18   :  { %243 = vrot.lane.b32.xlu0 %v5289_v14, %s5237_s28  ;;  %235 = vrot.lane.b32.xlu2 %v5302_v27, %s5237_s28 }
  0x1f   :  { %231 = vrot.lane.b32.xlu1 %v5287_v13, %s5237_s28 }
  0x20   :  { %237 = vrot.lane.b32.xlu0 %v5300_v26, %s5237_s28  ;;  %233 = vrot.lane.b32.xlu2 %v5320_v39, %s5237_s28 }
  0x6a   :  { %v5328_v42 = vpop.permute.xlu2 %241 }
  0x72   :  { %v5338_v49 = vpop.permute.xlu2 %235 }
  0x81   :  { %v5332_v44 = vpop.permute.xlu1 %245 }
  0x82   :  { %v5330_v43 = vpop.permute.xlu0 %247 }
  0x89   :  { %v5346_v55 = vpop.permute.xlu1 %239 }
  0x8a   :  { %v5342_v53 = vpop.permute.xlu0 %243 }
  0x8e   :  { %v94_v21 = vpop.f32.mrf.mxu0  ;;  %v121_v23 = vpop.f32.mrf.mxu1 }
  0x8f   :  { %v95_v24 = vadd.f32 %v4929_v19, %v94_v21  ;;  %v122_v25 = vadd.f32 %v4929_v19, %v121_v23 }
  0x91   :  { %v105_v28 = vadd.f32 %v103_v22, %v95_v24  ;;  %v125_v29 = vadd.f32 %v122_v25, %v103_v22  ;;  %v5386_v22 = vpop.permute.xlu2 %233  ;;  %v5396_v25 = vpop.permute.xlu1 %231 }
  0x92   :  { %v5389_v23 = vpop.permute.xlu0 %237 }
  0x93   :  { %v127_v31 = vrot.slane %v105_v28, 7  ;;  %v5306_v32 = vrot.slane %v125_v29, 6 }
  0x95   :  { %v5311_v33 = vsel %vm81_vm0, %v71_v20, %v127_v31  ;;  %v136_v34 = vsel %vm81_vm0, %v127_v31, %v130_v30  ;;  %v147_v40 = vpack.c.bf16 %v5306_v32, %v5306_v32 }
  0x96   :  { %v96_v35 = vpop.f32.mrf.mxu0  ;;  %v123_v36 = vpop.f32.mrf.mxu1  ;;  %v5316_v37 = vsel %vm137_vm3, %v136_v34, %v5306_v32 }
  0x97   :  { %v146_v38 = vpack.c.bf16 %v5316_v37, %v5311_v33 }
  0x99   :  { %4489 = vmatmul.msk.bf16.vlgmr.msra.gmra.mxu2 %vm162_vm4, %v146_v38 }
  0xa9   :  { %4490 = vmatmul.msk.bf16.gmra.mxu2 %vm162_vm4, %v147_v40 }
 0x11c   :  { %v178_v41 = vpop.f32.mrf.mxu2 }
 0x11d   :  { %v5336_v48 = vadd.f32 %v4930_v46, %v178_v41 }
 0x11f   :  { %v202_v56 = vrot.slane %v5336_v48, 4  ;;  %v211_v57 = vrot.slane %v5336_v48, 2  ;;  %v193_v6 = vrot.slane %v5336_v48, 6  ;;  %v258_v31 = vmul.f32 %v5396_v25, %v5336_v48 }
 0x124   :  { %v180_v45 = vpop.f32.mrf.mxu2 }
 0x125   :  { %v5334_v47 = vadd.f32 %v4930_v46, %v180_v45 }
 0x127   :  { %v212_v51 = vrot.slane %v5334_v47, 2  ;;  %v203_v52 = vrot.slane %v5334_v47, 4  ;;  %v194_v61 = vrot.slane %v5334_v47, 6  ;;  %v259_v29 = vmul.f32 %v5386_v22, %v5334_v47 }
 0x129   :  { %v5355_v62 = vsel %vm6629_vm6, %v202_v56, %v203_v52  ;;  %v5358_v63 = vsel %vm6630_vm5, %v211_v57, %v212_v51  ;;  %v5394_v24 = vsel %vm137_vm3, %v193_v6, %v194_v61  ;;  %v305_v35 = vpack.c.bf16 %v259_v29, %v258_v31  ;;  %v5426_v29 = vld [vmem:[#allocation4 + $0xbc] sm:$0xff] }
 0x12a   :  { %v263_v11 = vmul.f32 %v5328_v42, %v5355_v62  ;;  %v265_v15 = vmul.f32 %v5332_v44, %v5358_v63  ;;  %v261_v30 = vmul.f32 %v5389_v23, %v5394_v24 }
 0x12c   :  { %v183_v50 = vpop.f32.mrf.mxu2 }
 0x12d   :  { %v5344_v54 = vadd.f32 %v4930_v46, %v183_v50 }
 0x12f   :  { %v196_v58 = vrot.slane %v5344_v54, 6  ;;  %v205_v59 = vrot.slane %v5344_v54, 4  ;;  %v214_v60 = vrot.slane %v5344_v54, 2  ;;  %v5384_v21 = vsel %vm137_vm3, %v5344_v54, %v193_v6 }
 0x130   :  { %v260_v28 = vmul.f32 %v5338_v49, %v5384_v21 }
 0x131   :  { %v5361_v0 = vsel %vm6630_vm5, %v212_v51, %v214_v60  ;;  %v197_v1 = vsel %vm137_vm3, %v194_v61, %v196_v58  ;;  %v206_v2 = vsel %vm6629_vm6, %v203_v52, %v205_v59  ;;  %v187_v58 = vmul.f32 0.35355338, %v5336_v48 }
 0x132   :  { %v266_v3 = vmul.f32 %v5330_v43, %v5361_v0  ;;  %v5368_v4 = vsel %vm6629_vm6, %v197_v1, %v202_v56  ;;  %v5371_v5 = vsel %vm6630_vm5, %v206_v2, %v211_v57  ;;  %v306_v34 = vpack.c.bf16 %v261_v30, %v260_v28  ;;  %v139_v1 = vld [vmem:[#allocation4 + $0xe6] sm:$0xff] }
 0x133   :  { %v262_v7 = vmul.f32 %v5346_v55, %v5368_v4  ;;  %v264_v12 = vmul.f32 %v5342_v53, %v5371_v5  ;;  %v188_v57 = vmul.f32 0.35355338, %v5334_v47  ;;  %v189_v60 = vmul.f32 0.35355338, %v5344_v54  ;;  %v5423_v28 = vld [vmem:[#allocation4 + $0xc4] sm:$0xff] }
 0x134   :  { %v185_v16 = vpop.f32.mrf.mxu2  ;;  %v309_v17 = vpack.c.bf16 %v266_v3, %v266_v3 }
 0x135   :  { %v307_v19 = vpack.c.bf16 %v263_v11, %v262_v7  ;;  %v308_v20 = vpack.c.bf16 %v265_v15, %v264_v12  ;;  %v303_v59 = vpack.c.bf16 %v188_v57, %v187_v58  ;;  %v304_v61 = vpack.c.bf16 %v189_v60, %v189_v60  ;;  %v140_v7 = vld [vmem:[#allocation4 + $0xee] sm:$0xff]  ;;  %v141_v16 = vld [vmem:[#allocation4 + $0xf6] sm:$0x3] }
 0x136   :  { %323 = vrot.lane.b32.xlu0 %v309_v17, %s5238_s0 }
 0x137   :  { %319 = vrot.lane.b32.xlu2 %v307_v19, %s5238_s0  ;;  %321 = vrot.lane.b32.xlu1 %v308_v20, %s5238_s0  ;;  %v5421_v20 = vld [vmem:[#allocation4 + $0xcc] sm:$0xff] }
 0x138   :  { %400 = vmatpush.msrb.mxu0 %v5421_v20 }
 0x13a   :  { %401 = vmatpush.msrb.mxu0 %v5423_v28 }
 0x13c   :  { %402 = vmatpush.msrb.mxu0 %v5426_v29 }
 0x13e   :  { %317 = vrot.lane.b32.xlu0 %v306_v34, %s5238_s0 }
 0x13f   :  { %315 = vrot.lane.b32.xlu1 %v305_v35, %s5238_s0 }
 0x191   :  { %v320_v45 = vpop.permute.xlu2 %319 }
 0x192   :  { %v338_v46 = vsel %vm162_vm4, %v320_v45, 0 }
 0x1a8   :  { %v324_v36 = vpop.permute.xlu0 %323 }
 0x1a9   :  { %v344_v38 = vsel %vm162_vm4, %v324_v36, 0  ;;  %v322_v40 = vpop.permute.xlu1 %321 }
 0x1aa   :  { %349 = vmatpush.bf16.xpose.msra.mxu3 %v344_v38  ;;  %v341_v41 = vsel %vm162_vm4, %v322_v40, 0 }
 0x1b0   :  { %v318_v50 = vpop.permute.xlu0 %317 }
 0x1b1   :  { %v335_v51 = vsel %vm162_vm4, %v318_v50, 0  ;;  %v316_v52 = vpop.permute.xlu1 %315 }
 0x1b2   :  { %350 = vmatpush.bf16.xpose.msra.mxu3 %v341_v41  ;;  %v332_v56 = vsel %vm162_vm4, %v316_v52, 0 }
 0x1ba   :  { %351 = vmatpush.bf16.xpose.msra.mxu3 %v338_v46 }
 0x1c2   :  { %352 = vmatpush.bf16.xpose.msra.mxu3 %v335_v51 }
 0x1ca   :  { %353 = vmatpush.bf16.xpose.msra.mxu3 %v332_v56 }
 0x1d1   :  { %4491 = vmatmul.msk.bf16.vlgmr.msra.gmra.mxu3 %vm162_vm4, %v303_v59 }
 0x1e1   :  { %4492 = vmatmul.msk.bf16.gmra.mxu3 %vm162_vm4, %v304_v61 }
 0x254   :  { %v355_v2 = vpop.f32.mrf.mxu3 }
 0x255   :  { %v356_v3 = vadd.f32 %v355_v2, %v139_v1 }
 0x257   :  { %v365_v6 = vsel %vm364_vm7, %v356_v3, -inf }
 0x258   :  { %366 = vmax.xlane.f32.xlu2 %v365_v6 }
 0x25c   :  { %v357_v11 = vpop.f32.mrf.mxu3 }
 0x25d   :  { %v358_v12 = vadd.f32 %v357_v11, %v140_v7 }
 0x25f   :  { %v368_v15 = vsel %vm364_vm7, %v358_v12, -inf }
 0x260   :  { %369 = vmax.xlane.f32.xlu0 %v368_v15 }
 0x264   :  { %v360_v17 = vpop.f32.mrf.mxu3 }
 0x265   :  { %v361_v54 = vadd.f32 %v360_v17, %v141_v16 }
 0x267   :  { %v372_v19 = vsel %vm371_vm8, %v361_v54, -inf }
 0x268   :  { %373 = vmax.xlane.f32.xlu1 %v372_v19 }
 0x26c   :  { %v362_v30 = vpop.f32.mrf.mxu3 }
 0x270   :  { %283 = vrot.lane.b32.xlu2 %v5277_v9, %s5232_s20  ;;  %v5448_v9 = vld [vmem:[#allocation4 + $0xb4] sm:$0xff] }
 0x271   :  { %403 = vmatpush.msrb.mxu0 %v5448_v9 }
 0x274   :  { %279 = vrot.lane.b32.xlu0 %v5289_v14, %s5232_s20  ;;  %v5454_v14 = vld [vmem:[#allocation4 + $0xa4] sm:$0xff] }
 0x278   :  { %275 = vrot.lane.b32.xlu2 %v5283_v10, %s5232_s20  ;;  %v5451_v10 = vld [vmem:[#allocation4 + $0xac] sm:$0xff] }
 0x279   :  { %404 = vmatpush.msrb.mxu0 %v5451_v10 }
 0x27b   :  { %405 = vmatpush.msrb.mxu0 %v5454_v14 }
 0x27c   :  { %277 = vrot.lane.b32.xlu0 %v5295_v18, %s5232_s20  ;;  %v5463_v18 = vld [vmem:[#allocation4 + $0x8c] sm:$0xff] }
 0x280   :  { %271 = vrot.lane.b32.xlu2 %v5302_v27, %s5232_s20 }
 0x281   :  { %281 = vrot.lane.b32.xlu1 %v5275_v8, %s5232_s20  ;;  %v5456_v8 = vld [vmem:[#allocation4 + $0x9c] sm:$0xff] }
 0x282   :  { %406 = vmatpush.msrb.mxu0 %v5456_v8 }
 0x284   :  { %267 = vrot.lane.b32.xlu0 %v5287_v13, %s5232_s20  ;;  %v5460_v13 = vld [vmem:[#allocation4 + $0x94] sm:$0xff] }
 0x285   :  { %407 = vmatpush.msrb.mxu0 %v5460_v13 }
 0x287   :  { %408 = vmatpush.msrb.mxu0 %v5463_v18 }
 0x288   :  { %269 = vrot.lane.b32.xlu2 %v5320_v39, %s5232_s20 }
 0x289   :  { %273 = vrot.lane.b32.xlu1 %v5300_v26, %s5232_s20 }
 0x2cb   :  { %v367_v26 = vpop.xlane.xlu2 %366 }
 0x2cc   :  { %v375_v27 = vsub.f32 %v356_v3, %v367_v26 }
 0x2ce   :  { %v378_v39 = vmul.f32 1.442695, %v375_v27 }
 0x2d0   :  { %4977 = vpow2.f32 %v378_v39 }
 0x2d3   :  { %v370_v31 = vpop.xlane.xlu0 %369  ;;  %v5466_v34 = vpop.permute.xlu2 %283 }
 0x2d4   :  { %v376_v35 = vsub.f32 %v358_v12, %v370_v31  ;;  %v302_v36 = vmul.f32 %v5466_v34, %v5361_v0 }
 0x2d6   :  { %v5470_v38 = vpop.eup %4977  ;;  %v380_v40 = vmul.f32 1.442695, %v376_v35  ;;  %v479_v41 = vpack.c.bf16 %v302_v36, %v302_v36 }
 0x2d7   :  { %4493 = vmatmul.msk.f32.vlgmr.msrb.gmra.mxu0 %vm364_vm7, %v5470_v38 }
 0x2d8   :  { %4979 = vpow2.f32 %v380_v40  ;;  %493 = vrot.lane.b32.xlu1 %v479_v41, %s5232_s20 }
 0x2db   :  { %v374_v45 = vpop.xlane.xlu1 %373  ;;  %v5479_v0 = vpop.permute.xlu2 %275 }
 0x2dc   :  { %v377_v46 = vsub.f32 %v361_v54, %v374_v45  ;;  %v298_v59 = vmul.f32 %v5479_v0, %v5368_v4 }
 0x2de   :  { %v5475_v50 = vpop.eup %4979  ;;  %v382_v51 = vmul.f32 1.442695, %v377_v46 }
 0x2df   :  { %4494 = vmatmul.msk.f32.gmra.mxu0 %vm364_vm7, %v5475_v50 }
 0x2e0   :  { %4981 = vpow2.f32 %v382_v51 }
 0x2e3   :  { %v5489_v58 = vpop.permute.xlu2 %271 }
 0x2e4   :  { %v296_v12 = vmul.f32 %v5489_v58, %v5384_v21 }
 0x2e6   :  { %v5481_v52 = vpop.eup %4981  ;;  %v5483_v56 = vpop.permute.xlu0 %279 }
 0x2e7   :  { %4495 = vmatmul.msk.f32.gmra.mxu0 %vm364_vm7, %v5481_v52  ;;  %v300_v2 = vmul.f32 %v5483_v56, %v5371_v5 }
 0x2eb   :  { %v5505_v4 = vpop.permute.xlu2 %269 }
 0x2ee   :  { %v5487_v57 = vpop.permute.xlu0 %277 }
 0x2ef   :  { %v299_v60 = vmul.f32 %v5487_v57, %v5355_v62 }
 0x2f1   :  { %v477_v61 = vpack.c.bf16 %v299_v60, %v298_v59  ;;  %v4853_v59 = vld [vmem:[#allocation2 + $0x20] sm:$0xff] }
 0x2f2   :  { %558 = vmatpush.bf16.msrb.mxu2 %v4853_v59 }
 0x2f3   :  { %v5495_v1 = vpop.permute.xlu1 %281  ;;  %489 = vrot.lane.b32.xlu2 %v477_v61, %s5232_s20 }
 0x2f4   :  { %v301_v3 = vmul.f32 %v5495_v1, %v5358_v63  ;;  %v295_v63 = vmul.f32 %v5505_v4, %v5334_v47 }
 0x2f6   :  { %v478_v6 = vpack.c.bf16 %v301_v3, %v300_v2  ;;  %v5502_v7 = vpop.permute.xlu0 %267 }
 0x2f7   :  { %v294_v62 = vmul.f32 %v5502_v7, %v5336_v48 }
 0x2f8   :  { %491 = vrot.lane.b32.xlu0 %v478_v6, %s5232_s20 }
 0x2f9   :  { %v475_v16 = vpack.c.bf16 %v295_v63, %v294_v62  ;;  %v4852_v62 = vld [vmem:[#allocation2 + $0x18] sm:$0xff] }
 0x2fa   :  { %559 = vmatpush.bf16.msrb.mxu2 %v4852_v62 }
 0x2fb   :  { %v5509_v11 = vpop.permute.xlu1 %273 }
 0x2fc   :  { %v297_v5 = vmul.f32 %v5509_v11, %v5394_v24 }
 0x2fe   :  { %v476_v15 = vpack.c.bf16 %v297_v5, %v296_v12  ;;  %847 = vmatpush.msra.mxu2 %v5421_v20 }
 0x300   :  { %487 = vrot.lane.b32.xlu1 %v476_v15, %s5232_s20  ;;  %485 = vrot.lane.b32.xlu0 %v475_v16, %s5232_s20 }
 0x301   :  { %848 = vmatpush.msra.mxu2 %v5423_v28 }
 0x303   :  { %849 = vmatpush.msra.mxu2 %v5426_v29 }
 0x305   :  { %850 = vmatpush.msra.mxu2 %v5448_v9 }
 0x307   :  { %851 = vmatpush.msra.mxu2 %v5451_v10 }
 0x309   :  { %852 = vmatpush.msra.mxu2 %v5454_v14 }
 0x30b   :  { %853 = vmatpush.msra.mxu2 %v5456_v8 }
 0x30d   :  { %854 = vmatpush.msra.mxu2 %v5460_v13  ;;  %v4931_v13 = vld [vmem:[#allocation4 + $0xc] ss:$0 sm:$0xff] }
 0x30f   :  { %855 = vmatpush.msra.mxu2 %v5463_v18 }
 0x34a   :  { %v494_v17 = vpop.permute.xlu1 %493 }
 0x34b   :  { %v506_v48 = vsel %vm6629_vm6, %v494_v17, 0 }
 0x34c   :  { %511 = vmatpush.bf16.msrb.mxu1 %v506_v48 }
 0x34d   :  { %v490_v5 = vpop.permute.xlu2 %489 }
 0x354   :  { %v410_v54 = vpop.f32.mrf.mxu0 }
 0x355   :  { %4983 = vrcp.f32 %v410_v54  ;;  %v433_v45 = vand.u32 2147483648, %v410_v54  ;;  %vm427_vm12 = vweird.f32 %v410_v54  ;;  %v431_v61 = vand.u32 2147483647, %v410_v54 }
 0x357   :  { %v434_v63 = vor.u32 1.1754944e-38, %v433_v45  ;;  %vm432_vm1 = vcmp.eq.f32.partialorder %v431_v61, 8.507059e+37 }
 0x35b   :  { %v4984_v19 = vpop.eup %4983 }
 0x35c   :  { %v413_v21 = vpop.f32.mrf.mxu0  ;;  %v423_v30 = vmul.f32 %v4984_v19, %v410_v54  ;;  %vm428_vm10 = vweird.f32 %v4984_v19 }
 0x35d   :  { %4985 = vrcp.f32 %v413_v21  ;;  %v448_v36 = vand.u32 2147483648, %v413_v21  ;;  %v446_v40 = vand.u32 2147483647, %v413_v21  ;;  %vm442_vm11 = vweird.f32 %v413_v21  ;;  %vm429_vm14 = vmor %vm427_vm12, %vm428_vm10 }
 0x35e   :  { %v424_v24 = vsub.f32 1.0, %v423_v30  ;;  %vm420_vm2 = vcmp.gt.f32.partialorder %v413_v21, 0.0 }
 0x35f   :  { %v449_v2 = vor.u32 1.1754944e-38, %v448_v36  ;;  %vm447_vm15 = vcmp.eq.f32.partialorder %v446_v40, 8.507059e+37 }
 0x360   :  { %v425_v39 = vmul.f32 %v4984_v19, %v424_v24 }
 0x362   :  { %v426_v41 = vadd.f32 %v4984_v19, %v425_v39 }
 0x363   :  { %v4986_v26 = vpop.eup %4985 }
 0x364   :  { %v438_v27 = vmul.f32 %v4986_v26, %v413_v21  ;;  %v5520_v47 = vpop.f32.mrf.mxu0  ;;  %vm443_vm9 = vweird.f32 %v4986_v26  ;;  %v430_v12 = vsel %vm429_vm14, %v4984_v19, %v426_v41  ;;  %vm579_vm14 = vcmask 254976  }
 0x365   :  { %4987 = vrcp.f32 %v5520_v47  ;;  %vm444_vm13 = vmor %vm442_vm11, %vm443_vm9  ;;  %v435_v17 = vsel %vm432_vm1, %v434_v63, %v430_v12  ;;  %vm419_vm9 = vcmp.gt.f32.partialorder %v410_v54, 0.0  ;;  %v463_v54 = vand.u32 2147483648, %v5520_v47 }
 0x366   :  { %v439_v31 = vsub.f32 1.0, %v438_v27  ;;  %v467_v24 = vsel %vm419_vm9, %v435_v17, 0.0 }
 0x367   :  { %v470_v39 = vmul.f32 %v5470_v38, %v467_v24  ;;  %v464_v29 = vor.u32 1.1754944e-38, %v463_v54 }
 0x368   :  { %v440_v35 = vmul.f32 %v4986_v26, %v439_v31  ;;  %v461_v31 = vand.u32 2147483647, %v5520_v47 }
 0x36a   :  { %v441_v46 = vadd.f32 %v4986_v26, %v440_v35  ;;  %v492_v51 = vpop.permute.xlu0 %491  ;;  %vm462_vm12 = vcmp.eq.f32.partialorder %v461_v31, 8.507059e+37 }
 0x36b   :  { %v4988_v60 = vpop.eup %4987  ;;  %512 = vmatpush.bf16.msrb.mxu1 %v492_v51 }
 0x36c   :  { %v453_v3 = vmul.f32 %v4988_v60, %v5520_v47  ;;  %v445_v6 = vsel %vm444_vm13, %v4986_v26, %v441_v46  ;;  %vm458_vm10 = vweird.f32 %v4988_v60  ;;  %vm421_vm13 = vcmp.gt.f32.partialorder %v5520_v47, 0.0 }
 0x36d   :  { %v450_v15 = vsel %vm447_vm15, %v449_v2, %v445_v6 }
 0x36e   :  { %v454_v16 = vsub.f32 1.0, %v453_v3  ;;  %v468_v48 = vsel %vm420_vm2, %v450_v15, 0.0  ;;  %vm457_vm2 = vweird.f32 %v5520_v47 }
 0x36f   :  { %513 = vmatpush.bf16.msrb.mxu1 %v490_v5  ;;  %v471_v19 = vmul.f32 %v5475_v50, %v468_v48  ;;  %vm459_vm11 = vmor %vm457_vm2, %vm458_vm10 }
 0x370   :  { %v455_v26 = vmul.f32 %v4988_v60, %v454_v16 }
 0x371   :  { %v473_v20 = vpack.c.bf16 %v471_v19, %v470_v39 }
 0x372   :  { %v488_v30 = vpop.permute.xlu1 %487  ;;  %v486_v27 = vpop.permute.xlu0 %485  ;;  %v456_v21 = vadd.f32 %v4988_v60, %v455_v26 }
 0x373   :  { %514 = vmatpush.bf16.msrb.mxu1 %v488_v30 }
 0x374   :  { %v460_v28 = vsel %vm459_vm11, %v4988_v60, %v456_v21 }
 0x375   :  { %v465_v9 = vsel %vm462_vm12, %v464_v29, %v460_v28 }
 0x376   :  { %v469_v38 = vsel %vm421_vm13, %v465_v9, 0.0 }
 0x377   :  { %515 = vmatpush.bf16.msrb.mxu1 %v486_v27  ;;  %v472_v10 = vmul.f32 %v5481_v52, %v469_v38  ;;  %v4855_v38 = vld [vmem:[#allocation2 + $0x30] sm:$0xff] }
 0x378   :  { %689 = vmatpush.bf16.msra.mxu0 %v4855_v38 }
 0x379   :  { %v474_v50 = vpack.c.bf16 %v472_v10, %v472_v10 }
 0x37a   :  { %4496 = vmatmul.msk.bf16.vlgmr.msrb.gmra.mxu1 %vm364_vm7, %v473_v20 }
 0x38a   :  { %4497 = vmatmul.msk.bf16.gmra.mxu1 %vm364_vm7, %v474_v50 }
 0x3f7   :  { %v517_v35 = vpop.f32.mrf.mxu1 }
 0x3ff   :  { %v519_v36 = vpop.f32.mrf.mxu1 }
 0x400   :  { %v530_v14 = vpack.c.bf16 %v519_v36, %v517_v35  ;;  %v4854_v35 = vld [vmem:[#allocation2 + $0x28] sm:$0xff] }
 0x401   :  { %690 = vmatpush.bf16.msra.mxu0 %v4854_v35 }
 0x402   :  { %4506 = vmatmul.msk.bf16.vlgmr.msrb.gmra.mxu2 %vm162_vm4, %v530_v14 }
 0x407   :  { %v522_v40 = vpop.f32.mrf.mxu1 }
 0x408   :  { %v531_v41 = vpack.c.bf16 %v522_v40, %v522_v40 }
 0x40f   :  { %v524_v8 = vpop.f32.mrf.mxu1 }
 0x412   :  { %4507 = vmatmul.msk.bf16.gmra.mxu2 %vm162_vm4, %v531_v41 }
 0x485   :  { %v561_v47 = vpop.f32.mrf.mxu2 }
 0x486   :  { %v562_v45 = vadd.f32 %v4931_v13, %v561_v47 }
 0x488   :  { %v570_v18 = vadd.f32 %v562_v45, %v5311_v33  ;;  %v5239_v33 = vmov 32.0  }
 0x489   :  { %4989 = vrcp.f32 %v5239_v33  ;;  %v4932_v33 = vld [vmem:[#allocation4 + $0xd] ss:$0 sm:$0xff] }
 0x48a   :  { %v573_v52 = vsel %vm162_vm4, %v570_v18, 0.0 }
 0x48b   :  { %574 = vadd.xlane.f32.xlu2 %v573_v52 }
 0x48d   :  { %v563_v46 = vpop.f32.mrf.mxu2 }
 0x48e   :  { %v564_v51 = vadd.f32 %v4931_v13, %v563_v46 }
 0x48f   :  { %v4990_v12 = vpop.eup %4989 }
 0x490   :  { %v571_v59 = vadd.f32 %v564_v51, %v5316_v37  ;;  %v584_v5 = vmul.f32 32.0, %v4990_v12  ;;  %vm588_vm15 = vweird.f32 %v4990_v12 }
 0x492   :  { %v576_v60 = vsel %vm162_vm4, %v571_v59, 0.0  ;;  %v585_v63 = vsub.f32 1.0, %v584_v5 }
 0x493   :  { %577 = vadd.xlane.f32.xlu1 %v576_v60 }
 0x494   :  { %v586_v15 = vmul.f32 %v4990_v12, %v585_v63 }
 0x495   :  { %v566_v61 = vpop.f32.mrf.mxu2 }
 0x496   :  { %v567_v2 = vadd.f32 %v4931_v13, %v566_v61  ;;  %v587_v16 = vadd.f32 %v4990_v12, %v586_v15 }
 0x498   :  { %v572_v3 = vadd.f32 %v567_v2, %v5306_v32  ;;  %v5550_v37 = vsel %vm588_vm15, %v4990_v12, %v587_v16 }
 0x49a   :  { %v580_v6 = vsel %vm579_vm14, %v572_v3, 0.0 }
 0x49b   :  { %581 = vadd.xlane.f32.xlu0 %v580_v6 }
 0x49d   :  { %v568_v62 = vpop.f32.mrf.mxu2 }
 0x4fe   :  { %v575_v17 = vpop.xlane.xlu2 %574 }
 0x4ff   :  { %v590_v48 = vmul.f32 %v5550_v37, %v575_v17  ;;  %v4933_v17 = vld [vmem:[#allocation4 + $0xe] ss:$0 sm:$0xff] }
 0x501   :  { %v593_v30 = vsub.f32 %v570_v18, %v590_v48 }
 0x503   :  { %v596_v24 = vmul.f32 %v593_v30, %v593_v30 }
 0x505   :  { %v599_v32 = vsel %vm162_vm4, %v596_v24, 0.0 }
 0x506   :  { %v578_v26 = vpop.xlane.xlu1 %577  ;;  %600 = vadd.xlane.f32.xlu2 %v599_v32 }
 0x507   :  { %v591_v19 = vmul.f32 %v5550_v37, %v578_v26 }
 0x509   :  { %v594_v27 = vsub.f32 %v571_v59, %v591_v19 }
 0x50b   :  { %v597_v39 = vmul.f32 %v594_v27, %v594_v27 }
 0x50d   :  { %v602_v21 = vsel %vm162_vm4, %v597_v39, 0.0 }
 0x50e   :  { %603 = vadd.xlane.f32.xlu1 %v602_v21  ;;  %v582_v20 = vpop.xlane.xlu0 %581 }
 0x50f   :  { %v592_v54 = vmul.f32 %v5550_v37, %v582_v20 }
 0x511   :  { %v595_v31 = vsub.f32 %v572_v3, %v592_v54 }
 0x513   :  { %v598_v28 = vmul.f32 %v595_v31, %v595_v31 }
 0x515   :  { %v605_v29 = vsel %vm579_vm14, %v598_v28, 0.0 }
 0x516   :  { %606 = vadd.xlane.f32.xlu0 %v605_v29 }
 0x579   :  { %v601_v9 = vpop.xlane.xlu2 %600 }
 0x57a   :  { %v608_v10 = vmul.f32 %v601_v9, %v5550_v37 }
 0x57c   :  { %v611_v50 = vadd.f32 1e-05, %v608_v10  ;;  %v4934_v10 = vld [vmem:[#allocation4 + $0xf] ss:$0 sm:$0xff] }
 0x57e   :  { %4991 = vrsqrt.f32 %v611_v50  ;;  %vm620_vm9 = vweird.f32 %v611_v50 }
 0x581   :  { %v604_v36 = vpop.xlane.xlu1 %603 }
 0x582   :  { %v609_v14 = vmul.f32 %v604_v36, %v5550_v37 }
 0x584   :  { %v4992_v40 = vpop.eup %4991  ;;  %v612_v8 = vadd.f32 1e-05, %v609_v14 }
 0x585   :  { %v615_v41 = vmul.f32 %v4992_v40, %v611_v50  ;;  %vm621_vm1 = vweird.f32 %v4992_v40 }
 0x586   :  { %4993 = vrsqrt.f32 %v612_v8  ;;  %vm622_vm10 = vmor %vm620_vm9, %vm621_vm1  ;;  %vm630_vm11 = vweird.f32 %v612_v8 }
 0x587   :  { %v616_v13 = vmul.f32 %v4992_v40, %v615_v41 }
 0x589   :  { %v617_v47 = vmul.f32 0.5, %v616_v13  ;;  %v607_v45 = vpop.xlane.xlu0 %606 }
 0x58a   :  { %v610_v18 = vmul.f32 %v607_v45, %v5550_v37 }
 0x58b   :  { %v618_v52 = vsub.f32 1.5, %v617_v47 }
 0x58c   :  { %v4994_v46 = vpop.eup %4993  ;;  %v613_v51 = vadd.f32 1e-05, %v610_v18 }
 0x58d   :  { %v619_v59 = vmul.f32 %v4992_v40, %v618_v52  ;;  %v625_v60 = vmul.f32 %v4994_v46, %v612_v8  ;;  %vm631_vm2 = vweird.f32 %v4994_v46 }
 0x58e   :  { %4995 = vrsqrt.f32 %v613_v51  ;;  %vm632_vm12 = vmor %vm630_vm11, %vm631_vm2  ;;  %vm640_vm15 = vweird.f32 %v613_v51 }
 0x58f   :  { %v626_v61 = vmul.f32 %v4994_v46, %v625_v60  ;;  %v623_v2 = vsel %vm622_vm10, %v4992_v40, %v619_v59 }
 0x590   :  { %v644_v12 = vmul.f32 %v623_v2, %v593_v30 }
 0x591   :  { %v627_v3 = vmul.f32 0.5, %v626_v61 }
 0x592   :  { %v649_v48 = vmul.f32 %v4932_v33, %v644_v12 }
 0x593   :  { %v628_v6 = vsub.f32 1.5, %v627_v3 }
 0x594   :  { %v4996_v62 = vpop.eup %4995  ;;  %v5561_v39 = vadd.f32 %v4933_v17, %v649_v48 }
 0x595   :  { %v629_v5 = vmul.f32 %v4994_v46, %v628_v6  ;;  %v635_v63 = vmul.f32 %v4996_v62, %v613_v51  ;;  %vm641_vm13 = vweird.f32 %v4996_v62 }
 0x596   :  { %vm642_vm1 = vmor %vm640_vm15, %vm641_vm13 }
 0x597   :  { %v633_v15 = vsel %vm632_vm12, %v4994_v46, %v629_v5  ;;  %v636_v16 = vmul.f32 %v4996_v62, %v635_v63 }
 0x598   :  { %v645_v24 = vmul.f32 %v633_v15, %v594_v27 }
 0x599   :  { %v637_v32 = vmul.f32 0.5, %v636_v16 }
 0x59a   :  { %v650_v26 = vmul.f32 %v4932_v33, %v645_v24 }
 0x59b   :  { %v638_v19 = vsub.f32 1.5, %v637_v32 }
 0x59c   :  { %v5563_v21 = vadd.f32 %v4933_v17, %v650_v26 }
 0x59d   :  { %v639_v20 = vmul.f32 %v4996_v62, %v638_v19 }
 0x59e   :  { %v661_v30 = vpack.c.bf16 %v5563_v21, %v5561_v39 }
 0x59f   :  { %v643_v54 = vsel %vm642_vm1, %v4996_v62, %v639_v20 }
 0x5a0   :  { %4516 = vmatmul.msk.bf16.vlgmr.msra.gmra.mxu0 %vm162_vm4, %v661_v30  ;;  %v646_v28 = vmul.f32 %v643_v54, %v595_v31 }
 0x5a2   :  { %v651_v29 = vmul.f32 %v4932_v33, %v646_v28 }
 0x5a4   :  { %v5568_v27 = vadd.f32 %v4933_v17, %v651_v29 }
 0x5a6   :  { %v662_v9 = vpack.c.bf16 %v5568_v27, %v5568_v27 }
 0x5b0   :  { %4517 = vmatmul.msk.bf16.gmra.mxu0 %vm162_vm4, %v662_v9 }
 0x61d   :  { %v692_v38 = vpop.f32.mrf.mxu0 }
 0x61e   :  { %v693_v50 = vadd.f32 %v4934_v10, %v692_v38 }
 0x620   :  { %v5573_v14 = vmul.f32 0.35355338, %v693_v50  ;;  %v5581_v41 = vmul.f32 %v693_v50, %v5502_v7  ;;  %v723_v18 = vrot.slane %v693_v50, 2  ;;  %v715_v51 = vrot.slane %v693_v50, 4 }
 0x621   :  { %v707_v59 = vrot.slane %v693_v50, 6 }
 0x625   :  { %v694_v35 = vpop.f32.mrf.mxu0 }
 0x626   :  { %v695_v36 = vadd.f32 %v4934_v10, %v694_v35 }
 0x628   :  { %v5575_v40 = vmul.f32 0.35355338, %v695_v36  ;;  %v5578_v8 = vmul.f32 %v695_v36, %v5505_v4  ;;  %v724_v31 = vrot.slane %v695_v36, 2  ;;  %v716_v13 = vrot.slane %v695_v36, 4 }
 0x629   :  { %v708_v47 = vrot.slane %v695_v36, 6 }
 0x62a   :  { %v752_v45 = vpack.c.bf16 %v5575_v40, %v5573_v14  ;;  %v922_v52 = vpack.c.bf16 %v5578_v8, %v5581_v41  ;;  %v725_v61 = vsel %vm6630_vm5, %v723_v18, %v724_v31  ;;  %v717_v2 = vsel %vm6629_vm6, %v715_v51, %v716_v13 }
 0x62b   :  { %v709_v3 = vsel %vm137_vm3, %v707_v59, %v708_v47  ;;  %v741_v5 = vmul.f32 %v725_v61, %v5332_v44  ;;  %v739_v48 = vmul.f32 %v717_v2, %v5328_v42  ;;  %v750_v54 = vmul.f32 %v725_v61, %v5495_v1 }
 0x62c   :  { %v5606_v19 = vmul.f32 %v709_v3, %v5509_v11  ;;  %v748_v28 = vmul.f32 %v717_v2, %v5487_v57  ;;  %v734_v61 = vmul.f32 %v693_v50, %v5396_v25 }
 0x62d   :  { %v697_v46 = vpop.f32.mrf.mxu0 }
 0x62e   :  { %v698_v60 = vadd.f32 %v4934_v10, %v697_v46 }
 0x630   :  { %v710_v6 = vrot.slane %v698_v60, 6  ;;  %v718_v62 = vrot.slane %v698_v60, 4  ;;  %v726_v33 = vrot.slane %v698_v60, 2  ;;  %v731_v12 = vsel %vm137_vm3, %v698_v60, %v707_v59 }
 0x631   :  { %v5593_v63 = vmul.f32 %v731_v12, %v5489_v58  ;;  %v736_v46 = vmul.f32 %v731_v12, %v5338_v49  ;;  %v737_v59 = vmul.f32 %v709_v3, %v5389_v23 }
 0x632   :  { %v5596_v15 = vsel %vm6630_vm5, %v724_v31, %v726_v33  ;;  %v719_v16 = vsel %vm6629_vm6, %v716_v13, %v718_v62  ;;  %v711_v17 = vsel %vm137_vm3, %v708_v47, %v710_v6 }
 0x633   :  { %v742_v24 = vmul.f32 %v5596_v15, %v5330_v43  ;;  %v733_v32 = vsel %vm6630_vm5, %v719_v16, %v723_v18  ;;  %v732_v26 = vsel %vm6629_vm6, %v711_v17, %v715_v51  ;;  %v923_v10 = vpack.c.bf16 %v5606_v19, %v5593_v63 }
 0x634   :  { %v740_v20 = vmul.f32 %v733_v32, %v5342_v53  ;;  %v738_v30 = vmul.f32 %v732_v26, %v5346_v55  ;;  %v749_v38 = vmul.f32 %v733_v32, %v5483_v56  ;;  %v747_v35 = vmul.f32 %v732_v26, %v5479_v0  ;;  %v65_v32 = vld [vmem:[#allocation4 + $0xd4] sm:$0xff] }
 0x635   :  { %v699_v29 = vpop.f32.mrf.mxu0  ;;  %v758_v9 = vpack.c.bf16 %v742_v24, %v742_v24  ;;  %v735_v51 = vmul.f32 %v695_v36, %v5386_v22  ;;  %v755_v2 = vpack.c.bf16 %v737_v59, %v736_v46 }
 0x636   :  { %v757_v31 = vpack.c.bf16 %v741_v5, %v740_v20  ;;  %v756_v13 = vpack.c.bf16 %v739_v48, %v738_v30  ;;  %v925_v47 = vpack.c.bf16 %v750_v54, %v749_v38  ;;  %v924_v18 = vpack.c.bf16 %v748_v28, %v747_v35  ;;  %v66_v30 = vld [vmem:[#allocation4 + $0xdc] sm:$0xff] }
 0x637   :  { %772 = vrot.lane.b32.xlu2 %v758_v9, %s5238_s0  ;;  %v754_v6 = vpack.c.bf16 %v735_v51, %v734_v61  ;;  %v703_v48 = vmul.f32 0.35355338, %v698_v60  ;;  %v67_v9 = vld [vmem:[#allocation4 + $0xe4] sm:$0x3]  ;;  %v751_v60 = vmul.f32 %v5596_v15, %v5466_v34 }
 0x638   :  { %770 = vrot.lane.b32.xlu1 %v757_v31, %s5238_s0  ;;  %768 = vrot.lane.b32.xlu0 %v756_v13, %s5238_s0 }
 0x639   :  { %v753_v24 = vpack.c.bf16 %v703_v48, %v703_v48  ;;  %v926_v35 = vpack.c.bf16 %v751_v60, %v751_v60 }
 0x63f   :  { %766 = vrot.lane.b32.xlu2 %v755_v2, %s5238_s0 }
 0x640   :  { %764 = vrot.lane.b32.xlu0 %v754_v6, %s5238_s0 }
 0x691   :  { %v773_v62 = vpop.permute.xlu2 %772 }
 0x692   :  { %v793_v33 = vsel %vm162_vm4, %v773_v62, 0 }
 0x693   :  { %798 = vmatpush.bf16.xpose.msra.mxu1 %v793_v33 }
 0x699   :  { %v767_v3 = vpop.permute.xlu2 %766 }
 0x69a   :  { %v784_v50 = vsel %vm162_vm4, %v767_v3, 0 }
 0x6aa   :  { %v771_v5 = vpop.permute.xlu1 %770  ;;  %v769_v12 = vpop.permute.xlu0 %768 }
 0x6ab   :  { %v790_v63 = vsel %vm162_vm4, %v771_v5, 0  ;;  %v787_v36 = vsel %vm162_vm4, %v769_v12, 0 }
 0x6ac   :  { %799 = vmatpush.bf16.xpose.msra.mxu1 %v790_v63 }
 0x6b2   :  { %v765_v16 = vpop.permute.xlu0 %764 }
 0x6b3   :  { %v781_v17 = vsel %vm162_vm4, %v765_v16, 0 }
 0x6b4   :  { %800 = vmatpush.bf16.xpose.msra.mxu1 %v787_v36 }
 0x6bc   :  { %801 = vmatpush.bf16.xpose.msra.mxu1 %v784_v50 }
 0x6c4   :  { %802 = vmatpush.bf16.xpose.msra.mxu1 %v781_v17 }
 0x6cb   :  { %4518 = vmatmul.msk.bf16.vlgmr.msra.gmra.mxu1 %vm162_vm4, %v752_v45 }
 0x6db   :  { %4519 = vmatmul.msk.bf16.gmra.mxu1 %vm162_vm4, %v753_v24 }
 0x748   :  { %v804_v26 = vpop.f32.mrf.mxu1 }
 0x749   :  { %v805_v19 = vadd.f32 %v804_v26, %v65_v32  ;;  %v4857_v32 = vld [vmem:[#allocation2 + $0x40] sm:$0xff] }
 0x74a   :  { %1005 = vmatpush.bf16.msrb.mxu0 %v4857_v32 }
 0x74b   :  { %v813_v20 = vsel %vm364_vm7, %v805_v19, -inf }
 0x74c   :  { %814 = vmax.xlane.f32.xlu1 %v813_v20 }
 0x750   :  { %v806_v54 = vpop.f32.mrf.mxu1 }
 0x751   :  { %v807_v28 = vadd.f32 %v806_v54, %v66_v30  ;;  %v4856_v30 = vld [vmem:[#allocation2 + $0x38] sm:$0xff] }
 0x752   :  { %1006 = vmatpush.bf16.msrb.mxu0 %v4856_v30 }
 0x753   :  { %v816_v29 = vsel %vm364_vm7, %v807_v28, -inf }
 0x754   :  { %817 = vmax.xlane.f32.xlu2 %v816_v29 }
 0x758   :  { %v809_v14 = vpop.f32.mrf.mxu1 }
 0x759   :  { %v810_v40 = vadd.f32 %v809_v14, %v67_v9 }
 0x75b   :  { %v819_v45 = vsel %vm371_vm8, %v810_v40, -inf }
 0x75c   :  { %820 = vmax.xlane.f32.xlu0 %v819_v45 }
 0x760   :  { %v811_v38 = vpop.f32.mrf.mxu1 }
 0x765   :  { %940 = vrot.lane.b32.xlu1 %v926_v35, %s5232_s20 }
 0x76c   :  { %938 = vrot.lane.b32.xlu2 %v925_v47, %s5232_s20 }
 0x76d   :  { %934 = vrot.lane.b32.xlu1 %v923_v10, %s5232_s20 }
 0x770   :  { %936 = vrot.lane.b32.xlu0 %v924_v18, %s5232_s20 }
 0x778   :  { %932 = vrot.lane.b32.xlu0 %v922_v52, %s5232_s20 }
 0x7bf   :  { %v815_v31 = vpop.xlane.xlu1 %814 }
 0x7c0   :  { %v822_v13 = vsub.f32 %v805_v19, %v815_v31 }
 0x7c2   :  { %v825_v46 = vmul.f32 1.442695, %v822_v13 }
 0x7c4   :  { %4997 = vpow2.f32 %v825_v46 }
 0x7c7   :  { %v818_v15 = vpop.xlane.xlu2 %817 }
 0x7c8   :  { %v823_v51 = vsub.f32 %v807_v28, %v818_v15 }
 0x7ca   :  { %v5648_v59 = vpop.eup %4997  ;;  %v827_v61 = vmul.f32 1.442695, %v823_v51 }
 0x7cb   :  { %4520 = vmatmul.msk.f32.vlgmr.msra.gmra.mxu2 %vm364_vm7, %v5648_v59 }
 0x7cc   :  { %4999 = vpow2.f32 %v827_v61 }
 0x7cf   :  { %v821_v10 = vpop.xlane.xlu0 %820  ;;  %v939_v6 = vpop.permute.xlu2 %938 }
 0x7d0   :  { %v824_v47 = vsub.f32 %v810_v40, %v821_v10 }
 0x7d2   :  { %v5652_v18 = vpop.eup %4999  ;;  %v829_v2 = vmul.f32 1.442695, %v824_v47 }
 0x7d3   :  { %4521 = vmatmul.msk.f32.gmra.mxu2 %vm364_vm7, %v5652_v18 }
 0x7d4   :  { %5001 = vpow2.f32 %v829_v2 }
 0x7d7   :  { %v941_v8 = vpop.permute.xlu1 %940 }
 0x7d8   :  { %v953_v41 = vsel %vm6629_vm6, %v941_v8, 0 }
 0x7d9   :  { %958 = vmatpush.bf16.msrb.mxu3 %v953_v41 }
 0x7da   :  { %v5657_v52 = vpop.eup %5001 }
 0x7db   :  { %4522 = vmatmul.msk.f32.gmra.mxu2 %vm364_vm7, %v5657_v52 }
 0x7dd   :  { %959 = vmatpush.bf16.msrb.mxu3 %v939_v6 }
 0x7df   :  { %v935_v33 = vpop.permute.xlu1 %934 }
 0x7e2   :  { %v937_v62 = vpop.permute.xlu0 %936 }
 0x7e3   :  { %960 = vmatpush.bf16.msrb.mxu3 %v937_v62 }
 0x7e7   :  { %961 = vmatpush.bf16.msrb.mxu3 %v935_v33 }
 0x7ea   :  { %v933_v5 = vpop.permute.xlu0 %932 }
 0x7eb   :  { %962 = vmatpush.bf16.msrb.mxu3 %v933_v5 }
 0x84e   :  { %v857_v63 = vpop.f32.mrf.mxu2 }
 0x84f   :  { %5003 = vrcp.f32 %v857_v63  ;;  %v880_v24 = vand.u32 2147483648, %v857_v63  ;;  %vm874_vm10 = vweird.f32 %v857_v63  ;;  %v878_v26 = vand.u32 2147483647, %v857_v63 }
 0x850   :  { %vm866_vm15 = vcmp.gt.f32.partialorder %v857_v63, 0.0 }
 0x851   :  { %v881_v29 = vor.u32 1.1754944e-38, %v880_v24  ;;  %vm879_vm11 = vcmp.eq.f32.partialorder %v878_v26, 8.507059e+37  ;;  %v4935_v24 = vld [vmem:[#allocation4 + $0x10] ss:$0 sm:$0xff] }
 0x855   :  { %v5004_v12 = vpop.eup %5003 }
 0x856   :  { %v870_v36 = vmul.f32 %v5004_v12, %v857_v63  ;;  %v860_v3 = vpop.f32.mrf.mxu2  ;;  %vm875_vm9 = vweird.f32 %v5004_v12 }
 0x857   :  { %5005 = vrcp.f32 %v860_v3  ;;  %vm876_vm2 = vmor %vm874_vm10, %vm875_vm9  ;;  %v895_v9 = vand.u32 2147483648, %v860_v3  ;;  %v893_v40 = vand.u32 2147483647, %v860_v3  ;;  %vm889_vm13 = vweird.f32 %v860_v3 }
 0x858   :  { %v871_v50 = vsub.f32 1.0, %v870_v36  ;;  %vm867_vm10 = vcmp.gt.f32.partialorder %v860_v3, 0.0 }
 0x859   :  { %v896_v35 = vor.u32 1.1754944e-38, %v895_v9  ;;  %vm894_vm9 = vcmp.eq.f32.partialorder %v893_v40, 8.507059e+37 }
 0x85a   :  { %v872_v16 = vmul.f32 %v5004_v12, %v871_v50 }
 0x85c   :  { %v873_v17 = vadd.f32 %v5004_v12, %v872_v16 }
 0x85d   :  { %v5006_v48 = vpop.eup %5005 }
 0x85e   :  { %v885_v19 = vmul.f32 %v5006_v48, %v860_v3  ;;  %v863_v20 = vpop.f32.mrf.mxu2  ;;  %v877_v28 = vsel %vm876_vm2, %v5004_v12, %v873_v17  ;;  %vm890_vm12 = vweird.f32 %v5006_v48 }
 0x85f   :  { %5007 = vrcp.f32 %v863_v20  ;;  %v882_v45 = vsel %vm879_vm11, %v881_v29, %v877_v28  ;;  %vm891_vm1 = vmor %vm889_vm13, %vm890_vm12  ;;  %v910_v41 = vand.u32 2147483648, %v863_v20  ;;  %vm904_vm11 = vweird.f32 %v863_v20 }
 0x860   :  { %v886_v54 = vsub.f32 1.0, %v885_v19  ;;  %v914_v46 = vsel %vm866_vm15, %v882_v45, 0.0  ;;  %v908_v62 = vand.u32 2147483647, %v863_v20  ;;  %vm868_vm15 = vcmp.gt.f32.partialorder %v863_v20, 0.0 }
 0x861   :  { %v917_v10 = vmul.f32 %v5648_v59, %v914_v46  ;;  %v911_v5 = vor.u32 1.1754944e-38, %v910_v41 }
 0x862   :  { %v887_v14 = vmul.f32 %v5006_v48, %v886_v54  ;;  %vm909_vm13 = vcmp.eq.f32.partialorder %v908_v62, 8.507059e+37 }
 0x864   :  { %v888_v60 = vadd.f32 %v5006_v48, %v887_v14 }
 0x865   :  { %v5008_v38 = vpop.eup %5007 }
 0x866   :  { %v900_v31 = vmul.f32 %v5008_v38, %v863_v20  ;;  %v892_v13 = vsel %vm891_vm1, %v5006_v48, %v888_v60  ;;  %vm905_vm2 = vweird.f32 %v5008_v38 }
 0x867   :  { %v897_v15 = vsel %vm894_vm9, %v896_v35, %v892_v13  ;;  %vm906_vm12 = vmor %vm904_vm11, %vm905_vm2 }
 0x868   :  { %v901_v51 = vsub.f32 1.0, %v900_v31  ;;  %v915_v61 = vsel %vm867_vm10, %v897_v15, 0.0 }
 0x869   :  { %v918_v47 = vmul.f32 %v5652_v18, %v915_v61 }
 0x86a   :  { %v902_v2 = vmul.f32 %v5008_v38, %v901_v51 }
 0x86b   :  { %v920_v8 = vpack.c.bf16 %v918_v47, %v917_v10 }
 0x86c   :  { %v903_v6 = vadd.f32 %v5008_v38, %v902_v2 }
 0x86d   :  { %4523 = vmatmul.msk.bf16.vlgmr.msrb.gmra.mxu3 %vm364_vm7, %v920_v8  ;;  %v4859_v8 = vld [vmem:[#allocation2 + $0x50] sm:$0xff] }
 0x86e   :  { %v907_v33 = vsel %vm906_vm12, %v5008_v38, %v903_v6  ;;  %1128 = vmatpush.bf16.msrb.mxu1 %v4859_v8 }
 0x86f   :  { %v912_v63 = vsel %vm909_vm13, %v911_v5, %v907_v33  ;;  %v4858_v33 = vld [vmem:[#allocation2 + $0x48] sm:$0xff] }
 0x870   :  { %v916_v12 = vsel %vm868_vm15, %v912_v63, 0.0  ;;  %v5143_v5 = vld [vmem:[#allocation4 + $0xcc] sm:$0xff] }
 0x871   :  { %v919_v59 = vmul.f32 %v5657_v52, %v916_v12 }
 0x872   :  { %1129 = vmatpush.bf16.msrb.mxu1 %v4858_v33 }
 0x873   :  { %v921_v36 = vpack.c.bf16 %v919_v59, %v919_v59  ;;  %v5144_v59 = vld [vmem:[#allocation4 + $0xc4] sm:$0xff] }
 0x876   :  { %1627 = vmatpush.msra.mxu1 %v5143_v5 }
 0x878   :  { %1628 = vmatpush.msra.mxu1 %v5144_v59 }
 0x87d   :  { %4524 = vmatmul.msk.bf16.gmra.mxu3 %vm364_vm7, %v921_v36 }
 0x8f0   :  { %v964_v18 = vpop.f32.mrf.mxu3 }
 0x8f8   :  { %v966_v3 = vpop.f32.mrf.mxu3 }
 0x8f9   :  { %v977_v50 = vpack.c.bf16 %v966_v3, %v964_v18  ;;  %v5145_v3 = vld [vmem:[#allocation4 + $0xbc] sm:$0xff] }
 0x8fa   :  { %1629 = vmatpush.msra.mxu1 %v5145_v3 }
 0x8fb   :  { %4533 = vmatmul.msk.bf16.vlgmr.msrb.gmra.mxu0 %vm162_vm4, %v977_v50 }
 0x900   :  { %v969_v16 = vpop.f32.mrf.mxu3 }
 0x901   :  { %v978_v48 = vpack.c.bf16 %v969_v16, %v969_v16  ;;  %v5146_v16 = vld [vmem:[#allocation4 + $0xb4] sm:$0xff] }
 0x902   :  { %1630 = vmatpush.msra.mxu1 %v5146_v16  ;;  %v4867_v16 = vld [vmem:[#allocation2 + $0x90] sm:$0xff] }
 0x903   :  { %1340 = vmatpush.bf16.msrb.mxu2 %v4867_v16 }
 0x908   :  { %v971_v17 = vpop.f32.mrf.mxu3 }
 0x90b   :  { %4534 = vmatmul.msk.bf16.gmra.mxu0 %vm162_vm4, %v978_v48  ;;  %v5147_v48 = vld [vmem:[#allocation4 + $0xac] sm:$0xff] }
 0x90c   :  { %1631 = vmatpush.msra.mxu1 %v5147_v48  ;;  %v4866_v48 = vld [vmem:[#allocation2 + $0x88] sm:$0xff] }
 0x90d   :  { %1341 = vmatpush.bf16.msrb.mxu2 %v4866_v48 }
 0x978   :  { %v1008_v32 = vpop.f32.mrf.mxu0 }
 0x979   :  { %v1009_v26 = vadd.f32 %v4935_v24, %v1008_v32 }
 0x97b   :  { %v1017_v19 = vadd.f32 %v1009_v26, %v5561_v39 }
 0x97d   :  { %v1020_v52 = vsel %vm162_vm4, %v1017_v19, 0.0 }
 0x97e   :  { %1021 = vadd.xlane.f32.xlu2 %v1020_v52 }
 0x980   :  { %v1010_v20 = vpop.f32.mrf.mxu0 }
 0x981   :  { %v1011_v30 = vadd.f32 %v4935_v24, %v1010_v20 }
 0x983   :  { %v1018_v54 = vadd.f32 %v1011_v30, %v5563_v21 }
 0x985   :  { %v1023_v28 = vsel %vm162_vm4, %v1018_v54, 0.0 }
 0x986   :  { %1024 = vadd.xlane.f32.xlu1 %v1023_v28 }
 0x988   :  { %v1013_v29 = vpop.f32.mrf.mxu0 }
 0x989   :  { %v1014_v9 = vadd.f32 %v4935_v24, %v1013_v29 }
 0x98b   :  { %v1019_v14 = vadd.f32 %v1014_v9, %v5568_v27  ;;  %v5150_v9 = vld [vmem:[#allocation4 + $0x94] sm:$0xff] }
 0x98d   :  { %v1026_v40 = vsel %vm579_vm14, %v1019_v14, 0.0 }
 0x98e   :  { %1027 = vadd.xlane.f32.xlu0 %v1026_v40  ;;  %v5151_v40 = vld [vmem:[#allocation4 + $0x8c] sm:$0xff] }
 0x990   :  { %v1015_v45 = vpop.f32.mrf.mxu0 }
 0x9f1   :  { %v1022_v60 = vpop.xlane.xlu2 %1021 }
 0x9f2   :  { %v1029_v39 = vmul.f32 %v1022_v60, %v5550_v37 }
 0x9f4   :  { %v5675_v38 = vsub.f32 %v1017_v19, %v1029_v39  ;;  %v5148_v19 = vld [vmem:[#allocation4 + $0xa4] sm:$0xff] }
 0x9f5   :  { %1632 = vmatpush.msra.mxu1 %v5148_v19 }
 0x9f6   :  { %v1035_v35 = vmul.f32 %v5675_v38, %v5675_v38 }
 0x9f8   :  { %v1038_v21 = vsel %vm162_vm4, %v1035_v35, 0.0 }
 0x9f9   :  { %v1025_v31 = vpop.xlane.xlu1 %1024  ;;  %1039 = vadd.xlane.f32.xlu2 %v1038_v21  ;;  %v4936_v21 = vld [vmem:[#allocation4 + $0x11] ss:$0 sm:$0xff] }
 0x9fa   :  { %v1030_v13 = vmul.f32 %v1025_v31, %v5550_v37 }
 0x9fc   :  { %v5681_v46 = vsub.f32 %v1018_v54, %v1030_v13  ;;  %v5149_v54 = vld [vmem:[#allocation4 + $0x9c] sm:$0xff] }
 0x9fd   :  { %1633 = vmatpush.msra.mxu1 %v5149_v54 }
 0x9fe   :  { %v1036_v27 = vmul.f32 %v5681_v46, %v5681_v46 }
 0x9ff   :  { %1634 = vmatpush.msra.mxu1 %v5150_v9  ;;  %v4864_v9 = vld [vmem:[#allocation2 + $0x78] sm:$0xff] }
 0xa00   :  { %v1041_v15 = vsel %vm162_vm4, %v1036_v27, 0.0 }
 0xa01   :  { %1042 = vadd.xlane.f32.xlu1 %v1041_v15  ;;  %v1028_v51 = vpop.xlane.xlu0 %1027  ;;  %1635 = vmatpush.msra.mxu1 %v5151_v40 }
 0xa02   :  { %v1031_v61 = vmul.f32 %v1028_v51, %v5550_v37 }
 0xa04   :  { %v5687_v10 = vsub.f32 %v1019_v14, %v1031_v61  ;;  %v4937_v61 = vld [vmem:[#allocation4 + $0x12] ss:$0 sm:$0xff] }
 0xa06   :  { %v1037_v47 = vmul.f32 %v5687_v10, %v5687_v10 }
 0xa08   :  { %v1044_v2 = vsel %vm579_vm14, %v1037_v47, 0.0 }
 0xa09   :  { %1045 = vadd.xlane.f32.xlu0 %v1044_v2 }
 0xa6c   :  { %v1040_v41 = vpop.xlane.xlu2 %1039 }
 0xa6d   :  { %v1047_v6 = vmul.f32 %v1040_v41, %v5550_v37 }
 0xa6f   :  { %v1050_v62 = vadd.f32 1e-05, %v1047_v6 }
 0xa71   :  { %5009 = vrsqrt.f32 %v1050_v62  ;;  %vm1059_vm9 = vweird.f32 %v1050_v62 }
 0xa74   :  { %v1043_v63 = vpop.xlane.xlu1 %1042 }
 0xa75   :  { %v1048_v12 = vmul.f32 %v1043_v63, %v5550_v37 }
 0xa77   :  { %v5010_v36 = vpop.eup %5009  ;;  %v1051_v18 = vadd.f32 1e-05, %v1048_v12 }
 0xa78   :  { %v1054_v50 = vmul.f32 %v5010_v36, %v1050_v62  ;;  %vm1060_vm1 = vweird.f32 %v5010_v36 }
 0xa79   :  { %5011 = vrsqrt.f32 %v1051_v18  ;;  %vm1061_vm10 = vmor %vm1059_vm9, %vm1060_vm1  ;;  %vm1069_vm11 = vweird.f32 %v1051_v18 }
 0xa7a   :  { %v1055_v17 = vmul.f32 %v5010_v36, %v1054_v50 }
 0xa7c   :  { %v1056_v24 = vmul.f32 0.5, %v1055_v17  ;;  %v1046_v32 = vpop.xlane.xlu0 %1045 }
 0xa7d   :  { %v1049_v26 = vmul.f32 %v1046_v32, %v5550_v37 }
 0xa7e   :  { %v1057_v52 = vsub.f32 1.5, %v1056_v24 }
 0xa7f   :  { %v5012_v20 = vpop.eup %5011  ;;  %v1052_v30 = vadd.f32 1e-05, %v1049_v26 }
 0xa80   :  { %v1058_v28 = vmul.f32 %v5010_v36, %v1057_v52  ;;  %v1064_v29 = vmul.f32 %v5012_v20, %v1051_v18  ;;  %vm1070_vm2 = vweird.f32 %v5012_v20  ;;  %v4938_v18 = vld [vmem:[#allocation4 + $0x13] ss:$0 sm:$0xff] }
 0xa81   :  { %5013 = vrsqrt.f32 %v1052_v30  ;;  %vm1071_vm12 = vmor %vm1069_vm11, %vm1070_vm2  ;;  %vm1079_vm15 = vweird.f32 %v1052_v30 }
 0xa82   :  { %v1065_v14 = vmul.f32 %v5012_v20, %v1064_v29  ;;  %v1062_v45 = vsel %vm1061_vm10, %v5010_v36, %v1058_v28 }
 0xa83   :  { %v1083_v31 = vmul.f32 %v1062_v45, %v5675_v38 }
 0xa84   :  { %v1066_v60 = vmul.f32 0.5, %v1065_v14 }
 0xa85   :  { %v1088_v47 = vmul.f32 %v4936_v21, %v1083_v31  ;;  %v4863_v31 = vld [vmem:[#allocation2 + $0x70] sm:$0xff] }
 0xa86   :  { %v1067_v39 = vsub.f32 1.5, %v1066_v60 }
 0xa87   :  { %v5014_v35 = vpop.eup %5013  ;;  %v5697_v62 = vadd.f32 %v4937_v61, %v1088_v47 }
 0xa88   :  { %v1068_v13 = vmul.f32 %v5012_v20, %v1067_v39  ;;  %v1074_v27 = vmul.f32 %v5014_v35, %v1052_v30  ;;  %vm1080_vm13 = vweird.f32 %v5014_v35 }
 0xa89   :  { %vm1081_vm1 = vmor %vm1079_vm15, %vm1080_vm13 }
 0xa8a   :  { %v1072_v15 = vsel %vm1071_vm12, %v5012_v20, %v1068_v13  ;;  %v1075_v51 = vmul.f32 %v5014_v35, %v1074_v27  ;;  %v4865_v20 = vld [vmem:[#allocation2 + $0x80] sm:$0xff] }
 0xa8b   :  { %v1084_v2 = vmul.f32 %v1072_v15, %v5681_v46  ;;  %1342 = vmatpush.bf16.msrb.mxu2 %v4865_v20 }
 0xa8c   :  { %v1076_v8 = vmul.f32 0.5, %v1075_v51 }
 0xa8d   :  { %v1089_v41 = vmul.f32 %v4936_v21, %v1084_v2 }
 0xa8e   :  { %v1077_v6 = vsub.f32 1.5, %v1076_v8 }
 0xa8f   :  { %v5699_v33 = vadd.f32 %v4937_v61, %v1089_v41  ;;  %1343 = vmatpush.bf16.msrb.mxu2 %v4864_v9  ;;  %v4862_v41 = vld [vmem:[#allocation2 + $0x68] sm:$0xff]  ;;  %v4860_v9 = vld [vmem:[#allocation2 + $0x58] sm:$0xff] }
 0xa90   :  { %v1078_v5 = vmul.f32 %v5014_v35, %v1077_v6 }
 0xa91   :  { %v1100_v38 = vpack.c.bf16 %v5699_v33, %v5697_v62 }
 0xa92   :  { %v1082_v63 = vsel %vm1081_vm1, %v5014_v35, %v1078_v5 }
 0xa93   :  { %4543 = vmatmul.msk.bf16.vlgmr.msrb.gmra.mxu1 %vm162_vm4, %v1100_v38  ;;  %v1085_v12 = vmul.f32 %v1082_v63, %v5687_v10  ;;  %1344 = vmatpush.bf16.msrb.mxu2 %v4863_v31 }
 0xa95   :  { %v1090_v46 = vmul.f32 %v4936_v21, %v1085_v12 }
 0xa97   :  { %v5705_v59 = vadd.f32 %v4937_v61, %v1090_v46  ;;  %1345 = vmatpush.bf16.msrb.mxu2 %v4862_v41 }
 0xa99   :  { %v1101_v36 = vpack.c.bf16 %v5705_v59, %v5705_v59 }
 0xaa3   :  { %4544 = vmatmul.msk.bf16.gmra.mxu1 %vm162_vm4, %v1101_v36 }
 0xb10   :  { %v1131_v3 = vpop.f32.mrf.mxu1 }
 0xb11   :  { %v5710_v50 = vadd.f32 %v4938_v18, %v1131_v3 }
 0xb13   :  { %v5713_v17 = vmul.f32 0.70710677, %v5710_v50 }
 0xb15   :  { %v1146_v10 = vmul.f32 %v5713_v17, %v5713_v17 }
 0xb17   :  { %v5717_v24 = vmin.f32 %v1146_v10, 16.0  ;;  %v4861_v10 = vld [vmem:[#allocation2 + $0x60] sm:$0xff] }
 0xb18   :  { %v1133_v32 = vpop.f32.mrf.mxu1  ;;  %1346 = vmatpush.bf16.msrb.mxu2 %v4861_v10 }
 0xb19   :  { %v1148_v26 = vmul.f32 2.1237322e-06, %v5717_v24  ;;  %v1159_v19 = vmul.f32 3.8918573e-05, %v5717_v24  ;;  %v5721_v52 = vadd.f32 %v4938_v18, %v1133_v32 }
 0xb1b   :  { %v1149_v30 = vadd.f32 0.00028619796, %v1148_v26  ;;  %v1160_v54 = vadd.f32 0.001143296, %v1159_v19  ;;  %v5724_v28 = vmul.f32 0.70710677, %v5721_v52 }
 0xb1c   :  { %1347 = vmatpush.bf16.msrb.mxu2 %v4860_v9 }
 0xb1d   :  { %v1161_v29 = vmul.f32 %v1160_v54, %v5717_v24  ;;  %v1186_v14 = vmul.f32 %v5724_v28, %v5724_v28  ;;  %v1150_v40 = vmul.f32 %v1149_v30, %v5717_v24 }
 0xb1f   :  { %v1162_v45 = vadd.f32 0.014752088, %v1161_v29  ;;  %v5730_v60 = vmin.f32 %v1186_v14, 16.0  ;;  %v1151_v15 = vadd.f32 0.0036580483, %v1150_v40 }
 0xb20   :  { %v1136_v39 = vpop.f32.mrf.mxu1 }
 0xb21   :  { %v1163_v35 = vmul.f32 %v1162_v45, %v5717_v24  ;;  %v5733_v21 = vadd.f32 %v4938_v18, %v1136_v39  ;;  %v1188_v13 = vmul.f32 2.1237322e-06, %v5730_v60  ;;  %v1199_v27 = vmul.f32 3.8918573e-05, %v5730_v60 }
 0xb22   :  { %v1152_v63 = vmul.f32 %v1151_v15, %v5717_v24 }
 0xb23   :  { %v1164_v51 = vadd.f32 0.112945676, %v1163_v35  ;;  %v1189_v61 = vadd.f32 0.00028619796, %v1188_v13  ;;  %v1200_v47 = vadd.f32 0.001143296, %v1199_v27 }
 0xb24   :  { %v5738_v2 = vmul.f32 0.70710677, %v5733_v21  ;;  %v1153_v26 = vadd.f32 0.05243302, %v1152_v63 }
 0xb25   :  { %v1165_v8 = vmul.f32 %v1164_v51, %v5717_v24  ;;  %v1190_v6 = vmul.f32 %v1189_v61, %v5730_v60  ;;  %v1201_v5 = vmul.f32 %v1200_v47, %v5730_v60 }
 0xb26   :  { %v1226_v38 = vmul.f32 %v5738_v2, %v5738_v2  ;;  %v1154_v40 = vmul.f32 %v1153_v26, %v5717_v24 }
 0xb27   :  { %v1166_v12 = vadd.f32 0.4994258, %v1165_v8  ;;  %v1191_v46 = vadd.f32 0.0036580483, %v1190_v6  ;;  %v1202_v36 = vadd.f32 0.014752088, %v1201_v5 }
 0xb28   :  { %v5746_v18 = vmin.f32 %v1226_v38, 16.0  ;;  %v1138_v3 = vpop.f32.mrf.mxu1  ;;  %v1155_v51 = vadd.f32 0.18741608, %v1154_v40 }
 0xb29   :  { %v1167_v16 = vmul.f32 %v1166_v12, %v5717_v24  ;;  %v1203_v48 = vmul.f32 %v1202_v36, %v5730_v60  ;;  %v1192_v30 = vmul.f32 %v1191_v46, %v5730_v60 }
 0xb2a   :  { %v1228_v32 = vmul.f32 2.1237322e-06, %v5746_v18  ;;  %v1239_v20 = vmul.f32 3.8918573e-05, %v5746_v18  ;;  %v1156_v63 = vmul.f32 %v1155_v51, %v5717_v24 }
 0xb2b   :  { %v1168_v19 = vadd.f32 1.0, %v1167_v16  ;;  %v1204_v54 = vadd.f32 0.112945676, %v1203_v48  ;;  %v1193_v39 = vadd.f32 0.05243302, %v1192_v30 }
 0xb2c   :  { %v1229_v29 = vadd.f32 0.00028619796, %v1228_v32  ;;  %v1240_v45 = vadd.f32 0.001143296, %v1239_v20  ;;  %v1157_v26 = vadd.f32 1.1283791, %v1156_v63 }
 0xb2d   :  { %5015 = vrcp.f32 %v1168_v19  ;;  %v1205_v14 = vmul.f32 %v1204_v54, %v5730_v60  ;;  %v1194_v8 = vmul.f32 %v1193_v39, %v5730_v60  ;;  %v1180_v12 = vand.u32 2147483648, %v1168_v19 }
 0xb2e   :  { %v1230_v31 = vmul.f32 %v1229_v29, %v5746_v18  ;;  %v1241_v13 = vmul.f32 %v1240_v45, %v5746_v18  ;;  %v1178_v10 = vand.u32 2147483647, %v1168_v19  ;;  %vm1174_vm10 = vweird.f32 %v1168_v19 }
 0xb2f   :  { %v1206_v35 = vadd.f32 0.4994258, %v1205_v14  ;;  %v1195_v3 = vadd.f32 0.18741608, %v1194_v8  ;;  %v1181_v29 = vor.u32 1.1754944e-38, %v1180_v12  ;;  %v1158_v39 = vmul.f32 %v1157_v26, %v5713_v17 }
 0xb30   :  { %v1242_v61 = vadd.f32 0.014752088, %v1241_v13  ;;  %v1231_v6 = vadd.f32 0.0036580483, %v1230_v31  ;;  %vm1179_vm11 = vcmp.eq.f32.partialorder %v1178_v10, 8.507059e+37  ;;  %v1140_v10 = vmul.f32 0.5, %v5710_v50 }
 0xb31   :  { %v1207_v27 = vmul.f32 %v1206_v35, %v5730_v60  ;;  %v1196_v24 = vmul.f32 %v1195_v3, %v5730_v60 }
 0xb32   :  { %v1243_v5 = vmul.f32 %v1242_v61, %v5746_v18  ;;  %v1232_v16 = vmul.f32 %v1231_v6, %v5746_v18 }
 0xb33   :  { %v5016_v15 = vpop.eup %5015  ;;  %v1208_v41 = vadd.f32 1.0, %v1207_v27  ;;  %v1197_v31 = vadd.f32 1.1283791, %v1196_v24 }
 0xb34   :  { %v1170_v47 = vmul.f32 %v5016_v15, %v1168_v19  ;;  %v1244_v46 = vadd.f32 0.112945676, %v1243_v5  ;;  %vm1175_vm9 = vweird.f32 %v5016_v15  ;;  %v1233_v9 = vadd.f32 0.05243302, %v1232_v16 }
 0xb35   :  { %5017 = vrcp.f32 %v1208_v41  ;;  %vm1176_vm2 = vmor %vm1174_vm10, %vm1175_vm9  ;;  %v1220_v13 = vand.u32 2147483648, %v1208_v41  ;;  %vm1214_vm13 = vweird.f32 %v1208_v41  ;;  %v1198_v5 = vmul.f32 %v1197_v31, %v5724_v28 }
 0xb36   :  { %v1171_v38 = vsub.f32 1.0, %v1170_v47  ;;  %v1245_v48 = vmul.f32 %v1244_v46, %v5746_v18  ;;  %v1234_v19 = vmul.f32 %v1233_v9, %v5746_v18 }
 0xb37   :  { %v1221_v47 = vor.u32 1.1754944e-38, %v1220_v13 }
 0xb38   :  { %v1172_v36 = vmul.f32 %v5016_v15, %v1171_v38  ;;  %v1246_v20 = vadd.f32 0.4994258, %v1245_v48  ;;  %v1235_v8 = vadd.f32 0.18741608, %v1234_v19  ;;  %v4939_v19 = vld [vmem:[#allocation4 + $0x14] ss:$0 sm:$0xff] }
 0xb3a   :  { %v1173_v32 = vadd.f32 %v5016_v15, %v1172_v36  ;;  %v1247_v45 = vmul.f32 %v1246_v20, %v5746_v18  ;;  %v1236_v46 = vmul.f32 %v1235_v8, %v5746_v18 }
 0xb3b   :  { %v5018_v30 = vpop.eup %5017 }
 0xb3c   :  { %v1177_v54 = vsel %vm1176_vm2, %v5016_v15, %v1173_v32  ;;  %v1210_v14 = vmul.f32 %v5018_v30, %v1208_v41  ;;  %v1248_v27 = vadd.f32 1.0, %v1247_v45  ;;  %vm1215_vm12 = vweird.f32 %v5018_v30 }
 0xb3d   :  { %v1182_v40 = vsel %vm1179_vm11, %v1181_v29, %v1177_v54  ;;  %v1218_v15 = vand.u32 2147483647, %v1208_v41  ;;  %vm1216_vm15 = vmor %vm1214_vm13, %vm1215_vm12  ;;  %v1141_v41 = vmul.f32 0.5, %v5721_v52  ;;  %v1237_v26 = vadd.f32 1.1283791, %v1236_v46 }
 0xb3e   :  { %v1211_v35 = vsub.f32 1.0, %v1210_v14  ;;  %v1183_v51 = vmul.f32 %v1182_v40, %v1158_v39  ;;  %5019 = vrcp.f32 %v1248_v27  ;;  %v1258_v20 = vand.u32 2147483647, %v1248_v27 }
 0xb3f   :  { %vm1219_vm1 = vcmp.eq.f32.partialorder %v1218_v15, 8.507059e+37  ;;  %v1260_v54 = vand.u32 2147483648, %v1248_v27  ;;  %vm1254_vm10 = vweird.f32 %v1248_v27  ;;  %v1238_v14 = vmul.f32 %v1237_v26, %v5738_v2 }
 0xb40   :  { %v1212_v61 = vmul.f32 %v5018_v30, %v1211_v35  ;;  %v4545_v6 = vclamps-f32 %v1183_v51, 1.0  ;;  %vm1259_vm11 = vcmp.eq.f32.partialorder %v1258_v20, 8.507059e+37  ;;  %v1142_v35 = vmul.f32 0.5, %v5733_v21 }
 0xb41   :  { %v1261_v18 = vor.u32 1.1754944e-38, %v1260_v54  ;;  %v4869_v54 = vld [vmem:[#allocation2 + $0xa0] sm:$0xff] }
 0xb42   :  { %v1213_v60 = vadd.f32 %v5018_v30, %v1212_v61  ;;  %v1266_v36 = vadd.f32 1.0, %v4545_v6  ;;  %1469 = vmatpush.bf16.msra.mxu3 %v4869_v54 }
 0xb44   :  { %v1217_v17 = vsel %vm1216_vm15, %v5018_v30, %v1213_v60  ;;  %v5020_v12 = vpop.eup %5019  ;;  %v1269_v28 = vmul.f32 %v1266_v36, %v1140_v10 }
 0xb45   :  { %v1222_v38 = vsel %vm1219_vm1, %v1221_v47, %v1217_v17  ;;  %v1250_v16 = vmul.f32 %v5020_v12, %v1248_v27  ;;  %vm1255_vm9 = vweird.f32 %v5020_v12 }
 0xb46   :  { %v1223_v63 = vmul.f32 %v1222_v38, %v1198_v5  ;;  %vm1256_vm2 = vmor %vm1254_vm10, %vm1255_vm9 }
 0xb47   :  { %v1251_v32 = vsub.f32 1.0, %v1250_v16 }
 0xb48   :  { %v4546_v3 = vclamps-f32 %v1223_v63, 1.0 }
 0xb49   :  { %v1252_v29 = vmul.f32 %v5020_v12, %v1251_v32 }
 0xb4a   :  { %v1267_v48 = vadd.f32 1.0, %v4546_v3 }
 0xb4b   :  { %v1253_v9 = vadd.f32 %v5020_v12, %v1252_v29 }
 0xb4c   :  { %v1270_v30 = vmul.f32 %v1267_v48, %v1141_v41 }
 0xb4d   :  { %v1257_v50 = vsel %vm1256_vm2, %v5020_v12, %v1253_v9 }
 0xb4e   :  { %v1288_v24 = vpack.c.bf16 %v1270_v30, %v1269_v28  ;;  %v1262_v52 = vsel %vm1259_vm11, %v1261_v18, %v1257_v50 }
 0xb4f   :  { %v1263_v40 = vmul.f32 %v1262_v52, %v1238_v14 }
 0xb50   :  { %1348 = vmatmul.bf16.vlgmr.msrb.gmra.mxu2 %v1288_v24  ;;  %v4868_v24 = vld [vmem:[#allocation2 + $0x98] sm:$0xff] }
 0xb51   :  { %v4547_v45 = vclamps-f32 %v1263_v40, 1.0  ;;  %1470 = vmatpush.bf16.msra.mxu3 %v4868_v24 }
 0xb53   :  { %v1268_v39 = vadd.f32 1.0, %v4547_v45 }
 0xb55   :  { %v1271_v31 = vmul.f32 %v1268_v39, %v1142_v35 }
 0xb57   :  { %v1289_v13 = vpack.c.bf16 %v1271_v31, %v1271_v31 }
 0xb60   :  { %1353 = vmatmul.bf16.gmra.mxu2 %v1289_v13 }
 0xbd3   :  { %v1349_v51 = vpop.f32.mrf.mxu2 }
 0xbd4   :  { %v1350_v61 = vadd.f32 %v4939_v19, %v1349_v51 }
 0xbd6   :  { %v1358_v27 = vadd.f32 %v1350_v61, %v5697_v62 }
 0xbd8   :  { %v1361_v15 = vsel %vm162_vm4, %v1358_v27, 0.0 }
 0xbd9   :  { %1362 = vadd.xlane.f32.xlu2 %v1361_v15 }
 0xbdb   :  { %v1351_v2 = vpop.f32.mrf.mxu2 }
 0xbdc   :  { %v1352_v60 = vadd.f32 %v4939_v19, %v1351_v2 }
 0xbde   :  { %v1359_v47 = vadd.f32 %v1352_v60, %v5699_v33 }
 0xbe0   :  { %v1364_v8 = vsel %vm162_vm4, %v1359_v47, 0.0 }
 0xbe1   :  { %1365 = vadd.xlane.f32.xlu1 %v1364_v8  ;;  %v4940_v8 = vld [vmem:[#allocation4 + $0x15] ss:$0 sm:$0xff] }
 0xbe3   :  { %v1354_v6 = vpop.f32.mrf.mxu2 }
 0xbe4   :  { %v1355_v21 = vadd.f32 %v4939_v19, %v1354_v6 }
 0xbe6   :  { %v1360_v5 = vadd.f32 %v1355_v21, %v5705_v59 }
 0xbe8   :  { %v1367_v17 = vsel %vm579_vm14, %v1360_v5, 0.0 }
 0xbe9   :  { %1368 = vadd.xlane.f32.xlu0 %v1367_v17 }
 0xbeb   :  { %v1356_v38 = vpop.f32.mrf.mxu2 }
 0xc4c   :  { %v1363_v63 = vpop.xlane.xlu2 %1362 }
 0xc4d   :  { %v1370_v62 = vmul.f32 %v1363_v63, %v5550_v37  ;;  %v4941_v63 = vld [vmem:[#allocation4 + $0x16] ss:$0 sm:$0xff] }
 0xc4f   :  { %v1373_v12 = vsub.f32 %v1358_v27, %v1370_v62 }
 0xc51   :  { %v1376_v46 = vmul.f32 %v1373_v12, %v1373_v12 }
 0xc53   :  { %v1379_v36 = vsel %vm162_vm4, %v1376_v46, 0.0 }
 0xc54   :  { %v1366_v3 = vpop.xlane.xlu1 %1365  ;;  %1380 = vadd.xlane.f32.xlu2 %v1379_v36 }
 0xc55   :  { %v1371_v33 = vmul.f32 %v1366_v3, %v5550_v37 }
 0xc57   :  { %v1374_v16 = vsub.f32 %v1359_v47, %v1371_v33 }
 0xc59   :  { %v1377_v10 = vmul.f32 %v1374_v16, %v1374_v16 }
 0xc5b   :  { %v1382_v41 = vsel %vm162_vm4, %v1377_v10, 0.0 }
 0xc5c   :  { %1383 = vadd.xlane.f32.xlu1 %v1382_v41  ;;  %v1369_v59 = vpop.xlane.xlu0 %1368 }
 0xc5d   :  { %v1372_v48 = vmul.f32 %v1369_v59, %v5550_v37 }
 0xc5f   :  { %v1375_v32 = vsub.f32 %v1360_v5, %v1372_v48 }
 0xc61   :  { %v1378_v26 = vmul.f32 %v1375_v32, %v1375_v32 }
 0xc63   :  { %v1385_v20 = vsel %vm579_vm14, %v1378_v26, 0.0 }
 0xc64   :  { %1386 = vadd.xlane.f32.xlu0 %v1385_v20 }
 0xcc7   :  { %v1381_v28 = vpop.xlane.xlu2 %1380 }
 0xcc8   :  { %v1388_v30 = vmul.f32 %v1381_v28, %v5550_v37 }
 0xcca   :  { %v1391_v29 = vadd.f32 1e-05, %v1388_v30  ;;  %v4942_v30 = vld [vmem:[#allocation4 + $0x17] ss:$0 sm:$0xff] }
 0xccc   :  { %5021 = vrsqrt.f32 %v1391_v29  ;;  %vm1400_vm13 = vweird.f32 %v1391_v29 }
 0xccf   :  { %v1384_v9 = vpop.xlane.xlu1 %1383 }
 0xcd0   :  { %v1389_v18 = vmul.f32 %v1384_v9, %v5550_v37 }
 0xcd2   :  { %v5022_v14 = vpop.eup %5021  ;;  %v1392_v50 = vadd.f32 1e-05, %v1389_v18 }
 0xcd3   :  { %v1395_v52 = vmul.f32 %v5022_v14, %v1391_v29  ;;  %vm1401_vm12 = vweird.f32 %v5022_v14 }
 0xcd4   :  { %5023 = vrsqrt.f32 %v1392_v50  ;;  %vm1402_vm15 = vmor %vm1400_vm13, %vm1401_vm12  ;;  %vm1410_vm9 = vweird.f32 %v1392_v50 }
 0xcd5   :  { %v1396_v40 = vmul.f32 %v5022_v14, %v1395_v52 }
 0xcd7   :  { %v1397_v45 = vmul.f32 0.5, %v1396_v40  ;;  %v1387_v39 = vpop.xlane.xlu0 %1386 }
 0xcd8   :  { %v1390_v35 = vmul.f32 %v1387_v39, %v5550_v37 }
 0xcd9   :  { %v1398_v31 = vsub.f32 1.5, %v1397_v45 }
 0xcda   :  { %v5024_v13 = vpop.eup %5023  ;;  %v1393_v19 = vadd.f32 1e-05, %v1390_v35 }
 0xcdb   :  { %v1399_v51 = vmul.f32 %v5022_v14, %v1398_v31  ;;  %v1405_v61 = vmul.f32 %v5024_v13, %v1392_v50  ;;  %vm1411_vm1 = vweird.f32 %v5024_v13 }
 0xcdc   :  { %5025 = vrsqrt.f32 %v1393_v19  ;;  %vm1412_vm10 = vmor %vm1410_vm9, %vm1411_vm1  ;;  %vm1420_vm11 = vweird.f32 %v1393_v19 }
 0xcdd   :  { %v1406_v27 = vmul.f32 %v5024_v13, %v1405_v61  ;;  %v1403_v15 = vsel %vm1402_vm15, %v5022_v14, %v1399_v51 }
 0xcde   :  { %v1424_v6 = vmul.f32 %v1403_v15, %v1373_v12 }
 0xcdf   :  { %v1407_v2 = vmul.f32 0.5, %v1406_v27 }
 0xce0   :  { %v1429_v62 = vmul.f32 %v4940_v8, %v1424_v6 }
 0xce1   :  { %v1408_v60 = vsub.f32 1.5, %v1407_v2 }
 0xce2   :  { %v5026_v47 = vpop.eup %5025  ;;  %v5788_v10 = vadd.f32 %v4941_v63, %v1429_v62 }
 0xce3   :  { %v1409_v21 = vmul.f32 %v5024_v13, %v1408_v60  ;;  %v1415_v5 = vmul.f32 %v5026_v47, %v1393_v19  ;;  %vm1421_vm2 = vweird.f32 %v5026_v47 }
 0xce4   :  { %vm1422_vm12 = vmor %vm1420_vm11, %vm1421_vm2 }
 0xce5   :  { %v1413_v17 = vsel %vm1412_vm10, %v5024_v13, %v1409_v21  ;;  %v1416_v38 = vmul.f32 %v5026_v47, %v1415_v5 }
 0xce6   :  { %v1425_v46 = vmul.f32 %v1413_v17, %v1374_v16 }
 0xce7   :  { %v1417_v36 = vmul.f32 0.5, %v1416_v38 }
 0xce8   :  { %v1430_v3 = vmul.f32 %v4940_v8, %v1425_v46 }
 0xce9   :  { %v1418_v33 = vsub.f32 1.5, %v1417_v36 }
 0xcea   :  { %v5790_v41 = vadd.f32 %v4941_v63, %v1430_v3 }
 0xceb   :  { %v1419_v59 = vmul.f32 %v5026_v47, %v1418_v33 }
 0xcec   :  { %v1441_v12 = vpack.c.bf16 %v5790_v41, %v5788_v10 }
 0xced   :  { %v1423_v48 = vsel %vm1422_vm12, %v5026_v47, %v1419_v59 }
 0xcee   :  { %4588 = vmatmul.msk.bf16.vlgmr.msra.gmra.mxu3 %vm162_vm4, %v1441_v12  ;;  %v1426_v26 = vmul.f32 %v1423_v48, %v1375_v32 }
 0xcf0   :  { %v1431_v20 = vmul.f32 %v4940_v8, %v1426_v26 }
 0xcf2   :  { %v5795_v16 = vadd.f32 %v4941_v63, %v1431_v20 }
 0xcf4   :  { %v1442_v54 = vpack.c.bf16 %v5795_v16, %v5795_v16 }
 0xcfe   :  { %4589 = vmatmul.msk.bf16.gmra.mxu3 %vm162_vm4, %v1442_v54 }
 0xd71   :  { %v1472_v28 = vpop.f32.mrf.mxu3 }
 0xd72   :  { %v1473_v24 = vadd.f32 %v4942_v30, %v1472_v28 }
 0xd74   :  { %v5802_v14 = vmul.f32 0.35355338, %v1473_v24  ;;  %v1503_v39 = vrot.slane %v1473_v24, 2  ;;  %v1495_v35 = vrot.slane %v1473_v24, 4  ;;  %v1487_v21 = vrot.slane %v1473_v24, 6 }
 0xd75   :  { %v1514_v20 = vmul.f32 %v1473_v24, %v5396_v25 }
 0xd79   :  { %v1474_v29 = vpop.f32.mrf.mxu3 }
 0xd7a   :  { %v1475_v9 = vadd.f32 %v4942_v30, %v1474_v29 }
 0xd7c   :  { %v5800_v18 = vmul.f32 0.35355338, %v1475_v9  ;;  %v1504_v52 = vrot.slane %v1475_v9, 2  ;;  %v1496_v40 = vrot.slane %v1475_v9, 4  ;;  %v1488_v51 = vrot.slane %v1475_v9, 6 }
 0xd7d   :  { %v1515_v48 = vmul.f32 %v1475_v9, %v5386_v22 }
 0xd7e   :  { %v1532_v32 = vpack.c.bf16 %v5800_v18, %v5802_v14  ;;  %v1505_v61 = vsel %vm6630_vm5, %v1503_v39, %v1504_v52  ;;  %v1497_v27 = vsel %vm6629_vm6, %v1495_v35, %v1496_v40  ;;  %v1489_v59 = vsel %vm137_vm3, %v1487_v21, %v1488_v51  ;;  %v5153_v18 = vld [vmem:[#allocation4 + $0xdc] sm:$0xff] }
 0xd7f   :  { %v1521_v17 = vmul.f32 %v1505_v61, %v5332_v44  ;;  %v1519_v63 = vmul.f32 %v1497_v27, %v5328_v42  ;;  %v1517_v26 = vmul.f32 %v1489_v59, %v5389_v23  ;;  %v1534_v28 = vpack.c.bf16 %v1515_v48, %v1514_v20  ;;  %v5152_v48 = vld [vmem:[#allocation4 + $0xd4] sm:$0xff] }
 0xd81   :  { %v1477_v50 = vpop.f32.mrf.mxu3 }
 0xd82   :  { %v5806_v45 = vadd.f32 %v4942_v30, %v1477_v50 }
 0xd84   :  { %v1490_v31 = vrot.slane %v5806_v45, 6  ;;  %v1498_v13 = vrot.slane %v5806_v45, 4  ;;  %v1506_v19 = vrot.slane %v5806_v45, 2  ;;  %v1511_v33 = vsel %vm137_vm3, %v5806_v45, %v1487_v21 }
 0xd85   :  { %v1516_v12 = vmul.f32 %v1511_v33, %v5338_v49 }
 0xd86   :  { %v1507_v15 = vsel %vm6630_vm5, %v1504_v52, %v1506_v19  ;;  %v1499_v2 = vsel %vm6629_vm6, %v1496_v40, %v1498_v13  ;;  %v1491_v60 = vsel %vm137_vm3, %v1488_v51, %v1490_v31  ;;  %v1530_v52 = vmul.f32 %v1505_v61, %v5495_v1 }
 0xd87   :  { %v1522_v47 = vmul.f32 %v1507_v15, %v5330_v43  ;;  %v1513_v8 = vsel %vm6630_vm5, %v1499_v2, %v1503_v39  ;;  %v1512_v6 = vsel %vm6629_vm6, %v1491_v60, %v1495_v35  ;;  %v1535_v54 = vpack.c.bf16 %v1517_v26, %v1516_v12 }
 0xd88   :  { %v1520_v5 = vmul.f32 %v1513_v8, %v5342_v53  ;;  %v1518_v38 = vmul.f32 %v1512_v6, %v5346_v55  ;;  %v1531_v30 = vmul.f32 %v1507_v15, %v5466_v34  ;;  %v1529_v50 = vmul.f32 %v1513_v8, %v5483_v56 }
 0xd89   :  { %v1479_v62 = vpop.f32.mrf.mxu3  ;;  %v1538_v46 = vpack.c.bf16 %v1522_v47, %v1522_v47  ;;  %v1527_v39 = vmul.f32 %v1512_v6, %v5479_v0  ;;  %v1528_v35 = vmul.f32 %v1497_v27, %v5487_v57  ;;  %v1525_v13 = vmul.f32 %v1511_v33, %v5489_v58 }
 0xd8a   :  { %v1537_v36 = vpack.c.bf16 %v1521_v17, %v1520_v5  ;;  %v1536_v3 = vpack.c.bf16 %v1519_v63, %v1518_v38  ;;  %v1706_v29 = vpack.c.bf16 %v1531_v30, %v1531_v30  ;;  %v1705_v40 = vpack.c.bf16 %v1530_v52, %v1529_v50 }
 0xd8b   :  { %1552 = vrot.lane.b32.xlu2 %v1538_v46, %s5238_s0  ;;  %v1704_v31 = vpack.c.bf16 %v1528_v35, %v1527_v39  ;;  %v1526_v19 = vmul.f32 %v1489_v59, %v5509_v11  ;;  %v1524_v15 = vmul.f32 %v1475_v9, %v5505_v4  ;;  %v1523_v61 = vmul.f32 %v1473_v24, %v5502_v7 }
 0xd8c   :  { %1550 = vrot.lane.b32.xlu1 %v1537_v36, %s5238_s0  ;;  %1548 = vrot.lane.b32.xlu0 %v1536_v3, %s5238_s0  ;;  %v1483_v3 = vmul.f32 0.35355338, %v5806_v45 }
 0xd8d   :  { %v1703_v51 = vpack.c.bf16 %v1526_v19, %v1525_v13  ;;  %v1702_v2 = vpack.c.bf16 %v1524_v15, %v1523_v61  ;;  %v4871_v13 = vld [vmem:[#allocation2 + $0xb0] sm:$0xff] }
 0xd8e   :  { %v1533_v33 = vpack.c.bf16 %v1483_v3, %v1483_v3  ;;  %1785 = vmatpush.bf16.msrb.mxu3 %v4871_v13  ;;  %v5154_v13 = vld [vmem:[#allocation4 + $0xe4] sm:$0x3] }
 0xd93   :  { %1546 = vrot.lane.b32.xlu2 %v1535_v54, %s5238_s0 }
 0xd94   :  { %1544 = vrot.lane.b32.xlu0 %v1534_v28, %s5238_s0 }
 0xd9c   :  { %1720 = vrot.lane.b32.xlu0 %v1706_v29, %s5232_s20 }
 0xda4   :  { %1718 = vrot.lane.b32.xlu0 %v1705_v40, %s5232_s20 }
 0xdac   :  { %1716 = vrot.lane.b32.xlu0 %v1704_v31, %s5232_s20 }
 0xdb4   :  { %1714 = vrot.lane.b32.xlu0 %v1703_v51, %s5232_s20  ;;  %v4870_v51 = vld [vmem:[#allocation2 + $0xa8] sm:$0xff] }
 0xdb5   :  { %1786 = vmatpush.bf16.msrb.mxu3 %v4870_v51 }
 0xdbc   :  { %1712 = vrot.lane.b32.xlu0 %v1702_v2, %s5232_s20 }
 0xde5   :  { %v1553_v60 = vpop.permute.xlu2 %1552 }
 0xde6   :  { %v1573_v27 = vsel %vm162_vm4, %v1553_v60, 0 }
 0xde7   :  { %1578 = vmatpush.bf16.xpose.msra.mxu0 %v1573_v27 }
 0xded   :  { %v1547_v17 = vpop.permute.xlu2 %1546 }
 0xdee   :  { %v1564_v24 = vsel %vm162_vm4, %v1547_v17, 0 }
 0xdfe   :  { %v1551_v47 = vpop.permute.xlu1 %1550  ;;  %v1549_v8 = vpop.permute.xlu0 %1548 }
 0xdff   :  { %v1570_v6 = vsel %vm162_vm4, %v1551_v47, 0  ;;  %v1567_v5 = vsel %vm162_vm4, %v1549_v8, 0 }
 0xe00   :  { %1579 = vmatpush.bf16.xpose.msra.mxu0 %v1570_v6 }
 0xe06   :  { %v1545_v21 = vpop.permute.xlu0 %1544 }
 0xe07   :  { %v1561_v62 = vsel %vm162_vm4, %v1545_v21, 0 }
 0xe08   :  { %1580 = vmatpush.bf16.xpose.msra.mxu0 %v1567_v5 }
 0xe0e   :  { %v1721_v9 = vpop.permute.xlu0 %1720 }
 0xe0f   :  { %v1733_v38 = vsel %vm6629_vm6, %v1721_v9, 0 }
 0xe10   :  { %1581 = vmatpush.bf16.xpose.msra.mxu0 %v1564_v24  ;;  %1738 = vmatpush.bf16.msra.mxu2 %v1733_v38 }
 0xe16   :  { %v1719_v63 = vpop.permute.xlu0 %1718 }
 0xe17   :  { %1739 = vmatpush.bf16.msra.mxu2 %v1719_v63 }
 0xe18   :  { %1582 = vmatpush.bf16.xpose.msra.mxu0 %v1561_v62 }
 0xe1e   :  { %v1717_v46 = vpop.permute.xlu0 %1716 }
 0xe1f   :  { %4590 = vmatmul.msk.bf16.vlgmr.msra.gmra.mxu0 %vm162_vm4, %v1532_v32  ;;  %1740 = vmatpush.bf16.msra.mxu2 %v1717_v46 }
 0xe26   :  { %v1715_v36 = vpop.permute.xlu0 %1714 }
 0xe27   :  { %1741 = vmatpush.bf16.msra.mxu2 %v1715_v36 }
 0xe2e   :  { %v1713_v59 = vpop.permute.xlu0 %1712 }
 0xe2f   :  { %4591 = vmatmul.msk.bf16.gmra.mxu0 %vm162_vm4, %v1533_v33  ;;  %1742 = vmatpush.bf16.msra.mxu2 %v1713_v59 }
 0xe9c   :  { %v1584_v12 = vpop.f32.mrf.mxu0 }
 0xe9d   :  { %v1585_v26 = vadd.f32 %v5152_v48, %v1584_v12 }
 0xe9f   :  { %v1593_v20 = vsel %vm364_vm7, %v1585_v26, -inf }
 0xea0   :  { %1594 = vmax.xlane.f32.xlu1 %v1593_v20 }
 0xea4   :  { %v1586_v54 = vpop.f32.mrf.mxu0 }
 0xea5   :  { %v1587_v14 = vadd.f32 %v5153_v18, %v1586_v54 }
 0xea7   :  { %v1596_v32 = vsel %vm364_vm7, %v1587_v14, -inf }
 0xea8   :  { %1597 = vmax.xlane.f32.xlu2 %v1596_v32 }
 0xeac   :  { %v5863_v28 = vpop.f32.mrf.mxu0 }
 0xeb4   :  { %v1591_v45 = vpop.f32.mrf.mxu0 }
 0xeb5   :  { %v5869_v45 = vld [vmem:[#allocation4 + $0x18] ss:$0 sm:$0xff] }
 0xf13   :  { %v1595_v30 = vpop.xlane.xlu1 %1594 }
 0xf14   :  { %v1602_v29 = vsub.f32 %v1585_v26, %v1595_v30 }
 0xf16   :  { %v1605_v50 = vmul.f32 1.442695, %v1602_v29 }
 0xf18   :  { %5027 = vpow2.f32 %v1605_v50 }
 0xf1b   :  { %v1598_v52 = vpop.xlane.xlu2 %1597 }
 0xf1c   :  { %v1603_v40 = vsub.f32 %v1587_v14, %v1598_v52 }
 0xf1e   :  { %v5028_v39 = vpop.eup %5027  ;;  %v1607_v35 = vmul.f32 1.442695, %v1603_v40 }
 0xf1f   :  { %4592 = vmatmul.msk.f32.vlgmr.msra.gmra.mxu1 %vm364_vm7, %v5028_v39 }
 0xf20   :  { %5029 = vpow2.f32 %v1607_v35 }
 0xf26   :  { %v5030_v31 = vpop.eup %5029 }
 0xf27   :  { %4593 = vmatmul.msk.f32.gmra.mxu1 %vm364_vm7, %v5030_v31 }
 0xf9c   :  { %v1637_v19 = vpop.f32.mrf.mxu1 }
 0xf9d   :  { %5031 = vrcp.f32 %v1637_v19  ;;  %v1660_v6 = vand.u32 2147483648, %v1637_v19  ;;  %vm1654_vm15 = vweird.f32 %v1637_v19  ;;  %v1658_v21 = vand.u32 2147483647, %v1637_v19 }
 0xf9e   :  { %vm1646_vm11 = vcmp.gt.f32.partialorder %v1637_v19, 0.0 }
 0xf9f   :  { %v1661_v24 = vor.u32 1.1754944e-38, %v1660_v6  ;;  %vm1659_vm9 = vcmp.eq.f32.partialorder %v1658_v21, 8.507059e+37 }
 0xfa3   :  { %v5032_v15 = vpop.eup %5031 }
 0xfa4   :  { %v1650_v61 = vmul.f32 %v5032_v15, %v1637_v19  ;;  %v1640_v2 = vpop.f32.mrf.mxu1  ;;  %vm1655_vm13 = vweird.f32 %v5032_v15  ;;  %v1590_v19 = vadd.f32 %v5154_v13, %v5863_v28 }
 0xfa5   :  { %5033 = vrcp.f32 %v1640_v2  ;;  %vm1656_vm1 = vmor %vm1654_vm15, %vm1655_vm13  ;;  %v1675_v38 = vand.u32 2147483648, %v1640_v2  ;;  %v1673_v62 = vand.u32 2147483647, %v1640_v2  ;;  %vm1669_vm2 = vweird.f32 %v1640_v2 }
 0xfa6   :  { %v1651_v60 = vsub.f32 1.0, %v1650_v61  ;;  %vm1647_vm5 = vcmp.gt.f32.partialorder %v1640_v2, 0.0  ;;  %v1599_v51 = vsel %vm371_vm8, %v1590_v19, -inf }
 0xfa7   :  { %v1676_v3 = vor.u32 1.1754944e-38, %v1675_v38  ;;  %vm1674_vm6 = vcmp.eq.f32.partialorder %v1673_v62, 8.507059e+37  ;;  %v4872_v62 = vld [vmem:[#allocation2 + $0xb8] sm:$0xff] }
 0xfa8   :  { %v1652_v27 = vmul.f32 %v5032_v15, %v1651_v60 }
 0xfaa   :  { %v1653_v47 = vadd.f32 %v5032_v15, %v1652_v27 }
 0xfab   :  { %v5034_v8 = vpop.eup %5033 }
 0xfac   :  { %v1665_v5 = vmul.f32 %v5034_v8, %v1640_v2  ;;  %v1657_v9 = vsel %vm1656_vm1, %v5032_v15, %v1653_v47  ;;  %vm1670_vm10 = vweird.f32 %v5034_v8 }
 0xfad   :  { %v1662_v46 = vsel %vm1659_vm9, %v1661_v24, %v1657_v9  ;;  %vm1671_vm12 = vmor %vm1669_vm2, %vm1670_vm10  ;;  %v4873_v9 = vld [vmem:[#allocation2 + $0xc0] sm:$0xff] }
 0xfae   :  { %v1666_v17 = vsub.f32 1.0, %v1665_v5  ;;  %v1694_v59 = vsel %vm1646_vm11, %v1662_v46, 0.0  ;;  %1908 = vmatpush.bf16.msrb.mxu0 %v4873_v9 }
 0xfaf   :  { %v1697_v20 = vmul.f32 %v5028_v39, %v1694_v59 }
 0xfb0   :  { %v1667_v63 = vmul.f32 %v5034_v8, %v1666_v17 }
 0xfb2   :  { %v1668_v36 = vadd.f32 %v5034_v8, %v1667_v63  ;;  %1909 = vmatpush.bf16.msrb.mxu0 %v4872_v62 }
 0xfb4   :  { %v1672_v33 = vsel %vm1671_vm12, %v5034_v8, %v1668_v36 }
 0xfb5   :  { %v1677_v12 = vsel %vm1674_vm6, %v1676_v3, %v1672_v33 }
 0xfb6   :  { %v1695_v48 = vsel %vm1647_vm5, %v1677_v12, 0.0 }
 0xfb7   :  { %v1698_v26 = vmul.f32 %v5030_v31, %v1695_v48 }
 0xfb9   :  { %v1700_v54 = vpack.c.bf16 %v1698_v26, %v1697_v20 }
 0xfbb   :  { %4595 = vmatmul.msk.bf16.vlgmr.msra.gmra.mxu2 %vm364_vm7, %v1700_v54 }
0x103e   :  { %v1744_v18 = vpop.f32.mrf.mxu2 }
0x1046   :  { %v1746_v14 = vpop.f32.mrf.mxu2 }
0x1047   :  { %v1757_v32 = vpack.c.bf16 %v1746_v14, %v1744_v18 }
0x1049   :  { %4605 = vmatmul.msk.bf16.vlgmr.msrb.gmra.mxu3 %vm162_vm4, %v1757_v32 }
0x10cc   :  { %v1788_v30 = vpop.f32.mrf.mxu3 }
0x10cd   :  { %v1789_v29 = vadd.f32 %v5869_v45, %v1788_v30 }
0x10cf   :  { %v1797_v50 = vadd.f32 %v1789_v29, %v5788_v10 }
0x10d1   :  { %v1800_v52 = vsel %vm162_vm4, %v1797_v50, 0.0 }
0x10d2   :  { %1801 = vadd.xlane.f32.xlu2 %v1800_v52 }
0x10d4   :  { %v1790_v40 = vpop.f32.mrf.mxu3 }
0x10d5   :  { %v1791_v39 = vadd.f32 %v5869_v45, %v1790_v40 }
0x10d7   :  { %v1798_v35 = vadd.f32 %v1791_v39, %v5790_v41 }
0x10d9   :  { %v1803_v31 = vsel %vm162_vm4, %v1798_v35, 0.0 }
0x10da   :  { %1804 = vadd.xlane.f32.xlu1 %v1803_v31  ;;  %v5888_v31 = vld [vmem:[#allocation4 + $0x1a] ss:$0 sm:$0xff] }
0x10e2   :  { %1600 = vmax.xlane.f32.xlu1 %v1599_v51 }
0x1145   :  { %v1802_v15 = vpop.xlane.xlu2 %1801 }
0x1146   :  { %v1809_v10 = vmul.f32 %v1802_v15, %v5550_v37 }
0x1148   :  { %v1812_v61 = vsub.f32 %v1797_v50, %v1809_v10  ;;  %v5886_v50 = vld [vmem:[#allocation4 + $0x19] ss:$0 sm:$0xff] }
0x114a   :  { %v1815_v2 = vmul.f32 %v1812_v61, %v1812_v61 }
0x114c   :  { %v1818_v60 = vsel %vm162_vm4, %v1815_v2, 0.0 }
0x114d   :  { %v1805_v27 = vpop.xlane.xlu1 %1804  ;;  %1819 = vadd.xlane.f32.xlu0 %v1818_v60 }
0x114e   :  { %v1810_v41 = vmul.f32 %v1805_v27, %v5550_v37 }
0x1150   :  { %v1813_v47 = vsub.f32 %v1798_v35, %v1810_v41 }
0x1152   :  { %v1816_v8 = vmul.f32 %v1813_v47, %v1813_v47 }
0x1154   :  { %v1821_v6 = vsel %vm162_vm4, %v1816_v8, 0.0 }
0x1155   :  { %v1601_v21 = vpop.xlane.xlu1 %1600  ;;  %1822 = vadd.xlane.f32.xlu2 %v1821_v6 }
0x1156   :  { %v1604_v28 = vsub.f32 %v1590_v19, %v1601_v21 }
0x1158   :  { %v1609_v5 = vmul.f32 1.442695, %v1604_v28 }
0x115a   :  { %5035 = vpow2.f32 %v1609_v5 }
0x1160   :  { %v5036_v17 = vpop.eup %5035 }
0x1161   :  { %4594 = vmatmul.msk.f32.gmra.mxu1 %vm364_vm7, %v5036_v17 }
0x11c0   :  { %v1820_v24 = vpop.xlane.xlu0 %1819 }
0x11c1   :  { %v1827_v38 = vmul.f32 %v1820_v24, %v5550_v37 }
0x11c3   :  { %v1830_v63 = vadd.f32 1e-05, %v1827_v38 }
0x11c5   :  { %5037 = vrsqrt.f32 %v1830_v63  ;;  %vm1839_vm6 = vweird.f32 %v1830_v63 }
0x11c8   :  { %v1823_v46 = vpop.xlane.xlu2 %1822 }
0x11c9   :  { %v1828_v36 = vmul.f32 %v1823_v46, %v5550_v37 }
0x11cb   :  { %v5038_v3 = vpop.eup %5037  ;;  %v1831_v33 = vadd.f32 1e-05, %v1828_v36 }
0x11cc   :  { %v1834_v59 = vmul.f32 %v5038_v3, %v1830_v63  ;;  %vm1840_vm5 = vweird.f32 %v5038_v3  ;;  %v5902_v63 = vld [vmem:[#allocation4 + $0x1b] ss:$0 sm:$0xff] }
0x11cd   :  { %5039 = vrsqrt.f32 %v1831_v33  ;;  %vm1841_vm13 = vmor %vm1839_vm6, %vm1840_vm5  ;;  %vm1849_vm1 = vweird.f32 %v1831_v33 }
0x11ce   :  { %v1835_v12 = vmul.f32 %v5038_v3, %v1834_v59 }
0x11d0   :  { %v1836_v48 = vmul.f32 0.5, %v1835_v12  ;;  %v4880_v12 = vld [vmem:[#allocation2 + $0xf8] sm:$0xff] }
0x11d2   :  { %v1837_v26 = vsub.f32 1.5, %v1836_v48 }
0x11d3   :  { %v5040_v20 = vpop.eup %5039 }
0x11d4   :  { %v1838_v54 = vmul.f32 %v5038_v3, %v1837_v26  ;;  %v1844_v18 = vmul.f32 %v5040_v20, %v1831_v33  ;;  %vm1850_vm15 = vweird.f32 %v5040_v20 }
0x11d5   :  { %vm1851_vm9 = vmor %vm1849_vm1, %vm1850_vm15 }
0x11d6   :  { %v1845_v14 = vmul.f32 %v5040_v20, %v1844_v18  ;;  %v1842_v32 = vsel %vm1841_vm13, %v5038_v3, %v1838_v54  ;;  %v4881_v3 = vld [vmem:[#allocation2 + $0x100] sm:$0xff] }
0x11d7   :  { %v1863_v52 = vmul.f32 %v1842_v32, %v1812_v61  ;;  %2120 = vmatpush.bf16.msrb.mxu1 %v4881_v3  ;;  %v4879_v32 = vld [vmem:[#allocation2 + $0xf0] sm:$0xff] }
0x11d8   :  { %v1846_v30 = vmul.f32 0.5, %v1845_v14 }
0x11d9   :  { %v1868_v13 = vmul.f32 %v5886_v50, %v1863_v52 }
0x11da   :  { %v1847_v29 = vsub.f32 1.5, %v1846_v30 }
0x11db   :  { %v5893_v15 = vadd.f32 %v5888_v31, %v1868_v13  ;;  %2121 = vmatpush.bf16.msrb.mxu1 %v4880_v12 }
0x11dc   :  { %v1848_v40 = vmul.f32 %v5040_v20, %v1847_v29 }
0x11de   :  { %v1852_v39 = vsel %vm1851_vm9, %v5040_v20, %v1848_v40  ;;  %v1643_v35 = vpop.f32.mrf.mxu1 }
0x11df   :  { %v1864_v19 = vmul.f32 %v1852_v39, %v1813_v47  ;;  %5041 = vrcp.f32 %v1643_v35  ;;  %v1690_v41 = vand.u32 2147483648, %v1643_v35  ;;  %v1688_v47 = vand.u32 2147483647, %v1643_v35  ;;  %2122 = vmatpush.bf16.msrb.mxu1 %v4879_v32 }
0x11e0   :  { %vm1684_vm2 = vweird.f32 %v1643_v35  ;;  %vm1648_vm5 = vcmp.gt.f32.partialorder %v1643_v35, 0.0 }
0x11e1   :  { %v1869_v51 = vmul.f32 %v5886_v50, %v1864_v19  ;;  %v1691_v21 = vor.u32 1.1754944e-38, %v1690_v41  ;;  %vm1689_vm12 = vcmp.eq.f32.partialorder %v1688_v47, 8.507059e+37 }
0x11e3   :  { %v5896_v10 = vadd.f32 %v5888_v31, %v1869_v51 }
0x11e5   :  { %v5042_v61 = vpop.eup %5041  ;;  %v1880_v2 = vpack.c.bf16 %v5896_v10, %v5893_v15 }
0x11e6   :  { %v1680_v60 = vmul.f32 %v5042_v61, %v1643_v35  ;;  %vm1685_vm10 = vweird.f32 %v5042_v61  ;;  %v4878_v35 = vld [vmem:[#allocation2 + $0xe8] sm:$0xff] }
0x11e7   :  { %4615 = vmatmul.msk.bf16.vlgmr.msrb.gmra.mxu0 %vm162_vm4, %v1880_v2  ;;  %vm1686_vm11 = vmor %vm1684_vm2, %vm1685_vm10  ;;  %2123 = vmatpush.bf16.msrb.mxu1 %v4878_v35 }
0x11e8   :  { %v1681_v27 = vsub.f32 1.0, %v1680_v60 }
0x11ea   :  { %v1682_v8 = vmul.f32 %v5042_v61, %v1681_v27 }
0x11ec   :  { %v1683_v6 = vadd.f32 %v5042_v61, %v1682_v8  ;;  %v4877_v8 = vld [vmem:[#allocation2 + $0xe0] sm:$0xff] }
0x11ed   :  { %2124 = vmatpush.bf16.msrb.mxu1 %v4877_v8 }
0x11ee   :  { %v1687_v28 = vsel %vm1686_vm11, %v5042_v61, %v1683_v6 }
0x11ef   :  { %v1692_v5 = vsel %vm1689_vm12, %v1691_v21, %v1687_v28 }
0x11f0   :  { %v1696_v9 = vsel %vm1648_vm5, %v1692_v5, 0.0 }
0x11f1   :  { %v1699_v24 = vmul.f32 %v5036_v17, %v1696_v9 }
0x11f3   :  { %v1701_v38 = vpack.c.bf16 %v1699_v24, %v1699_v24 }
0x11f5   :  { %4596 = vmatmul.msk.bf16.gmra.mxu2 %vm364_vm7, %v1701_v38 }
0x1264   :  { %v1911_v62 = vpop.f32.mrf.mxu0 }
0x1265   :  { %v5905_v46 = vadd.f32 %v5902_v63, %v1911_v62  ;;  %v4876_v62 = vld [vmem:[#allocation2 + $0xd8] sm:$0xff] }
0x1266   :  { %2125 = vmatpush.bf16.msrb.mxu1 %v4876_v62 }
0x1267   :  { %v5908_v36 = vmul.f32 0.70710677, %v5905_v46 }
0x1269   :  { %v1926_v33 = vmul.f32 %v5908_v36, %v5908_v36 }
0x126b   :  { %v5912_v59 = vmin.f32 %v1926_v33, 16.0 }
0x126c   :  { %v1913_v17 = vpop.f32.mrf.mxu0 }
0x126d   :  { %v1928_v48 = vmul.f32 2.1237322e-06, %v5912_v59  ;;  %v1939_v26 = vmul.f32 3.8918573e-05, %v5912_v59  ;;  %v5917_v20 = vadd.f32 %v5902_v63, %v1913_v17 }
0x126f   :  { %v1929_v54 = vadd.f32 0.00028619796, %v1928_v48  ;;  %v1940_v18 = vadd.f32 0.001143296, %v1939_v26  ;;  %v5920_v14 = vmul.f32 0.70710677, %v5917_v20 }
0x1271   :  { %v1941_v30 = vmul.f32 %v1940_v18, %v5912_v59  ;;  %v1966_v29 = vmul.f32 %v5920_v14, %v5920_v14  ;;  %v1930_v52 = vmul.f32 %v1929_v54, %v5912_v59  ;;  %v4875_v18 = vld [vmem:[#allocation2 + $0xd0] sm:$0xff] }
0x1272   :  { %2126 = vmatpush.bf16.msrb.mxu1 %v4875_v18 }
0x1273   :  { %v1942_v40 = vadd.f32 0.014752088, %v1941_v30  ;;  %v1967_v39 = vmin.f32 %v1966_v29, 16.0  ;;  %v1931_v61 = vadd.f32 0.0036580483, %v1930_v52  ;;  %v4874_v29 = vld [vmem:[#allocation2 + $0xc8] sm:$0xff] }
0x1275   :  { %v1943_v13 = vmul.f32 %v1942_v40, %v5912_v59  ;;  %v1968_v19 = vmul.f32 2.1237322e-06, %v1967_v39  ;;  %v1979_v51 = vmul.f32 3.8918573e-05, %v1967_v39  ;;  %v1932_v5 = vmul.f32 %v1931_v61, %v5912_v59 }
0x1276   :  { %2127 = vmatpush.bf16.msrb.mxu1 %v4874_v29 }
0x1277   :  { %v1944_v2 = vadd.f32 0.112945676, %v1943_v13  ;;  %v1969_v60 = vadd.f32 0.00028619796, %v1968_v19  ;;  %v1980_v27 = vadd.f32 0.001143296, %v1979_v51 }
0x1278   :  { %v1749_v41 = vpop.f32.mrf.mxu2  ;;  %v1933_v17 = vadd.f32 0.05243302, %v1932_v5 }
0x1279   :  { %v1945_v47 = vmul.f32 %v1944_v2, %v5912_v59  ;;  %v1758_v6 = vpack.c.bf16 %v1749_v41, %v1749_v41  ;;  %v1970_v21 = vmul.f32 %v1969_v60, %v1967_v39  ;;  %v1981_v28 = vmul.f32 %v1980_v27, %v1967_v39 }
0x127a   :  { %v1934_v30 = vmul.f32 %v1933_v17, %v5912_v59 }
0x127b   :  { %v1946_v9 = vadd.f32 0.4994258, %v1945_v47  ;;  %4606 = vmatmul.msk.bf16.gmra.mxu3 %vm162_vm4, %v1758_v6  ;;  %v1971_v24 = vadd.f32 0.0036580483, %v1970_v21  ;;  %v1982_v38 = vadd.f32 0.014752088, %v1981_v28 }
0x127c   :  { %v1935_v19 = vadd.f32 0.18741608, %v1934_v30 }
0x127d   :  { %v1947_v3 = vmul.f32 %v1946_v9, %v5912_v59  ;;  %v1983_v33 = vmul.f32 %v1982_v38, %v1967_v39  ;;  %v1972_v48 = vmul.f32 %v1971_v24, %v1967_v39 }
0x127e   :  { %v1936_v27 = vmul.f32 %v1935_v19, %v5912_v59  ;;  %v1921_v19 = vmul.f32 0.5, %v5917_v20 }
0x127f   :  { %v1948_v12 = vadd.f32 1.0, %v1947_v3  ;;  %v1984_v26 = vadd.f32 0.112945676, %v1983_v33  ;;  %v1973_v52 = vadd.f32 0.05243302, %v1972_v48 }
0x1280   :  { %v1751_v54 = vpop.f32.mrf.mxu2  ;;  %v1937_v28 = vadd.f32 1.1283791, %v1936_v27 }
0x1281   :  { %5043 = vrcp.f32 %v1948_v12  ;;  %v1985_v32 = vmul.f32 %v1984_v26, %v1967_v39  ;;  %v1974_v61 = vmul.f32 %v1973_v52, %v1967_v39  ;;  %v1960_v8 = vand.u32 2147483648, %v1948_v12 }
0x1282   :  { %v1958_v6 = vand.u32 2147483647, %v1948_v12  ;;  %vm1954_vm13 = vweird.f32 %v1948_v12  ;;  %v1938_v33 = vmul.f32 %v1937_v28, %v5908_v36 }
0x1283   :  { %v1986_v40 = vadd.f32 0.4994258, %v1985_v32  ;;  %v1975_v47 = vadd.f32 0.18741608, %v1974_v61  ;;  %v1961_v24 = vor.u32 1.1754944e-38, %v1960_v8 }
0x1284   :  { %vm1959_vm1 = vcmp.eq.f32.partialorder %v1958_v6, 8.507059e+37  ;;  %v4947_v6 = vld [vmem:[#allocation4 + $0x1c] ss:$0 sm:$0xff] }
0x1285   :  { %v1987_v35 = vmul.f32 %v1986_v40, %v1967_v39  ;;  %v1976_v38 = vmul.f32 %v1975_v47, %v1967_v39 }
0x1287   :  { %v5044_v13 = vpop.eup %5043  ;;  %v1988_v2 = vadd.f32 1.0, %v1987_v35  ;;  %v1977_v59 = vadd.f32 1.1283791, %v1976_v38 }
0x1288   :  { %v1950_v51 = vmul.f32 %v5044_v13, %v1948_v12  ;;  %vm1955_vm6 = vweird.f32 %v5044_v13 }
0x1289   :  { %5045 = vrcp.f32 %v1988_v2  ;;  %vm1956_vm15 = vmor %vm1954_vm13, %vm1955_vm6  ;;  %v2000_v48 = vand.u32 2147483648, %v1988_v2  ;;  %v1998_v18 = vand.u32 2147483647, %v1988_v2  ;;  %vm1994_vm10 = vweird.f32 %v1988_v2 }
0x128a   :  { %v1951_v60 = vsub.f32 1.0, %v1950_v51  ;;  %v1978_v29 = vmul.f32 %v1977_v59, %v5920_v14 }
0x128b   :  { %v2001_v12 = vor.u32 1.1754944e-38, %v2000_v48  ;;  %vm1999_vm11 = vcmp.eq.f32.partialorder %v1998_v18, 8.507059e+37 }
0x128c   :  { %v1952_v41 = vmul.f32 %v5044_v13, %v1951_v60 }
0x128e   :  { %v1953_v21 = vadd.f32 %v5044_v13, %v1952_v41 }
0x128f   :  { %v5046_v5 = vpop.eup %5045 }
0x1290   :  { %v1957_v9 = vsel %vm1956_vm15, %v5044_v13, %v1953_v21  ;;  %v1990_v62 = vmul.f32 %v5046_v5, %v1988_v2  ;;  %vm1995_vm9 = vweird.f32 %v5046_v5  ;;  %v1920_v13 = vmul.f32 0.5, %v5905_v46 }
0x1291   :  { %v1962_v3 = vsel %vm1959_vm1, %v1961_v24, %v1957_v9  ;;  %vm1996_vm2 = vmor %vm1994_vm10, %vm1995_vm9 }
0x1292   :  { %v1991_v17 = vsub.f32 1.0, %v1990_v62  ;;  %v1963_v26 = vmul.f32 %v1962_v3, %v1938_v33 }
0x1294   :  { %v1992_v54 = vmul.f32 %v5046_v5, %v1991_v17  ;;  %v4617_v30 = vclamps-f32 %v1963_v26, 1.0 }
0x1296   :  { %v1993_v32 = vadd.f32 %v5046_v5, %v1992_v54  ;;  %v2046_v35 = vadd.f32 1.0, %v4617_v30 }
0x1298   :  { %v1997_v39 = vsel %vm1996_vm2, %v5046_v5, %v1993_v32  ;;  %v2049_v61 = vmul.f32 %v2046_v35, %v1920_v13 }
0x1299   :  { %v2002_v52 = vsel %vm1999_vm11, %v2001_v12, %v1997_v39 }
0x129a   :  { %v2003_v40 = vmul.f32 %v2002_v52, %v1978_v29 }
0x129c   :  { %v4618_v36 = vclamps-f32 %v2003_v40, 1.0 }
0x129e   :  { %v2047_v51 = vadd.f32 1.0, %v4618_v36 }
0x12a0   :  { %v2050_v60 = vmul.f32 %v2047_v51, %v1921_v19  ;;  %v4948_v51 = vld [vmem:[#allocation4 + $0x1d] ss:$0 sm:$0xff] }
0x12a2   :  { %v2068_v27 = vpack.c.bf16 %v2050_v60, %v2049_v61 }
0x12a4   :  { %2128 = vmatmul.bf16.vlgmr.msrb.gmra.mxu1 %v2068_v27 }
0x12fe   :  { %v1793_v2 = vpop.f32.mrf.mxu3 }
0x12ff   :  { %v1794_v41 = vadd.f32 %v5869_v45, %v1793_v2  ;;  %v4949_v2 = vld [vmem:[#allocation4 + $0x1e] ss:$0 sm:$0xff] }
0x1301   :  { %v5939_v14 = vadd.f32 %v1794_v41, %v5795_v16 }
0x1303   :  { %v1806_v8 = vsel %vm579_vm14, %v5939_v14, 0.0 }
0x1304   :  { %1807 = vadd.xlane.f32.xlu0 %v1806_v8 }
0x1306   :  { %v1795_v47 = vpop.f32.mrf.mxu3 }
0x1321   :  { %v2129_v46 = vpop.f32.mrf.mxu1 }
0x1322   :  { %v2130_v21 = vadd.f32 %v4947_v6, %v2129_v46 }
0x1324   :  { %v2137_v20 = vadd.f32 %v2130_v21, %v5893_v15 }
0x1326   :  { %v2139_v28 = vsel %vm162_vm4, %v2137_v20, 0.0 }
0x1327   :  { %2140 = vadd.xlane.f32.xlu2 %v2139_v28 }
0x1329   :  { %v2131_v5 = vpop.f32.mrf.mxu1 }
0x132a   :  { %v2132_v9 = vadd.f32 %v4947_v6, %v2131_v5 }
0x132c   :  { %v2138_v45 = vadd.f32 %v2132_v9, %v5896_v10 }
0x132e   :  { %v2142_v16 = vsel %vm162_vm4, %v2138_v45, 0.0 }
0x132f   :  { %2143 = vadd.xlane.f32.xlu1 %v2142_v16 }
0x1377   :  { %v1808_v16 = vpop.xlane.xlu0 %1807 }
0x139a   :  { %v2141_v24 = vpop.xlane.xlu2 %2140 }
0x139b   :  { %v2145_v38 = vmul.f32 %v2141_v24, %v5550_v37 }
0x139d   :  { %v2147_v62 = vsub.f32 %v2137_v20, %v2145_v38 }
0x139f   :  { %v2149_v3 = vmul.f32 %v2147_v62, %v2147_v62 }
0x13a1   :  { %v2151_v33 = vsel %vm162_vm4, %v2149_v3, 0.0 }
0x13a2   :  { %v2144_v17 = vpop.xlane.xlu1 %2143  ;;  %2152 = vadd.xlane.f32.xlu2 %v2151_v33 }
0x13a3   :  { %v2146_v15 = vmul.f32 %v2144_v17, %v5550_v37 }
0x13a5   :  { %v2148_v59 = vsub.f32 %v2138_v45, %v2146_v15 }
0x13a7   :  { %v2150_v48 = vmul.f32 %v2148_v59, %v2148_v59 }
0x13a9   :  { %v2154_v26 = vsel %vm162_vm4, %v2150_v48, 0.0 }
0x13aa   :  { %2155 = vadd.xlane.f32.xlu1 %v2154_v26 }
0x1415   :  { %v2153_v10 = vpop.xlane.xlu2 %2152 }
0x1416   :  { %v2157_v54 = vmul.f32 %v2153_v10, %v5550_v37 }
0x1418   :  { %v2159_v18 = vadd.f32 1e-05, %v2157_v54 }
0x141a   :  { %5047 = vrsqrt.f32 %v2159_v18  ;;  %vm2167_vm5 = vweird.f32 %v2159_v18 }
0x141d   :  { %v2156_v32 = vpop.xlane.xlu1 %2155 }
0x141e   :  { %v2158_v12 = vmul.f32 %v2156_v32, %v5550_v37 }
0x1420   :  { %v5048_v30 = vpop.eup %5047  ;;  %v2160_v29 = vadd.f32 1e-05, %v2158_v12 }
0x1421   :  { %v2162_v39 = vmul.f32 %v5048_v30, %v2159_v18  ;;  %vm2168_vm12 = vweird.f32 %v5048_v30 }
0x1422   :  { %5049 = vrsqrt.f32 %v2160_v29  ;;  %vm2169_vm6 = vmor %vm2167_vm5, %vm2168_vm12  ;;  %vm2177_vm15 = vweird.f32 %v2160_v29 }
0x1423   :  { %v2163_v52 = vmul.f32 %v5048_v30, %v2162_v39  ;;  %v4882_v39 = vld [vmem:[#allocation2 + $0x108] sm:$0xff] }
0x1425   :  { %v2164_v40 = vmul.f32 0.5, %v2163_v52  ;;  %v5975_v52 = vld [vmem:[#allocation4 + $0xcc] sm:$0xff] }
0x1427   :  { %v2165_v35 = vsub.f32 1.5, %v2164_v40 }
0x1428   :  { %v5050_v36 = vpop.eup %5049 }
0x1429   :  { %v2166_v13 = vmul.f32 %v5048_v30, %v2165_v35  ;;  %v2172_v19 = vmul.f32 %v5050_v36, %v2160_v29  ;;  %vm2178_vm13 = vweird.f32 %v5050_v36 }
0x142a   :  { %vm2179_vm1 = vmor %vm2177_vm15, %vm2178_vm13 }
0x142b   :  { %v2173_v61 = vmul.f32 %v5050_v36, %v2172_v19  ;;  %v2170_v60 = vsel %vm2169_vm6, %v5048_v30, %v2166_v13  ;;  %v5978_v13 = vld [vmem:[#allocation4 + $0xc4] sm:$0xff] }
0x142c   :  { %v2181_v27 = vmul.f32 %v2170_v60, %v2147_v62  ;;  %v1811_v62 = vmul.f32 %v1808_v16, %v5550_v37 }
0x142d   :  { %v2174_v41 = vmul.f32 0.5, %v2173_v61  ;;  %v5983_v61 = vld [vmem:[#allocation4 + $0xbc] sm:$0xff] }
0x142e   :  { %v2185_v8 = vmul.f32 %v4948_v51, %v2181_v27  ;;  %v5962_v17 = vsub.f32 %v5939_v14, %v1811_v62  ;;  %v4883_v14 = vld [vmem:[#allocation2 + $0x110] sm:$0xff] }
0x142f   :  { %v2175_v47 = vsub.f32 1.5, %v2174_v41  ;;  %2272 = vmatpush.bf16.msrb.mxu2 %v4883_v14 }
0x1430   :  { %v2189_v6 = vadd.f32 %v4949_v2, %v2185_v8  ;;  %v1817_v10 = vmul.f32 %v5962_v17, %v5962_v17  ;;  %v5986_v8 = vld [vmem:[#allocation4 + $0xb4] sm:$0xff] }
0x1431   :  { %v2176_v46 = vmul.f32 %v5050_v36, %v2175_v47 }
0x1432   :  { %v2191_v21 = vsel %vm162_vm4, %v2189_v6, 0.0  ;;  %v1824_v32 = vsel %vm579_vm14, %v1817_v10, 0.0 }
0x1433   :  { %2192 = vadd.xlane.f32.xlu2 %v2191_v21  ;;  %v2180_v20 = vsel %vm2179_vm1, %v5050_v36, %v2176_v46  ;;  %2273 = vmatpush.bf16.msrb.mxu2 %v4882_v39  ;;  %v4885_v36 = vld [vmem:[#allocation2 + $0x120] sm:$0xff]  ;;  %v4951_v39 = vld [vmem:[#allocation4 + $0x20] ss:$0 sm:$0xff] }
0x1434   :  { %v2182_v28 = vmul.f32 %v2180_v20, %v2148_v59  ;;  %2323 = vmatpush.bf16.msra.mxu3 %v4885_v36  ;;  %v5992_v21 = vld [vmem:[#allocation4 + $0xa4] sm:$0xff] }
0x1436   :  { %v2186_v5 = vmul.f32 %v4948_v51, %v2182_v28  ;;  %v5995_v28 = vld [vmem:[#allocation4 + $0x9c] sm:$0xff] }
0x1437   :  { %2538 = vmatpush.msra.mxu2 %v5975_v52 }
0x1438   :  { %v2190_v9 = vadd.f32 %v4949_v2, %v2186_v5 }
0x1439   :  { %2539 = vmatpush.msra.mxu2 %v5978_v13 }
0x143a   :  { %v2194_v45 = vsel %vm162_vm4, %v2190_v9, 0.0 }
0x143b   :  { %2195 = vadd.xlane.f32.xlu1 %v2194_v45  ;;  %2540 = vmatpush.msra.mxu2 %v5983_v61 }
0x143d   :  { %2541 = vmatpush.msra.mxu2 %v5986_v8 }
0x14a6   :  { %v2193_v24 = vpop.xlane.xlu2 %2192 }
0x14a7   :  { %v2197_v38 = vmul.f32 %v2193_v24, %v5550_v37  ;;  %v5998_v24 = vld [vmem:[#allocation4 + $0x94] sm:$0xff] }
0x14a9   :  { %v5957_v3 = vsub.f32 %v2189_v6, %v2197_v38  ;;  %v5989_v6 = vld [vmem:[#allocation4 + $0xac] sm:$0xff] }
0x14aa   :  { %2542 = vmatpush.msra.mxu2 %v5989_v6 }
0x14ab   :  { %v2201_v33 = vmul.f32 %v5957_v3, %v5957_v3 }
0x14ac   :  { %2543 = vmatpush.msra.mxu2 %v5992_v21 }
0x14ad   :  { %v2203_v15 = vsel %vm162_vm4, %v2201_v33, 0.0  ;;  %v6001_v33 = vld [vmem:[#allocation4 + $0x8c] sm:$0xff] }
0x14ae   :  { %v2196_v59 = vpop.xlane.xlu1 %2195  ;;  %2204 = vadd.xlane.f32.xlu2 %v2203_v15  ;;  %2544 = vmatpush.msra.mxu2 %v5995_v28 }
0x14af   :  { %v2198_v48 = vmul.f32 %v2196_v59, %v5550_v37 }
0x14b0   :  { %2545 = vmatpush.msra.mxu2 %v5998_v24 }
0x14b1   :  { %v5966_v26 = vsub.f32 %v2190_v9, %v2198_v48 }
0x14b2   :  { %2546 = vmatpush.msra.mxu2 %v6001_v33 }
0x14b3   :  { %v2202_v54 = vmul.f32 %v5966_v26, %v5966_v26 }
0x14b5   :  { %v2206_v18 = vsel %vm162_vm4, %v2202_v54, 0.0 }
0x14b6   :  { %2207 = vadd.xlane.f32.xlu1 %v2206_v18  ;;  %1825 = vadd.xlane.f32.xlu2 %v1824_v32  ;;  %v4950_v18 = vld [vmem:[#allocation4 + $0x1f] ss:$0 sm:$0xff] }
0x1521   :  { %v2205_v12 = vpop.xlane.xlu2 %2204 }
0x1522   :  { %v2209_v30 = vmul.f32 %v2205_v12, %v5550_v37 }
0x1524   :  { %v2211_v29 = vadd.f32 1e-05, %v2209_v30 }
0x1526   :  { %5051 = vrsqrt.f32 %v2211_v29  ;;  %vm2219_vm10 = vweird.f32 %v2211_v29 }
0x1529   :  { %v2208_v40 = vpop.xlane.xlu1 %2207  ;;  %v1826_v35 = vpop.xlane.xlu2 %1825 }
0x152a   :  { %v2210_v19 = vmul.f32 %v2208_v40, %v5550_v37  ;;  %v1829_v51 = vmul.f32 %v1826_v35, %v5550_v37 }
0x152c   :  { %v5052_v60 = vpop.eup %5051  ;;  %v2212_v27 = vadd.f32 1e-05, %v2210_v19  ;;  %v1832_v2 = vadd.f32 1e-05, %v1829_v51 }
0x152d   :  { %v2214_v41 = vmul.f32 %v5052_v60, %v2211_v29  ;;  %vm2220_vm9 = vweird.f32 %v5052_v60 }
0x152e   :  { %5053 = vrsqrt.f32 %v2212_v27  ;;  %vm2221_vm2 = vmor %vm2219_vm10, %vm2220_vm9  ;;  %vm2229_vm5 = vweird.f32 %v2212_v27  ;;  %vm1859_vm13 = vweird.f32 %v1832_v2 }
0x152f   :  { %v2215_v47 = vmul.f32 %v5052_v60, %v2214_v41  ;;  %5055 = vrsqrt.f32 %v1832_v2 }
0x1531   :  { %v2216_v46 = vmul.f32 0.5, %v2215_v47 }
0x1533   :  { %v2217_v20 = vsub.f32 1.5, %v2216_v46 }
0x1534   :  { %v5054_v5 = vpop.eup %5053 }
0x1535   :  { %v5056_v9 = vpop.eup %5055  ;;  %v2218_v45 = vmul.f32 %v5052_v60, %v2217_v20  ;;  %v2224_v16 = vmul.f32 %v5054_v5, %v2212_v27  ;;  %vm2230_vm11 = vweird.f32 %v5054_v5  ;;  %v4884_v20 = vld [vmem:[#allocation2 + $0x118] sm:$0xff] }
0x1536   :  { %v1854_v38 = vmul.f32 %v5056_v9, %v1832_v2  ;;  %vm1860_vm12 = vweird.f32 %v5056_v9  ;;  %vm2231_vm6 = vmor %vm2229_vm5, %vm2230_vm11  ;;  %2324 = vmatpush.bf16.msra.mxu3 %v4884_v20  ;;  %vm6631_vm11 = vcmask 1046528  }
0x1537   :  { %v2225_v62 = vmul.f32 %v5054_v5, %v2224_v16  ;;  %v2222_v59 = vsel %vm2221_vm2, %v5052_v60, %v2218_v45  ;;  %vm1861_vm15 = vmor %vm1859_vm13, %vm1860_vm12  ;;  %vm6633_vm12 = vcmask 1043456  }
0x1538   :  { %v1855_v15 = vmul.f32 %v5056_v9, %v1854_v38  ;;  %v2233_v32 = vmul.f32 %v2222_v59, %v5957_v3 }
0x1539   :  { %v2226_v48 = vmul.f32 0.5, %v2225_v62  ;;  %v2285_v62 = vld [vmem:[#allocation4 + $0x112] sm:$0xff] }
0x153a   :  { %v1856_v10 = vmul.f32 0.5, %v1855_v15  ;;  %v2237_v40 = vmul.f32 %v4950_v18, %v2233_v32 }
0x153b   :  { %v2227_v54 = vsub.f32 1.5, %v2226_v48 }
0x153c   :  { %v1857_v14 = vsub.f32 1.5, %v1856_v10  ;;  %v2241_v3 = vadd.f32 %v4951_v39, %v2237_v40 }
0x153d   :  { %v2228_v12 = vmul.f32 %v5054_v5, %v2227_v54 }
0x153e   :  { %v1858_v30 = vmul.f32 %v5056_v9, %v1857_v14 }
0x153f   :  { %v2232_v29 = vsel %vm2231_vm6, %v5054_v5, %v2228_v12  ;;  %vm6635_vm6 = vmmov %vm6633_vm12 }
0x1540   :  { %v2234_v35 = vmul.f32 %v2232_v29, %v5966_v26  ;;  %v1862_v36 = vsel %vm1861_vm15, %v5056_v9, %v1858_v30  ;;  %v4952_v9 = vld [vmem:[#allocation4 + $0x21] ss:$0 sm:$0xff]  ;;  %vm6637_vm15 = vmmov %vm6635_vm6 }
0x1541   :  { %v1865_v19 = vmul.f32 %v1862_v36, %v5962_v17 }
0x1542   :  { %v2238_v51 = vmul.f32 %v4950_v18, %v2234_v35 }
0x1543   :  { %v1870_v60 = vmul.f32 %v5886_v50, %v1865_v19 }
0x1544   :  { %v2242_v41 = vadd.f32 %v4951_v39, %v2238_v51 }
0x1545   :  { %v1875_v47 = vadd.f32 %v5888_v31, %v1870_v60  ;;  %v2284_v31 = vld [vmem:[#allocation4 + $0x10a] sm:$0xff] }
0x1546   :  { %v2243_v27 = vsel %vm81_vm0, %v2241_v3, %v2242_v41 }
0x1547   :  { %v1881_v46 = vpack.c.bf16 %v1875_v47, %v1875_v47  ;;  %v2248_v2 = vpack.c.bf16 %v2243_v27, %v2243_v27  ;;  %v4887_v47 = vld [vmem:[#allocation2 + $0x130] sm:$0xff] }
0x1548   :  { %2380 = vmatpush.bf16.msra.mxu0 %v4887_v47 }
0x1549   :  { %4616 = vmatmul.msk.bf16.gmra.mxu0 %vm162_vm4, %v1881_v46  ;;  %4660 = vmatmul.msk.bf16.vlgmr.msrb.gmra.mxu2 %vm162_vm4, %v2248_v2 }
0x15c6   :  { %v1916_v26 = vpop.f32.mrf.mxu0 }
0x15c7   :  { %v1917_v17 = vadd.f32 %v5902_v63, %v1916_v26 }
0x15c9   :  { %v1925_v5 = vmul.f32 0.70710677, %v1917_v17 }
0x15cb   :  { %v2006_v50 = vmul.f32 %v1925_v5, %v1925_v5 }
0x15cc   :  { %v2275_v45 = vpop.f32.mrf.mxu2 }
0x15cd   :  { %v2007_v16 = vmin.f32 %v2006_v50, 16.0  ;;  %v2276_v38 = vadd.f32 %v4952_v9, %v2275_v45 }
0x15ce   :  { %v1918_v15 = vpop.f32.mrf.mxu0 }
0x15cf   :  { %v2008_v59 = vmul.f32 2.1237322e-06, %v2007_v16  ;;  %v2286_v48 = vperm.slane %v2276_v38, 0  ;;  %v2287_v10 = vperm.slane %v2276_v38, 1  ;;  %v2019_v54 = vmul.f32 3.8918573e-05, %v2007_v16 }
0x15d1   :  { %v2009_v18 = vadd.f32 0.00028619796, %v2008_v59  ;;  %v2294_v32 = vmul.f32 %v2286_v48, %v2284_v31  ;;  %v2295_v14 = vmul.f32 %v2287_v10, %v2285_v62  ;;  %v2020_v12 = vadd.f32 0.001143296, %v2019_v54 }
0x15d3   :  { %v2010_v30 = vmul.f32 %v2009_v18, %v2007_v16  ;;  %v2300_v29 = vpack.c.bf16 %v2295_v14, %v2294_v32  ;;  %v2021_v63 = vmul.f32 %v2020_v12, %v2007_v16  ;;  %v1922_v12 = vmul.f32 0.5, %v1917_v17 }
0x15d4   :  { %v2277_v39 = vpop.f32.mrf.mxu2 }
0x15d5   :  { %4669 = vmatmul.msk.bf16.vlgmr.msra.gmra.mxu3 %vm162_vm4, %v2300_v29  ;;  %v2022_v40 = vadd.f32 0.014752088, %v2021_v63  ;;  %v2011_v35 = vadd.f32 0.0036580483, %v2010_v30  ;;  %v4886_v63 = vld [vmem:[#allocation2 + $0x128] sm:$0xff]  ;;  %v2279_v39 = vld [vmem:[#allocation4 + $0x22] sm:$0xff] }
0x15d6   :  { %2381 = vmatpush.bf16.msra.mxu0 %v4886_v63 }
0x15d7   :  { %v2023_v36 = vmul.f32 %v2022_v40, %v2007_v16  ;;  %v2012_v51 = vmul.f32 %v2011_v35, %v2007_v16  ;;  %v2280_v40 = vld [vmem:[#allocation4 + $0x2a] sm:$0x1]  ;;  %v4953_v35 = vld [vmem:[#allocation4 + $0x2c] ss:$0 sm:$0xff] }
0x15d9   :  { %v2024_v19 = vadd.f32 0.112945676, %v2023_v36  ;;  %v2013_v41 = vadd.f32 0.05243302, %v2012_v51  ;;  %v2290_v36 = vrot.slane %v2279_v39, 1 }
0x15db   :  { %v2025_v60 = vmul.f32 %v2024_v19, %v2007_v16  ;;  %v2014_v2 = vmul.f32 %v2013_v41, %v2007_v16  ;;  %v2291_v19 = vrot.slane %v2280_v40, 1 }
0x15dd   :  { %v2026_v3 = vadd.f32 0.4994258, %v2025_v60  ;;  %v2015_v20 = vadd.f32 0.18741608, %v2014_v2 }
0x15df   :  { %v2027_v27 = vmul.f32 %v2026_v3, %v2007_v16  ;;  %v2016_v9 = vmul.f32 %v2015_v20, %v2007_v16  ;;  %v2292_v3 = vsel %vm6631_vm11, %v2290_v36, %v2291_v19 }
0x15e1   :  { %v2028_v46 = vadd.f32 1.0, %v2027_v27  ;;  %v2017_v31 = vadd.f32 1.1283791, %v2016_v9 }
0x15e3   :  { %5057 = vrcp.f32 %v2028_v46  ;;  %v2040_v38 = vand.u32 2147483648, %v2028_v46  ;;  %v2038_v15 = vand.u32 2147483647, %v2028_v46  ;;  %vm2034_vm9 = vweird.f32 %v2028_v46 }
0x15e4   :  { %v2018_v10 = vmul.f32 %v2017_v31, %v1925_v5  ;;  %v2281_v5 = vld [vmem:[#allocation4 + $0x2b] sm:$0x1] }
0x15e5   :  { %v2041_v48 = vor.u32 1.1754944e-38, %v2040_v38  ;;  %vm2039_vm2 = vcmp.eq.f32.partialorder %v2038_v15, 8.507059e+37  ;;  %v2282_v41 = vadd.f32 %v2281_v5, %v2279_v39 }
0x15e7   :  { %v2337_v2 = vrot.slane %v2282_v41, 7 }
0x15e9   :  { %v5058_v26 = vpop.eup %5057 }
0x15ea   :  { %v2030_v50 = vmul.f32 %v5058_v26, %v2028_v46  ;;  %vm2035_vm1 = vweird.f32 %v5058_v26 }
0x15eb   :  { %vm2036_vm10 = vmor %vm2034_vm9, %vm2035_vm1 }
0x15ec   :  { %v2031_v45 = vsub.f32 1.0, %v2030_v50  ;;  %vm6638_vm1 = vmmov %vm6635_vm6 }
0x15ee   :  { %v2032_v62 = vmul.f32 %v5058_v26, %v2031_v45 }
0x15f0   :  { %v2033_v59 = vadd.f32 %v5058_v26, %v2032_v62 }
0x15f2   :  { %v2037_v54 = vsel %vm2036_vm10, %v5058_v26, %v2033_v59 }
0x15f3   :  { %v2042_v18 = vsel %vm2039_vm2, %v2041_v48, %v2037_v54  ;;  %v4954_v48 = vld [vmem:[#allocation4 + $0x2d] ss:$0 sm:$0xff] }
0x15f4   :  { %v2043_v32 = vmul.f32 %v2042_v18, %v2018_v10 }
0x15f6   :  { %v4619_v14 = vclamps-f32 %v2043_v32, 1.0 }
0x15f8   :  { %v2048_v30 = vadd.f32 1.0, %v4619_v14 }
0x15fa   :  { %v2051_v16 = vmul.f32 %v2048_v30, %v1922_v12 }
0x15fc   :  { %v2069_v29 = vpack.c.bf16 %v2051_v16, %v2051_v16 }
0x15fe   :  { %2133 = vmatmul.bf16.gmra.mxu1 %v2069_v29 }
0x1658   :  { %v2326_v51 = vpop.f32.mrf.mxu3 }
0x1659   :  { %v2327_v60 = vadd.f32 %v4953_v35, %v2326_v51 }
0x165b   :  { %v2331_v47 = vadd.f32 %v2327_v60, %v2292_v3 }
0x165d   :  { %v2334_v46 = vrot.slane %v2331_v47, 7 }
0x165f   :  { %v2343_v9 = vsel %vm81_vm0, %v2334_v46, %v2337_v2  ;;  %v6019_v50 = vsel %vm81_vm0, %v2282_v41, %v2334_v46  ;;  %vm6632_vm0 = vcmask 1045504  }
0x1660   :  { %v2328_v27 = vpop.f32.mrf.mxu3  ;;  %vm6634_vm5 = vmmov %vm6632_vm0 }
0x1661   :  { %v2329_v17 = vadd.f32 %v4953_v35, %v2328_v27  ;;  %vm6636_vm13 = vmmov %vm6632_vm0 }
0x1663   :  { %v2332_v20 = vadd.f32 %v2329_v17, %v2292_v3 }
0x1665   :  { %v6015_v26 = vrot.slane %v2332_v20, 6 }
0x1667   :  { %v6023_v45 = vsel %vm137_vm3, %v2343_v9, %v6015_v26  ;;  %v2353_v31 = vpack.c.bf16 %v6015_v26, %v6015_v26 }
0x1668   :  { %v2352_v38 = vpack.c.bf16 %v6023_v45, %v6019_v50 }
0x166a   :  { %4678 = vmatmul.msk.bf16.vlgmr.msra.gmra.mxu0 %vm162_vm4, %v2352_v38 }
0x167a   :  { %4679 = vmatmul.msk.bf16.gmra.mxu0 %vm162_vm4, %v2353_v31 }
0x167b   :  { %v2134_v62 = vpop.f32.mrf.mxu1 }
0x1683   :  { %v2135_v15 = vpop.f32.mrf.mxu1 }
0x16e7   :  { %v2383_v59 = vpop.f32.mrf.mxu0 }
0x16e8   :  { %v2384_v10 = vadd.f32 %v4954_v48, %v2383_v59 }
0x16ea   :  { %v6031_v32 = vmul.f32 0.35355338, %v2384_v10  ;;  %v6039_v16 = vmul.f32 %v2384_v10, %v5502_v7  ;;  %v2414_v40 = vrot.slane %v2384_v10, 2  ;;  %v2406_v19 = vrot.slane %v2384_v10, 4 }
0x16eb   :  { %v2398_v51 = vrot.slane %v2384_v10, 6 }
0x16ef   :  { %v2385_v54 = vpop.f32.mrf.mxu0 }
0x16f0   :  { %v2386_v18 = vadd.f32 %v4954_v48, %v2385_v54 }
0x16f2   :  { %v6033_v14 = vmul.f32 0.35355338, %v2386_v18  ;;  %v6036_v12 = vmul.f32 %v2386_v18, %v5505_v4  ;;  %v2415_v30 = vrot.slane %v2386_v18, 2  ;;  %v2407_v29 = vrot.slane %v2386_v18, 4 }
0x16f3   :  { %v2399_v63 = vrot.slane %v2386_v18, 6 }
0x16f4   :  { %v2443_v39 = vpack.c.bf16 %v6033_v14, %v6031_v32  ;;  %v2613_v35 = vpack.c.bf16 %v6036_v12, %v6039_v16  ;;  %v2416_v5 = vsel %vm6632_vm0, %v2414_v40, %v2415_v30  ;;  %v2408_v3 = vsel %vm6633_vm12, %v2406_v19, %v2407_v29 }
0x16f5   :  { %v2400_v41 = vsel %vm137_vm3, %v2398_v51, %v2399_v63  ;;  %v2432_v2 = vmul.f32 %v2416_v5, %v5332_v44  ;;  %v2430_v62 = vmul.f32 %v2408_v3, %v5328_v42 }
0x16f6   :  { %v6070_v54 = vmul.f32 %v2400_v41, %v5509_v11 }
0x16f7   :  { %v2388_v36 = vpop.f32.mrf.mxu0 }
0x16f8   :  { %v6045_v60 = vadd.f32 %v4954_v48, %v2388_v36 }
0x16fa   :  { %v2401_v47 = vrot.slane %v6045_v60, 6  ;;  %v2409_v27 = vrot.slane %v6045_v60, 4  ;;  %v2417_v17 = vrot.slane %v6045_v60, 2  ;;  %v2422_v46 = vsel %vm137_vm3, %v6045_v60, %v2398_v51 }
0x16fb   :  { %v6057_v20 = vmul.f32 %v2422_v46, %v5489_v58 }
0x16fc   :  { %v6060_v9 = vsel %vm6634_vm5, %v2415_v30, %v2417_v17  ;;  %v2410_v38 = vsel %vm6635_vm6, %v2407_v29, %v2409_v27  ;;  %v2402_v31 = vsel %vm137_vm3, %v2399_v63, %v2401_v47  ;;  %v6075_v29 = vmul.f32 %v2416_v5, %v5495_v1 }
0x16fd   :  { %v2433_v15 = vmul.f32 %v6060_v9, %v5330_v43  ;;  %v2424_v59 = vsel %vm6636_vm13, %v2410_v38, %v2414_v40  ;;  %v2423_v48 = vsel %vm6637_vm15, %v2402_v31, %v2406_v19  ;;  %v6078_v63 = vmul.f32 %v2408_v3, %v5487_v57 }
0x16fe   :  { %v2431_v36 = vmul.f32 %v2424_v59, %v5342_v53  ;;  %v2429_v30 = vmul.f32 %v2423_v48, %v5346_v55  ;;  %v6081_v27 = vmul.f32 %v2424_v59, %v5483_v56  ;;  %v2614_v40 = vpack.c.bf16 %v6070_v54, %v6057_v20 }
0x16ff   :  { %v2390_v51 = vpop.f32.mrf.mxu0  ;;  %v2449_v47 = vpack.c.bf16 %v2433_v15, %v2433_v15  ;;  %v6086_v19 = vmul.f32 %v2423_v48, %v5479_v0  ;;  %v2426_v31 = vmul.f32 %v2386_v18, %v5386_v22  ;;  %v2427_v15 = vmul.f32 %v2422_v46, %v5338_v49 }
0x1700   :  { %v2448_v17 = vpack.c.bf16 %v2432_v2, %v2431_v36  ;;  %v2447_v38 = vpack.c.bf16 %v2430_v62, %v2429_v30  ;;  %v2616_v5 = vpack.c.bf16 %v6075_v29, %v6081_v27  ;;  %v2425_v59 = vmul.f32 %v2384_v10, %v5396_v25 }
0x1701   :  { %2463 = vrot.lane.b32.xlu1 %v2449_v47, %s5238_s0  ;;  %v2615_v3 = vpack.c.bf16 %v6078_v63, %v6086_v19  ;;  %v2428_v2 = vmul.f32 %v2400_v41, %v5389_v23  ;;  %v2442_v19 = vmul.f32 %v6060_v9, %v5466_v34 }
0x1702   :  { %2461 = vrot.lane.b32.xlu0 %v2448_v17, %s5238_s0  ;;  %2459 = vrot.lane.b32.xlu2 %v2447_v38, %s5238_s0  ;;  %v2445_v62 = vpack.c.bf16 %v2426_v31, %v2425_v59 }
0x1703   :  { %v2446_v48 = vpack.c.bf16 %v2428_v2, %v2427_v15  ;;  %v2617_v38 = vpack.c.bf16 %v2442_v19, %v2442_v19 }
0x1709   :  { %2455 = vrot.lane.b32.xlu1 %v2445_v62, %s5238_s0 }
0x170a   :  { %2457 = vrot.lane.b32.xlu0 %v2446_v48, %s5238_s0 }
0x175c   :  { %v2460_v18 = vpop.permute.xlu2 %2459 }
0x175d   :  { %v2478_v46 = vsel %vm162_vm4, %v2460_v18, 0 }
0x1773   :  { %v2464_v36 = vpop.permute.xlu1 %2463 }
0x1774   :  { %v2484_v30 = vsel %vm162_vm4, %v2464_v36, 0  ;;  %v2462_v29 = vpop.permute.xlu0 %2461 }
0x1775   :  { %2489 = vmatpush.bf16.xpose.msra.mxu1 %v2484_v30  ;;  %v2481_v63 = vsel %vm162_vm4, %v2462_v29, 0 }
0x177b   :  { %v2456_v51 = vpop.permute.xlu1 %2455 }
0x177c   :  { %v2458_v10 = vpop.permute.xlu0 %2457  ;;  %v2472_v47 = vsel %vm162_vm4, %v2456_v51, 0 }
0x177d   :  { %2490 = vmatpush.bf16.xpose.msra.mxu1 %v2481_v63  ;;  %v2475_v41 = vsel %vm162_vm4, %v2458_v10, 0 }
0x1785   :  { %2491 = vmatpush.bf16.xpose.msra.mxu1 %v2478_v46 }
0x178d   :  { %2492 = vmatpush.bf16.xpose.msra.mxu1 %v2475_v41 }
0x1795   :  { %2493 = vmatpush.bf16.xpose.msra.mxu1 %v2472_v47 }
0x179c   :  { %4680 = vmatmul.msk.bf16.vlgmr.msra.gmra.mxu1 %vm162_vm4, %v2443_v39 }
0x179d   :  { %2977 = vmatpush.msrb.mxu1 %v5975_v52  ;;  %v2394_v52 = vmul.f32 0.35355338, %v6045_v60 }
0x179f   :  { %2978 = vmatpush.msrb.mxu1 %v5978_v13  ;;  %v2444_v13 = vpack.c.bf16 %v2394_v52, %v2394_v52 }
0x17a1   :  { %2979 = vmatpush.msrb.mxu1 %v5983_v61  ;;  %v2345_v61 = vld [vmem:[#allocation4 + $0xf8] sm:$0xff] }
0x17a3   :  { %2980 = vmatpush.msrb.mxu1 %v5986_v8 }
0x17a5   :  { %2981 = vmatpush.msrb.mxu1 %v5989_v6  ;;  %v2346_v6 = vld [vmem:[#allocation4 + $0x100] sm:$0xff] }
0x17a7   :  { %2982 = vmatpush.msrb.mxu1 %v5992_v21 }
0x17a9   :  { %2983 = vmatpush.msrb.mxu1 %v5995_v28 }
0x17ab   :  { %2984 = vmatpush.msrb.mxu1 %v5998_v24  ;;  %v2347_v24 = vld [vmem:[#allocation4 + $0x108] sm:$0x3] }
0x17ac   :  { %4681 = vmatmul.msk.bf16.gmra.mxu1 %vm162_vm4, %v2444_v13 }
0x17ad   :  { %2985 = vmatpush.msrb.mxu1 %v6001_v33 }
0x1819   :  { %v2495_v32 = vpop.f32.mrf.mxu1 }
0x181a   :  { %v2496_v14 = vadd.f32 %v2495_v32, %v2345_v61  ;;  %v4889_v61 = vld [vmem:[#allocation2 + $0x140] sm:$0xff] }
0x181b   :  { %2696 = vmatpush.bf16.msrb.mxu2 %v4889_v61 }
0x181c   :  { %v2504_v8 = vsel %vm364_vm7, %v2496_v14, -inf }
0x181d   :  { %2505 = vmax.xlane.f32.xlu2 %v2504_v8 }
0x1821   :  { %v2497_v39 = vpop.f32.mrf.mxu1 }
0x1822   :  { %v2498_v21 = vadd.f32 %v2497_v39, %v2346_v6  ;;  %v4888_v6 = vld [vmem:[#allocation2 + $0x138] sm:$0xff] }
0x1823   :  { %2697 = vmatpush.bf16.msrb.mxu2 %v4888_v6 }
0x1824   :  { %v2507_v28 = vsel %vm364_vm7, %v2498_v21, -inf }
0x1825   :  { %2508 = vmax.xlane.f32.xlu0 %v2507_v28 }
0x1829   :  { %v2500_v27 = vpop.f32.mrf.mxu1 }
0x182a   :  { %v2501_v60 = vadd.f32 %v2500_v27, %v2347_v24 }
0x182c   :  { %v2510_v33 = vsel %vm371_vm8, %v2501_v60, -inf }
0x182d   :  { %2511 = vmax.xlane.f32.xlu1 %v2510_v33 }
0x1831   :  { %v2502_v17 = vpop.f32.mrf.mxu1 }
0x1835   :  { %2631 = vrot.lane.b32.xlu2 %v2617_v38, %s5232_s20 }
0x1839   :  { %2629 = vrot.lane.b32.xlu0 %v2616_v5, %s5232_s20 }
0x183d   :  { %2623 = vrot.lane.b32.xlu2 %v2613_v35, %s5232_s20 }
0x1841   :  { %2625 = vrot.lane.b32.xlu0 %v2614_v40, %s5232_s20 }
0x1846   :  { %2627 = vrot.lane.b32.xlu1 %v2615_v3, %s5232_s20 }
0x1890   :  { %v2506_v31 = vpop.xlane.xlu2 %2505 }
0x1891   :  { %v2513_v9 = vsub.f32 %v2496_v14, %v2506_v31 }
0x1893   :  { %v2516_v15 = vmul.f32 1.442695, %v2513_v9 }
0x1895   :  { %5059 = vpow2.f32 %v2516_v15 }
0x1898   :  { %v2509_v59 = vpop.xlane.xlu0 %2508  ;;  %v2632_v2 = vpop.permute.xlu2 %2631 }
0x1899   :  { %v2514_v62 = vsub.f32 %v2498_v21, %v2509_v59  ;;  %v2644_v5 = vsel %vm6638_vm1, %v2632_v2, 0 }
0x189a   :  { %2649 = vmatpush.bf16.msrb.mxu3 %v2644_v5 }
0x189b   :  { %v6138_v48 = vpop.eup %5059  ;;  %v2518_v12 = vmul.f32 1.442695, %v2514_v62 }
0x189c   :  { %4682 = vmatmul.msk.f32.vlgmr.msra.gmra.mxu2 %vm364_vm7, %v6138_v48 }
0x189d   :  { %5061 = vpow2.f32 %v2518_v12 }
0x18a0   :  { %v2512_v16 = vpop.xlane.xlu1 %2511  ;;  %v2624_v29 = vpop.permute.xlu2 %2623 }
0x18a1   :  { %v2515_v35 = vsub.f32 %v2501_v60, %v2512_v16 }
0x18a3   :  { %v5062_v20 = vpop.eup %5061  ;;  %v2520_v54 = vmul.f32 1.442695, %v2515_v35 }
0x18a4   :  { %4683 = vmatmul.msk.f32.gmra.mxu2 %vm364_vm7, %v5062_v20 }
0x18a5   :  { %5063 = vpow2.f32 %v2520_v54 }
0x18ab   :  { %v6143_v40 = vpop.eup %5063  ;;  %v2630_v3 = vpop.permute.xlu0 %2629 }
0x18ac   :  { %4684 = vmatmul.msk.f32.gmra.mxu2 %vm364_vm7, %v6143_v40  ;;  %2650 = vmatpush.bf16.msrb.mxu3 %v2630_v3 }
0x18b3   :  { %v2626_v30 = vpop.permute.xlu0 %2625 }
0x18b8   :  { %v2628_v36 = vpop.permute.xlu1 %2627 }
0x18b9   :  { %2651 = vmatpush.bf16.msrb.mxu3 %v2628_v36 }
0x18bd   :  { %2652 = vmatpush.bf16.msrb.mxu3 %v2626_v30 }
0x18c1   :  { %2653 = vmatpush.bf16.msrb.mxu3 %v2624_v29 }
0x191f   :  { %v2548_v63 = vpop.f32.mrf.mxu2 }
0x1920   :  { %5065 = vrcp.f32 %v2548_v63  ;;  %v2571_v13 = vand.u32 2147483648, %v2548_v63  ;;  %vm2565_vm10 = vweird.f32 %v2548_v63  ;;  %v2569_v32 = vand.u32 2147483647, %v2548_v63 }
0x1921   :  { %vm2557_vm5 = vcmp.gt.f32.partialorder %v2548_v63, 0.0 }
0x1922   :  { %v2572_v28 = vor.u32 1.1754944e-38, %v2571_v13  ;;  %vm2570_vm11 = vcmp.eq.f32.partialorder %v2569_v32, 8.507059e+37  ;;  %v4955_v13 = vld [vmem:[#allocation4 + $0x2e] ss:$0 sm:$0xff] }
0x1926   :  { %v5066_v18 = vpop.eup %5065 }
0x1927   :  { %v2561_v46 = vmul.f32 %v5066_v18, %v2548_v63  ;;  %v2551_v10 = vpop.f32.mrf.mxu2  ;;  %vm2566_vm9 = vweird.f32 %v5066_v18 }
0x1928   :  { %5067 = vrcp.f32 %v2551_v10  ;;  %vm2567_vm2 = vmor %vm2565_vm10, %vm2566_vm9  ;;  %v2586_v24 = vand.u32 2147483648, %v2551_v10  ;;  %v2584_v60 = vand.u32 2147483647, %v2551_v10  ;;  %vm2580_vm12 = vweird.f32 %v2551_v10 }
0x1929   :  { %v2562_v41 = vsub.f32 1.0, %v2561_v46  ;;  %vm2558_vm15 = vcmp.gt.f32.partialorder %v2551_v10, 0.0 }
0x192a   :  { %v2587_v38 = vor.u32 1.1754944e-38, %v2586_v24  ;;  %vm2585_vm13 = vcmp.eq.f32.partialorder %v2584_v60, 8.507059e+37 }
0x192b   :  { %v2563_v51 = vmul.f32 %v5066_v18, %v2562_v41 }
0x192d   :  { %v2564_v47 = vadd.f32 %v5066_v18, %v2563_v51 }
0x192e   :  { %v5068_v52 = vpop.eup %5067 }
0x192f   :  { %v2576_v14 = vmul.f32 %v5068_v52, %v2551_v10  ;;  %v2554_v8 = vpop.f32.mrf.mxu2  ;;  %v2568_v39 = vsel %vm2567_vm2, %v5066_v18, %v2564_v47  ;;  %vm2581_vm0 = vweird.f32 %v5068_v52 }
0x1930   :  { %5069 = vrcp.f32 %v2554_v8  ;;  %v2573_v33 = vsel %vm2570_vm11, %v2572_v28, %v2568_v39  ;;  %vm2582_vm6 = vmor %vm2580_vm12, %vm2581_vm0  ;;  %v2601_v54 = vand.u32 2147483648, %v2554_v8  ;;  %vm2595_vm9 = vweird.f32 %v2554_v8 }
0x1931   :  { %v2577_v21 = vsub.f32 1.0, %v2576_v14  ;;  %v2605_v31 = vsel %vm2557_vm5, %v2573_v33, 0.0  ;;  %v2599_v36 = vand.u32 2147483647, %v2554_v8  ;;  %vm2559_vm11 = vcmp.gt.f32.partialorder %v2554_v8, 0.0 }
0x1932   :  { %v2608_v5 = vmul.f32 %v6138_v48, %v2605_v31  ;;  %v2602_v29 = vor.u32 1.1754944e-38, %v2601_v54 }
0x1933   :  { %v2578_v27 = vmul.f32 %v5068_v52, %v2577_v21  ;;  %vm2600_vm2 = vcmp.eq.f32.partialorder %v2599_v36, 8.507059e+37 }
0x1935   :  { %v2579_v19 = vadd.f32 %v5068_v52, %v2578_v27 }
0x1936   :  { %v5070_v17 = vpop.eup %5069 }
0x1937   :  { %v2583_v9 = vsel %vm2582_vm6, %v5068_v52, %v2579_v19  ;;  %v2591_v15 = vmul.f32 %v5070_v17, %v2554_v8  ;;  %vm2596_vm1 = vweird.f32 %v5070_v17 }
0x1938   :  { %v2588_v59 = vsel %vm2585_vm13, %v2587_v38, %v2583_v9  ;;  %vm2597_vm10 = vmor %vm2595_vm9, %vm2596_vm1 }
0x1939   :  { %v2606_v2 = vsel %vm2558_vm15, %v2588_v59, 0.0  ;;  %v2592_v62 = vsub.f32 1.0, %v2591_v15 }
0x193a   :  { %v2609_v12 = vmul.f32 %v5062_v20, %v2606_v2 }
0x193b   :  { %v2593_v16 = vmul.f32 %v5070_v17, %v2592_v62 }
0x193c   :  { %v2611_v35 = vpack.c.bf16 %v2609_v12, %v2608_v5 }
0x193d   :  { %v2594_v3 = vadd.f32 %v5070_v17, %v2593_v16 }
0x193e   :  { %4685 = vmatmul.msk.bf16.vlgmr.msrb.gmra.mxu3 %vm364_vm7, %v2611_v35  ;;  %v4891_v35 = vld [vmem:[#allocation2 + $0x150] sm:$0xff] }
0x193f   :  { %v2598_v30 = vsel %vm2597_vm10, %v5070_v17, %v2594_v3  ;;  %2819 = vmatpush.bf16.msrb.mxu0 %v4891_v35 }
0x1940   :  { %v2603_v63 = vsel %vm2600_vm2, %v2602_v29, %v2598_v30  ;;  %v4890_v30 = vld [vmem:[#allocation2 + $0x148] sm:$0xff]  ;;  %vm6639_vm2 = vcmask 1045504  }
0x1941   :  { %v2607_v18 = vsel %vm2559_vm11, %v2603_v63, 0.0  ;;  %vm6640_vm11 = vcmask 1043456  }
0x1942   :  { %v2610_v46 = vmul.f32 %v6143_v40, %v2607_v18 }
0x1943   :  { %2820 = vmatpush.bf16.msrb.mxu0 %v4890_v30 }
0x1944   :  { %v2612_v48 = vpack.c.bf16 %v2610_v46, %v2610_v46 }
0x194e   :  { %4686 = vmatmul.msk.bf16.gmra.mxu3 %vm364_vm7, %v2612_v48 }
0x19c1   :  { %v2655_v20 = vpop.f32.mrf.mxu3 }
0x19c9   :  { %v2657_v10 = vpop.f32.mrf.mxu3 }
0x19ca   :  { %v2668_v41 = vpack.c.bf16 %v2657_v10, %v2655_v20 }
0x19cc   :  { %4695 = vmatmul.msk.bf16.vlgmr.msrb.gmra.mxu2 %vm162_vm4, %v2668_v41 }
0x19d1   :  { %v2660_v51 = vpop.f32.mrf.mxu3 }
0x19d2   :  { %v2669_v52 = vpack.c.bf16 %v2660_v51, %v2660_v51 }
0x19d9   :  { %v2662_v47 = vpop.f32.mrf.mxu3 }
0x19dc   :  { %4696 = vmatmul.msk.bf16.gmra.mxu2 %vm162_vm4, %v2669_v52 }
0x1a4f   :  { %v2699_v61 = vpop.f32.mrf.mxu2 }
0x1a50   :  { %v2700_v32 = vadd.f32 %v4955_v13, %v2699_v61 }
0x1a52   :  { %v2708_v14 = vadd.f32 %v2700_v32, %v6019_v50 }
0x1a54   :  { %v2711_v40 = vsel %vm162_vm4, %v2708_v14, 0.0 }
0x1a55   :  { %2712 = vadd.xlane.f32.xlu1 %v2711_v40 }
0x1a57   :  { %v2701_v8 = vpop.f32.mrf.mxu2 }
0x1a58   :  { %v2702_v6 = vadd.f32 %v4955_v13, %v2701_v8 }
0x1a5a   :  { %v2709_v39 = vadd.f32 %v2702_v6, %v6023_v45 }
0x1a5c   :  { %v2714_v21 = vsel %vm162_vm4, %v2709_v39, 0.0 }
0x1a5d   :  { %2715 = vadd.xlane.f32.xlu0 %v2714_v21  ;;  %v4956_v21 = vld [vmem:[#allocation4 + $0x2f] ss:$0 sm:$0xff] }
0x1a5f   :  { %v2704_v28 = vpop.f32.mrf.mxu2 }
0x1a60   :  { %v2705_v24 = vadd.f32 %v4955_v13, %v2704_v28 }
0x1a62   :  { %v2710_v27 = vadd.f32 %v2705_v24, %v6015_v26 }
0x1a64   :  { %v2717_v60 = vsel %vm579_vm14, %v2710_v27, 0.0 }
0x1a65   :  { %2718 = vadd.xlane.f32.xlu2 %v2717_v60 }
0x1a67   :  { %v2706_v33 = vpop.f32.mrf.mxu2 }
0x1ac8   :  { %v2713_v19 = vpop.xlane.xlu1 %2712 }
0x1ac9   :  { %v2720_v50 = vmul.f32 %v2713_v19, %v5550_v37  ;;  %v4957_v19 = vld [vmem:[#allocation4 + $0x30] ss:$0 sm:$0xff] }
0x1acb   :  { %v2723_v17 = vsub.f32 %v2708_v14, %v2720_v50 }
0x1acd   :  { %v2726_v38 = vmul.f32 %v2723_v17, %v2723_v17 }
0x1acf   :  { %v2729_v31 = vsel %vm162_vm4, %v2726_v38, 0.0 }
0x1ad0   :  { %v2716_v9 = vpop.xlane.xlu0 %2715  ;;  %2730 = vadd.xlane.f32.xlu1 %v2729_v31 }
0x1ad1   :  { %v2721_v45 = vmul.f32 %v2716_v9, %v5550_v37 }
0x1ad3   :  { %v2724_v15 = vsub.f32 %v2709_v39, %v2721_v45 }
0x1ad5   :  { %v2727_v59 = vmul.f32 %v2724_v15, %v2724_v15 }
0x1ad7   :  { %v2732_v2 = vsel %vm162_vm4, %v2727_v59, 0.0 }
0x1ad8   :  { %2733 = vadd.xlane.f32.xlu0 %v2732_v2  ;;  %v2719_v26 = vpop.xlane.xlu2 %2718 }
0x1ad9   :  { %v2722_v62 = vmul.f32 %v2719_v26, %v5550_v37 }
0x1adb   :  { %v2725_v5 = vsub.f32 %v2710_v27, %v2722_v62 }
0x1add   :  { %v2728_v12 = vmul.f32 %v2725_v5, %v2725_v5 }
0x1adf   :  { %v2735_v16 = vsel %vm579_vm14, %v2728_v12, 0.0 }
0x1ae0   :  { %2736 = vadd.xlane.f32.xlu2 %v2735_v16 }
0x1b43   :  { %v2731_v54 = vpop.xlane.xlu1 %2730 }
0x1b44   :  { %v2738_v3 = vmul.f32 %v2731_v54, %v5550_v37 }
0x1b46   :  { %v2741_v36 = vadd.f32 1e-05, %v2738_v3  ;;  %v4958_v3 = vld [vmem:[#allocation4 + $0x31] ss:$0 sm:$0xff] }
0x1b48   :  { %5071 = vrsqrt.f32 %v2741_v36  ;;  %vm2750_vm12 = vweird.f32 %v2741_v36 }
0x1b4b   :  { %v2734_v29 = vpop.xlane.xlu0 %2733 }
0x1b4c   :  { %v2739_v63 = vmul.f32 %v2734_v29, %v5550_v37 }
0x1b4e   :  { %v5072_v18 = vpop.eup %5071  ;;  %v2742_v46 = vadd.f32 1e-05, %v2739_v63 }
0x1b4f   :  { %v2745_v48 = vmul.f32 %v5072_v18, %v2741_v36  ;;  %vm2751_vm0 = vweird.f32 %v5072_v18 }
0x1b50   :  { %5073 = vrsqrt.f32 %v2742_v46  ;;  %vm2752_vm5 = vmor %vm2750_vm12, %vm2751_vm0  ;;  %vm2760_vm13 = vweird.f32 %v2742_v46 }
0x1b51   :  { %v2746_v20 = vmul.f32 %v5072_v18, %v2745_v48  ;;  %vm6641_vm0 = vmmov %vm6639_vm2 }
0x1b52   :  { %vm6642_vm12 = vmmov %vm6640_vm11 }
0x1b53   :  { %v2747_v10 = vmul.f32 0.5, %v2746_v20  ;;  %v2737_v41 = vpop.xlane.xlu2 %2736 }
0x1b54   :  { %v2740_v51 = vmul.f32 %v2737_v41, %v5550_v37 }
0x1b55   :  { %v2748_v47 = vsub.f32 1.5, %v2747_v10 }
0x1b56   :  { %v5074_v52 = vpop.eup %5073  ;;  %v2743_v13 = vadd.f32 1e-05, %v2740_v51 }
0x1b57   :  { %v2749_v61 = vmul.f32 %v5072_v18, %v2748_v47  ;;  %v2755_v32 = vmul.f32 %v5074_v52, %v2742_v46  ;;  %vm2761_vm6 = vweird.f32 %v5074_v52 }
0x1b58   :  { %5075 = vrsqrt.f32 %v2743_v13  ;;  %vm2762_vm15 = vmor %vm2760_vm13, %vm2761_vm6  ;;  %vm2770_vm9 = vweird.f32 %v2743_v13 }
0x1b59   :  { %v2756_v14 = vmul.f32 %v5074_v52, %v2755_v32  ;;  %v2753_v40 = vsel %vm2752_vm5, %v5072_v18, %v2749_v61  ;;  %vm6643_vm5 = vmmov %vm6641_vm0 }
0x1b5a   :  { %v2774_v28 = vmul.f32 %v2753_v40, %v2723_v17  ;;  %vm6644_vm6 = vmmov %vm6640_vm11 }
0x1b5b   :  { %v2757_v8 = vmul.f32 0.5, %v2756_v14  ;;  %vm6645_vm13 = vmmov %vm6644_vm6 }
0x1b5c   :  { %v2779_v50 = vmul.f32 %v4956_v21, %v2774_v28 }
0x1b5d   :  { %v2758_v6 = vsub.f32 1.5, %v2757_v8 }
0x1b5e   :  { %v5076_v39 = vpop.eup %5075  ;;  %v6168_v59 = vadd.f32 %v4957_v19, %v2779_v50 }
0x1b5f   :  { %v2759_v24 = vmul.f32 %v5074_v52, %v2758_v6  ;;  %v2765_v27 = vmul.f32 %v5076_v39, %v2743_v13  ;;  %vm2771_vm1 = vweird.f32 %v5076_v39 }
0x1b60   :  { %vm2772_vm10 = vmor %vm2770_vm9, %vm2771_vm1 }
0x1b61   :  { %v2763_v60 = vsel %vm2762_vm15, %v5074_v52, %v2759_v24  ;;  %v2766_v33 = vmul.f32 %v5076_v39, %v2765_v27 }
0x1b62   :  { %v2775_v38 = vmul.f32 %v2763_v60, %v2724_v15 }
0x1b63   :  { %v2767_v31 = vmul.f32 0.5, %v2766_v33 }
0x1b64   :  { %v2780_v9 = vmul.f32 %v4956_v21, %v2775_v38 }
0x1b65   :  { %v2768_v45 = vsub.f32 1.5, %v2767_v31 }
0x1b66   :  { %v6170_v2 = vadd.f32 %v4957_v19, %v2780_v9 }
0x1b67   :  { %v2769_v26 = vmul.f32 %v5076_v39, %v2768_v45 }
0x1b68   :  { %v2791_v17 = vpack.c.bf16 %v6170_v2, %v6168_v59 }
0x1b69   :  { %v2773_v62 = vsel %vm2772_vm10, %v5076_v39, %v2769_v26 }
0x1b6a   :  { %4705 = vmatmul.msk.bf16.vlgmr.msrb.gmra.mxu0 %vm162_vm4, %v2791_v17  ;;  %v2776_v12 = vmul.f32 %v2773_v62, %v2725_v5 }
0x1b6c   :  { %v2781_v16 = vmul.f32 %v4956_v21, %v2776_v12 }
0x1b6e   :  { %v6175_v15 = vadd.f32 %v4957_v19, %v2781_v16 }
0x1b70   :  { %v2792_v35 = vpack.c.bf16 %v6175_v15, %v6175_v15 }
0x1b7a   :  { %4706 = vmatmul.msk.bf16.gmra.mxu0 %vm162_vm4, %v2792_v35 }
0x1be7   :  { %v2822_v54 = vpop.f32.mrf.mxu0 }
0x1be8   :  { %v2823_v36 = vadd.f32 %v4958_v3, %v2822_v54 }
0x1bea   :  { %v6180_v63 = vmul.f32 0.35355338, %v2823_v36  ;;  %v6188_v48 = vmul.f32 %v2823_v36, %v5502_v7  ;;  %v2853_v51 = vrot.slane %v2823_v36, 2  ;;  %v2845_v13 = vrot.slane %v2823_v36, 4 }
0x1beb   :  { %v2837_v61 = vrot.slane %v2823_v36, 6 }
0x1bef   :  { %v2824_v30 = vpop.f32.mrf.mxu0 }
0x1bf0   :  { %v2825_v29 = vadd.f32 %v4958_v3, %v2824_v30 }
0x1bf2   :  { %v6182_v18 = vmul.f32 0.35355338, %v2825_v29  ;;  %v6185_v46 = vmul.f32 %v2825_v29, %v5505_v4  ;;  %v2854_v5 = vrot.slane %v2825_v29, 2  ;;  %v2846_v20 = vrot.slane %v2825_v29, 4 }
0x1bf3   :  { %v2838_v10 = vrot.slane %v2825_v29, 6 }
0x1bf4   :  { %v2882_v41 = vpack.c.bf16 %v6182_v18, %v6180_v63  ;;  %v3052_v47 = vpack.c.bf16 %v6185_v46, %v6188_v48  ;;  %v2855_v14 = vsel %vm6639_vm2, %v2853_v51, %v2854_v5  ;;  %v2847_v40 = vsel %vm6640_vm11, %v2845_v13, %v2846_v20  ;;  %v5166_v63 = vld [vmem:[#allocation4 + $0xe4] sm:$0x3] }
0x1bf5   :  { %v2839_v8 = vsel %vm137_vm3, %v2837_v61, %v2838_v10  ;;  %v2871_v24 = vmul.f32 %v2855_v14, %v5332_v44  ;;  %v2869_v50 = vmul.f32 %v2847_v40, %v5328_v42  ;;  %v2880_v62 = vmul.f32 %v2855_v14, %v5495_v1 }
0x1bf6   :  { %v6213_v45 = vmul.f32 %v2839_v8, %v5509_v11  ;;  %v2878_v12 = vmul.f32 %v2847_v40, %v5487_v57  ;;  %v2867_v14 = vmul.f32 %v2839_v8, %v5389_v23 }
0x1bf7   :  { %v2827_v52 = vpop.f32.mrf.mxu0 }
0x1bf8   :  { %v2828_v32 = vadd.f32 %v4958_v3, %v2827_v52  ;;  %v2865_v52 = vmul.f32 %v2825_v29, %v5386_v22 }
0x1bfa   :  { %v2840_v6 = vrot.slane %v2828_v32, 6  ;;  %v2848_v39 = vrot.slane %v2828_v32, 4  ;;  %v2856_v21 = vrot.slane %v2828_v32, 2  ;;  %v2861_v28 = vsel %vm137_vm3, %v2828_v32, %v2837_v61 }
0x1bfb   :  { %v6200_v27 = vmul.f32 %v2861_v28, %v5489_v58  ;;  %v2864_v61 = vmul.f32 %v2823_v36, %v5396_v25 }
0x1bfc   :  { %v6203_v60 = vsel %vm6641_vm0, %v2854_v5, %v2856_v21  ;;  %v2849_v33 = vsel %vm6642_vm12, %v2846_v20, %v2848_v39  ;;  %v2841_v19 = vsel %vm137_vm3, %v2838_v10, %v2840_v6 }
0x1bfd   :  { %v2872_v38 = vmul.f32 %v6203_v60, %v5330_v43  ;;  %v2863_v31 = vsel %vm6643_vm5, %v2849_v33, %v2853_v51  ;;  %v2862_v9 = vsel %vm6644_vm6, %v2841_v19, %v2845_v13  ;;  %v3053_v3 = vpack.c.bf16 %v6213_v45, %v6200_v27 }
0x1bfe   :  { %v2870_v26 = vmul.f32 %v2863_v31, %v5342_v53  ;;  %v2868_v17 = vmul.f32 %v2862_v9, %v5346_v55  ;;  %v2879_v54 = vmul.f32 %v2863_v31, %v5483_v56  ;;  %v2877_v30 = vmul.f32 %v2862_v9, %v5479_v0  ;;  %v5164_v9 = vld [vmem:[#allocation4 + $0xd4] sm:$0xff] }
0x1bff   :  { %v2829_v16 = vpop.f32.mrf.mxu0  ;;  %v2888_v35 = vpack.c.bf16 %v2872_v38, %v2872_v38  ;;  %v2866_v13 = vmul.f32 %v2861_v28, %v5338_v49  ;;  %v2884_v40 = vpack.c.bf16 %v2865_v52, %v2864_v61 }
0x1c00   :  { %v2887_v5 = vpack.c.bf16 %v2871_v24, %v2870_v26  ;;  %v2886_v20 = vpack.c.bf16 %v2869_v50, %v2868_v17  ;;  %v3055_v10 = vpack.c.bf16 %v2880_v62, %v2879_v54  ;;  %v3054_v51 = vpack.c.bf16 %v2878_v12, %v2877_v30  ;;  %v5165_v62 = vld [vmem:[#allocation4 + $0xdc] sm:$0xff] }
0x1c01   :  { %2902 = vrot.lane.b32.xlu1 %v2888_v35, %s5238_s0  ;;  %v2885_v6 = vpack.c.bf16 %v2867_v14, %v2866_v13  ;;  %v2833_v50 = vmul.f32 0.35355338, %v2828_v32  ;;  %v2881_v32 = vmul.f32 %v6203_v60, %v5466_v34 }
0x1c02   :  { %2900 = vrot.lane.b32.xlu0 %v2887_v5, %s5238_s0  ;;  %2898 = vrot.lane.b32.xlu2 %v2886_v20, %s5238_s0 }
0x1c03   :  { %v2883_v38 = vpack.c.bf16 %v2833_v50, %v2833_v50  ;;  %v3056_v30 = vpack.c.bf16 %v2881_v32, %v2881_v32 }
0x1c09   :  { %2894 = vrot.lane.b32.xlu1 %v2884_v40, %s5238_s0 }
0x1c0a   :  { %2896 = vrot.lane.b32.xlu0 %v2885_v6, %s5238_s0 }
0x1c5c   :  { %v2899_v29 = vpop.permute.xlu2 %2898 }
0x1c5d   :  { %v2917_v28 = vsel %vm162_vm4, %v2899_v29, 0 }
0x1c73   :  { %v2903_v39 = vpop.permute.xlu1 %2902 }
0x1c74   :  { %v2923_v21 = vsel %vm162_vm4, %v2903_v39, 0  ;;  %v2901_v24 = vpop.permute.xlu0 %2900 }
0x1c75   :  { %2928 = vmatpush.bf16.xpose.msra.mxu3 %v2923_v21  ;;  %v2920_v27 = vsel %vm162_vm4, %v2901_v24, 0 }
0x1c7b   :  { %v2895_v33 = vpop.permute.xlu1 %2894 }
0x1c7c   :  { %v2897_v36 = vpop.permute.xlu0 %2896  ;;  %v2911_v19 = vsel %vm162_vm4, %v2895_v33, 0 }
0x1c7d   :  { %2929 = vmatpush.bf16.xpose.msra.mxu3 %v2920_v27  ;;  %v2914_v8 = vsel %vm162_vm4, %v2897_v36, 0 }
0x1c85   :  { %2930 = vmatpush.bf16.xpose.msra.mxu3 %v2917_v28 }
0x1c8d   :  { %2931 = vmatpush.bf16.xpose.msra.mxu3 %v2914_v8 }
0x1c95   :  { %2932 = vmatpush.bf16.xpose.msra.mxu3 %v2911_v19 }
0x1c9c   :  { %4707 = vmatmul.msk.bf16.vlgmr.msra.gmra.mxu3 %vm162_vm4, %v2882_v41 }
0x1cac   :  { %4708 = vmatmul.msk.bf16.gmra.mxu3 %vm162_vm4, %v2883_v38 }
0x1d1f   :  { %v2934_v31 = vpop.f32.mrf.mxu3 }
0x1d20   :  { %v2935_v45 = vadd.f32 %v5164_v9, %v2934_v31  ;;  %v4893_v31 = vld [vmem:[#allocation2 + $0x160] sm:$0xff] }
0x1d21   :  { %3135 = vmatpush.bf16.msra.mxu0 %v4893_v31 }
0x1d22   :  { %v2943_v26 = vsel %vm364_vm7, %v2935_v45, -inf }
0x1d23   :  { %2944 = vmax.xlane.f32.xlu2 %v2943_v26 }
0x1d27   :  { %v2936_v17 = vpop.f32.mrf.mxu3 }
0x1d28   :  { %v2937_v12 = vadd.f32 %v5165_v62, %v2936_v17  ;;  %v4892_v17 = vld [vmem:[#allocation2 + $0x158] sm:$0xff] }
0x1d29   :  { %3136 = vmatpush.bf16.msra.mxu0 %v4892_v17 }
0x1d2a   :  { %v2946_v16 = vsel %vm364_vm7, %v2937_v12, -inf }
0x1d2b   :  { %2947 = vmax.xlane.f32.xlu0 %v2946_v16 }
0x1d2f   :  { %v2939_v35 = vpop.f32.mrf.mxu3 }
0x1d30   :  { %v2940_v18 = vadd.f32 %v5166_v63, %v2939_v35 }
0x1d32   :  { %v2949_v41 = vsel %vm371_vm8, %v2940_v18, -inf }
0x1d33   :  { %2950 = vmax.xlane.f32.xlu1 %v2949_v41 }
0x1d37   :  { %v2941_v54 = vpop.f32.mrf.mxu3 }
0x1d3b   :  { %3070 = vrot.lane.b32.xlu2 %v3056_v30, %s5232_s20 }
0x1d3f   :  { %3068 = vrot.lane.b32.xlu0 %v3055_v10, %s5232_s20 }
0x1d43   :  { %3062 = vrot.lane.b32.xlu2 %v3052_v47, %s5232_s20 }
0x1d47   :  { %3064 = vrot.lane.b32.xlu0 %v3053_v3, %s5232_s20 }
0x1d4c   :  { %3066 = vrot.lane.b32.xlu1 %v3054_v51, %s5232_s20 }
0x1d96   :  { %v2945_v5 = vpop.xlane.xlu2 %2944 }
0x1d97   :  { %v2952_v20 = vsub.f32 %v2935_v45, %v2945_v5 }
0x1d99   :  { %v2955_v52 = vmul.f32 1.442695, %v2952_v20 }
0x1d9b   :  { %5077 = vpow2.f32 %v2955_v52 }
0x1d9e   :  { %v2948_v60 = vpop.xlane.xlu0 %2947  ;;  %v3071_v13 = vpop.permute.xlu2 %3070 }
0x1d9f   :  { %v2953_v61 = vsub.f32 %v2937_v12, %v2948_v60  ;;  %v3083_v14 = vsel %vm6645_vm13, %v3071_v13, 0 }
0x1da0   :  { %3088 = vmatpush.bf16.msra.mxu2 %v3083_v14 }
0x1da1   :  { %v6256_v10 = vpop.eup %5077  ;;  %v2957_v40 = vmul.f32 1.442695, %v2953_v61 }
0x1da2   :  { %4709 = vmatmul.msk.f32.vlgmr.msrb.gmra.mxu1 %vm364_vm7, %v6256_v10 }
0x1da3   :  { %5079 = vpow2.f32 %v2957_v40 }
0x1da6   :  { %v2951_v46 = vpop.xlane.xlu1 %2950  ;;  %v3063_v24 = vpop.permute.xlu2 %3062 }
0x1da7   :  { %v2954_v48 = vsub.f32 %v2940_v18, %v2951_v46 }
0x1da9   :  { %v5080_v47 = vpop.eup %5079  ;;  %v2959_v3 = vmul.f32 1.442695, %v2954_v48 }
0x1daa   :  { %4710 = vmatmul.msk.f32.gmra.mxu1 %vm364_vm7, %v5080_v47 }
0x1dab   :  { %5081 = vpow2.f32 %v2959_v3 }
0x1db1   :  { %v6261_v51 = vpop.eup %5081  ;;  %v3069_v6 = vpop.permute.xlu0 %3068 }
0x1db2   :  { %4711 = vmatmul.msk.f32.gmra.mxu1 %vm364_vm7, %v6261_v51  ;;  %3089 = vmatpush.bf16.msra.mxu2 %v3069_v6 }
0x1db9   :  { %v3065_v21 = vpop.permute.xlu0 %3064 }
0x1dbe   :  { %v3067_v39 = vpop.permute.xlu1 %3066 }
0x1dbf   :  { %3090 = vmatpush.bf16.msra.mxu2 %v3067_v39 }
0x1dc3   :  { %3091 = vmatpush.bf16.msra.mxu2 %v3065_v21 }
0x1dc7   :  { %3092 = vmatpush.bf16.msra.mxu2 %v3063_v24 }
0x1e1f   :  { %v2987_v27 = vpop.f32.mrf.mxu1 }
0x1e20   :  { %5083 = vrcp.f32 %v2987_v27  ;;  %v3010_v38 = vand.u32 2147483648, %v2987_v27  ;;  %vm3004_vm1 = vweird.f32 %v2987_v27  ;;  %v3008_v9 = vand.u32 2147483647, %v2987_v27 }
0x1e21   :  { %vm2996_vm0 = vcmp.gt.f32.partialorder %v2987_v27, 0.0 }
0x1e22   :  { %v3011_v16 = vor.u32 1.1754944e-38, %v3010_v38  ;;  %vm3009_vm10 = vcmp.eq.f32.partialorder %v3008_v9, 8.507059e+37  ;;  %v4959_v38 = vld [vmem:[#allocation4 + $0x32] ss:$0 sm:$0xff] }
0x1e26   :  { %v5084_v29 = vpop.eup %5083 }
0x1e27   :  { %v3000_v28 = vmul.f32 %v5084_v29, %v2987_v27  ;;  %v2990_v36 = vpop.f32.mrf.mxu1  ;;  %vm3005_vm15 = vweird.f32 %v5084_v29 }
0x1e28   :  { %5085 = vrcp.f32 %v2990_v36  ;;  %vm3006_vm9 = vmor %vm3004_vm1, %vm3005_vm15  ;;  %v3025_v35 = vand.u32 2147483648, %v2990_v36  ;;  %v3023_v18 = vand.u32 2147483647, %v2990_v36  ;;  %vm3019_vm11 = vweird.f32 %v2990_v36 }
0x1e29   :  { %v3001_v8 = vsub.f32 1.0, %v3000_v28  ;;  %vm2997_vm6 = vcmp.gt.f32.partialorder %v2990_v36, 0.0 }
0x1e2a   :  { %v3026_v30 = vor.u32 1.1754944e-38, %v3025_v35  ;;  %vm3024_vm5 = vcmp.eq.f32.partialorder %v3023_v18, 8.507059e+37 }
0x1e2b   :  { %v3002_v33 = vmul.f32 %v5084_v29, %v3001_v8 }
0x1e2d   :  { %v3003_v19 = vadd.f32 %v5084_v29, %v3002_v33 }
0x1e2e   :  { %v5086_v50 = vpop.eup %5085 }
0x1e2f   :  { %v3015_v45 = vmul.f32 %v5086_v50, %v2990_v36  ;;  %v2993_v26 = vpop.f32.mrf.mxu1  ;;  %v3007_v62 = vsel %vm3006_vm9, %v5084_v29, %v3003_v19  ;;  %vm3020_vm2 = vweird.f32 %v5086_v50 }
0x1e30   :  { %5087 = vrcp.f32 %v2993_v26  ;;  %v3012_v41 = vsel %vm3009_vm10, %v3011_v16, %v3007_v62  ;;  %vm3021_vm12 = vmor %vm3019_vm11, %vm3020_vm2  ;;  %v3040_v3 = vand.u32 2147483648, %v2993_v26  ;;  %vm3034_vm15 = vweird.f32 %v2993_v26 }
0x1e31   :  { %v3016_v12 = vsub.f32 1.0, %v3015_v45  ;;  %v3044_v5 = vsel %vm2996_vm0, %v3012_v41, 0.0  ;;  %v3038_v39 = vand.u32 2147483647, %v2993_v26  ;;  %vm2998_vm10 = vcmp.gt.f32.partialorder %v2993_v26, 0.0 }
0x1e32   :  { %v3047_v14 = vmul.f32 %v6256_v10, %v3044_v5  ;;  %v3041_v24 = vor.u32 1.1754944e-38, %v3040_v3 }
0x1e33   :  { %v3017_v63 = vmul.f32 %v5086_v50, %v3016_v12  ;;  %vm3039_vm9 = vcmp.eq.f32.partialorder %v3038_v39, 8.507059e+37 }
0x1e35   :  { %v3018_v32 = vadd.f32 %v5086_v50, %v3017_v63 }
0x1e36   :  { %v5088_v54 = vpop.eup %5087 }
0x1e37   :  { %v3022_v20 = vsel %vm3021_vm12, %v5086_v50, %v3018_v32  ;;  %v3030_v52 = vmul.f32 %v5088_v54, %v2993_v26  ;;  %vm3035_vm13 = vweird.f32 %v5088_v54 }
0x1e38   :  { %v3027_v60 = vsel %vm3024_vm5, %v3026_v30, %v3022_v20  ;;  %vm3036_vm1 = vmor %vm3034_vm15, %vm3035_vm13 }
0x1e39   :  { %v3045_v13 = vsel %vm2997_vm6, %v3027_v60, 0.0  ;;  %v3031_v61 = vsub.f32 1.0, %v3030_v52 }
0x1e3a   :  { %v3048_v40 = vmul.f32 %v5080_v47, %v3045_v13 }
0x1e3b   :  { %v3032_v46 = vmul.f32 %v5088_v54, %v3031_v61 }
0x1e3c   :  { %v3050_v48 = vpack.c.bf16 %v3048_v40, %v3047_v14 }
0x1e3d   :  { %v3033_v6 = vadd.f32 %v5088_v54, %v3032_v46 }
0x1e3e   :  { %4712 = vmatmul.msk.bf16.vlgmr.msra.gmra.mxu2 %vm364_vm7, %v3050_v48 }
0x1e3f   :  { %v3037_v21 = vsel %vm3036_vm1, %v5088_v54, %v3033_v6  ;;  %v4895_v6 = vld [vmem:[#allocation2 + $0x170] sm:$0xff] }
0x1e40   :  { %v3042_v27 = vsel %vm3039_vm9, %v3041_v24, %v3037_v21  ;;  %3258 = vmatpush.bf16.msra.mxu1 %v4895_v6  ;;  %v4894_v21 = vld [vmem:[#allocation2 + $0x168] sm:$0xff] }
0x1e41   :  { %v3046_v29 = vsel %vm2998_vm10, %v3042_v27, 0.0 }
0x1e42   :  { %v3049_v28 = vmul.f32 %v6261_v51, %v3046_v29  ;;  %v5167_v29 = vld [vmem:[#allocation4 + $0xcc] sm:$0xff] }
0x1e44   :  { %v3051_v10 = vpack.c.bf16 %v3049_v28, %v3049_v28  ;;  %3259 = vmatpush.bf16.msra.mxu1 %v4894_v21 }
0x1e48   :  { %3757 = vmatpush.msrb.mxu1 %v5167_v29 }
0x1e4e   :  { %4713 = vmatmul.msk.bf16.gmra.mxu2 %vm364_vm7, %v3051_v10 }
0x1ec1   :  { %v3094_v47 = vpop.f32.mrf.mxu2 }
0x1ec9   :  { %v3096_v36 = vpop.f32.mrf.mxu2 }
0x1eca   :  { %v3107_v8 = vpack.c.bf16 %v3096_v36, %v3094_v47  ;;  %v5168_v47 = vld [vmem:[#allocation4 + $0xc4] sm:$0xff] }
0x1ecb   :  { %3758 = vmatpush.msrb.mxu1 %v5168_v47  ;;  %v4962_v47 = vld [vmem:[#allocation4 + $0x35] ss:$0 sm:$0xff] }
0x1ecc   :  { %4722 = vmatmul.msk.bf16.vlgmr.msra.gmra.mxu0 %vm162_vm4, %v3107_v8  ;;  %v5169_v8 = vld [vmem:[#allocation4 + $0xbc] sm:$0xff] }
0x1ecd   :  { %3759 = vmatpush.msrb.mxu1 %v5169_v8 }
0x1ed1   :  { %v3099_v33 = vpop.f32.mrf.mxu2 }
0x1ed2   :  { %v3108_v50 = vpack.c.bf16 %v3099_v33, %v3099_v33 }
0x1ed9   :  { %v3101_v19 = vpop.f32.mrf.mxu2 }
0x1eda   :  { %v5170_v19 = vld [vmem:[#allocation4 + $0xb4] sm:$0xff] }
0x1edb   :  { %3760 = vmatpush.msrb.mxu1 %v5170_v19 }
0x1edc   :  { %4723 = vmatmul.msk.bf16.gmra.mxu0 %vm162_vm4, %v3108_v50 }
0x1f49   :  { %v3138_v31 = vpop.f32.mrf.mxu0 }
0x1f4a   :  { %v3139_v9 = vadd.f32 %v4959_v38, %v3138_v31 }
0x1f4c   :  { %v3147_v45 = vadd.f32 %v3139_v9, %v6168_v59  ;;  %v5171_v9 = vld [vmem:[#allocation4 + $0xac] sm:$0xff] }
0x1f4d   :  { %3761 = vmatpush.msrb.mxu1 %v5171_v9 }
0x1f4e   :  { %v3150_v51 = vsel %vm162_vm4, %v3147_v45, 0.0 }
0x1f4f   :  { %3151 = vadd.xlane.f32.xlu0 %v3150_v51 }
0x1f51   :  { %v3140_v26 = vpop.f32.mrf.mxu0 }
0x1f52   :  { %v3141_v17 = vadd.f32 %v4959_v38, %v3140_v26 }
0x1f54   :  { %v3148_v62 = vadd.f32 %v3141_v17, %v6170_v2  ;;  %v5172_v17 = vld [vmem:[#allocation4 + $0xa4] sm:$0xff] }
0x1f55   :  { %3762 = vmatpush.msrb.mxu1 %v5172_v17 }
0x1f56   :  { %v3153_v12 = vsel %vm162_vm4, %v3148_v62, 0.0 }
0x1f57   :  { %3154 = vadd.xlane.f32.xlu1 %v3153_v12 }
0x1f59   :  { %v3143_v16 = vpop.f32.mrf.mxu0 }
0x1f5a   :  { %v3144_v35 = vadd.f32 %v4959_v38, %v3143_v16  ;;  %v5173_v16 = vld [vmem:[#allocation4 + $0x9c] sm:$0xff] }
0x1f5b   :  { %3763 = vmatpush.msrb.mxu1 %v5173_v16  ;;  %v4901_v16 = vld [vmem:[#allocation2 + $0x1a0] sm:$0xff] }
0x1f5c   :  { %v3149_v63 = vadd.f32 %v3144_v35, %v6175_v15 }
0x1f5e   :  { %v3156_v18 = vsel %vm579_vm14, %v3149_v63, 0.0 }
0x1f5f   :  { %3157 = vadd.xlane.f32.xlu2 %v3156_v18 }
0x1f61   :  { %v3145_v41 = vpop.f32.mrf.mxu0 }
0x1fc2   :  { %v3152_v32 = vpop.xlane.xlu0 %3151 }
0x1fc3   :  { %v3159_v59 = vmul.f32 %v3152_v32, %v5550_v37  ;;  %v5175_v32 = vld [vmem:[#allocation4 + $0x8c] sm:$0xff] }
0x1fc5   :  { %v6278_v54 = vsub.f32 %v3147_v45, %v3159_v59 }
0x1fc7   :  { %v3165_v30 = vmul.f32 %v6278_v54, %v6278_v54 }
0x1fc9   :  { %v3168_v2 = vsel %vm162_vm4, %v3165_v30, 0.0 }
0x1fca   :  { %v3155_v5 = vpop.xlane.xlu1 %3154  ;;  %3169 = vadd.xlane.f32.xlu2 %v3168_v2  ;;  %v4960_v2 = vld [vmem:[#allocation4 + $0x33] ss:$0 sm:$0xff] }
0x1fcb   :  { %v3160_v20 = vmul.f32 %v3155_v5, %v5550_v37 }
0x1fcd   :  { %v6284_v52 = vsub.f32 %v3148_v62, %v3160_v20 }
0x1fcf   :  { %v3166_v15 = vmul.f32 %v6284_v52, %v6284_v52 }
0x1fd1   :  { %v3171_v60 = vsel %vm162_vm4, %v3166_v15, 0.0 }
0x1fd2   :  { %3172 = vadd.xlane.f32.xlu0 %v3171_v60  ;;  %v3158_v13 = vpop.xlane.xlu2 %3157 }
0x1fd3   :  { %v3161_v61 = vmul.f32 %v3158_v13, %v5550_v37 }
0x1fd5   :  { %v6290_v14 = vsub.f32 %v3149_v63, %v3161_v61  ;;  %v5174_v63 = vld [vmem:[#allocation4 + $0x94] sm:$0xff] }
0x1fd6   :  { %3764 = vmatpush.msrb.mxu1 %v5174_v63  ;;  %v4961_v61 = vld [vmem:[#allocation4 + $0x34] ss:$0 sm:$0xff] }
0x1fd7   :  { %v3167_v40 = vmul.f32 %v6290_v14, %v6290_v14 }
0x1fd8   :  { %3765 = vmatpush.msrb.mxu1 %v5175_v32 }
0x1fd9   :  { %v3174_v46 = vsel %vm579_vm14, %v3167_v40, 0.0 }
0x1fda   :  { %3175 = vadd.xlane.f32.xlu1 %v3174_v46 }
0x203d   :  { %v3170_v48 = vpop.xlane.xlu2 %3169 }
0x203e   :  { %v3177_v3 = vmul.f32 %v3170_v48, %v5550_v37 }
0x2040   :  { %v3180_v39 = vadd.f32 1e-05, %v3177_v3 }
0x2042   :  { %5089 = vrsqrt.f32 %v3180_v39  ;;  %vm3189_vm11 = vweird.f32 %v3180_v39 }
0x2045   :  { %v3173_v24 = vpop.xlane.xlu0 %3172 }
0x2046   :  { %v3178_v27 = vmul.f32 %v3173_v24, %v5550_v37 }
0x2048   :  { %v5090_v28 = vpop.eup %5089  ;;  %v3181_v10 = vadd.f32 1e-05, %v3178_v27 }
0x2049   :  { %v3184_v36 = vmul.f32 %v5090_v28, %v3180_v39  ;;  %vm3190_vm2 = vweird.f32 %v5090_v28 }
0x204a   :  { %5091 = vrsqrt.f32 %v3181_v10  ;;  %vm3191_vm0 = vmor %vm3189_vm11, %vm3190_vm2  ;;  %vm3199_vm5 = vweird.f32 %v3181_v10 }
0x204b   :  { %v3185_v33 = vmul.f32 %v5090_v28, %v3184_v36 }
0x204d   :  { %v3186_v50 = vmul.f32 0.5, %v3185_v33  ;;  %v3176_v38 = vpop.xlane.xlu1 %3175 }
0x204e   :  { %v3179_v31 = vmul.f32 %v3176_v38, %v5550_v37 }
0x204f   :  { %v3187_v45 = vsub.f32 1.5, %v3186_v50  ;;  %v4903_v50 = vld [vmem:[#allocation2 + $0x1b0] sm:$0xff] }
0x2050   :  { %v5092_v51 = vpop.eup %5091  ;;  %v3182_v26 = vadd.f32 1e-05, %v3179_v31  ;;  %3470 = vmatpush.bf16.msrb.mxu3 %v4903_v50 }
0x2051   :  { %v3188_v62 = vmul.f32 %v5090_v28, %v3187_v45  ;;  %v3194_v12 = vmul.f32 %v5092_v51, %v3181_v10  ;;  %vm3200_vm12 = vweird.f32 %v5092_v51 }
0x2052   :  { %5093 = vrsqrt.f32 %v3182_v26  ;;  %vm3201_vm6 = vmor %vm3199_vm5, %vm3200_vm12  ;;  %vm3209_vm15 = vweird.f32 %v3182_v26 }
0x2053   :  { %v3195_v35 = vmul.f32 %v5092_v51, %v3194_v12  ;;  %v3192_v18 = vsel %vm3191_vm0, %v5090_v28, %v3188_v62 }
0x2054   :  { %v3213_v5 = vmul.f32 %v3192_v18, %v6278_v54 }
0x2055   :  { %v3196_v41 = vmul.f32 0.5, %v3195_v35 }
0x2056   :  { %v3218_v40 = vmul.f32 %v4960_v2, %v3213_v5 }
0x2057   :  { %v3197_v59 = vsub.f32 1.5, %v3196_v41 }
0x2058   :  { %v5094_v30 = vpop.eup %5093  ;;  %v6300_v39 = vadd.f32 %v4961_v61, %v3218_v40 }
0x2059   :  { %v3198_v20 = vmul.f32 %v5092_v51, %v3197_v59  ;;  %v3204_v15 = vmul.f32 %v5094_v30, %v3182_v26  ;;  %vm3210_vm13 = vweird.f32 %v5094_v30 }
0x205a   :  { %vm3211_vm1 = vmor %vm3209_vm15, %vm3210_vm13 }
0x205b   :  { %v3202_v60 = vsel %vm3201_vm6, %v5092_v51, %v3198_v20  ;;  %v3205_v13 = vmul.f32 %v5094_v30, %v3204_v15  ;;  %v4902_v51 = vld [vmem:[#allocation2 + $0x1a8] sm:$0xff] }
0x205c   :  { %v3214_v46 = vmul.f32 %v3202_v60, %v6284_v52  ;;  %3471 = vmatpush.bf16.msrb.mxu3 %v4902_v51 }
0x205d   :  { %v3206_v48 = vmul.f32 0.5, %v3205_v13 }
0x205e   :  { %v3219_v3 = vmul.f32 %v4960_v2, %v3214_v46 }
0x205f   :  { %v3207_v6 = vsub.f32 1.5, %v3206_v48  ;;  %v4899_v48 = vld [vmem:[#allocation2 + $0x190] sm:$0xff] }
0x2060   :  { %v6302_v21 = vadd.f32 %v4961_v61, %v3219_v3  ;;  %3472 = vmatpush.bf16.msrb.mxu3 %v4901_v16  ;;  %v4897_v16 = vld [vmem:[#allocation2 + $0x180] sm:$0xff] }
0x2061   :  { %v3208_v24 = vmul.f32 %v5094_v30, %v3207_v6 }
0x2062   :  { %v3230_v54 = vpack.c.bf16 %v6302_v21, %v6300_v39 }
0x2063   :  { %v3212_v27 = vsel %vm3211_vm1, %v5094_v30, %v3208_v24 }
0x2064   :  { %4732 = vmatmul.msk.bf16.vlgmr.msra.gmra.mxu1 %vm162_vm4, %v3230_v54  ;;  %v3215_v29 = vmul.f32 %v3212_v27, %v6290_v14 }
0x2066   :  { %v3220_v52 = vmul.f32 %v4960_v2, %v3215_v29  ;;  %v4900_v2 = vld [vmem:[#allocation2 + $0x198] sm:$0xff] }
0x2067   :  { %3473 = vmatpush.bf16.msrb.mxu3 %v4900_v2 }
0x2068   :  { %v6308_v28 = vadd.f32 %v4961_v61, %v3220_v52 }
0x206a   :  { %v3231_v10 = vpack.c.bf16 %v6308_v28, %v6308_v28 }
0x206b   :  { %3474 = vmatpush.bf16.msrb.mxu3 %v4899_v48 }
0x2074   :  { %4733 = vmatmul.msk.bf16.gmra.mxu1 %vm162_vm4, %v3231_v10 }
0x20e1   :  { %v3261_v36 = vpop.f32.mrf.mxu1 }
0x20e2   :  { %v6313_v8 = vadd.f32 %v4962_v47, %v3261_v36 }
0x20e4   :  { %v6316_v33 = vmul.f32 0.70710677, %v6313_v8 }
0x20e6   :  { %v3276_v19 = vmul.f32 %v6316_v33, %v6316_v33 }
0x20e8   :  { %v6320_v14 = vmin.f32 %v3276_v19, 16.0  ;;  %v4898_v19 = vld [vmem:[#allocation2 + $0x188] sm:$0xff] }
0x20e9   :  { %v3263_v38 = vpop.f32.mrf.mxu1  ;;  %3475 = vmatpush.bf16.msrb.mxu3 %v4898_v19 }
0x20ea   :  { %v3278_v31 = vmul.f32 2.1237322e-06, %v6320_v14  ;;  %v3289_v9 = vmul.f32 3.8918573e-05, %v6320_v14  ;;  %v6324_v45 = vadd.f32 %v4962_v47, %v3263_v38 }
0x20ec   :  { %v3279_v26 = vadd.f32 0.00028619796, %v3278_v31  ;;  %v3290_v17 = vadd.f32 0.001143296, %v3289_v9  ;;  %v6327_v62 = vmul.f32 0.70710677, %v6324_v45 }
0x20ed   :  { %3476 = vmatpush.bf16.msrb.mxu3 %v4897_v16 }
0x20ee   :  { %v3291_v12 = vmul.f32 %v3290_v17, %v6320_v14  ;;  %v3316_v35 = vmul.f32 %v6327_v62, %v6327_v62  ;;  %v3280_v63 = vmul.f32 %v3279_v26, %v6320_v14 }
0x20f0   :  { %v3292_v18 = vadd.f32 0.014752088, %v3291_v12  ;;  %v6333_v41 = vmin.f32 %v3316_v35, 16.0  ;;  %v3281_v15 = vadd.f32 0.0036580483, %v3280_v63 }
0x20f1   :  { %v3266_v32 = vpop.f32.mrf.mxu1 }
0x20f2   :  { %v3293_v59 = vmul.f32 %v3292_v18, %v6320_v14  ;;  %v6336_v30 = vadd.f32 %v4962_v47, %v3266_v32  ;;  %v3318_v5 = vmul.f32 2.1237322e-06, %v6333_v41  ;;  %v3329_v20 = vmul.f32 3.8918573e-05, %v6333_v41 }
0x20f3   :  { %v3282_v54 = vmul.f32 %v3281_v15, %v6320_v14 }
0x20f4   :  { %v3294_v60 = vadd.f32 0.112945676, %v3293_v59  ;;  %v3319_v13 = vadd.f32 0.00028619796, %v3318_v5  ;;  %v3330_v61 = vadd.f32 0.001143296, %v3329_v20 }
0x20f5   :  { %v6341_v40 = vmul.f32 0.70710677, %v6336_v30  ;;  %v3283_v31 = vadd.f32 0.05243302, %v3282_v54  ;;  %v4896_v20 = vld [vmem:[#allocation2 + $0x178] sm:$0xff] }
0x20f6   :  { %v3295_v46 = vmul.f32 %v3294_v60, %v6320_v14  ;;  %v3320_v3 = vmul.f32 %v3319_v13, %v6333_v41  ;;  %v3331_v6 = vmul.f32 %v3330_v61, %v6333_v41  ;;  %3477 = vmatpush.bf16.msrb.mxu3 %v4896_v20 }
0x20f7   :  { %v3356_v24 = vmul.f32 %v6341_v40, %v6341_v40  ;;  %v3284_v63 = vmul.f32 %v3283_v31, %v6320_v14 }
0x20f8   :  { %v3296_v27 = vadd.f32 0.4994258, %v3295_v46  ;;  %v3321_v29 = vadd.f32 0.0036580483, %v3320_v3  ;;  %v3332_v52 = vadd.f32 0.014752088, %v3331_v6 }
0x20f9   :  { %v6349_v10 = vmin.f32 %v3356_v24, 16.0  ;;  %v3268_v47 = vpop.f32.mrf.mxu1  ;;  %v3285_v13 = vadd.f32 0.18741608, %v3284_v63 }
0x20fa   :  { %v3297_v36 = vmul.f32 %v3296_v27, %v6320_v14  ;;  %v3333_v50 = vmul.f32 %v3332_v52, %v6333_v41  ;;  %v3322_v26 = vmul.f32 %v3321_v29, %v6333_v41 }
0x20fb   :  { %v3358_v38 = vmul.f32 2.1237322e-06, %v6349_v10  ;;  %v3369_v51 = vmul.f32 3.8918573e-05, %v6349_v10  ;;  %v3286_v27 = vmul.f32 %v3285_v13, %v6320_v14 }
0x20fc   :  { %v3298_v9 = vadd.f32 1.0, %v3297_v36  ;;  %v3334_v17 = vadd.f32 0.112945676, %v3333_v50  ;;  %v3323_v32 = vadd.f32 0.05243302, %v3322_v26 }
0x20fd   :  { %v3359_v12 = vadd.f32 0.00028619796, %v3358_v38  ;;  %v3370_v18 = vadd.f32 0.001143296, %v3369_v51  ;;  %v3287_v51 = vadd.f32 1.1283791, %v3286_v27 }
0x20fe   :  { %5095 = vrcp.f32 %v3298_v9  ;;  %v3335_v35 = vmul.f32 %v3334_v17, %v6333_v41  ;;  %v3324_v48 = vmul.f32 %v3323_v32, %v6333_v41  ;;  %v3310_v29 = vand.u32 2147483648, %v3298_v9 }
0x20ff   :  { %v3360_v2 = vmul.f32 %v3359_v12, %v6349_v10  ;;  %v3371_v5 = vmul.f32 %v3370_v18, %v6349_v10  ;;  %v3308_v50 = vand.u32 2147483647, %v3298_v9  ;;  %vm3304_vm10 = vweird.f32 %v3298_v9 }
0x2100   :  { %v3336_v59 = vadd.f32 0.4994258, %v3335_v35  ;;  %v3325_v36 = vadd.f32 0.18741608, %v3324_v48  ;;  %v3311_v16 = vor.u32 1.1754944e-38, %v3310_v29 }
0x2101   :  { %v3372_v61 = vadd.f32 0.014752088, %v3371_v5  ;;  %v3361_v6 = vadd.f32 0.0036580483, %v3360_v2  ;;  %vm3309_vm11 = vcmp.eq.f32.partialorder %v3308_v50, 8.507059e+37  ;;  %v3270_v50 = vmul.f32 0.5, %v6313_v8 }
0x2102   :  { %v3337_v15 = vmul.f32 %v3336_v59, %v6333_v41  ;;  %v3326_v14 = vmul.f32 %v3325_v36, %v6333_v41  ;;  %v3288_v59 = vmul.f32 %v3287_v51, %v6316_v33 }
0x2103   :  { %v3373_v24 = vmul.f32 %v3372_v61, %v6349_v10  ;;  %v3362_v19 = vmul.f32 %v3361_v6, %v6349_v10 }
0x2104   :  { %v5096_v60 = vpop.eup %5095  ;;  %v3338_v3 = vadd.f32 1.0, %v3337_v15  ;;  %v3327_v5 = vadd.f32 1.1283791, %v3326_v14 }
0x2105   :  { %v3300_v46 = vmul.f32 %v5096_v60, %v3298_v9  ;;  %v3374_v52 = vadd.f32 0.112945676, %v3373_v24  ;;  %vm3305_vm9 = vweird.f32 %v5096_v60  ;;  %v3363_v35 = vadd.f32 0.05243302, %v3362_v19 }
0x2106   :  { %5097 = vrcp.f32 %v3338_v3  ;;  %vm3306_vm2 = vmor %vm3304_vm10, %vm3305_vm9  ;;  %v3350_v20 = vand.u32 2147483648, %v3338_v3  ;;  %vm3344_vm12 = vweird.f32 %v3338_v3  ;;  %v3328_v24 = vmul.f32 %v3327_v5, %v6327_v62 }
0x2107   :  { %v3301_v54 = vsub.f32 1.0, %v3300_v46  ;;  %v3375_v38 = vmul.f32 %v3374_v52, %v6349_v10  ;;  %v3364_v9 = vmul.f32 %v3363_v35, %v6349_v10 }
0x2108   :  { %v3351_v46 = vor.u32 1.1754944e-38, %v3350_v20 }
0x2109   :  { %v3302_v47 = vmul.f32 %v5096_v60, %v3301_v54  ;;  %v3376_v26 = vadd.f32 0.4994258, %v3375_v38  ;;  %v3365_v48 = vadd.f32 0.18741608, %v3364_v9  ;;  %v4963_v9 = vld [vmem:[#allocation4 + $0x36] ss:$0 sm:$0xff] }
0x210b   :  { %v3303_v31 = vadd.f32 %v5096_v60, %v3302_v47  ;;  %v3377_v32 = vmul.f32 %v3376_v26, %v6349_v10  ;;  %v3366_v52 = vmul.f32 %v3365_v48, %v6349_v10 }
0x210c   :  { %v5098_v17 = vpop.eup %5097 }
0x210d   :  { %v3307_v12 = vsel %vm3306_vm2, %v5096_v60, %v3303_v31  ;;  %v3340_v63 = vmul.f32 %v5098_v17, %v3338_v3  ;;  %v3378_v15 = vadd.f32 1.0, %v3377_v32  ;;  %vm3345_vm0 = vweird.f32 %v5098_v17 }
0x210e   :  { %v3312_v18 = vsel %vm3309_vm11, %v3311_v16, %v3307_v12  ;;  %v3348_v60 = vand.u32 2147483647, %v3338_v3  ;;  %vm3346_vm5 = vmor %vm3344_vm12, %vm3345_vm0  ;;  %v3271_v3 = vmul.f32 0.5, %v6324_v45  ;;  %v3367_v51 = vadd.f32 1.1283791, %v3366_v52 }
0x210f   :  { %v3341_v2 = vsub.f32 1.0, %v3340_v63  ;;  %v3313_v13 = vmul.f32 %v3312_v18, %v3288_v59  ;;  %5099 = vrcp.f32 %v3378_v15  ;;  %v3388_v26 = vand.u32 2147483647, %v3378_v15 }
0x2110   :  { %vm3349_vm6 = vcmp.eq.f32.partialorder %v3348_v60, 8.507059e+37  ;;  %v3390_v12 = vand.u32 2147483648, %v3378_v15  ;;  %vm3384_vm15 = vweird.f32 %v3378_v15  ;;  %v3368_v63 = vmul.f32 %v3367_v51, %v6341_v40 }
0x2111   :  { %v3342_v61 = vmul.f32 %v5098_v17, %v3341_v2  ;;  %v4734_v6 = vclamps-f32 %v3313_v13, 1.0  ;;  %vm3389_vm9 = vcmp.eq.f32.partialorder %v3388_v26, 8.507059e+37  ;;  %v3272_v2 = vmul.f32 0.5, %v6336_v30 }
0x2112   :  { %v3391_v10 = vor.u32 1.1754944e-38, %v3390_v12  ;;  %v4905_v12 = vld [vmem:[#allocation2 + $0x1c0] sm:$0xff] }
0x2113   :  { %v3343_v41 = vadd.f32 %v5098_v17, %v3342_v61  ;;  %v3396_v47 = vadd.f32 1.0, %v4734_v6  ;;  %3599 = vmatpush.bf16.msrb.mxu2 %v4905_v12 }
0x2115   :  { %v3347_v33 = vsel %vm3346_vm5, %v5098_v17, %v3343_v41  ;;  %v5100_v29 = vpop.eup %5099  ;;  %v3399_v62 = vmul.f32 %v3396_v47, %v3270_v50 }
0x2116   :  { %v3352_v54 = vsel %vm3349_vm6, %v3351_v46, %v3347_v33  ;;  %v3380_v19 = vmul.f32 %v5100_v29, %v3378_v15  ;;  %vm3385_vm13 = vweird.f32 %v5100_v29 }
0x2117   :  { %v3353_v27 = vmul.f32 %v3352_v54, %v3328_v24  ;;  %vm3386_vm1 = vmor %vm3384_vm15, %vm3385_vm13 }
0x2118   :  { %v3381_v31 = vsub.f32 1.0, %v3380_v19 }
0x2119   :  { %v4735_v36 = vclamps-f32 %v3353_v27, 1.0 }
0x211a   :  { %v3382_v16 = vmul.f32 %v5100_v29, %v3381_v31 }
0x211b   :  { %v3397_v38 = vadd.f32 1.0, %v4735_v36 }
0x211c   :  { %v3383_v35 = vadd.f32 %v5100_v29, %v3382_v16 }
0x211d   :  { %v3400_v17 = vmul.f32 %v3397_v38, %v3271_v3 }
0x211e   :  { %v3387_v18 = vsel %vm3386_vm1, %v5100_v29, %v3383_v35  ;;  %vm6646_vm1 = vcmask 1045504  }
0x211f   :  { %v3418_v14 = vpack.c.bf16 %v3400_v17, %v3399_v62  ;;  %v3392_v8 = vsel %vm3389_vm9, %v3391_v10, %v3387_v18  ;;  %vm6647_vm9 = vcmask 1043456  }
0x2120   :  { %v3393_v45 = vmul.f32 %v3392_v8, %v3368_v63 }
0x2121   :  { %3478 = vmatmul.bf16.vlgmr.msrb.gmra.mxu3 %v3418_v14  ;;  %v4904_v14 = vld [vmem:[#allocation2 + $0x1b8] sm:$0xff] }
0x2122   :  { %v4736_v32 = vclamps-f32 %v3393_v45, 1.0  ;;  %3600 = vmatpush.bf16.msrb.mxu2 %v4904_v14 }
0x2124   :  { %v3398_v59 = vadd.f32 1.0, %v4736_v32 }
0x2126   :  { %v3401_v5 = vmul.f32 %v3398_v59, %v3272_v2 }
0x2128   :  { %v3419_v20 = vpack.c.bf16 %v3401_v5, %v3401_v5 }
0x2131   :  { %3483 = vmatmul.bf16.gmra.mxu3 %v3419_v20 }
0x21a4   :  { %v3479_v13 = vpop.f32.mrf.mxu3 }
0x21a5   :  { %v3480_v61 = vadd.f32 %v4963_v9, %v3479_v13 }
0x21a7   :  { %v3488_v15 = vadd.f32 %v3480_v61, %v6300_v39 }
0x21a9   :  { %v3491_v60 = vsel %vm162_vm4, %v3488_v15, 0.0 }
0x21aa   :  { %3492 = vadd.xlane.f32.xlu2 %v3491_v60 }
0x21ac   :  { %v3481_v40 = vpop.f32.mrf.mxu3 }
0x21ad   :  { %v3482_v41 = vadd.f32 %v4963_v9, %v3481_v40 }
0x21af   :  { %v3489_v46 = vadd.f32 %v3482_v41, %v6302_v21 }
0x21b1   :  { %v3494_v48 = vsel %vm162_vm4, %v3489_v46, 0.0 }
0x21b2   :  { %3495 = vadd.xlane.f32.xlu0 %v3494_v48  ;;  %v4964_v48 = vld [vmem:[#allocation4 + $0x37] ss:$0 sm:$0xff] }
0x21b4   :  { %v3484_v6 = vpop.f32.mrf.mxu3 }
0x21b5   :  { %v3485_v30 = vadd.f32 %v4963_v9, %v3484_v6 }
0x21b7   :  { %v3490_v24 = vadd.f32 %v3485_v30, %v6308_v28 }
0x21b9   :  { %v3497_v33 = vsel %vm579_vm14, %v3490_v24, 0.0 }
0x21ba   :  { %3498 = vadd.xlane.f32.xlu1 %v3497_v33 }
0x21bc   :  { %v3486_v54 = vpop.f32.mrf.mxu3 }
0x221d   :  { %v3493_v27 = vpop.xlane.xlu2 %3492 }
0x221e   :  { %v3500_v39 = vmul.f32 %v3493_v27, %v5550_v37  ;;  %v4965_v27 = vld [vmem:[#allocation4 + $0x38] ss:$0 sm:$0xff] }
0x2220   :  { %v3503_v29 = vsub.f32 %v3488_v15, %v3500_v39 }
0x2222   :  { %v3506_v52 = vmul.f32 %v3503_v29, %v3503_v29 }
0x2224   :  { %v3509_v47 = vsel %vm162_vm4, %v3506_v52, 0.0 }
0x2225   :  { %v3496_v36 = vpop.xlane.xlu0 %3495  ;;  %3510 = vadd.xlane.f32.xlu2 %v3509_v47 }
0x2226   :  { %v3501_v21 = vmul.f32 %v3496_v36, %v5550_v37 }
0x2228   :  { %v3504_v19 = vsub.f32 %v3489_v46, %v3501_v21 }
0x222a   :  { %v3507_v50 = vmul.f32 %v3504_v19, %v3504_v19 }
0x222c   :  { %v3512_v3 = vsel %vm162_vm4, %v3507_v50, 0.0 }
0x222d   :  { %v3499_v28 = vpop.xlane.xlu1 %3498  ;;  %3513 = vadd.xlane.f32.xlu0 %v3512_v3 }
0x222e   :  { %v3502_v38 = vmul.f32 %v3499_v28, %v5550_v37 }
0x2230   :  { %v3505_v31 = vsub.f32 %v3490_v24, %v3502_v38 }
0x2232   :  { %v3508_v51 = vmul.f32 %v3505_v31, %v3505_v31 }
0x2234   :  { %v3515_v26 = vsel %vm579_vm14, %v3508_v51, 0.0 }
0x2235   :  { %3516 = vadd.xlane.f32.xlu1 %v3515_v26 }
0x2298   :  { %v3511_v62 = vpop.xlane.xlu2 %3510 }
0x2299   :  { %v3518_v17 = vmul.f32 %v3511_v62, %v5550_v37 }
0x229b   :  { %v3521_v16 = vadd.f32 1e-05, %v3518_v17  ;;  %v4966_v17 = vld [vmem:[#allocation4 + $0x39] ss:$0 sm:$0xff] }
0x229d   :  { %5101 = vrsqrt.f32 %v3521_v16  ;;  %vm3530_vm2 = vweird.f32 %v3521_v16 }
0x22a0   :  { %v3514_v35 = vpop.xlane.xlu0 %3513 }
0x22a1   :  { %v3519_v10 = vmul.f32 %v3514_v35, %v5550_v37 }
0x22a3   :  { %v5102_v63 = vpop.eup %5101  ;;  %v3522_v18 = vadd.f32 1e-05, %v3519_v10 }
0x22a4   :  { %v3525_v8 = vmul.f32 %v5102_v63, %v3521_v16  ;;  %vm3531_vm10 = vweird.f32 %v5102_v63 }
0x22a5   :  { %5103 = vrsqrt.f32 %v3522_v18  ;;  %vm3532_vm11 = vmor %vm3530_vm2, %vm3531_vm10  ;;  %vm3540_vm12 = vweird.f32 %v3522_v18 }
0x22a6   :  { %v3526_v45 = vmul.f32 %v5102_v63, %v3525_v8  ;;  %vm6648_vm10 = vmmov %vm6646_vm1 }
0x22a7   :  { %vm6649_vm2 = vmmov %vm6647_vm9 }
0x22a8   :  { %v3527_v32 = vmul.f32 0.5, %v3526_v45  ;;  %v3517_v59 = vpop.xlane.xlu1 %3516 }
0x22a9   :  { %v3520_v2 = vmul.f32 %v3517_v59, %v5550_v37 }
0x22aa   :  { %v3528_v5 = vsub.f32 1.5, %v3527_v32 }
0x22ab   :  { %v5104_v20 = vpop.eup %5103  ;;  %v3523_v9 = vadd.f32 1e-05, %v3520_v2 }
0x22ac   :  { %v3529_v13 = vmul.f32 %v5102_v63, %v3528_v5  ;;  %v3535_v61 = vmul.f32 %v5104_v20, %v3522_v18  ;;  %vm3541_vm0 = vweird.f32 %v5104_v20 }
0x22ad   :  { %5105 = vrsqrt.f32 %v3523_v9  ;;  %vm3542_vm5 = vmor %vm3540_vm12, %vm3541_vm0  ;;  %vm3550_vm13 = vweird.f32 %v3523_v9 }
0x22ae   :  { %v3536_v15 = vmul.f32 %v5104_v20, %v3535_v61  ;;  %v3533_v60 = vsel %vm3532_vm11, %v5102_v63, %v3529_v13  ;;  %vm6650_vm11 = vmmov %vm6646_vm1 }
0x22af   :  { %v3554_v6 = vmul.f32 %v3533_v60, %v3503_v29  ;;  %vm6651_vm0 = vmmov %vm6649_vm2 }
0x22b0   :  { %v3537_v40 = vmul.f32 0.5, %v3536_v15 }
0x22b1   :  { %v3559_v39 = vmul.f32 %v4964_v48, %v3554_v6 }
0x22b2   :  { %v3538_v41 = vsub.f32 1.5, %v3537_v40 }
0x22b3   :  { %v5106_v46 = vpop.eup %5105  ;;  %v6391_v50 = vadd.f32 %v4965_v27, %v3559_v39 }
0x22b4   :  { %v3539_v30 = vmul.f32 %v5104_v20, %v3538_v41  ;;  %v3545_v24 = vmul.f32 %v5106_v46, %v3523_v9  ;;  %vm3551_vm6 = vweird.f32 %v5106_v46 }
0x22b5   :  { %vm3552_vm15 = vmor %vm3550_vm13, %vm3551_vm6 }
0x22b6   :  { %v3543_v33 = vsel %vm3542_vm5, %v5104_v20, %v3539_v30  ;;  %v3546_v54 = vmul.f32 %v5106_v46, %v3545_v24 }
0x22b7   :  { %v3555_v52 = vmul.f32 %v3543_v33, %v3504_v19 }
0x22b8   :  { %v3547_v47 = vmul.f32 0.5, %v3546_v54 }
0x22b9   :  { %v3560_v36 = vmul.f32 %v4964_v48, %v3555_v52 }
0x22ba   :  { %v3548_v21 = vsub.f32 1.5, %v3547_v47 }
0x22bb   :  { %v6393_v3 = vadd.f32 %v4965_v27, %v3560_v36 }
0x22bc   :  { %v3549_v28 = vmul.f32 %v5106_v46, %v3548_v21 }
0x22bd   :  { %v3571_v29 = vpack.c.bf16 %v6393_v3, %v6391_v50 }
0x22be   :  { %v3553_v38 = vsel %vm3552_vm15, %v5106_v46, %v3549_v28 }
0x22bf   :  { %4777 = vmatmul.msk.bf16.vlgmr.msrb.gmra.mxu2 %vm162_vm4, %v3571_v29  ;;  %v3556_v51 = vmul.f32 %v3553_v38, %v3505_v31 }
0x22c1   :  { %v3561_v26 = vmul.f32 %v4964_v48, %v3556_v51 }
0x22c3   :  { %v6398_v19 = vadd.f32 %v4965_v27, %v3561_v26 }
0x22c5   :  { %v3572_v12 = vpack.c.bf16 %v6398_v19, %v6398_v19 }
0x22cf   :  { %4778 = vmatmul.msk.bf16.gmra.mxu2 %vm162_vm4, %v3572_v12 }
0x2342   :  { %v3602_v62 = vpop.f32.mrf.mxu2 }
0x2343   :  { %v3603_v16 = vadd.f32 %v4966_v17, %v3602_v62 }
0x2345   :  { %v6403_v10 = vmul.f32 0.35355338, %v3603_v16  ;;  %v6413_v45 = vmul.f32 %v3603_v16, %v5502_v7  ;;  %v3633_v2 = vrot.slane %v3603_v16, 2  ;;  %v3625_v9 = vrot.slane %v3603_v16, 4 }
0x2346   :  { %v3617_v13 = vrot.slane %v3603_v16, 6 }
0x234a   :  { %v3604_v14 = vpop.f32.mrf.mxu2 }
0x234b   :  { %v3605_v35 = vadd.f32 %v4966_v17, %v3604_v14 }
0x234d   :  { %v6405_v63 = vmul.f32 0.35355338, %v3605_v35  ;;  %v6408_v18 = vmul.f32 %v3605_v35, %v5505_v4  ;;  %v3634_v31 = vrot.slane %v3605_v35, 2  ;;  %v3626_v32 = vrot.slane %v3605_v35, 4 }
0x234e   :  { %v3618_v59 = vrot.slane %v3605_v35, 6 }
0x234f   :  { %v3662_v8 = vpack.c.bf16 %v6405_v63, %v6403_v10  ;;  %v3832_v5 = vpack.c.bf16 %v6408_v18, %v6413_v45  ;;  %v3635_v4 = vsel %vm6646_vm1, %v3633_v2, %v3634_v31  ;;  %v3627_v15 = vsel %vm6647_vm9, %v3625_v9, %v3626_v32  ;;  %v5178_v10 = vld [vmem:[#allocation4 + $0xe4] sm:$0x3] }
0x2350   :  { %v3619_v60 = vsel %vm137_vm3, %v3617_v13, %v3618_v59  ;;  %v3651_v48 = vmul.f32 %v3635_v4, %v5332_v44  ;;  %v3649_v54 = vmul.f32 %v3627_v15, %v5328_v42  ;;  %v3660_v36 = vmul.f32 %v3635_v4, %v5495_v1 }
0x2351   :  { %v6436_v44 = vmul.f32 %v3619_v60, %v5509_v11  ;;  %v3658_v21 = vmul.f32 %v3627_v15, %v5487_v57  ;;  %v3647_v1 = vmul.f32 %v3619_v60, %v5389_v23  ;;  %v5177_v15 = vld [vmem:[#allocation4 + $0xdc] sm:$0xff] }
0x2352   :  { %v3607_v20 = vpop.f32.mrf.mxu2 }
0x2353   :  { %v3608_v61 = vadd.f32 %v4966_v17, %v3607_v20  ;;  %v5176_v20 = vld [vmem:[#allocation4 + $0xd4] sm:$0xff] }
0x2355   :  { %v3620_v40 = vrot.slane %v3608_v61, 6  ;;  %v3628_v41 = vrot.slane %v3608_v61, 4  ;;  %v3636_v7 = vrot.slane %v3608_v61, 2  ;;  %v3641_v46 = vsel %vm137_vm3, %v3608_v61, %v3617_v13 }
0x2356   :  { %v6423_v6 = vmul.f32 %v3641_v46, %v5489_v58  ;;  %v3646_v57 = vmul.f32 %v3641_v46, %v5338_v49 }
0x2357   :  { %v6426_v30 = vsel %vm6648_vm10, %v3634_v31, %v3636_v7  ;;  %v3629_v24 = vsel %vm6649_vm2, %v3626_v32, %v3628_v41  ;;  %v3621_v33 = vsel %vm137_vm3, %v3618_v59, %v3620_v40  ;;  %v3613_v32 = vmul.f32 0.35355338, %v3608_v61  ;;  %vm6652_vm3 = vmmov %vm6651_vm0 }
0x2358   :  { %v3652_v27 = vmul.f32 %v6426_v30, %v5330_v43  ;;  %v3643_v39 = vsel %vm6650_vm11, %v3629_v24, %v3633_v2  ;;  %v3642_v52 = vsel %vm6651_vm0, %v3621_v33, %v3625_v9  ;;  %v3833_v43 = vpack.c.bf16 %v6436_v44, %v6423_v6 }
0x2359   :  { %v3650_v58 = vmul.f32 %v3643_v39, %v5342_v53  ;;  %v3648_v47 = vmul.f32 %v3642_v52, %v5346_v55  ;;  %v3659_v29 = vmul.f32 %v3643_v39, %v5483_v56  ;;  %v3657_v38 = vmul.f32 %v3642_v52, %v5479_v0 }
0x235a   :  { %v3609_v28 = vpop.f32.mrf.mxu2  ;;  %v3668_v42 = vpack.c.bf16 %v3652_v27, %v3652_v27  ;;  %v3645_v55 = vmul.f32 %v3605_v35, %v5386_v22  ;;  %v3644_v56 = vmul.f32 %v3603_v16, %v5396_v25  ;;  %v3665_v0 = vpack.c.bf16 %v3647_v1, %v3646_v57 }
0x235b   :  { %v3667_v51 = vpack.c.bf16 %v3651_v48, %v3650_v58  ;;  %v3666_v11 = vpack.c.bf16 %v3649_v54, %v3648_v47  ;;  %v3835_v53 = vpack.c.bf16 %v3660_v36, %v3659_v29  ;;  %v3834_v26 = vpack.c.bf16 %v3658_v21, %v3657_v38 }
0x235c   :  { %3682 = vrot.lane.b32.xlu2 %v3668_v42, %s5238_s0  ;;  %v3664_v12 = vpack.c.bf16 %v3645_v55, %v3644_v56  ;;  %v3663_v59 = vpack.c.bf16 %v3613_v32, %v3613_v32  ;;  %v3661_v61 = vmul.f32 %v6426_v30, %v5466_v34  ;;  %v4907_v55 = vld [vmem:[#allocation2 + $0x1d0] sm:$0xff] }
0x235d   :  { %3680 = vrot.lane.b32.xlu0 %v3667_v51, %s5238_s0  ;;  %3678 = vrot.lane.b32.xlu1 %v3666_v11, %s5238_s0 }
0x235e   :  { %v3836_v46 = vpack.c.bf16 %v3661_v61, %v3661_v61  ;;  %3915 = vmatpush.bf16.msra.mxu2 %v4907_v55 }
0x2364   :  { %3674 = vrot.lane.b32.xlu2 %v3664_v12, %s5238_s0  ;;  %v4906_v12 = vld [vmem:[#allocation2 + $0x1c8] sm:$0xff] }
0x2365   :  { %3676 = vrot.lane.b32.xlu0 %v3665_v0, %s5238_s0  ;;  %3916 = vmatpush.bf16.msra.mxu2 %v4906_v12 }
0x23b6   :  { %v3683_v62 = vpop.permute.xlu2 %3682 }
0x23b7   :  { %v3703_v17 = vsel %vm162_vm4, %v3683_v62, 0 }
0x23b8   :  { %3708 = vmatpush.bf16.xpose.msrb.mxu0 %v3703_v17 }
0x23be   :  { %v3675_v16 = vpop.permute.xlu2 %3674 }
0x23bf   :  { %v3691_v35 = vsel %vm162_vm4, %v3675_v16, 0 }
0x23cf   :  { %v3681_v14 = vpop.permute.xlu0 %3680  ;;  %v3679_v22 = vpop.permute.xlu1 %3678 }
0x23d0   :  { %v3700_v31 = vsel %vm162_vm4, %v3681_v14, 0  ;;  %v3697_v49 = vsel %vm162_vm4, %v3679_v22, 0 }
0x23d1   :  { %3709 = vmatpush.bf16.xpose.msrb.mxu0 %v3700_v31 }
0x23d7   :  { %v3677_v25 = vpop.permute.xlu0 %3676 }
0x23d8   :  { %v3694_v23 = vsel %vm162_vm4, %v3677_v25, 0 }
0x23d9   :  { %3710 = vmatpush.bf16.xpose.msrb.mxu0 %v3697_v49 }
0x23e1   :  { %3711 = vmatpush.bf16.xpose.msrb.mxu0 %v3694_v23 }
0x23e9   :  { %3712 = vmatpush.bf16.xpose.msrb.mxu0 %v3691_v35 }
0x23f0   :  { %4779 = vmatmul.msk.bf16.vlgmr.msrb.gmra.mxu0 %vm162_vm4, %v3662_v8 }
0x2400   :  { %4780 = vmatmul.msk.bf16.gmra.mxu0 %vm162_vm4, %v3663_v59 }
0x246d   :  { %v3714_v2 = vpop.f32.mrf.mxu0 }
0x246e   :  { %v3715_v9 = vadd.f32 %v5176_v20, %v3714_v2 }
0x2470   :  { %v3723_v13 = vsel %vm364_vm7, %v3715_v9, -inf }
0x2471   :  { %3724 = vmax.xlane.f32.xlu1 %v3723_v13 }
0x2475   :  { %v3716_v4 = vpop.f32.mrf.mxu0 }
0x2476   :  { %v3717_v60 = vadd.f32 %v5177_v15, %v3716_v4 }
0x2478   :  { %v3726_v40 = vsel %vm364_vm7, %v3717_v60, -inf }
0x2479   :  { %3727 = vmax.xlane.f32.xlu0 %v3726_v40 }
0x247d   :  { %v3719_v41 = vpop.f32.mrf.mxu0 }
0x247e   :  { %v3720_v63 = vadd.f32 %v5178_v10, %v3719_v41 }
0x2480   :  { %v3729_v8 = vsel %vm371_vm8, %v3720_v63, -inf }
0x2481   :  { %3730 = vmax.xlane.f32.xlu2 %v3729_v8 }
0x2485   :  { %v3721_v7 = vpop.f32.mrf.mxu0 }
0x248a   :  { %3850 = vrot.lane.b32.xlu1 %v3836_v46, %s5232_s20 }
0x248d   :  { %3848 = vrot.lane.b32.xlu0 %v3835_v53, %s5232_s20 }
0x2492   :  { %3842 = vrot.lane.b32.xlu1 %v3832_v5, %s5232_s20 }
0x2495   :  { %3844 = vrot.lane.b32.xlu0 %v3833_v43, %s5232_s20 }
0x2499   :  { %3846 = vrot.lane.b32.xlu2 %v3834_v26, %s5232_s20 }
0x24e4   :  { %v3725_v48 = vpop.xlane.xlu1 %3724 }
0x24e5   :  { %v3732_v6 = vsub.f32 %v3715_v9, %v3725_v48 }
0x24e7   :  { %v3735_v24 = vmul.f32 1.442695, %v3732_v6 }
0x24e9   :  { %5107 = vpow2.f32 %v3735_v24 }
0x24ec   :  { %v3728_v34 = vpop.xlane.xlu0 %3727 }
0x24ed   :  { %v3733_v30 = vsub.f32 %v3717_v60, %v3728_v34 }
0x24ef   :  { %v6478_v33 = vpop.eup %5107  ;;  %v3737_v54 = vmul.f32 1.442695, %v3733_v30 }
0x24f0   :  { %4781 = vmatmul.msk.f32.vlgmr.msrb.gmra.mxu1 %vm364_vm7, %v6478_v33 }
0x24f1   :  { %5109 = vpow2.f32 %v3737_v54 }
0x24f4   :  { %v3731_v27 = vpop.xlane.xlu2 %3730 }
0x24f5   :  { %v3734_v18 = vsub.f32 %v3720_v63, %v3731_v27  ;;  %v4967_v27 = vld [vmem:[#allocation4 + $0x3a] ss:$0 sm:$0xff] }
0x24f7   :  { %v6482_v45 = vpop.eup %5109  ;;  %v3739_v5 = vmul.f32 1.442695, %v3734_v18 }
0x24f8   :  { %4782 = vmatmul.msk.f32.gmra.mxu1 %vm364_vm7, %v6482_v45 }
0x24f9   :  { %5111 = vpow2.f32 %v3739_v5 }
0x24fc   :  { %v3851_v39 = vpop.permute.xlu1 %3850  ;;  %v3847_v47 = vpop.permute.xlu2 %3846 }
0x24fd   :  { %v3863_v52 = vsel %vm6652_vm3, %v3851_v39, 0 }
0x24fe   :  { %3868 = vmatpush.bf16.msra.mxu3 %v3863_v52 }
0x24ff   :  { %v6487_v44 = vpop.eup %5111  ;;  %v3849_v58 = vpop.permute.xlu0 %3848 }
0x2500   :  { %4783 = vmatmul.msk.f32.gmra.mxu1 %vm364_vm7, %v6487_v44 }
0x2502   :  { %3869 = vmatpush.bf16.msra.mxu3 %v3849_v58 }
0x2504   :  { %v3843_v21 = vpop.permute.xlu1 %3842 }
0x2506   :  { %3870 = vmatpush.bf16.msra.mxu3 %v3847_v47 }
0x2507   :  { %v3845_v36 = vpop.permute.xlu0 %3844 }
0x250a   :  { %3871 = vmatpush.bf16.msra.mxu3 %v3845_v36 }
0x250e   :  { %3872 = vmatpush.bf16.msra.mxu3 %v3843_v21 }
0x256d   :  { %v3767_v28 = vpop.f32.mrf.mxu1 }
0x256e   :  { %5113 = vrcp.f32 %v3767_v28  ;;  %v3790_v26 = vand.u32 2147483648, %v3767_v28  ;;  %vm3784_vm12 = vweird.f32 %v3767_v28  ;;  %v3788_v57 = vand.u32 2147483647, %v3767_v28 }
0x256f   :  { %vm3776_vm1 = vcmp.gt.f32.partialorder %v3767_v28, 0.0 }
0x2570   :  { %v3791_v17 = vor.u32 1.1754944e-38, %v3790_v26  ;;  %vm3789_vm6 = vcmp.eq.f32.partialorder %v3788_v57, 8.507059e+37 }
0x2574   :  { %v5114_v42 = vpop.eup %5113 }
0x2575   :  { %v3780_v29 = vmul.f32 %v5114_v42, %v3767_v28  ;;  %v3770_v43 = vpop.f32.mrf.mxu1  ;;  %vm3785_vm8 = vweird.f32 %v5114_v42 }
0x2576   :  { %5115 = vrcp.f32 %v3770_v43  ;;  %vm3786_vm5 = vmor %vm3784_vm12, %vm3785_vm8  ;;  %v3805_v14 = vand.u32 2147483648, %v3770_v43  ;;  %v3803_v22 = vand.u32 2147483647, %v3770_v43  ;;  %vm3799_vm15 = vweird.f32 %v3770_v43 }
0x2577   :  { %v3781_v38 = vsub.f32 1.0, %v3780_v29  ;;  %vm3777_vm2 = vcmp.gt.f32.partialorder %v3770_v43, 0.0 }
0x2578   :  { %v3806_v16 = vor.u32 1.1754944e-38, %v3805_v14  ;;  %vm3804_vm10 = vcmp.eq.f32.partialorder %v3803_v22, 8.507059e+37  ;;  %v4908_v22 = vld [vmem:[#allocation2 + $0x1d8] sm:$0xff] }
0x2579   :  { %v3782_v51 = vmul.f32 %v5114_v42, %v3781_v38 }
0x257b   :  { %v3783_v11 = vadd.f32 %v5114_v42, %v3782_v51 }
0x257c   :  { %v5116_v53 = vpop.eup %5115 }
0x257d   :  { %v3795_v56 = vmul.f32 %v5116_v53, %v3770_v43  ;;  %v3773_v1 = vpop.f32.mrf.mxu1  ;;  %v3787_v0 = vsel %vm3786_vm5, %v5114_v42, %v3783_v11  ;;  %vm3800_vm13 = vweird.f32 %v5116_v53 }
0x257e   :  { %5117 = vrcp.f32 %v3773_v1  ;;  %v3792_v49 = vsel %vm3789_vm6, %v3791_v17, %v3787_v0  ;;  %vm3801_vm9 = vmor %vm3799_vm15, %vm3800_vm13  ;;  %v3820_v40 = vand.u32 2147483648, %v3773_v1  ;;  %vm3814_vm0 = vweird.f32 %v3773_v1 }
0x257f   :  { %v3796_v62 = vsub.f32 1.0, %v3795_v56  ;;  %v3824_v35 = vsel %vm3776_vm1, %v3792_v49, 0.0  ;;  %v3818_v10 = vand.u32 2147483647, %v3773_v1  ;;  %vm3778_vm12 = vcmp.gt.f32.partialorder %v3773_v1, 0.0 }
0x2580   :  { %v3827_v13 = vmul.f32 %v6478_v33, %v3824_v35  ;;  %v3821_v8 = vor.u32 1.1754944e-38, %v3820_v40 }
0x2581   :  { %v3797_v31 = vmul.f32 %v5116_v53, %v3796_v62  ;;  %vm3819_vm8 = vcmp.eq.f32.partialorder %v3818_v10, 8.507059e+37 }
0x2583   :  { %v3798_v25 = vadd.f32 %v5116_v53, %v3797_v31  ;;  %v4909_v31 = vld [vmem:[#allocation2 + $0x1e0] sm:$0xff] }
0x2584   :  { %v5118_v23 = vpop.eup %5117  ;;  %4038 = vmatpush.bf16.msra.mxu1 %v4909_v31 }
0x2585   :  { %v3802_v32 = vsel %vm3801_vm9, %v5116_v53, %v3798_v25  ;;  %v3810_v59 = vmul.f32 %v5118_v23, %v3773_v1  ;;  %vm3815_vm11 = vweird.f32 %v5118_v23 }
0x2586   :  { %v3807_v2 = vsel %vm3804_vm10, %v3806_v16, %v3802_v32  ;;  %vm3816_vm3 = vmor %vm3814_vm0, %vm3815_vm11 }
0x2587   :  { %v3825_v20 = vsel %vm3777_vm2, %v3807_v2, 0.0  ;;  %v3811_v9 = vsub.f32 1.0, %v3810_v59 }
0x2588   :  { %v3828_v4 = vmul.f32 %v6482_v45, %v3825_v20  ;;  %4039 = vmatpush.bf16.msra.mxu1 %v4908_v22 }
0x2589   :  { %v3812_v15 = vmul.f32 %v5118_v23, %v3811_v9 }
0x258a   :  { %v3830_v60 = vpack.c.bf16 %v3828_v4, %v3827_v13 }
0x258b   :  { %v3813_v41 = vadd.f32 %v5118_v23, %v3812_v15 }
0x258c   :  { %4784 = vmatmul.msk.bf16.vlgmr.msra.gmra.mxu3 %vm364_vm7, %v3830_v60 }
0x258d   :  { %v3817_v63 = vsel %vm3816_vm3, %v5118_v23, %v3813_v41 }
0x258e   :  { %v3822_v61 = vsel %vm3819_vm8, %v3821_v8, %v3817_v63 }
0x258f   :  { %v3826_v7 = vsel %vm3778_vm12, %v3822_v61, 0.0  ;;  %v4968_v61 = vld [vmem:[#allocation4 + $0x3b] ss:$0 sm:$0xff] }
0x2590   :  { %v3829_v46 = vmul.f32 %v6487_v44, %v3826_v7 }
0x2592   :  { %v3831_v48 = vpack.c.bf16 %v3829_v46, %v3829_v46 }
0x259c   :  { %4785 = vmatmul.msk.bf16.gmra.mxu3 %vm364_vm7, %v3831_v48 }
0x260f   :  { %v3874_v6 = vpop.f32.mrf.mxu3 }
0x2617   :  { %v3876_v24 = vpop.f32.mrf.mxu3 }
0x2618   :  { %v3887_v34 = vpack.c.bf16 %v3876_v24, %v3874_v6 }
0x261a   :  { %4794 = vmatmul.msk.bf16.vlgmr.msra.gmra.mxu2 %vm162_vm4, %v3887_v34  ;;  %v4969_v34 = vld [vmem:[#allocation4 + $0x3c] ss:$0 sm:$0xff] }
0x261f   :  { %v3879_v30 = vpop.f32.mrf.mxu3 }
0x2620   :  { %v3888_v54 = vpack.c.bf16 %v3879_v30, %v3879_v30 }
0x2627   :  { %v3881_v33 = vpop.f32.mrf.mxu3 }
0x262a   :  { %4795 = vmatmul.msk.bf16.gmra.mxu2 %vm162_vm4, %v3888_v54 }
0x269d   :  { %v3918_v18 = vpop.f32.mrf.mxu2 }
0x269e   :  { %v3919_v45 = vadd.f32 %v4967_v27, %v3918_v18 }
0x26a0   :  { %v3927_v5 = vadd.f32 %v3919_v45, %v6391_v50 }
0x26a2   :  { %v3930_v39 = vsel %vm162_vm4, %v3927_v5, 0.0 }
0x26a3   :  { %3931 = vadd.xlane.f32.xlu2 %v3930_v39 }
0x26a5   :  { %v3920_v52 = vpop.f32.mrf.mxu2 }
0x26a6   :  { %v3921_v44 = vadd.f32 %v4967_v27, %v3920_v52 }
0x26a8   :  { %v3928_v58 = vadd.f32 %v3921_v44, %v6393_v3 }
0x26aa   :  { %v3933_v47 = vsel %vm162_vm4, %v3928_v58, 0.0 }
0x26ab   :  { %3934 = vadd.xlane.f32.xlu0 %v3933_v47 }
0x26ad   :  { %v3923_v36 = vpop.f32.mrf.mxu2 }
0x26ae   :  { %v3924_v21 = vadd.f32 %v4967_v27, %v3923_v36 }
0x26b0   :  { %v3929_v28 = vadd.f32 %v3924_v21, %v6398_v19 }
0x26b2   :  { %v3936_v42 = vsel %vm579_vm14, %v3929_v28, 0.0 }
0x26b3   :  { %3937 = vadd.xlane.f32.xlu1 %v3936_v42 }
0x26b5   :  { %v3925_v29 = vpop.f32.mrf.mxu2 }
0x2716   :  { %v3932_v43 = vpop.xlane.xlu2 %3931 }
0x2717   :  { %v3939_v50 = vmul.f32 %v3932_v43, %v5550_v37 }
0x2719   :  { %v3942_v38 = vsub.f32 %v3927_v5, %v3939_v50 }
0x271b   :  { %v3945_v51 = vmul.f32 %v3942_v38, %v3942_v38 }
0x271d   :  { %v3948_v11 = vsel %vm162_vm4, %v3945_v51, 0.0 }
0x271e   :  { %v3935_v53 = vpop.xlane.xlu0 %3934  ;;  %3949 = vadd.xlane.f32.xlu2 %v3948_v11 }
0x271f   :  { %v3940_v3 = vmul.f32 %v3935_v53, %v5550_v37 }
0x2721   :  { %v3943_v26 = vsub.f32 %v3928_v58, %v3940_v3 }
0x2723   :  { %v3946_v55 = vmul.f32 %v3943_v26, %v3943_v26 }
0x2725   :  { %v3951_v57 = vsel %vm162_vm4, %v3946_v55, 0.0  ;;  %v4916_v55 = vld [vmem:[#allocation2 + $0x218] sm:$0xff] }
0x2726   :  { %3952 = vadd.xlane.f32.xlu0 %v3951_v57  ;;  %v3938_v19 = vpop.xlane.xlu1 %3937 }
0x2727   :  { %v3941_v56 = vmul.f32 %v3938_v19, %v5550_v37 }
0x2729   :  { %v3944_v1 = vsub.f32 %v3929_v28, %v3941_v56  ;;  %v4970_v28 = vld [vmem:[#allocation4 + $0x3d] ss:$0 sm:$0xff] }
0x272b   :  { %v3947_v12 = vmul.f32 %v3944_v1, %v3944_v1 }
0x272d   :  { %v3954_v0 = vsel %vm579_vm14, %v3947_v12, 0.0  ;;  %v4915_v12 = vld [vmem:[#allocation2 + $0x210] sm:$0xff] }
0x272e   :  { %3955 = vadd.xlane.f32.xlu1 %v3954_v0 }
0x2791   :  { %v3950_v62 = vpop.xlane.xlu2 %3949 }
0x2792   :  { %v3957_v17 = vmul.f32 %v3950_v62, %v5550_v37 }
0x2794   :  { %v3960_v14 = vadd.f32 1e-05, %v3957_v17 }
0x2796   :  { %5119 = vrsqrt.f32 %v3960_v14  ;;  %vm3969_vm5 = vweird.f32 %v3960_v14 }
0x2799   :  { %v3953_v49 = vpop.xlane.xlu0 %3952 }
0x279a   :  { %v3958_v25 = vmul.f32 %v3953_v49, %v5550_v37 }
0x279c   :  { %v5120_v23 = vpop.eup %5119  ;;  %v3961_v16 = vadd.f32 1e-05, %v3958_v25  ;;  %v4914_v25 = vld [vmem:[#allocation2 + $0x208] sm:$0xff] }
0x279d   :  { %v3964_v35 = vmul.f32 %v5120_v23, %v3960_v14  ;;  %vm3970_vm7 = vweird.f32 %v5120_v23 }
0x279e   :  { %5121 = vrsqrt.f32 %v3961_v16  ;;  %vm3971_vm6 = vmor %vm3969_vm5, %vm3970_vm7  ;;  %vm3979_vm15 = vweird.f32 %v3961_v16 }
0x279f   :  { %v3965_v32 = vmul.f32 %v5120_v23, %v3964_v35 }
0x27a1   :  { %v3966_v59 = vmul.f32 0.5, %v3965_v32  ;;  %v3956_v2 = vpop.xlane.xlu1 %3955 }
0x27a2   :  { %v3959_v20 = vmul.f32 %v3956_v2, %v5550_v37 }
0x27a3   :  { %v3967_v9 = vsub.f32 1.5, %v3966_v59 }
0x27a4   :  { %v5122_v13 = vpop.eup %5121  ;;  %v3962_v4 = vadd.f32 1e-05, %v3959_v20 }
0x27a5   :  { %v3968_v15 = vmul.f32 %v5120_v23, %v3967_v9  ;;  %v3974_v60 = vmul.f32 %v5122_v13, %v3961_v16  ;;  %vm3980_vm13 = vweird.f32 %v5122_v13 }
0x27a6   :  { %5123 = vrsqrt.f32 %v3962_v4  ;;  %vm3981_vm1 = vmor %vm3979_vm15, %vm3980_vm13  ;;  %vm3989_vm10 = vweird.f32 %v3962_v4 }
0x27a7   :  { %v3975_v40 = vmul.f32 %v5122_v13, %v3974_v60  ;;  %v3972_v41 = vsel %vm3971_vm6, %v5120_v23, %v3968_v15 }
0x27a8   :  { %v3993_v7 = vmul.f32 %v3972_v41, %v3942_v38  ;;  %v4917_v38 = vld [vmem:[#allocation2 + $0x220] sm:$0xff] }
0x27a9   :  { %v3976_v10 = vmul.f32 0.5, %v3975_v40  ;;  %4250 = vmatpush.bf16.msra.mxu0 %v4917_v38 }
0x27aa   :  { %v3998_v30 = vmul.f32 %v4968_v61, %v3993_v7 }
0x27ab   :  { %v3977_v63 = vsub.f32 1.5, %v3976_v10 }
0x27ac   :  { %v5124_v8 = vpop.eup %5123  ;;  %v6513_v45 = vadd.f32 %v4969_v34, %v3998_v30 }
0x27ad   :  { %v3978_v46 = vmul.f32 %v5122_v13, %v3977_v63  ;;  %v3984_v48 = vmul.f32 %v5124_v8, %v3962_v4  ;;  %vm3990_vm9 = vweird.f32 %v5124_v8  ;;  %4251 = vmatpush.bf16.msra.mxu0 %v4916_v55 }
0x27ae   :  { %vm3991_vm2 = vmor %vm3989_vm10, %vm3990_vm9 }
0x27af   :  { %v3982_v6 = vsel %vm3981_vm1, %v5122_v13, %v3978_v46  ;;  %v3985_v24 = vmul.f32 %v5124_v8, %v3984_v48  ;;  %v4913_v13 = vld [vmem:[#allocation2 + $0x200] sm:$0xff]  ;;  %v4912_v46 = vld [vmem:[#allocation2 + $0x1f8] sm:$0xff] }
0x27b0   :  { %v3994_v33 = vmul.f32 %v3982_v6, %v3943_v26 }
0x27b1   :  { %v3986_v54 = vmul.f32 0.5, %v3985_v24  ;;  %4252 = vmatpush.bf16.msra.mxu0 %v4915_v12 }
0x27b2   :  { %v3999_v27 = vmul.f32 %v4968_v61, %v3994_v33 }
0x27b3   :  { %v3987_v18 = vsub.f32 1.5, %v3986_v54 }
0x27b4   :  { %v6515_v5 = vadd.f32 %v4969_v34, %v3999_v27 }
0x27b5   :  { %v3988_v39 = vmul.f32 %v5124_v8, %v3987_v18  ;;  %4253 = vmatpush.bf16.msra.mxu0 %v4914_v25  ;;  %v4911_v18 = vld [vmem:[#allocation2 + $0x1f0] sm:$0xff] }
0x27b6   :  { %v4010_v52 = vpack.c.bf16 %v6515_v5, %v6513_v45 }
0x27b7   :  { %v3992_v44 = vsel %vm3991_vm2, %v5124_v8, %v3988_v39 }
0x27b8   :  { %4804 = vmatmul.msk.bf16.vlgmr.msra.gmra.mxu1 %vm162_vm4, %v4010_v52  ;;  %v3995_v58 = vmul.f32 %v3992_v44, %v3944_v1 }
0x27b9   :  { %4254 = vmatpush.bf16.msra.mxu0 %v4913_v13 }
0x27ba   :  { %v4000_v47 = vmul.f32 %v4968_v61, %v3995_v58 }
0x27bc   :  { %v6520_v36 = vadd.f32 %v4969_v34, %v4000_v47 }
0x27bd   :  { %4255 = vmatpush.bf16.msra.mxu0 %v4912_v46 }
0x27be   :  { %v4011_v21 = vpack.c.bf16 %v6520_v36, %v6520_v36 }
0x27c1   :  { %4256 = vmatpush.bf16.msra.mxu0 %v4911_v18 }
0x27c8   :  { %4805 = vmatmul.msk.bf16.gmra.mxu1 %vm162_vm4, %v4011_v21 }
0x2835   :  { %v4041_v42 = vpop.f32.mrf.mxu1 }
0x2836   :  { %v6525_v29 = vadd.f32 %v4970_v28, %v4041_v42  ;;  %v4910_v42 = vld [vmem:[#allocation2 + $0x1e8] sm:$0xff] }
0x2837   :  { %4257 = vmatpush.bf16.msra.mxu0 %v4910_v42 }
0x2838   :  { %v6528_v43 = vmul.f32 0.70710677, %v6525_v29 }
0x283a   :  { %v4056_v50 = vmul.f32 %v6528_v43, %v6528_v43 }
0x283c   :  { %v6532_v51 = vmin.f32 %v4056_v50, 16.0 }
0x283d   :  { %v4043_v11 = vpop.f32.mrf.mxu1 }
0x283e   :  { %v4058_v53 = vmul.f32 2.1237322e-06, %v6532_v51  ;;  %v4069_v3 = vmul.f32 3.8918573e-05, %v6532_v51  ;;  %v6536_v26 = vadd.f32 %v4970_v28, %v4043_v11 }
0x2840   :  { %v4059_v57 = vadd.f32 0.00028619796, %v4058_v53  ;;  %v4070_v19 = vadd.f32 0.001143296, %v4069_v3  ;;  %v6539_v56 = vmul.f32 0.70710677, %v6536_v26 }
0x2842   :  { %v4071_v1 = vmul.f32 %v4070_v19, %v6532_v51  ;;  %v4096_v0 = vmul.f32 %v6539_v56, %v6539_v56  ;;  %v4060_v62 = vmul.f32 %v4059_v57, %v6532_v51 }
0x2844   :  { %v4072_v17 = vadd.f32 0.014752088, %v4071_v1  ;;  %v6545_v14 = vmin.f32 %v4096_v0, 16.0  ;;  %v4061_v35 = vadd.f32 0.0036580483, %v4060_v62 }
0x2845   :  { %v4046_v31 = vpop.f32.mrf.mxu1 }
0x2846   :  { %v4073_v22 = vmul.f32 %v4072_v17, %v6532_v51  ;;  %v6548_v49 = vadd.f32 %v4970_v28, %v4046_v31  ;;  %v4098_v23 = vmul.f32 2.1237322e-06, %v6545_v14  ;;  %v4109_v16 = vmul.f32 3.8918573e-05, %v6545_v14 }
0x2847   :  { %v4062_v40 = vmul.f32 %v4061_v35, %v6532_v51 }
0x2848   :  { %v4074_v32 = vadd.f32 0.112945676, %v4073_v22  ;;  %v4099_v59 = vadd.f32 0.00028619796, %v4098_v23  ;;  %v4110_v2 = vadd.f32 0.001143296, %v4109_v16 }
0x2849   :  { %v6553_v20 = vmul.f32 0.70710677, %v6548_v49  ;;  %v4063_v24 = vadd.f32 0.05243302, %v4062_v40 }
0x284a   :  { %v4075_v9 = vmul.f32 %v4074_v32, %v6532_v51  ;;  %v4100_v4 = vmul.f32 %v4099_v59, %v6545_v14  ;;  %v4111_v15 = vmul.f32 %v4110_v2, %v6545_v14 }
0x284b   :  { %v4136_v60 = vmul.f32 %v6553_v20, %v6553_v20  ;;  %v4064_v52 = vmul.f32 %v4063_v24, %v6532_v51 }
0x284c   :  { %v4076_v41 = vadd.f32 0.4994258, %v4075_v9  ;;  %v4101_v10 = vadd.f32 0.0036580483, %v4100_v4  ;;  %v4112_v63 = vadd.f32 0.014752088, %v4111_v15 }
0x284d   :  { %v6561_v8 = vmin.f32 %v4136_v60, 16.0  ;;  %v4048_v61 = vpop.f32.mrf.mxu1  ;;  %v4065_v11 = vadd.f32 0.18741608, %v4064_v52 }
0x284e   :  { %v4077_v7 = vmul.f32 %v4076_v41, %v6532_v51  ;;  %v4113_v48 = vmul.f32 %v4112_v63, %v6545_v14  ;;  %v4102_v33 = vmul.f32 %v4101_v10, %v6545_v14 }
0x284f   :  { %v4138_v6 = vmul.f32 2.1237322e-06, %v6561_v8  ;;  %v4149_v30 = vmul.f32 3.8918573e-05, %v6561_v8  ;;  %v4066_v0 = vmul.f32 %v4065_v11, %v6532_v51 }
0x2850   :  { %v4078_v34 = vadd.f32 1.0, %v4077_v7  ;;  %v4114_v54 = vadd.f32 0.112945676, %v4113_v48  ;;  %v4103_v58 = vadd.f32 0.05243302, %v4102_v33 }
0x2851   :  { %v4139_v27 = vadd.f32 0.00028619796, %v4138_v6  ;;  %v4150_v44 = vadd.f32 0.001143296, %v4149_v30  ;;  %v4067_v32 = vadd.f32 1.1283791, %v4066_v0 }
0x2852   :  { %5125 = vrcp.f32 %v4078_v34  ;;  %v4115_v39 = vmul.f32 %v4114_v54, %v6545_v14  ;;  %v4104_v55 = vmul.f32 %v4103_v58, %v6545_v14  ;;  %v4090_v62 = vand.u32 2147483648, %v4078_v34 }
0x2853   :  { %v4140_v21 = vmul.f32 %v4139_v27, %v6561_v8  ;;  %v4151_v28 = vmul.f32 %v4150_v44, %v6561_v8  ;;  %v4088_v23 = vand.u32 2147483647, %v4078_v34  ;;  %vm4084_vm0 = vweird.f32 %v4078_v34 }
0x2854   :  { %v4116_v47 = vadd.f32 0.4994258, %v4115_v39  ;;  %v4105_v22 = vadd.f32 0.18741608, %v4104_v55  ;;  %v4091_v13 = vor.u32 1.1754944e-38, %v4090_v62  ;;  %v4068_v41 = vmul.f32 %v4067_v32, %v6528_v43 }
0x2855   :  { %v4152_v53 = vadd.f32 0.014752088, %v4151_v28  ;;  %v4141_v19 = vadd.f32 0.0036580483, %v4140_v21  ;;  %vm4089_vm8 = vcmp.eq.f32.partialorder %v4088_v23, 8.507059e+37  ;;  %v4050_v21 = vmul.f32 0.5, %v6525_v29 }
0x2856   :  { %v4117_v50 = vmul.f32 %v4116_v47, %v6545_v14  ;;  %v4106_v51 = vmul.f32 %v4105_v22, %v6545_v14  ;;  %v4051_v28 = vmul.f32 0.5, %v6536_v26 }
0x2857   :  { %v4153_v1 = vmul.f32 %v4152_v53, %v6561_v8  ;;  %v4142_v25 = vmul.f32 %v4141_v19, %v6561_v8 }
0x2858   :  { %v5126_v38 = vpop.eup %5125  ;;  %v4118_v57 = vadd.f32 1.0, %v4117_v50  ;;  %v4107_v63 = vadd.f32 1.1283791, %v4106_v51 }
0x2859   :  { %v4080_v3 = vmul.f32 %v5126_v38, %v4078_v34  ;;  %v4154_v17 = vadd.f32 0.112945676, %v4153_v1  ;;  %vm4085_vm11 = vweird.f32 %v5126_v38  ;;  %v4143_v4 = vadd.f32 0.05243302, %v4142_v25  ;;  %v4971_v25 = vld [vmem:[#allocation4 + $0x3e] ss:$0 sm:$0xff] }
0x285a   :  { %5127 = vrcp.f32 %v4118_v57  ;;  %vm4086_vm3 = vmor %vm4084_vm0, %vm4085_vm11  ;;  %v4130_v61 = vand.u32 2147483648, %v4118_v57  ;;  %v4128_v24 = vand.u32 2147483647, %v4118_v57  ;;  %vm4124_vm7 = vweird.f32 %v4118_v57 }
0x285b   :  { %v4081_v12 = vsub.f32 1.0, %v4080_v3  ;;  %v4155_v16 = vmul.f32 %v4154_v17, %v6561_v8  ;;  %v4144_v7 = vmul.f32 %v4143_v4, %v6561_v8  ;;  %v4108_v54 = vmul.f32 %v4107_v63, %v6539_v56 }
0x285c   :  { %v4131_v34 = vor.u32 1.1754944e-38, %v4130_v61  ;;  %vm4129_vm6 = vcmp.eq.f32.partialorder %v4128_v24, 8.507059e+37  ;;  %v4052_v17 = vmul.f32 0.5, %v6548_v49 }
0x285d   :  { %v4082_v31 = vmul.f32 %v5126_v38, %v4081_v12  ;;  %v4156_v59 = vadd.f32 0.4994258, %v4155_v16  ;;  %v4145_v30 = vadd.f32 0.18741608, %v4144_v7 }
0x285f   :  { %v4083_v35 = vadd.f32 %v5126_v38, %v4082_v31  ;;  %v4157_v40 = vmul.f32 %v4156_v59, %v6561_v8  ;;  %v4146_v52 = vmul.f32 %v4145_v30, %v6561_v8 }
0x2860   :  { %v5128_v2 = vpop.eup %5127 }
0x2861   :  { %v4087_v9 = vsel %vm4086_vm3, %v5126_v38, %v4083_v35  ;;  %v4120_v15 = vmul.f32 %v5128_v2, %v4118_v57  ;;  %v4158_v46 = vadd.f32 1.0, %v4157_v40  ;;  %vm4125_vm12 = vweird.f32 %v5128_v2 }
0x2862   :  { %v4092_v60 = vsel %vm4089_vm8, %v4091_v13, %v4087_v9  ;;  %vm4126_vm5 = vmor %vm4124_vm7, %vm4125_vm12  ;;  %v4147_v38 = vadd.f32 1.1283791, %v4146_v52 }
0x2863   :  { %v4121_v10 = vsub.f32 1.0, %v4120_v15  ;;  %v4093_v48 = vmul.f32 %v4092_v60, %v4068_v41  ;;  %5129 = vrcp.f32 %v4158_v46  ;;  %v4168_v11 = vand.u32 2147483647, %v4158_v46 }
0x2864   :  { %v4170_v53 = vand.u32 2147483648, %v4158_v46  ;;  %vm4164_vm15 = vweird.f32 %v4158_v46  ;;  %v4148_v1 = vmul.f32 %v4147_v38, %v6553_v20 }
0x2865   :  { %v4122_v6 = vmul.f32 %v5128_v2, %v4121_v10  ;;  %v4806_v33 = vclamps-f32 %v4093_v48, 1.0  ;;  %vm4169_vm9 = vcmp.eq.f32.partialorder %v4168_v11, 8.507059e+37  ;;  %v4972_v11 = vld [vmem:[#allocation4 + $0x3f] ss:$0 sm:$0xff] }
0x2866   :  { %v4171_v8 = vor.u32 1.1754944e-38, %v4170_v53 }
0x2867   :  { %v4123_v14 = vadd.f32 %v5128_v2, %v4122_v6  ;;  %v4176_v44 = vadd.f32 1.0, %v4806_v33 }
0x2869   :  { %v4127_v43 = vsel %vm4126_vm5, %v5128_v2, %v4123_v14  ;;  %v5130_v39 = vpop.eup %5129  ;;  %v4179_v56 = vmul.f32 %v4176_v44, %v4050_v21 }
0x286a   :  { %v4132_v27 = vsel %vm4129_vm6, %v4131_v34, %v4127_v43  ;;  %v4160_v47 = vmul.f32 %v5130_v39, %v4158_v46  ;;  %vm4165_vm13 = vweird.f32 %v5130_v39 }
0x286b   :  { %v4133_v18 = vmul.f32 %v4132_v27, %v4108_v54  ;;  %vm4166_vm1 = vmor %vm4164_vm15, %vm4165_vm13 }
0x286c   :  { %v4161_v50 = vsub.f32 1.0, %v4160_v47 }
0x286d   :  { %v4807_v58 = vclamps-f32 %v4133_v18, 1.0 }
0x286e   :  { %v4162_v55 = vmul.f32 %v5130_v39, %v4161_v50 }
0x286f   :  { %v4177_v42 = vadd.f32 1.0, %v4807_v58 }
0x2870   :  { %v4163_v19 = vadd.f32 %v5130_v39, %v4162_v55  ;;  %v4973_v55 = vld [vmem:[#allocation4 + $0x40] ss:$0 sm:$0xff] }
0x2871   :  { %v4180_v3 = vmul.f32 %v4177_v42, %v4051_v28 }
0x2872   :  { %v4167_v12 = vsel %vm4166_vm1, %v5130_v39, %v4163_v19 }
0x2873   :  { %v4198_v57 = vpack.c.bf16 %v4180_v3, %v4179_v56  ;;  %v4172_v29 = vsel %vm4169_vm9, %v4171_v8, %v4167_v12 }
0x2874   :  { %v4173_v26 = vmul.f32 %v4172_v29, %v4148_v1 }
0x2875   :  { %4258 = vmatmul.bf16.vlgmr.msra.gmra.mxu0 %v4198_v57 }
0x2876   :  { %v4808_v0 = vclamps-f32 %v4173_v26, 1.0 }
0x2878   :  { %v4178_v62 = vadd.f32 1.0, %v4808_v0 }
0x287a   :  { %v4181_v31 = vmul.f32 %v4178_v62, %v4052_v17 }
0x287c   :  { %v4199_v22 = vpack.c.bf16 %v4181_v31, %v4181_v31 }
0x2885   :  { %4263 = vmatmul.bf16.gmra.mxu0 %v4199_v22 }
0x28f2   :  { %v4259_v23 = vpop.f32.mrf.mxu0 }
0x28f3   :  { %v4260_v16 = vadd.f32 %v4971_v25, %v4259_v23 }
0x28f5   :  { %v4268_v35 = vadd.f32 %v4260_v16, %v6513_v45 }
0x28f7   :  { %v4271_v32 = vsel %vm162_vm4, %v4268_v35, 0.0 }
0x28f8   :  { %4272 = vadd.xlane.f32.xlu2 %v4271_v32 }
0x28fa   :  { %v4261_v20 = vpop.f32.mrf.mxu0 }
0x28fb   :  { %v4262_v59 = vadd.f32 %v4971_v25, %v4261_v20 }
0x28fd   :  { %v4269_v2 = vadd.f32 %v4262_v59, %v6515_v5 }
0x28ff   :  { %v4274_v9 = vsel %vm162_vm4, %v4269_v2, 0.0 }
0x2900   :  { %4275 = vadd.xlane.f32.xlu0 %v4274_v9 }
0x2902   :  { %v4264_v13 = vpop.f32.mrf.mxu0 }
0x2903   :  { %v4265_v49 = vadd.f32 %v4971_v25, %v4264_v13 }
0x2905   :  { %v4270_v51 = vadd.f32 %v4265_v49, %v6520_v36 }
0x2907   :  { %v4277_v4 = vsel %vm579_vm14, %v4270_v51, 0.0 }
0x2908   :  { %4278 = vadd.xlane.f32.xlu1 %v4277_v4 }
0x290a   :  { %v4266_v15 = vpop.f32.mrf.mxu0 }
0x296b   :  { %v4273_v60 = vpop.xlane.xlu2 %4272 }
0x296c   :  { %v4280_v45 = vmul.f32 %v4273_v60, %v5550_v37 }
0x296e   :  { %v4283_v40 = vsub.f32 %v4268_v35, %v4280_v45 }
0x2970   :  { %v4286_v41 = vmul.f32 %v4283_v40, %v4283_v40 }
0x2972   :  { %v4289_v10 = vsel %vm162_vm4, %v4286_v41, 0.0 }
0x2973   :  { %v4276_v63 = vpop.xlane.xlu0 %4275  ;;  %4290 = vadd.xlane.f32.xlu2 %v4289_v10 }
0x2974   :  { %v4281_v5 = vmul.f32 %v4276_v63, %v5550_v37 }
0x2976   :  { %v4284_v61 = vsub.f32 %v4269_v2, %v4281_v5 }
0x2978   :  { %v4287_v7 = vmul.f32 %v4284_v61, %v4284_v61 }
0x297a   :  { %v4292_v46 = vsel %vm162_vm4, %v4287_v7, 0.0 }
0x297b   :  { %4293 = vadd.xlane.f32.xlu0 %v4292_v46  ;;  %v4279_v36 = vpop.xlane.xlu1 %4278 }
0x297c   :  { %v4282_v48 = vmul.f32 %v4279_v36, %v5550_v37 }
0x297e   :  { %v4285_v6 = vsub.f32 %v4270_v51, %v4282_v48 }
0x2980   :  { %v4288_v24 = vmul.f32 %v4285_v6, %v4285_v6 }
0x2982   :  { %v4295_v14 = vsel %vm579_vm14, %v4288_v24, 0.0 }
0x2983   :  { %4296 = vadd.xlane.f32.xlu1 %v4295_v14 }
0x29e6   :  { %v4291_v34 = vpop.xlane.xlu2 %4290 }
0x29e7   :  { %v4298_v30 = vmul.f32 %v4291_v34, %v5550_v37 }
0x29e9   :  { %v4301_v33 = vadd.f32 1e-05, %v4298_v30 }
0x29eb   :  { %5131 = vrsqrt.f32 %v4301_v33  ;;  %vm4310_vm2 = vweird.f32 %v4301_v33 }
0x29ee   :  { %v4294_v54 = vpop.xlane.xlu0 %4293 }
0x29ef   :  { %v4299_v43 = vmul.f32 %v4294_v54, %v5550_v37 }
0x29f1   :  { %v5132_v27 = vpop.eup %5131  ;;  %v4302_v18 = vadd.f32 1e-05, %v4299_v43  ;;  %v4919_v43 = vld [vmem:[#allocation2 + $0x230] sm:$0xff] }
0x29f2   :  { %v4305_v39 = vmul.f32 %v5132_v27, %v4301_v33  ;;  %vm4311_vm10 = vweird.f32 %v5132_v27  ;;  %4462 = vmatpush.bf16.msrb.mxu3 %v4919_v43 }
0x29f3   :  { %5133 = vrsqrt.f32 %v4302_v18  ;;  %vm4312_vm11 = vmor %vm4310_vm2, %vm4311_vm10  ;;  %vm4320_vm3 = vweird.f32 %v4302_v18 }
0x29f4   :  { %v4306_v52 = vmul.f32 %v5132_v27, %v4305_v39 }
0x29f6   :  { %v4307_v44 = vmul.f32 0.5, %v4306_v52  ;;  %v4297_v58 = vpop.xlane.xlu1 %4296 }
0x29f7   :  { %v4300_v47 = vmul.f32 %v4297_v58, %v5550_v37 }
0x29f8   :  { %v4308_v21 = vsub.f32 1.5, %v4307_v44 }
0x29f9   :  { %v5134_v28 = vpop.eup %5133  ;;  %v4303_v42 = vadd.f32 1e-05, %v4300_v47 }
0x29fa   :  { %v4309_v50 = vmul.f32 %v5132_v27, %v4308_v21  ;;  %v4315_v38 = vmul.f32 %v5134_v28, %v4302_v18  ;;  %vm4321_vm0 = vweird.f32 %v5134_v28  ;;  %v4918_v18 = vld [vmem:[#allocation2 + $0x228] sm:$0xff] }
0x29fb   :  { %5135 = vrsqrt.f32 %v4303_v42  ;;  %vm4322_vm8 = vmor %vm4320_vm3, %vm4321_vm0  ;;  %vm4330_vm7 = vweird.f32 %v4303_v42  ;;  %4463 = vmatpush.bf16.msrb.mxu3 %v4918_v18  ;;  %vm6653_vm0 = vcmask 1046528   ;;  %vm6654_vm3 = vcmask 1045504  }
0x29fc   :  { %v4316_v53 = vmul.f32 %v5134_v28, %v4315_v38  ;;  %v4313_v56 = vsel %vm4312_vm11, %v5132_v27, %v4309_v50 }
0x29fd   :  { %v4334_v3 = vmul.f32 %v4313_v56, %v4283_v40 }
0x29fe   :  { %v4317_v57 = vmul.f32 0.5, %v4316_v53 }
0x29ff   :  { %v4339_v19 = vmul.f32 %v4972_v11, %v4334_v3 }
0x2a00   :  { %v4318_v8 = vsub.f32 1.5, %v4317_v57 }
0x2a01   :  { %v5136_v1 = vpop.eup %5135  ;;  %v4344_v12 = vadd.f32 %v4973_v55, %v4339_v19 }
0x2a02   :  { %v4319_v29 = vmul.f32 %v5134_v28, %v4318_v8  ;;  %v4325_v26 = vmul.f32 %v5136_v1, %v4303_v42  ;;  %vm4331_vm12 = vweird.f32 %v5136_v1 }
0x2a03   :  { %v4347_v0 = vsel %vm162_vm4, %v4344_v12, 0.0  ;;  %vm4332_vm5 = vmor %vm4330_vm7, %vm4331_vm12 }
0x2a04   :  { %v4326_v62 = vmul.f32 %v5136_v1, %v4325_v26  ;;  %4348 = vadd.xlane.f32.xlu2 %v4347_v0  ;;  %v4323_v17 = vsel %vm4322_vm8, %v5134_v28, %v4319_v29 }
0x2a05   :  { %v4335_v31 = vmul.f32 %v4323_v17, %v4284_v61 }
0x2a06   :  { %v4327_v22 = vmul.f32 0.5, %v4326_v62  ;;  %v4975_v62 = vld [vmem:[#allocation4 + $0x42] ss:$0 sm:$0xff] }
0x2a07   :  { %v4340_v25 = vmul.f32 %v4972_v11, %v4335_v31 }
0x2a08   :  { %v4328_v23 = vsub.f32 1.5, %v4327_v22 }
0x2a09   :  { %v4345_v16 = vadd.f32 %v4973_v55, %v4340_v25 }
0x2a0a   :  { %v4329_v35 = vmul.f32 %v5136_v1, %v4328_v23 }
0x2a0b   :  { %v4350_v32 = vsel %vm162_vm4, %v4345_v16, 0.0 }
0x2a0c   :  { %4351 = vadd.xlane.f32.xlu0 %v4350_v32  ;;  %v4333_v20 = vsel %vm4332_vm5, %v5136_v1, %v4329_v35  ;;  %v4974_v1 = vld [vmem:[#allocation4 + $0x41] ss:$0 sm:$0xff] }
0x2a0d   :  { %v4336_v59 = vmul.f32 %v4333_v20, %v4285_v6 }
0x2a0f   :  { %v4341_v2 = vmul.f32 %v4972_v11, %v4336_v59 }
0x2a11   :  { %v4346_v9 = vadd.f32 %v4973_v55, %v4341_v2 }
0x2a13   :  { %v4353_v13 = vsel %vm579_vm14, %v4346_v9, 0.0 }
0x2a14   :  { %4354 = vadd.xlane.f32.xlu1 %v4353_v13 }
0x2a77   :  { %v4349_v49 = vpop.xlane.xlu2 %4348 }
0x2a78   :  { %v4356_v51 = vmul.f32 %v4349_v49, %v5550_v37 }
0x2a7a   :  { %v4359_v4 = vsub.f32 %v4344_v12, %v4356_v51  ;;  %v4976_v51 = vld [vmem:[#allocation4 + $0x43] ss:$0 sm:$0xff] }
0x2a7c   :  { %v4362_v15 = vmul.f32 %v4359_v4, %v4359_v4 }
0x2a7e   :  { %v4365_v60 = vsel %vm162_vm4, %v4362_v15, 0.0 }
0x2a7f   :  { %v4352_v45 = vpop.xlane.xlu0 %4351  ;;  %4366 = vadd.xlane.f32.xlu2 %v4365_v60 }
0x2a80   :  { %v4357_v40 = vmul.f32 %v4352_v45, %v5550_v37 }
0x2a82   :  { %v4360_v41 = vsub.f32 %v4345_v16, %v4357_v40 }
0x2a84   :  { %v4363_v10 = vmul.f32 %v4360_v41, %v4360_v41 }
0x2a86   :  { %v4368_v63 = vsel %vm162_vm4, %v4363_v10, 0.0 }
0x2a87   :  { %4369 = vadd.xlane.f32.xlu0 %v4368_v63  ;;  %v4355_v5 = vpop.xlane.xlu1 %4354 }
0x2a88   :  { %v4358_v61 = vmul.f32 %v4355_v5, %v5550_v37 }
0x2a8a   :  { %v4361_v7 = vsub.f32 %v4346_v9, %v4358_v61 }
0x2a8c   :  { %v4364_v46 = vmul.f32 %v4361_v7, %v4361_v7 }
0x2a8e   :  { %v4371_v36 = vsel %vm579_vm14, %v4364_v46, 0.0 }
0x2a8f   :  { %4372 = vadd.xlane.f32.xlu1 %v4371_v36 }
0x2af2   :  { %v4367_v48 = vpop.xlane.xlu2 %4366 }
0x2af3   :  { %v4374_v6 = vmul.f32 %v4367_v48, %v5550_v37 }
0x2af5   :  { %v4377_v24 = vadd.f32 1e-05, %v4374_v6 }
0x2af7   :  { %5137 = vrsqrt.f32 %v4377_v24  ;;  %vm4386_vm13 = vweird.f32 %v4377_v24 }
0x2afa   :  { %v4370_v14 = vpop.xlane.xlu0 %4369 }
0x2afb   :  { %v4375_v34 = vmul.f32 %v4370_v14, %v5550_v37 }
0x2afd   :  { %v5138_v30 = vpop.eup %5137  ;;  %v4378_v33 = vadd.f32 1e-05, %v4375_v34 }
0x2afe   :  { %v4381_v54 = vmul.f32 %v5138_v30, %v4377_v24  ;;  %vm4387_vm14 = vweird.f32 %v5138_v30 }
0x2aff   :  { %5139 = vrsqrt.f32 %v4378_v33  ;;  %vm4388_vm15 = vmor %vm4386_vm13, %vm4387_vm14  ;;  %vm4396_vm1 = vweird.f32 %v4378_v33 }
0x2b00   :  { %v4382_v27 = vmul.f32 %v5138_v30, %v4381_v54 }
0x2b02   :  { %v4373_v39 = vpop.xlane.xlu1 %4372  ;;  %v4383_v44 = vmul.f32 0.5, %v4382_v27 }
0x2b03   :  { %v4376_v52 = vmul.f32 %v4373_v39, %v5550_v37 }
0x2b04   :  { %v4384_v28 = vsub.f32 1.5, %v4383_v44 }
0x2b05   :  { %v5140_v58 = vpop.eup %5139  ;;  %v4379_v47 = vadd.f32 1e-05, %v4376_v52 }
0x2b06   :  { %v4391_v21 = vmul.f32 %v5140_v58, %v4378_v33  ;;  %v4385_v38 = vmul.f32 %v5138_v30, %v4384_v28  ;;  %vm4397_vm6 = vweird.f32 %v5140_v58 }
0x2b07   :  { %5141 = vrsqrt.f32 %v4379_v47  ;;  %vm4398_vm9 = vmor %vm4396_vm1, %vm4397_vm6  ;;  %vm4406_vm2 = vweird.f32 %v4379_v47 }
0x2b08   :  { %v4392_v42 = vmul.f32 %v5140_v58, %v4391_v21  ;;  %v4389_v37 = vsel %vm4388_vm15, %v5138_v30, %v4385_v38 }
0x2b09   :  { %v4410_v12 = vmul.f32 %v4389_v37, %v4359_v4 }
0x2b0a   :  { %v4393_v50 = vmul.f32 0.5, %v4392_v42 }
0x2b0b   :  { %v4415_v17 = vmul.f32 %v4974_v1, %v4410_v12 }
0x2b0c   :  { %v4394_v11 = vsub.f32 1.5, %v4393_v50 }
0x2b0d   :  { %v5142_v53 = vpop.eup %5141  ;;  %v4420_v23 = vadd.f32 %v4975_v62, %v4415_v17 }
0x2b0e   :  { %v4395_v56 = vmul.f32 %v5140_v58, %v4394_v11  ;;  %v4401_v3 = vmul.f32 %v5142_v53, %v4379_v47  ;;  %vm4407_vm10 = vweird.f32 %v5142_v53 }
0x2b0f   :  { %vm4408_vm11 = vmor %vm4406_vm2, %vm4407_vm10  ;;  %v4425_v20 = vrot.slane %v4420_v23, 1 }
0x2b10   :  { %v4399_v55 = vsel %vm4398_vm9, %v5140_v58, %v4395_v56  ;;  %v4402_v57 = vmul.f32 %v5142_v53, %v4401_v3 }
0x2b11   :  { %v4411_v19 = vmul.f32 %v4399_v55, %v4360_v41 }
0x2b12   :  { %v4403_v8 = vmul.f32 0.5, %v4402_v57 }
0x2b13   :  { %v4416_v26 = vmul.f32 %v4974_v1, %v4411_v19 }
0x2b14   :  { %v4404_v29 = vsub.f32 1.5, %v4403_v8 }
0x2b15   :  { %v4421_v22 = vadd.f32 %v4975_v62, %v4416_v26 }
0x2b16   :  { %v4405_v0 = vmul.f32 %v5142_v53, %v4404_v29 }
0x2b17   :  { %v4426_v35 = vrot.slane %v4421_v22, 1  ;;  %v4430_v59 = vrot.slane %v4421_v22, 2 }
0x2b18   :  { %v4409_v31 = vsel %vm4408_vm11, %v5142_v53, %v4405_v0 }
0x2b19   :  { %v4412_v25 = vmul.f32 %v4409_v31, %v4361_v7  ;;  %v4427_v9 = vsel %vm6653_vm0, %v4425_v20, %v4426_v35 }
0x2b1b   :  { %v4417_v16 = vmul.f32 %v4974_v1, %v4412_v25 }
0x2b1d   :  { %v4422_v32 = vadd.f32 %v4975_v62, %v4417_v16 }
0x2b1f   :  { %v4431_v2 = vrot.slane %v4422_v32, 2 }
0x2b21   :  { %v4432_v13 = vsel %vm6654_vm3, %v4430_v59, %v4431_v2 }
0x2b22   :  { %v4438_v49 = vpack.c.bf16 %v4432_v13, %v4427_v9 }
0x2b24   :  { %4849 = vmatmul.msk.bf16.vlgmr.msrb.gmra.mxu3 %vm162_vm4, %v4438_v49 }
0x2ba7   :  { %v4465_v4 = vpop.f32.mrf.mxu3 }
0x2ba8   :  { %v4466_v15 = vadd.f32 %v4976_v51, %v4465_v4 }
0x2baa   :  { %4470 = vst [vmem:[%s6627_s3] sm:$0xff] %v4466_v15 }
0x2baf   :  { %v4467_v60 = vpop.f32.mrf.mxu3 }
0x2bb0   :  { %v4468_v45 = vadd.f32 %v4976_v51, %v4467_v60 }
0x2bb2   :  { %4471 = vst [vmem:[%s6627_s3 + $0x8] sm:$0xff] %v4468_v45 }
0x2bb3   :  { %4476 = vsyncpa [#allocation3], 1 }
0x2bb4   :  { %4477 = vsyncpa [#allocation5], 1 }

</bundles_post_ra>
